<compile_context>
chip_gen: v5e
topology: v5e:2x2
jax: 0.10.0
libtpu: 0.0.40
codegen_flags: <defaults>
</compile_context>

<pallas_src>
import functools
import numpy as np
import jax
import jax.numpy as jnp
from jax import lax
from jax.experimental import pallas as pl
from jax.experimental.pallas import tpu as pltpu


def _round_up(a, m):
    return ((a + m - 1) // m) * m


def _pick_tp(P, cap=2048):
    """Largest spatial (lane) tile dividing P; prefers multiples of 128."""
    if P <= cap:
        return P
    best = 0
    t = 128
    while t <= cap:
        if P % t == 0:
            best = t
        t += 128
    return best if best > 0 else P


# ----------------------------------------------------------------------------
# Kernel 1: ChannelGate statistics (avg / max over space) + shared MLP + sigmoid
#   grid = (B, P/TP), spatial axis is the (arbitrary) reduction axis.
# ----------------------------------------------------------------------------
def _cgate_stats_kernel(x_ref, s_ref, w1a_ref, w1b_ref, b1_ref, w2_ref, b2_ref,
                        scale_ref, sxs, sss, sxm, ssm, *, inv_p):
    p = pl.program_id(1)
    xv = x_ref[0]                                   # (C, TP)
    sv = s_ref[0]                                   # (C, TP)

    @pl.when(p == 0)
    def _():
        sxs[...] = jnp.zeros_like(sxs)
        sss[...] = jnp.zeros_like(sss)
        sxm[...] = jnp.full_like(sxm, -jnp.inf)
        ssm[...] = jnp.full_like(ssm, -jnp.inf)

    sxs[...] += jnp.sum(xv, axis=1, keepdims=True)            # (C, 1)
    sss[...] += jnp.sum(sv, axis=1, keepdims=True)
    sxm[...] = jnp.maximum(sxm[...], jnp.max(xv, axis=1, keepdims=True))
    ssm[...] = jnp.maximum(ssm[...], jnp.max(sv, axis=1, keepdims=True))

    @pl.when(p == pl.num_programs(1) - 1)
    def _():
        w1a = w1a_ref[...]                          # (hid, C)  (x half)
        w1b = w1b_ref[...]                          # (hid, C)  (skip half)
        b1 = b1_ref[...]                            # (hid, 1)
        w2 = w2_ref[...]                            # (2C, hid)
        b2 = b2_ref[...]                            # (2C, 1)

        def mlp(px, ps):                            # px, ps: (C, 1)
            h = (jnp.dot(w1a, px, preferred_element_type=jnp.float32)
                 + jnp.dot(w1b, ps, preferred_element_type=jnp.float32) + b1)
            h = jnp.maximum(h, 0.0)
            return jnp.dot(w2, h, preferred_element_type=jnp.float32) + b2

        att = (mlp(sxs[...] * inv_p, sss[...] * inv_p)
               + mlp(sxm[...], ssm[...]))           # (2C, 1)
        scale_ref[0] = jax.nn.sigmoid(att)


# ----------------------------------------------------------------------------
# Kernel 2: apply channel scale + ChannelPool (max / mean over channels)
# ----------------------------------------------------------------------------
def _cpool_kernel(x_ref, s_ref, scale_ref, cmax_ref, cmean_ref, *, C):
    xv = x_ref[0]                                   # (C, TP)
    sv = s_ref[0]
    sc = scale_ref[0]                               # (2C, 1)
    gx = xv * sc[:C]
    gs = sv * sc[C:]
    mx = jnp.maximum(jnp.max(gx, axis=0, keepdims=True),
                     jnp.max(gs, axis=0, keepdims=True))      # (1, TP)
    mn = (jnp.sum(gx, axis=0, keepdims=True)
          + jnp.sum(gs, axis=0, keepdims=True)) * (1.0 / (2 * C))
    cmax_ref[0] = mx
    cmean_ref[0] = mn


# ----------------------------------------------------------------------------
# Kernel 3: 3x3x3 conv, 2C -> 2C, padding 1, no bias  (stack_conv_norm_relu)
#   Taps folded into K: 9 matmuls with K = (W+2)*2C, only leading-dim slices.
# ----------------------------------------------------------------------------
def _conv3_kernel(x_ref, mb_ref, o_ref, *, D, H, W, C2):
    DH = D * H
    Wp = W + 2
    acc = jnp.zeros((DH, W * C2), jnp.float32)
    for kd in range(3):
        for kh in range(3):
            slab = x_ref[0, kd:kd + D, kh:kh + H, :]          # (D, H, Wp*C2)
            slab = slab.reshape(DH, Wp * C2)
            acc = acc + jnp.dot(slab, mb_ref[kd * 3 + kh],
                                preferred_element_type=jnp.float32)
    o_ref[0] = acc                                            # (DH, W*C2)


# ----------------------------------------------------------------------------
# Kernel 4: SpatialGate 7x7x7 conv (2 -> 1, padding 3, no bias) + BN + sigmoid
#   Channel & depth taps folded into K; lane-dense (LA>=128) accumulator.
# ----------------------------------------------------------------------------
def _spatial7_kernel(x_ref, w_ref, bn_ref, o_ref, *, D, Wp, Dp, LA):
    acc = jnp.zeros((D, LA), jnp.float32)
    for kh in range(7):
        for kw in range(7):
            off = kh * Wp + kw
            slab = x_ref[0, :, :, off:off + LA]               # (2, Dp, LA)
            slab = slab.reshape(2 * Dp, LA)
            acc = acc + jnp.dot(w_ref[kh * 7 + kw], slab,
                                preferred_element_type=jnp.float32)
    y = acc * bn_ref[0] + bn_ref[1]                 # folded inference BatchNorm
    o_ref[0] = jax.nn.sigmoid(y)


# ----------------------------------------------------------------------------
# Kernel 5: fused gates + grouped 1x1x1 conv
#   _stage1 = sigmoid(dw(x) + dw(skip)); x2 = stage0*scale*ssp;
#   temp = x1*x2*stage0; stage1 = grouped_conv(temp)+b; out = _stage1*stage1
# ----------------------------------------------------------------------------
def _fuse_kernel(x_ref, s_ref, x1_ref, scale_ref, ssp_ref,
                 wdw_ref, bdw_ref, wa_ref, wb_ref, bg_ref, o_ref, *, C):
    xv = x_ref[0]                                   # (C, TP)
    sv = s_ref[0]
    wdw = wdw_ref[...]                              # (C, 1)
    bdw = bdw_ref[...]
    st1 = jax.nn.sigmoid((xv + sv) * wdw + 2.0 * bdw)

    sc = scale_ref[0]                               # (2C, 1)
    ssp = ssp_ref[0]                                # (1, TP)
    x1 = x1_ref[0]                                  # (2C, TP)

    gx = xv * sc[:C]                                # channel-gated stage0 (x half)
    gs = sv * sc[C:]
    tx = x1[:C] * (gx * ssp) * xv                   # x1 * x2 * x3, x half
    ts = x1[C:] * (gs * ssp) * sv                   # x1 * x2 * x3, skip half

    stage1 = (jnp.dot(wa_ref[...], tx, preferred_element_type=jnp.float32)
              + jnp.dot(wb_ref[...], ts, preferred_element_type=jnp.float32)
              + bg_ref[...])                        # grouped 1x1 conv (2C->C)
    o_ref[0] = st1 * stage1


# ----------------------------------------------------------------------------
# Wrapper
# ----------------------------------------------------------------------------
def mutifuse_forward(params, x, skip):
    """x, skip: (B, C, D, H, W) float32 (PyTorch NCDHW convention)."""
    B, C, D, H, W = x.shape
    C2 = 2 * C
    P = D * H * W

    # channel-rows layout: free reshapes (no transposes) for x / skip / output
    x_cr = x.reshape(B, C, P)
    s_cr = skip.reshape(B, C, P)
    TP = _pick_tp(P)
    NPT = P // TP

    # ---------------- ChannelGate: pooled stats + MLP -> scale (B, 2C, 1) ----
    hid = params['w1'].shape[1]
    w1t = params['w1'].T                            # (hid, 2C)
    w1ta, w1tb = w1t[:, :C], w1t[:, C:]
    b1c = params['b1'].reshape(hid, 1)
    w2t = params['w2'].T                            # (2C, hid)
    b2c = params['b2'].reshape(C2, 1)

    scale_c = pl.pallas_call(
        functools.partial(_cgate_stats_kernel, inv_p=1.0 / P),
        grid=(B, NPT),
        in_specs=[
            pl.BlockSpec((1, C, TP), lambda b, p: (b, 0, p)),
            pl.BlockSpec((1, C, TP), lambda b, p: (b, 0, p)),
            pl.BlockSpec((hid, C), lambda b, p: (0, 0)),
            pl.BlockSpec((hid, C), lambda b, p: (0, 0)),
            pl.BlockSpec((hid, 1), lambda b, p: (0, 0)),
            pl.BlockSpec((C2, hid), lambda b, p: (0, 0)),
            pl.BlockSpec((C2, 1), lambda b, p: (0, 0)),
        ],
        out_specs=pl.BlockSpec((1, C2, 1), lambda b, p: (b, 0, 0)),
        out_shape=jax.ShapeDtypeStruct((B, C2, 1), jnp.float32),
        scratch_shapes=[pltpu.VMEM((C, 1), jnp.float32)] * 4,
        compiler_params=pltpu.CompilerParams(
            dimension_semantics=("parallel", "arbitrary")),
    )(x_cr, s_cr, w1ta, w1tb, b1c, w2t, b2c)

    # ---------------- ChannelPool of the gated tensor (max / mean over C) ----
    cmax, cmean = pl.pallas_call(
        functools.partial(_cpool_kernel, C=C),
        grid=(B, NPT),
        in_specs=[
            pl.BlockSpec((1, C, TP), lambda b, p: (b, 0, p)),
            pl.BlockSpec((1, C, TP), lambda b, p: (b, 0, p)),
            pl.BlockSpec((1, C2, 1), lambda b, p: (b, 0, 0)),
        ],
        out_specs=(pl.BlockSpec((1, 1, TP), lambda b, p: (b, 0, p)),
                   pl.BlockSpec((1, 1, TP), lambda b, p: (b, 0, p))),
        out_shape=(jax.ShapeDtypeStruct((B, 1, P), jnp.float32),
                   jax.ShapeDtypeStruct((B, 1, P), jnp.float32)),
        compiler_params=pltpu.CompilerParams(
            dimension_semantics=("parallel", "parallel")),
    )(x_cr, s_cr, scale_c)

    # ---------------- x1 = 3x3x3 conv (2C -> 2C, pad 1, bias=False) ----------
    x_cl = jnp.transpose(x, (0, 2, 3, 4, 1))
    s_cl = jnp.transpose(skip, (0, 2, 3, 4, 1))
    st0_cl = jnp.concatenate([x_cl, s_cl], axis=-1)           # (B, D, H, W, 2C)
    st0_pad = jnp.pad(st0_cl, ((0, 0), (1, 1), (1, 1), (1, 1), (0, 0)))
    Wp3 = W + 2
    xr = st0_pad.reshape(B, D + 2, H + 2, Wp3 * C2)

    # banded weights: taps (kw, ci) folded into K => (9, (W+2)*2C, W*2C)
    w_in_idx = jnp.arange(Wp3)[:, None]
    w_idx = jnp.arange(W)[None, :]
    kw = w_in_idx - w_idx
    valid3 = (kw >= 0) & (kw < 3)
    kw_c = jnp.clip(kw, 0, 2)
    w3_t = jnp.transpose(params['w3'], (2, 3, 4, 1, 0)).reshape(9, 3, C2, C2)
    g3 = w3_t[:, kw_c, :, :]                                  # (9, Wp3, W, ci, co)
    g3 = jnp.where(valid3[None, :, :, None, None], g3, 0.0)
    mband = jnp.transpose(g3, (0, 1, 3, 2, 4)).reshape(9, Wp3 * C2, W * C2)

    DH = D * H
    x1_raw = pl.pallas_call(
        functools.partial(_conv3_kernel, D=D, H=H, W=W, C2=C2),
        grid=(B,),
        in_specs=[pl.BlockSpec((1, D + 2, H + 2, Wp3 * C2),
                               lambda b: (b, 0, 0, 0)),
                  pl.BlockSpec((9, Wp3 * C2, W * C2), lambda b: (0, 0, 0))],
        out_specs=pl.BlockSpec((1, DH, W * C2), lambda b: (b, 0, 0)),
        out_shape=jax.ShapeDtypeStruct((B, DH, W * C2), jnp.float32),
        compiler_params=pltpu.CompilerParams(
            dimension_semantics=("parallel",)),
    )(xr, mband)
    # -> channel-rows layout (cheap XLA layout fixup)
    x1_cr = jnp.transpose(x1_raw.reshape(B, DH, W, C2),
                          (0, 3, 1, 2)).reshape(B, C2, P)

    # ---------------- SpatialGate: 7x7x7 conv (2->1) + BN + sigmoid ----------
    comp = jnp.concatenate([cmax, cmean], axis=1).reshape(B, 2, D, H, W)
    comp_pad = jnp.pad(comp, ((0, 0), (0, 0), (3, 3), (3, 3), (3, 3)))
    Dp, Hp, Wp = D + 6, H + 6, W + 6
    comp_flat = comp_pad.reshape(B, 2, Dp, Hp * Wp)
    LA = _round_up(H * Wp, 128)                     # lane-dense accumulator
    L = _round_up(LA + 6 * Wp + 6, 128)
    comp_flat = jnp.pad(comp_flat, ((0, 0), (0, 0), (0, 0), (0, L - Hp * Wp)))

    # banded depth weights: taps (c, kd) folded into K => (49, D, 2*Dp)
    d_idx = jnp.arange(D)[:, None]
    dp_idx = jnp.arange(Dp)[None, :]
    kd = dp_idx - d_idx
    valid7 = (kd >= 0) & (kd < 7)
    kd_c = jnp.clip(kd, 0, 6)
    w7r = params['w7'].reshape(2, 7, 49)                      # (c, kd, kh*7+kw)
    g7 = w7r[:, kd_c, :]                                      # (2, D, Dp, 49)
    g7 = jnp.where(valid7[None, :, :, None], g7, 0.0)
    wmat7 = jnp.transpose(g7, (3, 1, 0, 2)).reshape(49, D, 2 * Dp)

    eps = 1e-5
    bn_scale = params['bn_gamma'] / jnp.sqrt(params['bn_var'] + eps)
    bn_shift = params['bn_beta'] - params['bn_mean'] * bn_scale
    bn = jnp.stack([bn_scale, bn_shift]).astype(jnp.float32)  # (2,)

    ssp_pad = pl.pallas_call(
        functools.partial(_spatial7_kernel, D=D, Wp=Wp, Dp=Dp, LA=LA),
        grid=(B,),
        in_specs=[pl.BlockSpec((1, 2, Dp, L), lambda b: (b, 0, 0, 0)),
                  pl.BlockSpec((49, D, 2 * Dp), lambda b: (0, 0, 0)),
                  pl.BlockSpec(memory_space=pltpu.MemorySpace.SMEM)],
        out_specs=pl.BlockSpec((1, D, LA), lambda b: (b, 0, 0)),
        out_shape=jax.ShapeDtypeStruct((B, D, LA), jnp.float32),
        compiler_params=pltpu.CompilerParams(
            dimension_semantics=("parallel",)),
    )(comp_flat, wmat7, bn)
    # extract valid lanes (padded-width layout -> dense P) with cheap XLA glue
    ssp = ssp_pad[:, :, :H * Wp].reshape(B, D, H, Wp)[..., :W].reshape(B, 1, P)

    # ---------------- fused gates + grouped 1x1x1 conv (2C->C, groups=C) -----
    wsel = jnp.zeros((C, C2), jnp.float32)
    wsel = wsel.at[jnp.arange(C), 2 * jnp.arange(C)].set(params['w_g'][:, 0])
    wsel = wsel.at[jnp.arange(C), 2 * jnp.arange(C) + 1].set(params['w_g'][:, 1])
    wsel_a, wsel_b = wsel[:, :C], wsel[:, C:]
    wdw = params['w_dw'].reshape(C, 1)
    bdw = params['b_dw'].reshape(C, 1)
    bg = params['b_g'].reshape(C, 1)

    out_cr = pl.pallas_call(
        functools.partial(_fuse_kernel, C=C),
        grid=(B, NPT),
        in_specs=[
            pl.BlockSpec((1, C, TP), lambda b, p: (b, 0, p)),      # x
            pl.BlockSpec((1, C, TP), lambda b, p: (b, 0, p)),      # skip
            pl.BlockSpec((1, C2, TP), lambda b, p: (b, 0, p)),     # x1
            pl.BlockSpec((1, C2, 1), lambda b, p: (b, 0, 0)),      # channel scale
            pl.BlockSpec((1, 1, TP), lambda b, p: (b, 0, p)),      # spatial gate
            pl.BlockSpec((C, 1), lambda b, p: (0, 0)),             # w_dw
            pl.BlockSpec((C, 1), lambda b, p: (0, 0)),             # b_dw
            pl.BlockSpec((C, C), lambda b, p: (0, 0)),             # wsel (x half)
            pl.BlockSpec((C, C), lambda b, p: (0, 0)),             # wsel (skip half)
            pl.BlockSpec((C, 1), lambda b, p: (0, 0)),             # b_g
        ],
        out_specs=pl.BlockSpec((1, C, TP), lambda b, p: (b, 0, p)),
        out_shape=jax.ShapeDtypeStruct((B, C, P), jnp.float32),
        compiler_params=pltpu.CompilerParams(
            dimension_semantics=("parallel", "parallel")),
    )(x_cr, s_cr, x1_cr, scale_c, ssp, wdw, bdw, wsel_a, wsel_b, bg)

    return out_cr.reshape(B, C, D, H, W)


# ----------------------------------------------------------------------------
# Deterministic parameter init (shapes follow MutiFuse.__init__; in == out ch)
# ----------------------------------------------------------------------------
def init_params(key, C):
    C2 = 2 * C
    hid = C2 // 16
    assert hid >= 1, "gate_channels // 16 must be >= 1"
    ks = jax.random.split(key, 10)

    def nrm(k, shape, s):
        return (s * jax.random.normal(k, shape)).astype(jnp.float32)

    return dict(
        w_dw=nrm(ks[0], (C,), 0.5),                 # _conv1d depthwise weight
        b_dw=nrm(ks[1], (C,), 0.1),                 # _conv1d bias
        w3=nrm(ks[2], (C2, C2, 3, 3, 3), 1.0 / np.sqrt(C2 * 27)),  # 3x3x3 conv
        w1=nrm(ks[3], (C2, hid), 1.0 / np.sqrt(C2)),  # ChannelGate MLP (right-mult)
        b1=nrm(ks[4], (hid,), 0.1),
        w2=nrm(ks[5], (hid, C2), 1.0),
        b2=nrm(ks[6], (C2,), 0.1),
        w7=nrm(ks[7], (1, 2, 7, 7, 7), 1.0 / np.sqrt(2 * 343)),    # spatial conv
        w_g=nrm(ks[8], (C, 2), 0.5),                # grouped 1x1 conv (2C->C)
        b_g=nrm(ks[9], (C,), 0.1),
        bn_gamma=jnp.float32(1.05),                 # SpatialGate BN (inference)
        bn_beta=jnp.float32(0.02),
        bn_mean=jnp.float32(0.01),
        bn_var=jnp.float32(0.9),
    )


# ----------------------------------------------------------------------------
# Pure-JAX reference (same math, XLA conv ops) for a sanity check
# ----------------------------------------------------------------------------
def mutifuse_reference(params, x, skip):
    B, C, D, H, W = x.shape
    w_dw = params['w_dw'][None, :, None, None, None]
    b_dw = params['b_dw'][None, :, None, None, None]
    _stage1 = jax.nn.sigmoid((x * w_dw + b_dw) + (skip * w_dw + b_dw))
    stage0 = jnp.concatenate([x, skip], axis=1)

    dn = ('NCDHW', 'OIDHW', 'NCDHW')
    x1 = lax.conv_general_dilated(stage0, params['w3'], (1, 1, 1), [(1, 1)] * 3,
                                  dimension_numbers=dn,
                                  precision=lax.Precision.HIGHEST)
    avg_p = jnp.mean(stage0, axis=(2, 3, 4))
    max_p = jnp.max(stage0, axis=(2, 3, 4))

    def mlp(p):
        h = jnp.maximum(p @ params['w1'] + params['b1'], 0.0)
        return h @ params['w2'] + params['b2']

    scale_c = jax.nn.sigmoid(mlp(avg_p) + mlp(max_p))
    xg = stage0 * scale_c[:, :, None, None, None]
    comp = jnp.stack([jnp.max(xg, axis=1), jnp.mean(xg, axis=1)], axis=1)
    co = lax.conv_general_dilated(comp, params['w7'], (1, 1, 1), [(3, 3)] * 3,
                                  dimension_numbers=dn,
                                  precision=lax.Precision.HIGHEST)
    eps = 1e-5
    bn = (params['bn_gamma'] * (co - params['bn_mean'])
          / jnp.sqrt(params['bn_var'] + eps) + params['bn_beta'])
    x2 = xg * jax.nn.sigmoid(bn)
    temp = x1 * x2 * stage0
    tg = temp.reshape(B, C, 2, D, H, W)
    stage1 = (jnp.einsum('bcgdhw,cg->bcdhw', tg, params['w_g'])
              + params['b_g'][None, :, None, None, None])
    return _stage1 * stage1


if __name__ == "__main__":
    B, C, D, H, W = 2, 8, 4, 8, 8          # in_channels == out_channels == 8
    key = jax.random.PRNGKey(0)
    kx, ks, kp = jax.random.split(key, 3)
    x = jax.random.normal(kx, (B, C, D, H, W), jnp.float32)
    skip = jax.random.normal(ks, (B, C, D, H, W), jnp.float32)
    params = init_params(kp, C)

    fwd = jax.jit(mutifuse_forward)
    out = fwd(params, x, skip)
    out = jax.block_until_ready(out)

    ref = mutifuse_reference(params, x, skip)
    np.testing.assert_allclose(np.asarray(out), np.asarray(ref),
                               rtol=3e-2, atol=3e-2)
    print("KERNEL_OK")
</pallas_src>

<mosaic_0001>
module attributes {stable_mosaic.version = 11 : i64} {
  func.func @_cgate_stats_kernel(%arg0: i32, %arg1: i32, %arg2: memref<1x8x256xf32, #tpu.memory_space<vmem>>, %arg3: memref<1x8x256xf32, #tpu.memory_space<vmem>>, %arg4: memref<1x8xf32, #tpu.memory_space<vmem>>, %arg5: memref<1x8xf32, #tpu.memory_space<vmem>>, %arg6: memref<1x1xf32, #tpu.memory_space<vmem>>, %arg7: memref<16x1xf32, #tpu.memory_space<vmem>>, %arg8: memref<16x1xf32, #tpu.memory_space<vmem>>, %arg9: memref<1x16x1xf32, #tpu.memory_space<vmem>>, %arg10: memref<8x1xf32, #tpu.memory_space<vmem>>, %arg11: memref<8x1xf32, #tpu.memory_space<vmem>>, %arg12: memref<8x1xf32, #tpu.memory_space<vmem>>, %arg13: memref<8x1xf32, #tpu.memory_space<vmem>>) attributes {dimension_semantics = [#tpu.dimension_semantics<parallel>, #tpu.dimension_semantics<arbitrary>], iteration_bounds = array<i64: 2, 1>, scalar_prefetch = 0 : i64, scratch_operands = 4 : i64, tpu.core_type = #tpu.core_type<tc>, window_params = [{transform_indices = @transform_0, window_bounds = array<i64: 1, 8, 256>}, {transform_indices = @transform_1, window_bounds = array<i64: 1, 8, 256>}, {pipeline_mode = #tpu.pipeline_mode<synchronous>, transform_indices = @transform_2, window_bounds = array<i64: 1, 8>}, {pipeline_mode = #tpu.pipeline_mode<synchronous>, transform_indices = @transform_3, window_bounds = array<i64: 1, 8>}, {pipeline_mode = #tpu.pipeline_mode<synchronous>, transform_indices = @transform_4, window_bounds = array<i64: 1, 1>}, {pipeline_mode = #tpu.pipeline_mode<synchronous>, transform_indices = @transform_5, window_bounds = array<i64: 16, 1>}, {pipeline_mode = #tpu.pipeline_mode<synchronous>, transform_indices = @transform_6, window_bounds = array<i64: 16, 1>}, {transform_indices = @transform_7, window_bounds = array<i64: 1, 16, 1>}]} {
    %c0 = arith.constant 0 : index
    %c0_0 = arith.constant 0 : index
    %c0_1 = arith.constant 0 : index
    %0 = vector.load %arg2[%c0, %c0_0, %c0_1] : memref<1x8x256xf32, #tpu.memory_space<vmem>>, vector<1x8x256xf32>
    %1 = vector.shape_cast %0 : vector<1x8x256xf32> to vector<8x256xf32>
    %c0_2 = arith.constant 0 : index
    %c0_3 = arith.constant 0 : index
    %c0_4 = arith.constant 0 : index
    %2 = vector.load %arg3[%c0_2, %c0_3, %c0_4] : memref<1x8x256xf32, #tpu.memory_space<vmem>>, vector<1x8x256xf32>
    %3 = vector.shape_cast %2 : vector<1x8x256xf32> to vector<8x256xf32>
    %c0_i32 = arith.constant 0 : i32
    %4 = arith.cmpi eq, %arg1, %c0_i32 : i32
    %5 = arith.extui %4 : i1 to i32
    %c0_i32_5 = arith.constant 0 : i32
    %6 = arith.cmpi ne, %5, %c0_i32_5 : i32
    scf.if %6 {
      %cst_27 = arith.constant 0.000000e+00 : f32
      %30 = vector.broadcast %cst_27 : f32 to vector<8x1xf32>
      %c0_28 = arith.constant 0 : index
      %c0_29 = arith.constant 0 : index
      %31 = vector.load %arg10[%c0_28, %c0_29] : memref<8x1xf32, #tpu.memory_space<vmem>>, vector<8x1xf32>
      tpu.vector_store %arg10[%c0_28, %c0_29], %30 {strides = array<i32>} : memref<8x1xf32, #tpu.memory_space<vmem>>, vector<8x1xf32>,
      %cst_30 = arith.constant 0.000000e+00 : f32
      %32 = vector.broadcast %cst_30 : f32 to vector<8x1xf32>
      %c0_31 = arith.constant 0 : index
      %c0_32 = arith.constant 0 : index
      %33 = vector.load %arg11[%c0_31, %c0_32] : memref<8x1xf32, #tpu.memory_space<vmem>>, vector<8x1xf32>
      tpu.vector_store %arg11[%c0_31, %c0_32], %32 {strides = array<i32>} : memref<8x1xf32, #tpu.memory_space<vmem>>, vector<8x1xf32>,
      %cst_33 = arith.constant 0xFF800000 : f32
      %34 = vector.broadcast %cst_33 : f32 to vector<8x1xf32>
      %c0_34 = arith.constant 0 : index
      %c0_35 = arith.constant 0 : index
      %35 = vector.load %arg12[%c0_34, %c0_35] : memref<8x1xf32, #tpu.memory_space<vmem>>, vector<8x1xf32>
      tpu.vector_store %arg12[%c0_34, %c0_35], %34 {strides = array<i32>} : memref<8x1xf32, #tpu.memory_space<vmem>>, vector<8x1xf32>,
      %cst_36 = arith.constant 0xFF800000 : f32
      %36 = vector.broadcast %cst_36 : f32 to vector<8x1xf32>
      %c0_37 = arith.constant 0 : index
      %c0_38 = arith.constant 0 : index
      %37 = vector.load %arg13[%c0_37, %c0_38] : memref<8x1xf32, #tpu.memory_space<vmem>>, vector<8x1xf32>
      tpu.vector_store %arg13[%c0_37, %c0_38], %36 {strides = array<i32>} : memref<8x1xf32, #tpu.memory_space<vmem>>, vector<8x1xf32>,
    } else {
    }
    %c0_6 = arith.constant 0 : index
    %c0_7 = arith.constant 0 : index
    %7 = vector.load %arg10[%c0_6, %c0_7] : memref<8x1xf32, #tpu.memory_space<vmem>>, vector<8x1xf32>
    %cst = arith.constant dense<0.000000e+00> : vector<8xf32>
    %8 = vector.multi_reduction <add>, %1, %cst [1] : vector<8x256xf32> to vector<8xf32>
    %9 = vector.shape_cast %8 : vector<8xf32> to vector<8x1xf32>
    %10 = arith.addf %7, %9 : vector<8x1xf32>
    %c0_8 = arith.constant 0 : index
    %c0_9 = arith.constant 0 : index
    %11 = vector.load %arg10[%c0_8, %c0_9] : memref<8x1xf32, #tpu.memory_space<vmem>>, vector<8x1xf32>
    tpu.vector_store %arg10[%c0_8, %c0_9], %10 {strides = array<i32>} : memref<8x1xf32, #tpu.memory_space<vmem>>, vector<8x1xf32>,
    %c0_10 = arith.constant 0 : index
    %c0_11 = arith.constant 0 : index
    %12 = vector.load %arg11[%c0_10, %c0_11] : memref<8x1xf32, #tpu.memory_space<vmem>>, vector<8x1xf32>
    %cst_12 = arith.constant dense<0.000000e+00> : vector<8xf32>
    %13 = vector.multi_reduction <add>, %3, %cst_12 [1] : vector<8x256xf32> to vector<8xf32>
    %14 = vector.shape_cast %13 : vector<8xf32> to vector<8x1xf32>
    %15 = arith.addf %12, %14 : vector<8x1xf32>
    %c0_13 = arith.constant 0 : index
    %c0_14 = arith.constant 0 : index
    %16 = vector.load %arg11[%c0_13, %c0_14] : memref<8x1xf32, #tpu.memory_space<vmem>>, vector<8x1xf32>
    tpu.vector_store %arg11[%c0_13, %c0_14], %15 {strides = array<i32>} : memref<8x1xf32, #tpu.memory_space<vmem>>, vector<8x1xf32>,
    %c0_15 = arith.constant 0 : index
    %c0_16 = arith.constant 0 : index
    %17 = vector.load %arg12[%c0_15, %c0_16] : memref<8x1xf32, #tpu.memory_space<vmem>>, vector<8x1xf32>
    %cst_17 = arith.constant dense<0xFF800000> : vector<8xf32>
    %18 = vector.multi_reduction <maximumf>, %1, %cst_17 [1] : vector<8x256xf32> to vector<8xf32>
    %19 = vector.shape_cast %18 : vector<8xf32> to vector<8x1xf32>
    %20 = arith.maximumf %17, %19 : vector<8x1xf32>
    %c0_18 = arith.constant 0 : index
    %c0_19 = arith.constant 0 : index
    %21 = vector.load %arg12[%c0_18, %c0_19] : memref<8x1xf32, #tpu.memory_space<vmem>>, vector<8x1xf32>
    tpu.vector_store %arg12[%c0_18, %c0_19], %20 {strides = array<i32>} : memref<8x1xf32, #tpu.memory_space<vmem>>, vector<8x1xf32>,
    %c0_20 = arith.constant 0 : index
    %c0_21 = arith.constant 0 : index
    %22 = vector.load %arg13[%c0_20, %c0_21] : memref<8x1xf32, #tpu.memory_space<vmem>>, vector<8x1xf32>
    %cst_22 = arith.constant dense<0xFF800000> : vector<8xf32>
    %23 = vector.multi_reduction <maximumf>, %3, %cst_22 [1] : vector<8x256xf32> to vector<8xf32>
    %24 = vector.shape_cast %23 : vector<8xf32> to vector<8x1xf32>
    %25 = arith.maximumf %22, %24 : vector<8x1xf32>
    %c0_23 = arith.constant 0 : index
    %c0_24 = arith.constant 0 : index
    %26 = vector.load %arg13[%c0_23, %c0_24] : memref<8x1xf32, #tpu.memory_space<vmem>>, vector<8x1xf32>
    tpu.vector_store %arg13[%c0_23, %c0_24], %25 {strides = array<i32>} : memref<8x1xf32, #tpu.memory_space<vmem>>, vector<8x1xf32>,
    %c0_i32_25 = arith.constant 0 : i32
    %27 = arith.cmpi eq, %arg1, %c0_i32_25 : i32
    %28 = arith.extui %27 : i1 to i32
    %c0_i32_26 = arith.constant 0 : i32
    %29 = arith.cmpi ne, %28, %c0_i32_26 : i32
    scf.if %29 {
      %c0_27 = arith.constant 0 : index
      %c0_28 = arith.constant 0 : index
      %30 = vector.load %arg4[%c0_27, %c0_28] : memref<1x8xf32, #tpu.memory_space<vmem>>, vector<1x8xf32>
      %c0_29 = arith.constant 0 : index
      %c0_30 = arith.constant 0 : index
      %31 = vector.load %arg5[%c0_29, %c0_30] : memref<1x8xf32, #tpu.memory_space<vmem>>, vector<1x8xf32>
      %c0_31 = arith.constant 0 : index
      %c0_32 = arith.constant 0 : index
      %32 = vector.load %arg6[%c0_31, %c0_32] : memref<1x1xf32, #tpu.memory_space<vmem>>, vector<1x1xf32>
      %c0_33 = arith.constant 0 : index
      %c0_34 = arith.constant 0 : index
      %33 = vector.load %arg7[%c0_33, %c0_34] : memref<16x1xf32, #tpu.memory_space<vmem>>, vector<16x1xf32>
      %c0_35 = arith.constant 0 : index
      %c0_36 = arith.constant 0 : index
      %34 = vector.load %arg8[%c0_35, %c0_36] : memref<16x1xf32, #tpu.memory_space<vmem>>, vector<16x1xf32>
      %c0_37 = arith.constant 0 : index
      %c0_38 = arith.constant 0 : index
      %35 = vector.load %arg10[%c0_37, %c0_38] : memref<8x1xf32, #tpu.memory_space<vmem>>, vector<8x1xf32>
      %cst_39 = arith.constant 3.906250e-03 : f32
      %36 = vector.broadcast %cst_39 : f32 to vector<8x1xf32>
      %37 = arith.mulf %35, %36 : vector<8x1xf32>
      %c0_40 = arith.constant 0 : index
      %c0_41 = arith.constant 0 : index
      %38 = vector.load %arg11[%c0_40, %c0_41] : memref<8x1xf32, #tpu.memory_space<vmem>>, vector<8x1xf32>
      %cst_42 = arith.constant 3.906250e-03 : f32
      %39 = vector.broadcast %cst_42 : f32 to vector<8x1xf32>
      %40 = arith.mulf %38, %39 : vector<8x1xf32>
      %cst_43 = arith.constant dense<0.000000e+00> : vector<1x1xf32>
      %41 = tpu.matmul %30, %37, %cst_43 {dimension_numbers = #tpu.dot_dimension_numbers<[1], [0], [0], [1], [0, 0, 1, 1], [], []>} : vector<1x8xf32>, vector<8x1xf32>, vector<1x1xf32> -> vector<1x1xf32>
      %cst_44 = arith.constant dense<0.000000e+00> : vector<1x1xf32>
      %42 = tpu.matmul %31, %40, %cst_44 {dimension_numbers = #tpu.dot_dimension_numbers<[1], [0], [0], [1], [0, 0, 1, 1], [], []>} : vector<1x8xf32>, vector<8x1xf32>, vector<1x1xf32> -> vector<1x1xf32>
      %43 = arith.addf %41, %42 : vector<1x1xf32>
      %44 = arith.addf %43, %32 : vector<1x1xf32>
      %cst_45 = arith.constant 0.000000e+00 : f32
      %45 = vector.broadcast %cst_45 : f32 to vector<1x1xf32>
      %46 = arith.maximumf %44, %45 : vector<1x1xf32>
      %cst_46 = arith.constant dense<0.000000e+00> : vector<16x1xf32>
      %47 = tpu.matmul %33, %46, %cst_46 {dimension_numbers = #tpu.dot_dimension_numbers<[1], [0], [0], [1], [0, 0, 1, 1], [], []>} : vector<16x1xf32>, vector<1x1xf32>, vector<16x1xf32> -> vector<16x1xf32>
      %48 = arith.addf %47, %34 : vector<16x1xf32>
      %c0_47 = arith.constant 0 : index
      %c0_48 = arith.constant 0 : index
      %49 = vector.load %arg12[%c0_47, %c0_48] : memref<8x1xf32, #tpu.memory_space<vmem>>, vector<8x1xf32>
      %c0_49 = arith.constant 0 : index
      %c0_50 = arith.constant 0 : index
      %50 = vector.load %arg13[%c0_49, %c0_50] : memref<8x1xf32, #tpu.memory_space<vmem>>, vector<8x1xf32>
      %cst_51 = arith.constant dense<0.000000e+00> : vector<1x1xf32>
      %51 = tpu.matmul %30, %49, %cst_51 {dimension_numbers = #tpu.dot_dimension_numbers<[1], [0], [0], [1], [0, 0, 1, 1], [], []>} : vector<1x8xf32>, vector<8x1xf32>, vector<1x1xf32> -> vector<1x1xf32>
      %cst_52 = arith.constant dense<0.000000e+00> : vector<1x1xf32>
      %52 = tpu.matmul %31, %50, %cst_52 {dimension_numbers = #tpu.dot_dimension_numbers<[1], [0], [0], [1], [0, 0, 1, 1], [], []>} : vector<1x8xf32>, vector<8x1xf32>, vector<1x1xf32> -> vector<1x1xf32>
      %53 = arith.addf %51, %52 : vector<1x1xf32>
      %54 = arith.addf %53, %32 : vector<1x1xf32>
      %cst_53 = arith.constant 0.000000e+00 : f32
      %55 = vector.broadcast %cst_53 : f32 to vector<1x1xf32>
      %56 = arith.maximumf %54, %55 : vector<1x1xf32>
      %cst_54 = arith.constant dense<0.000000e+00> : vector<16x1xf32>
      %57 = tpu.matmul %33, %56, %cst_54 {dimension_numbers = #tpu.dot_dimension_numbers<[1], [0], [0], [1], [0, 0, 1, 1], [], []>} : vector<16x1xf32>, vector<1x1xf32>, vector<16x1xf32> -> vector<16x1xf32>
      %58 = arith.addf %57, %34 : vector<16x1xf32>
      %59 = arith.addf %48, %58 : vector<16x1xf32>
      %60 = arith.negf %59 : vector<16x1xf32>
      %61 = math.exp %60 : vector<16x1xf32>
      %cst_55 = arith.constant 1.000000e+00 : f32
      %62 = vector.broadcast %cst_55 : f32 to vector<16x1xf32>
      %63 = arith.addf %62, %61 : vector<16x1xf32>
      %64 = arith.divf %62, %63 : vector<16x1xf32>
      %c0_56 = arith.constant 0 : index
      %c0_57 = arith.constant 0 : index
      %c0_58 = arith.constant 0 : index
      %65 = vector.load %arg9[%c0_56, %c0_57, %c0_58] : memref<1x16x1xf32, #tpu.memory_space<vmem>>, vector<1x16x1xf32>
      %66 = vector.shape_cast %65 : vector<1x16x1xf32> to vector<16x1xf32>
      %67 = vector.shape_cast %64 : vector<16x1xf32> to vector<1x16x1xf32>
      tpu.vector_store %arg9[%c0_56, %c0_57, %c0_58], %67 {strides = array<i32>} : memref<1x16x1xf32, #tpu.memory_space<vmem>>, vector<1x16x1xf32>,
    } else {
    }
    return
  }
  func.func @transform_0(%arg0: i32, %arg1: i32) -> (i32, i32, i32) {
    %c0_i32 = arith.constant 0 : i32
    %c0_i32_0 = arith.constant 0 : i32
    return %arg0, %c0_i32, %arg1 : i32, i32, i32
  }
  func.func @transform_1(%arg0: i32, %arg1: i32) -> (i32, i32, i32) {
    %c0_i32 = arith.constant 0 : i32
    %c0_i32_0 = arith.constant 0 : i32
    return %arg0, %c0_i32, %arg1 : i32, i32, i32
  }
  func.func @transform_2(%arg0: i32, %arg1: i32) -> (i32, i32) {
    %c0_i32 = arith.constant 0 : i32
    %c0_i32_0 = arith.constant 0 : i32
    %c0_i32_1 = arith.constant 0 : i32
    return %c0_i32, %c0_i32_0 : i32, i32
  }
  func.func @transform_3(%arg0: i32, %arg1: i32) -> (i32, i32) {
    %c0_i32 = arith.constant 0 : i32
    %c0_i32_0 = arith.constant 0 : i32
    %c0_i32_1 = arith.constant 0 : i32
    return %c0_i32, %c0_i32_0 : i32, i32
  }
  func.func @transform_4(%arg0: i32, %arg1: i32) -> (i32, i32) {
    %c0_i32 = arith.constant 0 : i32
    %c0_i32_0 = arith.constant 0 : i32
    %c0_i32_1 = arith.constant 0 : i32
    return %c0_i32, %c0_i32_0 : i32, i32
  }
  func.func @transform_5(%arg0: i32, %arg1: i32) -> (i32, i32) {
    %c0_i32 = arith.constant 0 : i32
    %c0_i32_0 = arith.constant 0 : i32
    %c0_i32_1 = arith.constant 0 : i32
    return %c0_i32, %c0_i32_0 : i32, i32
  }
  func.func @transform_6(%arg0: i32, %arg1: i32) -> (i32, i32) {
    %c0_i32 = arith.constant 0 : i32
    %c0_i32_0 = arith.constant 0 : i32
    %c0_i32_1 = arith.constant 0 : i32
    return %c0_i32, %c0_i32_0 : i32, i32
  }
  func.func @transform_7(%arg0: i32, %arg1: i32) -> (i32, i32, i32) {
    %c0_i32 = arith.constant 0 : i32
    %c0_i32_0 = arith.constant 0 : i32
    %c0_i32_1 = arith.constant 0 : i32
    return %arg0, %c0_i32, %c0_i32_0 : i32, i32, i32
  }
}

module attributes {stable_mosaic.version = 11 : i64} {
  func.func @_cpool_kernel(%arg0: i32, %arg1: i32, %arg2: memref<1x8x256xf32, #tpu.memory_space<vmem>>, %arg3: memref<1x8x256xf32, #tpu.memory_space<vmem>>, %arg4: memref<1x16x1xf32, #tpu.memory_space<vmem>>, %arg5: memref<1x1x256xf32, #tpu.memory_space<vmem>>, %arg6: memref<1x1x256xf32, #tpu.memory_space<vmem>>) attributes {dimension_semantics = [#tpu.dimension_semantics<parallel>, #tpu.dimension_semantics<parallel>], iteration_bounds = array<i64: 2, 1>, scalar_prefetch = 0 : i64, scratch_operands = 0 : i64, tpu.core_type = #tpu.core_type<tc>, window_params = [{transform_indices = @transform_0, window_bounds = array<i64: 1, 8, 256>}, {transform_indices = @transform_1, window_bounds = array<i64: 1, 8, 256>}, {transform_indices = @transform_2, window_bounds = array<i64: 1, 16, 1>}, {transform_indices = @transform_3, window_bounds = array<i64: 1, 1, 256>}, {transform_indices = @transform_4, window_bounds = array<i64: 1, 1, 256>}]} {
    %c0 = arith.constant 0 : index
    %c0_0 = arith.constant 0 : index
    %c0_1 = arith.constant 0 : index
    %0 = vector.load %arg2[%c0, %c0_0, %c0_1] : memref<1x8x256xf32, #tpu.memory_space<vmem>>, vector<1x8x256xf32>
    %1 = vector.shape_cast %0 : vector<1x8x256xf32> to vector<8x256xf32>
    %c0_2 = arith.constant 0 : index
    %c0_3 = arith.constant 0 : index
    %c0_4 = arith.constant 0 : index
    %2 = vector.load %arg3[%c0_2, %c0_3, %c0_4] : memref<1x8x256xf32, #tpu.memory_space<vmem>>, vector<1x8x256xf32>
    %3 = vector.shape_cast %2 : vector<1x8x256xf32> to vector<8x256xf32>
    %c0_5 = arith.constant 0 : index
    %c0_6 = arith.constant 0 : index
    %c0_7 = arith.constant 0 : index
    %4 = vector.load %arg4[%c0_5, %c0_6, %c0_7] : memref<1x16x1xf32, #tpu.memory_space<vmem>>, vector<1x16x1xf32>
    %5 = vector.shape_cast %4 : vector<1x16x1xf32> to vector<16x1xf32>
    %6 = vector.extract_strided_slice %5 {offsets = [0, 0], sizes = [8, 1], strides = [1, 1]} : vector<16x1xf32> to vector<8x1xf32>
    %7 = vector.broadcast %6 : vector<8x1xf32> to vector<8x256xf32>
    %8 = arith.mulf %1, %7 : vector<8x256xf32>
    %9 = vector.extract_strided_slice %5 {offsets = [8, 0], sizes = [8, 1], strides = [1, 1]} : vector<16x1xf32> to vector<8x1xf32>
    %10 = vector.broadcast %9 : vector<8x1xf32> to vector<8x256xf32>
    %11 = arith.mulf %3, %10 : vector<8x256xf32>
    %cst = arith.constant dense<0xFF800000> : vector<256xf32>
    %12 = vector.multi_reduction <maximumf>, %8, %cst [0] : vector<8x256xf32> to vector<256xf32>
    %13 = vector.shape_cast %12 : vector<256xf32> to vector<1x256xf32>
    %cst_8 = arith.constant dense<0xFF800000> : vector<256xf32>
    %14 = vector.multi_reduction <maximumf>, %11, %cst_8 [0] : vector<8x256xf32> to vector<256xf32>
    %15 = vector.shape_cast %14 : vector<256xf32> to vector<1x256xf32>
    %16 = arith.maximumf %13, %15 : vector<1x256xf32>
    %cst_9 = arith.constant dense<0.000000e+00> : vector<256xf32>
    %17 = vector.multi_reduction <add>, %8, %cst_9 [0] : vector<8x256xf32> to vector<256xf32>
    %18 = vector.shape_cast %17 : vector<256xf32> to vector<1x256xf32>
    %cst_10 = arith.constant dense<0.000000e+00> : vector<256xf32>
    %19 = vector.multi_reduction <add>, %11, %cst_10 [0] : vector<8x256xf32> to vector<256xf32>
    %20 = vector.shape_cast %19 : vector<256xf32> to vector<1x256xf32>
    %21 = arith.addf %18, %20 : vector<1x256xf32>
    %cst_11 = arith.constant 6.250000e-02 : f32
    %22 = vector.broadcast %cst_11 : f32 to vector<1x256xf32>
    %23 = arith.mulf %21, %22 : vector<1x256xf32>
    %c0_12 = arith.constant 0 : index
    %c0_13 = arith.constant 0 : index
    %c0_14 = arith.constant 0 : index
    %24 = vector.load %arg5[%c0_12, %c0_13, %c0_14] : memref<1x1x256xf32, #tpu.memory_space<vmem>>, vector<1x1x256xf32>
    %25 = vector.shape_cast %24 : vector<1x1x256xf32> to vector<1x256xf32>
    %26 = vector.shape_cast %16 : vector<1x256xf32> to vector<1x1x256xf32>
    tpu.vector_store %arg5[%c0_12, %c0_13, %c0_14], %26 {strides = array<i32>} : memref<1x1x256xf32, #tpu.memory_space<vmem>>, vector<1x1x256xf32>,
    %c0_15 = arith.constant 0 : index
    %c0_16 = arith.constant 0 : index
    %c0_17 = arith.constant 0 : index
    %27 = vector.load %arg6[%c0_15, %c0_16, %c0_17] : memref<1x1x256xf32, #tpu.memory_space<vmem>>, vector<1x1x256xf32>
    %28 = vector.shape_cast %27 : vector<1x1x256xf32> to vector<1x256xf32>
    %29 = vector.shape_cast %23 : vector<1x256xf32> to vector<1x1x256xf32>
    tpu.vector_store %arg6[%c0_15, %c0_16, %c0_17], %29 {strides = array<i32>} : memref<1x1x256xf32, #tpu.memory_space<vmem>>, vector<1x1x256xf32>,
    return
  }
  func.func @transform_0(%arg0: i32, %arg1: i32) -> (i32, i32, i32) {
    %c0_i32 = arith.constant 0 : i32
    %c0_i32_0 = arith.constant 0 : i32
    return %arg0, %c0_i32, %arg1 : i32, i32, i32
  }
  func.func @transform_1(%arg0: i32, %arg1: i32) -> (i32, i32, i32) {
    %c0_i32 = arith.constant 0 : i32
    %c0_i32_0 = arith.constant 0 : i32
    return %arg0, %c0_i32, %arg1 : i32, i32, i32
  }
  func.func @transform_2(%arg0: i32, %arg1: i32) -> (i32, i32, i32) {
    %c0_i32 = arith.constant 0 : i32
    %c0_i32_0 = arith.constant 0 : i32
    %c0_i32_1 = arith.constant 0 : i32
    return %arg0, %c0_i32, %c0_i32_0 : i32, i32, i32
  }
  func.func @transform_3(%arg0: i32, %arg1: i32) -> (i32, i32, i32) {
    %c0_i32 = arith.constant 0 : i32
    %c0_i32_0 = arith.constant 0 : i32
    return %arg0, %c0_i32, %arg1 : i32, i32, i32
  }
  func.func @transform_4(%arg0: i32, %arg1: i32) -> (i32, i32, i32) {
    %c0_i32 = arith.constant 0 : i32
    %c0_i32_0 = arith.constant 0 : i32
    return %arg0, %c0_i32, %arg1 : i32, i32, i32
  }
}

module attributes {stable_mosaic.version = 11 : i64} {
  func.func @_spatial7_kernel(%arg0: i32, %arg1: memref<1x2x10x256xf32, #tpu.memory_space<vmem>>, %arg2: memref<49x4x20xf32, #tpu.memory_space<vmem>>, %arg3: memref<2xf32, #tpu.memory_space<smem>>, %arg4: memref<1x4x128xf32, #tpu.memory_space<vmem>>) attributes {dimension_semantics = [#tpu.dimension_semantics<parallel>], iteration_bounds = array<i64: 2>, scalar_prefetch = 0 : i64, scratch_operands = 0 : i64, tpu.core_type = #tpu.core_type<tc>, window_params = [{transform_indices = @transform_0, window_bounds = array<i64: 1, 2, 10, 256>}, {pipeline_mode = #tpu.pipeline_mode<synchronous>, transform_indices = @transform_1, window_bounds = array<i64: 49, 4, 20>}, {transform_indices = @transform_2, window_bounds = array<i64: 2>}, {transform_indices = @transform_3, window_bounds = array<i64: 1, 4, 128>}]} {
    %cst = arith.constant 0.000000e+00 : f32
    %0 = vector.broadcast %cst : f32 to vector<4x128xf32>
    %c0 = arith.constant 0 : index
    %c0_0 = arith.constant 0 : index
    %c0_1 = arith.constant 0 : index
    %c0_2 = arith.constant 0 : index
    %1 = vector.load %arg1[%c0, %c0_0, %c0_1, %c0_2] : memref<1x2x10x256xf32, #tpu.memory_space<vmem>>, vector<1x2x10x128xf32>
    %2 = vector.shape_cast %1 : vector<1x2x10x128xf32> to vector<2x10x128xf32>
    %3 = vector.shape_cast %2 : vector<2x10x128xf32> to vector<20x128xf32>
    %c0_3 = arith.constant 0 : index
    %c0_4 = arith.constant 0 : index
    %c0_5 = arith.constant 0 : index
    %4 = vector.load %arg2[%c0_3, %c0_4, %c0_5] : memref<49x4x20xf32, #tpu.memory_space<vmem>>, vector<1x4x20xf32>
    %5 = vector.shape_cast %4 : vector<1x4x20xf32> to vector<4x20xf32>
    %cst_6 = arith.constant dense<0.000000e+00> : vector<4x128xf32>
    %6 = tpu.matmul %5, %3, %cst_6 {dimension_numbers = #tpu.dot_dimension_numbers<[1], [0], [0], [1], [0, 0, 1, 1], [], []>} : vector<4x20xf32>, vector<20x128xf32>, vector<4x128xf32> -> vector<4x128xf32>
    %7 = arith.addf %0, %6 : vector<4x128xf32>
    %c0_7 = arith.constant 0 : index
    %c0_8 = arith.constant 0 : index
    %c0_9 = arith.constant 0 : index
    %c1 = arith.constant 1 : index
    %8 = vector.load %arg1[%c0_7, %c0_8, %c0_9, %c1] : memref<1x2x10x256xf32, #tpu.memory_space<vmem>>, vector<1x2x10x128xf32>
    %9 = vector.shape_cast %8 : vector<1x2x10x128xf32> to vector<2x10x128xf32>
    %10 = vector.shape_cast %9 : vector<2x10x128xf32> to vector<20x128xf32>
    %c1_10 = arith.constant 1 : index
    %c0_11 = arith.constant 0 : index
    %c0_12 = arith.constant 0 : index
    %11 = vector.load %arg2[%c1_10, %c0_11, %c0_12] : memref<49x4x20xf32, #tpu.memory_space<vmem>>, vector<1x4x20xf32>
    %12 = vector.shape_cast %11 : vector<1x4x20xf32> to vector<4x20xf32>
    %cst_13 = arith.constant dense<0.000000e+00> : vector<4x128xf32>
    %13 = tpu.matmul %12, %10, %cst_13 {dimension_numbers = #tpu.dot_dimension_numbers<[1], [0], [0], [1], [0, 0, 1, 1], [], []>} : vector<4x20xf32>, vector<20x128xf32>, vector<4x128xf32> -> vector<4x128xf32>
    %14 = arith.addf %7, %13 : vector<4x128xf32>
    %c0_14 = arith.constant 0 : index
    %c0_15 = arith.constant 0 : index
    %c0_16 = arith.constant 0 : index
    %c2 = arith.constant 2 : index
    %15 = vector.load %arg1[%c0_14, %c0_15, %c0_16, %c2] : memref<1x2x10x256xf32, #tpu.memory_space<vmem>>, vector<1x2x10x128xf32>
    %16 = vector.shape_cast %15 : vector<1x2x10x128xf32> to vector<2x10x128xf32>
    %17 = vector.shape_cast %16 : vector<2x10x128xf32> to vector<20x128xf32>
    %c2_17 = arith.constant 2 : index
    %c0_18 = arith.constant 0 : index
    %c0_19 = arith.constant 0 : index
    %18 = vector.load %arg2[%c2_17, %c0_18, %c0_19] : memref<49x4x20xf32, #tpu.memory_space<vmem>>, vector<1x4x20xf32>
    %19 = vector.shape_cast %18 : vector<1x4x20xf32> to vector<4x20xf32>
    %cst_20 = arith.constant dense<0.000000e+00> : vector<4x128xf32>
    %20 = tpu.matmul %19, %17, %cst_20 {dimension_numbers = #tpu.dot_dimension_numbers<[1], [0], [0], [1], [0, 0, 1, 1], [], []>} : vector<4x20xf32>, vector<20x128xf32>, vector<4x128xf32> -> vector<4x128xf32>
    %21 = arith.addf %14, %20 : vector<4x128xf32>
    %c0_21 = arith.constant 0 : index
    %c0_22 = arith.constant 0 : index
    %c0_23 = arith.constant 0 : index
    %c3 = arith.constant 3 : index
    %22 = vector.load %arg1[%c0_21, %c0_22, %c0_23, %c3] : memref<1x2x10x256xf32, #tpu.memory_space<vmem>>, vector<1x2x10x128xf32>
    %23 = vector.shape_cast %22 : vector<1x2x10x128xf32> to vector<2x10x128xf32>
    %24 = vector.shape_cast %23 : vector<2x10x128xf32> to vector<20x128xf32>
    %c3_24 = arith.constant 3 : index
    %c0_25 = arith.constant 0 : index
    %c0_26 = arith.constant 0 : index
    %25 = vector.load %arg2[%c3_24, %c0_25, %c0_26] : memref<49x4x20xf32, #tpu.memory_space<vmem>>, vector<1x4x20xf32>
    %26 = vector.shape_cast %25 : vector<1x4x20xf32> to vector<4x20xf32>
    %cst_27 = arith.constant dense<0.000000e+00> : vector<4x128xf32>
    %27 = tpu.matmul %26, %24, %cst_27 {dimension_numbers = #tpu.dot_dimension_numbers<[1], [0], [0], [1], [0, 0, 1, 1], [], []>} : vector<4x20xf32>, vector<20x128xf32>, vector<4x128xf32> -> vector<4x128xf32>
    %28 = arith.addf %21, %27 : vector<4x128xf32>
    %c0_28 = arith.constant 0 : index
    %c0_29 = arith.constant 0 : index
    %c0_30 = arith.constant 0 : index
    %c4 = arith.constant 4 : index
    %29 = vector.load %arg1[%c0_28, %c0_29, %c0_30, %c4] : memref<1x2x10x256xf32, #tpu.memory_space<vmem>>, vector<1x2x10x128xf32>
    %30 = vector.shape_cast %29 : vector<1x2x10x128xf32> to vector<2x10x128xf32>
    %31 = vector.shape_cast %30 : vector<2x10x128xf32> to vector<20x128xf32>
    %c4_31 = arith.constant 4 : index
    %c0_32 = arith.constant 0 : index
    %c0_33 = arith.constant 0 : index
    %32 = vector.load %arg2[%c4_31, %c0_32, %c0_33] : memref<49x4x20xf32, #tpu.memory_space<vmem>>, vector<1x4x20xf32>
    %33 = vector.shape_cast %32 : vector<1x4x20xf32> to vector<4x20xf32>
    %cst_34 = arith.constant dense<0.000000e+00> : vector<4x128xf32>
    %34 = tpu.matmul %33, %31, %cst_34 {dimension_numbers = #tpu.dot_dimension_numbers<[1], [0], [0], [1], [0, 0, 1, 1], [], []>} : vector<4x20xf32>, vector<20x128xf32>, vector<4x128xf32> -> vector<4x128xf32>
    %35 = arith.addf %28, %34 : vector<4x128xf32>
    %c0_35 = arith.constant 0 : index
    %c0_36 = arith.constant 0 : index
    %c0_37 = arith.constant 0 : index
    %c5 = arith.constant 5 : index
    %36 = vector.load %arg1[%c0_35, %c0_36, %c0_37, %c5] : memref<1x2x10x256xf32, #tpu.memory_space<vmem>>, vector<1x2x10x128xf32>
    %37 = vector.shape_cast %36 : vector<1x2x10x128xf32> to vector<2x10x128xf32>
    %38 = vector.shape_cast %37 : vector<2x10x128xf32> to vector<20x128xf32>
    %c5_38 = arith.constant 5 : index
    %c0_39 = arith.constant 0 : index
    %c0_40 = arith.constant 0 : index
    %39 = vector.load %arg2[%c5_38, %c0_39, %c0_40] : memref<49x4x20xf32, #tpu.memory_space<vmem>>, vector<1x4x20xf32>
    %40 = vector.shape_cast %39 : vector<1x4x20xf32> to vector<4x20xf32>
    %cst_41 = arith.constant dense<0.000000e+00> : vector<4x128xf32>
    %41 = tpu.matmul %40, %38, %cst_41 {dimension_numbers = #tpu.dot_dimension_numbers<[1], [0], [0], [1], [0, 0, 1, 1], [], []>} : vector<4x20xf32>, vector<20x128xf32>, vector<4x128xf32> -> vector<4x128xf32>
    %42 = arith.addf %35, %41 : vector<4x128xf32>
    %c0_42 = arith.constant 0 : index
    %c0_43 = arith.constant 0 : index
    %c0_44 = arith.constant 0 : index
    %c6 = arith.constant 6 : index
    %43 = vector.load %arg1[%c0_42, %c0_43, %c0_44, %c6] : memref<1x2x10x256xf32, #tpu.memory_space<vmem>>, vector<1x2x10x128xf32>
    %44 = vector.shape_cast %43 : vector<1x2x10x128xf32> to vector<2x10x128xf32>
    %45 = vector.shape_cast %44 : vector<2x10x128xf32> to vector<20x128xf32>
    %c6_45 = arith.constant 6 : index
    %c0_46 = arith.constant 0 : index
    %c0_47 = arith.constant 0 : index
    %46 = vector.load %arg2[%c6_45, %c0_46, %c0_47] : memref<49x4x20xf32, #tpu.memory_space<vmem>>, vector<1x4x20xf32>
    %47 = vector.shape_cast %46 : vector<1x4x20xf32> to vector<4x20xf32>
    %cst_48 = arith.constant dense<0.000000e+00> : vector<4x128xf32>
    %48 = tpu.matmul %47, %45, %cst_48 {dimension_numbers = #tpu.dot_dimension_numbers<[1], [0], [0], [1], [0, 0, 1, 1], [], []>} : vector<4x20xf32>, vector<20x128xf32>, vector<4x128xf32> -> vector<4x128xf32>
    %49 = arith.addf %42, %48 : vector<4x128xf32>
    %c0_49 = arith.constant 0 : index
    %c0_50 = arith.constant 0 : index
    %c0_51 = arith.constant 0 : index
    %c14 = arith.constant 14 : index
    %50 = vector.load %arg1[%c0_49, %c0_50, %c0_51, %c14] : memref<1x2x10x256xf32, #tpu.memory_space<vmem>>, vector<1x2x10x128xf32>
    %51 = vector.shape_cast %50 : vector<1x2x10x128xf32> to vector<2x10x128xf32>
    %52 = vector.shape_cast %51 : vector<2x10x128xf32> to vector<20x128xf32>
    %c7 = arith.constant 7 : index
    %c0_52 = arith.constant 0 : index
    %c0_53 = arith.constant 0 : index
    %53 = vector.load %arg2[%c7, %c0_52, %c0_53] : memref<49x4x20xf32, #tpu.memory_space<vmem>>, vector<1x4x20xf32>
    %54 = vector.shape_cast %53 : vector<1x4x20xf32> to vector<4x20xf32>
    %cst_54 = arith.constant dense<0.000000e+00> : vector<4x128xf32>
    %55 = tpu.matmul %54, %52, %cst_54 {dimension_numbers = #tpu.dot_dimension_numbers<[1], [0], [0], [1], [0, 0, 1, 1], [], []>} : vector<4x20xf32>, vector<20x128xf32>, vector<4x128xf32> -> vector<4x128xf32>
    %56 = arith.addf %49, %55 : vector<4x128xf32>
    %c0_55 = arith.constant 0 : index
    %c0_56 = arith.constant 0 : index
    %c0_57 = arith.constant 0 : index
    %c15 = arith.constant 15 : index
    %57 = vector.load %arg1[%c0_55, %c0_56, %c0_57, %c15] : memref<1x2x10x256xf32, #tpu.memory_space<vmem>>, vector<1x2x10x128xf32>
    %58 = vector.shape_cast %57 : vector<1x2x10x128xf32> to vector<2x10x128xf32>
    %59 = vector.shape_cast %58 : vector<2x10x128xf32> to vector<20x128xf32>
    %c8 = arith.constant 8 : index
    %c0_58 = arith.constant 0 : index
    %c0_59 = arith.constant 0 : index
    %60 = vector.load %arg2[%c8, %c0_58, %c0_59] : memref<49x4x20xf32, #tpu.memory_space<vmem>>, vector<1x4x20xf32>
    %61 = vector.shape_cast %60 : vector<1x4x20xf32> to vector<4x20xf32>
    %cst_60 = arith.constant dense<0.000000e+00> : vector<4x128xf32>
    %62 = tpu.matmul %61, %59, %cst_60 {dimension_numbers = #tpu.dot_dimension_numbers<[1], [0], [0], [1], [0, 0, 1, 1], [], []>} : vector<4x20xf32>, vector<20x128xf32>, vector<4x128xf32> -> vector<4x128xf32>
    %63 = arith.addf %56, %62 : vector<4x128xf32>
    %c0_61 = arith.constant 0 : index
    %c0_62 = arith.constant 0 : index
    %c0_63 = arith.constant 0 : index
    %c16 = arith.constant 16 : index
    %64 = vector.load %arg1[%c0_61, %c0_62, %c0_63, %c16] : memref<1x2x10x256xf32, #tpu.memory_space<vmem>>, vector<1x2x10x128xf32>
    %65 = vector.shape_cast %64 : vector<1x2x10x128xf32> to vector<2x10x128xf32>
    %66 = vector.shape_cast %65 : vector<2x10x128xf32> to vector<20x128xf32>
    %c9 = arith.constant 9 : index
    %c0_64 = arith.constant 0 : index
    %c0_65 = arith.constant 0 : index
    %67 = vector.load %arg2[%c9, %c0_64, %c0_65] : memref<49x4x20xf32, #tpu.memory_space<vmem>>, vector<1x4x20xf32>
    %68 = vector.shape_cast %67 : vector<1x4x20xf32> to vector<4x20xf32>
    %cst_66 = arith.constant dense<0.000000e+00> : vector<4x128xf32>
    %69 = tpu.matmul %68, %66, %cst_66 {dimension_numbers = #tpu.dot_dimension_numbers<[1], [0], [0], [1], [0, 0, 1, 1], [], []>} : vector<4x20xf32>, vector<20x128xf32>, vector<4x128xf32> -> vector<4x128xf32>
    %70 = arith.addf %63, %69 : vector<4x128xf32>
    %c0_67 = arith.constant 0 : index
    %c0_68 = arith.constant 0 : index
    %c0_69 = arith.constant 0 : index
    %c17 = arith.constant 17 : index
    %71 = vector.load %arg1[%c0_67, %c0_68, %c0_69, %c17] : memref<1x2x10x256xf32, #tpu.memory_space<vmem>>, vector<1x2x10x128xf32>
    %72 = vector.shape_cast %71 : vector<1x2x10x128xf32> to vector<2x10x128xf32>
    %73 = vector.shape_cast %72 : vector<2x10x128xf32> to vector<20x128xf32>
    %c10 = arith.constant 10 : index
    %c0_70 = arith.constant 0 : index
    %c0_71 = arith.constant 0 : index
    %74 = vector.load %arg2[%c10, %c0_70, %c0_71] : memref<49x4x20xf32, #tpu.memory_space<vmem>>, vector<1x4x20xf32>
    %75 = vector.shape_cast %74 : vector<1x4x20xf32> to vector<4x20xf32>
    %cst_72 = arith.constant dense<0.000000e+00> : vector<4x128xf32>
    %76 = tpu.matmul %75, %73, %cst_72 {dimension_numbers = #tpu.dot_dimension_numbers<[1], [0], [0], [1], [0, 0, 1, 1], [], []>} : vector<4x20xf32>, vector<20x128xf32>, vector<4x128xf32> -> vector<4x128xf32>
    %77 = arith.addf %70, %76 : vector<4x128xf32>
    %c0_73 = arith.constant 0 : index
    %c0_74 = arith.constant 0 : index
    %c0_75 = arith.constant 0 : index
    %c18 = arith.constant 18 : index
    %78 = vector.load %arg1[%c0_73, %c0_74, %c0_75, %c18] : memref<1x2x10x256xf32, #tpu.memory_space<vmem>>, vector<1x2x10x128xf32>
    %79 = vector.shape_cast %78 : vector<1x2x10x128xf32> to vector<2x10x128xf32>
    %80 = vector.shape_cast %79 : vector<2x10x128xf32> to vector<20x128xf32>
    %c11 = arith.constant 11 : index
    %c0_76 = arith.constant 0 : index
    %c0_77 = arith.constant 0 : index
    %81 = vector.load %arg2[%c11, %c0_76, %c0_77] : memref<49x4x20xf32, #tpu.memory_space<vmem>>, vector<1x4x20xf32>
    %82 = vector.shape_cast %81 : vector<1x4x20xf32> to vector<4x20xf32>
    %cst_78 = arith.constant dense<0.000000e+00> : vector<4x128xf32>
    %83 = tpu.matmul %82, %80, %cst_78 {dimension_numbers = #tpu.dot_dimension_numbers<[1], [0], [0], [1], [0, 0, 1, 1], [], []>} : vector<4x20xf32>, vector<20x128xf32>, vector<4x128xf32> -> vector<4x128xf32>
    %84 = arith.addf %77, %83 : vector<4x128xf32>
    %c0_79 = arith.constant 0 : index
    %c0_80 = arith.constant 0 : index
    %c0_81 = arith.constant 0 : index
    %c19 = arith.constant 19 : index
    %85 = vector.load %arg1[%c0_79, %c0_80, %c0_81, %c19] : memref<1x2x10x256xf32, #tpu.memory_space<vmem>>, vector<1x2x10x128xf32>
    %86 = vector.shape_cast %85 : vector<1x2x10x128xf32> to vector<2x10x128xf32>
    %87 = vector.shape_cast %86 : vector<2x10x128xf32> to vector<20x128xf32>
    %c12 = arith.constant 12 : index
    %c0_82 = arith.constant 0 : index
    %c0_83 = arith.constant 0 : index
    %88 = vector.load %arg2[%c12, %c0_82, %c0_83] : memref<49x4x20xf32, #tpu.memory_space<vmem>>, vector<1x4x20xf32>
    %89 = vector.shape_cast %88 : vector<1x4x20xf32> to vector<4x20xf32>
    %cst_84 = arith.constant dense<0.000000e+00> : vector<4x128xf32>
    %90 = tpu.matmul %89, %87, %cst_84 {dimension_numbers = #tpu.dot_dimension_numbers<[1], [0], [0], [1], [0, 0, 1, 1], [], []>} : vector<4x20xf32>, vector<20x128xf32>, vector<4x128xf32> -> vector<4x128xf32>
    %91 = arith.addf %84, %90 : vector<4x128xf32>
    %c0_85 = arith.constant 0 : index
    %c0_86 = arith.constant 0 : index
    %c0_87 = arith.constant 0 : index
    %c20 = arith.constant 20 : index
    %92 = vector.load %arg1[%c0_85, %c0_86, %c0_87, %c20] : memref<1x2x10x256xf32, #tpu.memory_space<vmem>>, vector<1x2x10x128xf32>
    %93 = vector.shape_cast %92 : vector<1x2x10x128xf32> to vector<2x10x128xf32>
    %94 = vector.shape_cast %93 : vector<2x10x128xf32> to vector<20x128xf32>
    %c13 = arith.constant 13 : index
    %c0_88 = arith.constant 0 : index
    %c0_89 = arith.constant 0 : index
    %95 = vector.load %arg2[%c13, %c0_88, %c0_89] : memref<49x4x20xf32, #tpu.memory_space<vmem>>, vector<1x4x20xf32>
    %96 = vector.shape_cast %95 : vector<1x4x20xf32> to vector<4x20xf32>
    %cst_90 = arith.constant dense<0.000000e+00> : vector<4x128xf32>
    %97 = tpu.matmul %96, %94, %cst_90 {dimension_numbers = #tpu.dot_dimension_numbers<[1], [0], [0], [1], [0, 0, 1, 1], [], []>} : vector<4x20xf32>, vector<20x128xf32>, vector<4x128xf32> -> vector<4x128xf32>
    %98 = arith.addf %91, %97 : vector<4x128xf32>
    %c0_91 = arith.constant 0 : index
    %c0_92 = arith.constant 0 : index
    %c0_93 = arith.constant 0 : index
    %c28 = arith.constant 28 : index
    %99 = vector.load %arg1[%c0_91, %c0_92, %c0_93, %c28] : memref<1x2x10x256xf32, #tpu.memory_space<vmem>>, vector<1x2x10x128xf32>
    %100 = vector.shape_cast %99 : vector<1x2x10x128xf32> to vector<2x10x128xf32>
    %101 = vector.shape_cast %100 : vector<2x10x128xf32> to vector<20x128xf32>
    %c14_94 = arith.constant 14 : index
    %c0_95 = arith.constant 0 : index
    %c0_96 = arith.constant 0 : index
    %102 = vector.load %arg2[%c14_94, %c0_95, %c0_96] : memref<49x4x20xf32, #tpu.memory_space<vmem>>, vector<1x4x20xf32>
    %103 = vector.shape_cast %102 : vector<1x4x20xf32> to vector<4x20xf32>
    %cst_97 = arith.constant dense<0.000000e+00> : vector<4x128xf32>
    %104 = tpu.matmul %103, %101, %cst_97 {dimension_numbers = #tpu.dot_dimension_numbers<[1], [0], [0], [1], [0, 0, 1, 1], [], []>} : vector<4x20xf32>, vector<20x128xf32>, vector<4x128xf32> -> vector<4x128xf32>
    %105 = arith.addf %98, %104 : vector<4x128xf32>
    %c0_98 = arith.constant 0 : index
    %c0_99 = arith.constant 0 : index
    %c0_100 = arith.constant 0 : index
    %c29 = arith.constant 29 : index
    %106 = vector.load %arg1[%c0_98, %c0_99, %c0_100, %c29] : memref<1x2x10x256xf32, #tpu.memory_space<vmem>>, vector<1x2x10x128xf32>
    %107 = vector.shape_cast %106 : vector<1x2x10x128xf32> to vector<2x10x128xf32>
    %108 = vector.shape_cast %107 : vector<2x10x128xf32> to vector<20x128xf32>
    %c15_101 = arith.constant 15 : index
    %c0_102 = arith.constant 0 : index
    %c0_103 = arith.constant 0 : index
    %109 = vector.load %arg2[%c15_101, %c0_102, %c0_103] : memref<49x4x20xf32, #tpu.memory_space<vmem>>, vector<1x4x20xf32>
    %110 = vector.shape_cast %109 : vector<1x4x20xf32> to vector<4x20xf32>
    %cst_104 = arith.constant dense<0.000000e+00> : vector<4x128xf32>
    %111 = tpu.matmul %110, %108, %cst_104 {dimension_numbers = #tpu.dot_dimension_numbers<[1], [0], [0], [1], [0, 0, 1, 1], [], []>} : vector<4x20xf32>, vector<20x128xf32>, vector<4x128xf32> -> vector<4x128xf32>
    %112 = arith.addf %105, %111 : vector<4x128xf32>
    %c0_105 = arith.constant 0 : index
    %c0_106 = arith.constant 0 : index
    %c0_107 = arith.constant 0 : index
    %c30 = arith.constant 30 : index
    %113 = vector.load %arg1[%c0_105, %c0_106, %c0_107, %c30] : memref<1x2x10x256xf32, #tpu.memory_space<vmem>>, vector<1x2x10x128xf32>
    %114 = vector.shape_cast %113 : vector<1x2x10x128xf32> to vector<2x10x128xf32>
    %115 = vector.shape_cast %114 : vector<2x10x128xf32> to vector<20x128xf32>
    %c16_108 = arith.constant 16 : index
    %c0_109 = arith.constant 0 : index
    %c0_110 = arith.constant 0 : index
    %116 = vector.load %arg2[%c16_108, %c0_109, %c0_110] : memref<49x4x20xf32, #tpu.memory_space<vmem>>, vector<1x4x20xf32>
    %117 = vector.shape_cast %116 : vector<1x4x20xf32> to vector<4x20xf32>
    %cst_111 = arith.constant dense<0.000000e+00> : vector<4x128xf32>
    %118 = tpu.matmul %117, %115, %cst_111 {dimension_numbers = #tpu.dot_dimension_numbers<[1], [0], [0], [1], [0, 0, 1, 1], [], []>} : vector<4x20xf32>, vector<20x128xf32>, vector<4x128xf32> -> vector<4x128xf32>
    %119 = arith.addf %112, %118 : vector<4x128xf32>
    %c0_112 = arith.constant 0 : index
    %c0_113 = arith.constant 0 : index
    %c0_114 = arith.constant 0 : index
    %c31 = arith.constant 31 : index
    %120 = vector.load %arg1[%c0_112, %c0_113, %c0_114, %c31] : memref<1x2x10x256xf32, #tpu.memory_space<vmem>>, vector<1x2x10x128xf32>
    %121 = vector.shape_cast %120 : vector<1x2x10x128xf32> to vector<2x10x128xf32>
    %122 = vector.shape_cast %121 : vector<2x10x128xf32> to vector<20x128xf32>
    %c17_115 = arith.constant 17 : index
    %c0_116 = arith.constant 0 : index
    %c0_117 = arith.constant 0 : index
    %123 = vector.load %arg2[%c17_115, %c0_116, %c0_117] : memref<49x4x20xf32, #tpu.memory_space<vmem>>, vector<1x4x20xf32>
    %124 = vector.shape_cast %123 : vector<1x4x20xf32> to vector<4x20xf32>
    %cst_118 = arith.constant dense<0.000000e+00> : vector<4x128xf32>
    %125 = tpu.matmul %124, %122, %cst_118 {dimension_numbers = #tpu.dot_dimension_numbers<[1], [0], [0], [1], [0, 0, 1, 1], [], []>} : vector<4x20xf32>, vector<20x128xf32>, vector<4x128xf32> -> vector<4x128xf32>
    %126 = arith.addf %119, %125 : vector<4x128xf32>
    %c0_119 = arith.constant 0 : index
    %c0_120 = arith.constant 0 : index
    %c0_121 = arith.constant 0 : index
    %c32 = arith.constant 32 : index
    %127 = vector.load %arg1[%c0_119, %c0_120, %c0_121, %c32] : memref<1x2x10x256xf32, #tpu.memory_space<vmem>>, vector<1x2x10x128xf32>
    %128 = vector.shape_cast %127 : vector<1x2x10x128xf32> to vector<2x10x128xf32>
    %129 = vector.shape_cast %128 : vector<2x10x128xf32> to vector<20x128xf32>
    %c18_122 = arith.constant 18 : index
    %c0_123 = arith.constant 0 : index
    %c0_124 = arith.constant 0 : index
    %130 = vector.load %arg2[%c18_122, %c0_123, %c0_124] : memref<49x4x20xf32, #tpu.memory_space<vmem>>, vector<1x4x20xf32>
    %131 = vector.shape_cast %130 : vector<1x4x20xf32> to vector<4x20xf32>
    %cst_125 = arith.constant dense<0.000000e+00> : vector<4x128xf32>
    %132 = tpu.matmul %131, %129, %cst_125 {dimension_numbers = #tpu.dot_dimension_numbers<[1], [0], [0], [1], [0, 0, 1, 1], [], []>} : vector<4x20xf32>, vector<20x128xf32>, vector<4x128xf32> -> vector<4x128xf32>
    %133 = arith.addf %126, %132 : vector<4x128xf32>
    %c0_126 = arith.constant 0 : index
    %c0_127 = arith.constant 0 : index
    %c0_128 = arith.constant 0 : index
    %c33 = arith.constant 33 : index
    %134 = vector.load %arg1[%c0_126, %c0_127, %c0_128, %c33] : memref<1x2x10x256xf32, #tpu.memory_space<vmem>>, vector<1x2x10x128xf32>
    %135 = vector.shape_cast %134 : vector<1x2x10x128xf32> to vector<2x10x128xf32>
    %136 = vector.shape_cast %135 : vector<2x10x128xf32> to vector<20x128xf32>
    %c19_129 = arith.constant 19 : index
    %c0_130 = arith.constant 0 : index
    %c0_131 = arith.constant 0 : index
    %137 = vector.load %arg2[%c19_129, %c0_130, %c0_131] : memref<49x4x20xf32, #tpu.memory_space<vmem>>, vector<1x4x20xf32>
    %138 = vector.shape_cast %137 : vector<1x4x20xf32> to vector<4x20xf32>
    %cst_132 = arith.constant dense<0.000000e+00> : vector<4x128xf32>
    %139 = tpu.matmul %138, %136, %cst_132 {dimension_numbers = #tpu.dot_dimension_numbers<[1], [0], [0], [1], [0, 0, 1, 1], [], []>} : vector<4x20xf32>, vector<20x128xf32>, vector<4x128xf32> -> vector<4x128xf32>
    %140 = arith.addf %133, %139 : vector<4x128xf32>
    %c0_133 = arith.constant 0 : index
    %c0_134 = arith.constant 0 : index
    %c0_135 = arith.constant 0 : index
    %c34 = arith.constant 34 : index
    %141 = vector.load %arg1[%c0_133, %c0_134, %c0_135, %c34] : memref<1x2x10x256xf32, #tpu.memory_space<vmem>>, vector<1x2x10x128xf32>
    %142 = vector.shape_cast %141 : vector<1x2x10x128xf32> to vector<2x10x128xf32>
    %143 = vector.shape_cast %142 : vector<2x10x128xf32> to vector<20x128xf32>
    %c20_136 = arith.constant 20 : index
    %c0_137 = arith.constant 0 : index
    %c0_138 = arith.constant 0 : index
    %144 = vector.load %arg2[%c20_136, %c0_137, %c0_138] : memref<49x4x20xf32, #tpu.memory_space<vmem>>, vector<1x4x20xf32>
    %145 = vector.shape_cast %144 : vector<1x4x20xf32> to vector<4x20xf32>
    %cst_139 = arith.constant dense<0.000000e+00> : vector<4x128xf32>
    %146 = tpu.matmul %145, %143, %cst_139 {dimension_numbers = #tpu.dot_dimension_numbers<[1], [0], [0], [1], [0, 0, 1, 1], [], []>} : vector<4x20xf32>, vector<20x128xf32>, vector<4x128xf32> -> vector<4x128xf32>
    %147 = arith.addf %140, %146 : vector<4x128xf32>
    %c0_140 = arith.constant 0 : index
    %c0_141 = arith.constant 0 : index
    %c0_142 = arith.constant 0 : index
    %c42 = arith.constant 42 : index
    %148 = vector.load %arg1[%c0_140, %c0_141, %c0_142, %c42] : memref<1x2x10x256xf32, #tpu.memory_space<vmem>>, vector<1x2x10x128xf32>
    %149 = vector.shape_cast %148 : vector<1x2x10x128xf32> to vector<2x10x128xf32>
    %150 = vector.shape_cast %149 : vector<2x10x128xf32> to vector<20x128xf32>
    %c21 = arith.constant 21 : index
    %c0_143 = arith.constant 0 : index
    %c0_144 = arith.constant 0 : index
    %151 = vector.load %arg2[%c21, %c0_143, %c0_144] : memref<49x4x20xf32, #tpu.memory_space<vmem>>, vector<1x4x20xf32>
    %152 = vector.shape_cast %151 : vector<1x4x20xf32> to vector<4x20xf32>
    %cst_145 = arith.constant dense<0.000000e+00> : vector<4x128xf32>
    %153 = tpu.matmul %152, %150, %cst_145 {dimension_numbers = #tpu.dot_dimension_numbers<[1], [0], [0], [1], [0, 0, 1, 1], [], []>} : vector<4x20xf32>, vector<20x128xf32>, vector<4x128xf32> -> vector<4x128xf32>
    %154 = arith.addf %147, %153 : vector<4x128xf32>
    %c0_146 = arith.constant 0 : index
    %c0_147 = arith.constant 0 : index
    %c0_148 = arith.constant 0 : index
    %c43 = arith.constant 43 : index
    %155 = vector.load %arg1[%c0_146, %c0_147, %c0_148, %c43] : memref<1x2x10x256xf32, #tpu.memory_space<vmem>>, vector<1x2x10x128xf32>
    %156 = vector.shape_cast %155 : vector<1x2x10x128xf32> to vector<2x10x128xf32>
    %157 = vector.shape_cast %156 : vector<2x10x128xf32> to vector<20x128xf32>
    %c22 = arith.constant 22 : index
    %c0_149 = arith.constant 0 : index
    %c0_150 = arith.constant 0 : index
    %158 = vector.load %arg2[%c22, %c0_149, %c0_150] : memref<49x4x20xf32, #tpu.memory_space<vmem>>, vector<1x4x20xf32>
    %159 = vector.shape_cast %158 : vector<1x4x20xf32> to vector<4x20xf32>
    %cst_151 = arith.constant dense<0.000000e+00> : vector<4x128xf32>
    %160 = tpu.matmul %159, %157, %cst_151 {dimension_numbers = #tpu.dot_dimension_numbers<[1], [0], [0], [1], [0, 0, 1, 1], [], []>} : vector<4x20xf32>, vector<20x128xf32>, vector<4x128xf32> -> vector<4x128xf32>
    %161 = arith.addf %154, %160 : vector<4x128xf32>
    %c0_152 = arith.constant 0 : index
    %c0_153 = arith.constant 0 : index
    %c0_154 = arith.constant 0 : index
    %c44 = arith.constant 44 : index
    %162 = vector.load %arg1[%c0_152, %c0_153, %c0_154, %c44] : memref<1x2x10x256xf32, #tpu.memory_space<vmem>>, vector<1x2x10x128xf32>
    %163 = vector.shape_cast %162 : vector<1x2x10x128xf32> to vector<2x10x128xf32>
    %164 = vector.shape_cast %163 : vector<2x10x128xf32> to vector<20x128xf32>
    %c23 = arith.constant 23 : index
    %c0_155 = arith.constant 0 : index
    %c0_156 = arith.constant 0 : index
    %165 = vector.load %arg2[%c23, %c0_155, %c0_156] : memref<49x4x20xf32, #tpu.memory_space<vmem>>, vector<1x4x20xf32>
    %166 = vector.shape_cast %165 : vector<1x4x20xf32> to vector<4x20xf32>
    %cst_157 = arith.constant dense<0.000000e+00> : vector<4x128xf32>
    %167 = tpu.matmul %166, %164, %cst_157 {dimension_numbers = #tpu.dot_dimension_numbers<[1], [0], [0], [1], [0, 0, 1, 1], [], []>} : vector<4x20xf32>, vector<20x128xf32>, vector<4x128xf32> -> vector<4x128xf32>
    %168 = arith.addf %161, %167 : vector<4x128xf32>
    %c0_158 = arith.constant 0 : index
    %c0_159 = arith.constant 0 : index
    %c0_160 = arith.constant 0 : index
    %c45 = arith.constant 45 : index
    %169 = vector.load %arg1[%c0_158, %c0_159, %c0_160, %c45] : memref<1x2x10x256xf32, #tpu.memory_space<vmem>>, vector<1x2x10x128xf32>
    %170 = vector.shape_cast %169 : vector<1x2x10x128xf32> to vector<2x10x128xf32>
    %171 = vector.shape_cast %170 : vector<2x10x128xf32> to vector<20x128xf32>
    %c24 = arith.constant 24 : index
    %c0_161 = arith.constant 0 : index
    %c0_162 = arith.constant 0 : index
    %172 = vector.load %arg2[%c24, %c0_161, %c0_162] : memref<49x4x20xf32, #tpu.memory_space<vmem>>, vector<1x4x20xf32>
    %173 = vector.shape_cast %172 : vector<1x4x20xf32> to vector<4x20xf32>
    %cst_163 = arith.constant dense<0.000000e+00> : vector<4x128xf32>
    %174 = tpu.matmul %173, %171, %cst_163 {dimension_numbers = #tpu.dot_dimension_numbers<[1], [0], [0], [1], [0, 0, 1, 1], [], []>} : vector<4x20xf32>, vector<20x128xf32>, vector<4x128xf32> -> vector<4x128xf32>
    %175 = arith.addf %168, %174 : vector<4x128xf32>
    %c0_164 = arith.constant 0 : index
    %c0_165 = arith.constant 0 : index
    %c0_166 = arith.constant 0 : index
    %c46 = arith.constant 46 : index
    %176 = vector.load %arg1[%c0_164, %c0_165, %c0_166, %c46] : memref<1x2x10x256xf32, #tpu.memory_space<vmem>>, vector<1x2x10x128xf32>
    %177 = vector.shape_cast %176 : vector<1x2x10x128xf32> to vector<2x10x128xf32>
    %178 = vector.shape_cast %177 : vector<2x10x128xf32> to vector<20x128xf32>
    %c25 = arith.constant 25 : index
    %c0_167 = arith.constant 0 : index
    %c0_168 = arith.constant 0 : index
    %179 = vector.load %arg2[%c25, %c0_167, %c0_168] : memref<49x4x20xf32, #tpu.memory_space<vmem>>, vector<1x4x20xf32>
    %180 = vector.shape_cast %179 : vector<1x4x20xf32> to vector<4x20xf32>
    %cst_169 = arith.constant dense<0.000000e+00> : vector<4x128xf32>
    %181 = tpu.matmul %180, %178, %cst_169 {dimension_numbers = #tpu.dot_dimension_numbers<[1], [0], [0], [1], [0, 0, 1, 1], [], []>} : vector<4x20xf32>, vector<20x128xf32>, vector<4x128xf32> -> vector<4x128xf32>
    %182 = arith.addf %175, %181 : vector<4x128xf32>
    %c0_170 = arith.constant 0 : index
    %c0_171 = arith.constant 0 : index
    %c0_172 = arith.constant 0 : index
    %c47 = arith.constant 47 : index
    %183 = vector.load %arg1[%c0_170, %c0_171, %c0_172, %c47] : memref<1x2x10x256xf32, #tpu.memory_space<vmem>>, vector<1x2x10x128xf32>
    %184 = vector.shape_cast %183 : vector<1x2x10x128xf32> to vector<2x10x128xf32>
    %185 = vector.shape_cast %184 : vector<2x10x128xf32> to vector<20x128xf32>
    %c26 = arith.constant 26 : index
    %c0_173 = arith.constant 0 : index
    %c0_174 = arith.constant 0 : index
    %186 = vector.load %arg2[%c26, %c0_173, %c0_174] : memref<49x4x20xf32, #tpu.memory_space<vmem>>, vector<1x4x20xf32>
    %187 = vector.shape_cast %186 : vector<1x4x20xf32> to vector<4x20xf32>
    %cst_175 = arith.constant dense<0.000000e+00> : vector<4x128xf32>
    %188 = tpu.matmul %187, %185, %cst_175 {dimension_numbers = #tpu.dot_dimension_numbers<[1], [0], [0], [1], [0, 0, 1, 1], [], []>} : vector<4x20xf32>, vector<20x128xf32>, vector<4x128xf32> -> vector<4x128xf32>
    %189 = arith.addf %182, %188 : vector<4x128xf32>
    %c0_176 = arith.constant 0 : index
    %c0_177 = arith.constant 0 : index
    %c0_178 = arith.constant 0 : index
    %c48 = arith.constant 48 : index
    %190 = vector.load %arg1[%c0_176, %c0_177, %c0_178, %c48] : memref<1x2x10x256xf32, #tpu.memory_space<vmem>>, vector<1x2x10x128xf32>
    %191 = vector.shape_cast %190 : vector<1x2x10x128xf32> to vector<2x10x128xf32>
    %192 = vector.shape_cast %191 : vector<2x10x128xf32> to vector<20x128xf32>
    %c27 = arith.constant 27 : index
    %c0_179 = arith.constant 0 : index
    %c0_180 = arith.constant 0 : index
    %193 = vector.load %arg2[%c27, %c0_179, %c0_180] : memref<49x4x20xf32, #tpu.memory_space<vmem>>, vector<1x4x20xf32>
    %194 = vector.shape_cast %193 : vector<1x4x20xf32> to vector<4x20xf32>
    %cst_181 = arith.constant dense<0.000000e+00> : vector<4x128xf32>
    %195 = tpu.matmul %194, %192, %cst_181 {dimension_numbers = #tpu.dot_dimension_numbers<[1], [0], [0], [1], [0, 0, 1, 1], [], []>} : vector<4x20xf32>, vector<20x128xf32>, vector<4x128xf32> -> vector<4x128xf32>
    %196 = arith.addf %189, %195 : vector<4x128xf32>
    %c0_182 = arith.constant 0 : index
    %c0_183 = arith.constant 0 : index
    %c0_184 = arith.constant 0 : index
    %c56 = arith.constant 56 : index
    %197 = vector.load %arg1[%c0_182, %c0_183, %c0_184, %c56] : memref<1x2x10x256xf32, #tpu.memory_space<vmem>>, vector<1x2x10x128xf32>
    %198 = vector.shape_cast %197 : vector<1x2x10x128xf32> to vector<2x10x128xf32>
    %199 = vector.shape_cast %198 : vector<2x10x128xf32> to vector<20x128xf32>
    %c28_185 = arith.constant 28 : index
    %c0_186 = arith.constant 0 : index
    %c0_187 = arith.constant 0 : index
    %200 = vector.load %arg2[%c28_185, %c0_186, %c0_187] : memref<49x4x20xf32, #tpu.memory_space<vmem>>, vector<1x4x20xf32>
    %201 = vector.shape_cast %200 : vector<1x4x20xf32> to vector<4x20xf32>
    %cst_188 = arith.constant dense<0.000000e+00> : vector<4x128xf32>
    %202 = tpu.matmul %201, %199, %cst_188 {dimension_numbers = #tpu.dot_dimension_numbers<[1], [0], [0], [1], [0, 0, 1, 1], [], []>} : vector<4x20xf32>, vector<20x128xf32>, vector<4x128xf32> -> vector<4x128xf32>
    %203 = arith.addf %196, %202 : vector<4x128xf32>
    %c0_189 = arith.constant 0 : index
    %c0_190 = arith.constant 0 : index
    %c0_191 = arith.constant 0 : index
    %c57 = arith.constant 57 : index
    %204 = vector.load %arg1[%c0_189, %c0_190, %c0_191, %c57] : memref<1x2x10x256xf32, #tpu.memory_space<vmem>>, vector<1x2x10x128xf32>
    %205 = vector.shape_cast %204 : vector<1x2x10x128xf32> to vector<2x10x128xf32>
    %206 = vector.shape_cast %205 : vector<2x10x128xf32> to vector<20x128xf32>
    %c29_192 = arith.constant 29 : index
    %c0_193 = arith.constant 0 : index
    %c0_194 = arith.constant 0 : index
    %207 = vector.load %arg2[%c29_192, %c0_193, %c0_194] : memref<49x4x20xf32, #tpu.memory_space<vmem>>, vector<1x4x20xf32>
    %208 = vector.shape_cast %207 : vector<1x4x20xf32> to vector<4x20xf32>
    %cst_195 = arith.constant dense<0.000000e+00> : vector<4x128xf32>
    %209 = tpu.matmul %208, %206, %cst_195 {dimension_numbers = #tpu.dot_dimension_numbers<[1], [0], [0], [1], [0, 0, 1, 1], [], []>} : vector<4x20xf32>, vector<20x128xf32>, vector<4x128xf32> -> vector<4x128xf32>
    %210 = arith.addf %203, %209 : vector<4x128xf32>
    %c0_196 = arith.constant 0 : index
    %c0_197 = arith.constant 0 : index
    %c0_198 = arith.constant 0 : index
    %c58 = arith.constant 58 : index
    %211 = vector.load %arg1[%c0_196, %c0_197, %c0_198, %c58] : memref<1x2x10x256xf32, #tpu.memory_space<vmem>>, vector<1x2x10x128xf32>
    %212 = vector.shape_cast %211 : vector<1x2x10x128xf32> to vector<2x10x128xf32>
    %213 = vector.shape_cast %212 : vector<2x10x128xf32> to vector<20x128xf32>
    %c30_199 = arith.constant 30 : index
    %c0_200 = arith.constant 0 : index
    %c0_201 = arith.constant 0 : index
    %214 = vector.load %arg2[%c30_199, %c0_200, %c0_201] : memref<49x4x20xf32, #tpu.memory_space<vmem>>, vector<1x4x20xf32>
    %215 = vector.shape_cast %214 : vector<1x4x20xf32> to vector<4x20xf32>
    %cst_202 = arith.constant dense<0.000000e+00> : vector<4x128xf32>
    %216 = tpu.matmul %215, %213, %cst_202 {dimension_numbers = #tpu.dot_dimension_numbers<[1], [0], [0], [1], [0, 0, 1, 1], [], []>} : vector<4x20xf32>, vector<20x128xf32>, vector<4x128xf32> -> vector<4x128xf32>
    %217 = arith.addf %210, %216 : vector<4x128xf32>
    %c0_203 = arith.constant 0 : index
    %c0_204 = arith.constant 0 : index
    %c0_205 = arith.constant 0 : index
    %c59 = arith.constant 59 : index
    %218 = vector.load %arg1[%c0_203, %c0_204, %c0_205, %c59] : memref<1x2x10x256xf32, #tpu.memory_space<vmem>>, vector<1x2x10x128xf32>
    %219 = vector.shape_cast %218 : vector<1x2x10x128xf32> to vector<2x10x128xf32>
    %220 = vector.shape_cast %219 : vector<2x10x128xf32> to vector<20x128xf32>
    %c31_206 = arith.constant 31 : index
    %c0_207 = arith.constant 0 : index
    %c0_208 = arith.constant 0 : index
    %221 = vector.load %arg2[%c31_206, %c0_207, %c0_208] : memref<49x4x20xf32, #tpu.memory_space<vmem>>, vector<1x4x20xf32>
    %222 = vector.shape_cast %221 : vector<1x4x20xf32> to vector<4x20xf32>
    %cst_209 = arith.constant dense<0.000000e+00> : vector<4x128xf32>
    %223 = tpu.matmul %222, %220, %cst_209 {dimension_numbers = #tpu.dot_dimension_numbers<[1], [0], [0], [1], [0, 0, 1, 1], [], []>} : vector<4x20xf32>, vector<20x128xf32>, vector<4x128xf32> -> vector<4x128xf32>
    %224 = arith.addf %217, %223 : vector<4x128xf32>
    %c0_210 = arith.constant 0 : index
    %c0_211 = arith.constant 0 : index
    %c0_212 = arith.constant 0 : index
    %c60 = arith.constant 60 : index
    %225 = vector.load %arg1[%c0_210, %c0_211, %c0_212, %c60] : memref<1x2x10x256xf32, #tpu.memory_space<vmem>>, vector<1x2x10x128xf32>
    %226 = vector.shape_cast %225 : vector<1x2x10x128xf32> to vector<2x10x128xf32>
    %227 = vector.shape_cast %226 : vector<2x10x128xf32> to vector<20x128xf32>
    %c32_213 = arith.constant 32 : index
    %c0_214 = arith.constant 0 : index
    %c0_215 = arith.constant 0 : index
    %228 = vector.load %arg2[%c32_213, %c0_214, %c0_215] : memref<49x4x20xf32, #tpu.memory_space<vmem>>, vector<1x4x20xf32>
    %229 = vector.shape_cast %228 : vector<1x4x20xf32> to vector<4x20xf32>
    %cst_216 = arith.constant dense<0.000000e+00> : vector<4x128xf32>
    %230 = tpu.matmul %229, %227, %cst_216 {dimension_numbers = #tpu.dot_dimension_numbers<[1], [0], [0], [1], [0, 0, 1, 1], [], []>} : vector<4x20xf32>, vector<20x128xf32>, vector<4x128xf32> -> vector<4x128xf32>
    %231 = arith.addf %224, %230 : vector<4x128xf32>
    %c0_217 = arith.constant 0 : index
    %c0_218 = arith.constant 0 : index
    %c0_219 = arith.constant 0 : index
    %c61 = arith.constant 61 : index
    %232 = vector.load %arg1[%c0_217, %c0_218, %c0_219, %c61] : memref<1x2x10x256xf32, #tpu.memory_space<vmem>>, vector<1x2x10x128xf32>
    %233 = vector.shape_cast %232 : vector<1x2x10x128xf32> to vector<2x10x128xf32>
    %234 = vector.shape_cast %233 : vector<2x10x128xf32> to vector<20x128xf32>
    %c33_220 = arith.constant 33 : index
    %c0_221 = arith.constant 0 : index
    %c0_222 = arith.constant 0 : index
    %235 = vector.load %arg2[%c33_220, %c0_221, %c0_222] : memref<49x4x20xf32, #tpu.memory_space<vmem>>, vector<1x4x20xf32>
    %236 = vector.shape_cast %235 : vector<1x4x20xf32> to vector<4x20xf32>
    %cst_223 = arith.constant dense<0.000000e+00> : vector<4x128xf32>
    %237 = tpu.matmul %236, %234, %cst_223 {dimension_numbers = #tpu.dot_dimension_numbers<[1], [0], [0], [1], [0, 0, 1, 1], [], []>} : vector<4x20xf32>, vector<20x128xf32>, vector<4x128xf32> -> vector<4x128xf32>
    %238 = arith.addf %231, %237 : vector<4x128xf32>
    %c0_224 = arith.constant 0 : index
    %c0_225 = arith.constant 0 : index
    %c0_226 = arith.constant 0 : index
    %c62 = arith.constant 62 : index
    %239 = vector.load %arg1[%c0_224, %c0_225, %c0_226, %c62] : memref<1x2x10x256xf32, #tpu.memory_space<vmem>>, vector<1x2x10x128xf32>
    %240 = vector.shape_cast %239 : vector<1x2x10x128xf32> to vector<2x10x128xf32>
    %241 = vector.shape_cast %240 : vector<2x10x128xf32> to vector<20x128xf32>
    %c34_227 = arith.constant 34 : index
    %c0_228 = arith.constant 0 : index
    %c0_229 = arith.constant 0 : index
    %242 = vector.load %arg2[%c34_227, %c0_228, %c0_229] : memref<49x4x20xf32, #tpu.memory_space<vmem>>, vector<1x4x20xf32>
    %243 = vector.shape_cast %242 : vector<1x4x20xf32> to vector<4x20xf32>
    %cst_230 = arith.constant dense<0.000000e+00> : vector<4x128xf32>
    %244 = tpu.matmul %243, %241, %cst_230 {dimension_numbers = #tpu.dot_dimension_numbers<[1], [0], [0], [1], [0, 0, 1, 1], [], []>} : vector<4x20xf32>, vector<20x128xf32>, vector<4x128xf32> -> vector<4x128xf32>
    %245 = arith.addf %238, %244 : vector<4x128xf32>
    %c0_231 = arith.constant 0 : index
    %c0_232 = arith.constant 0 : index
    %c0_233 = arith.constant 0 : index
    %c70 = arith.constant 70 : index
    %246 = vector.load %arg1[%c0_231, %c0_232, %c0_233, %c70] : memref<1x2x10x256xf32, #tpu.memory_space<vmem>>, vector<1x2x10x128xf32>
    %247 = vector.shape_cast %246 : vector<1x2x10x128xf32> to vector<2x10x128xf32>
    %248 = vector.shape_cast %247 : vector<2x10x128xf32> to vector<20x128xf32>
    %c35 = arith.constant 35 : index
    %c0_234 = arith.constant 0 : index
    %c0_235 = arith.constant 0 : index
    %249 = vector.load %arg2[%c35, %c0_234, %c0_235] : memref<49x4x20xf32, #tpu.memory_space<vmem>>, vector<1x4x20xf32>
    %250 = vector.shape_cast %249 : vector<1x4x20xf32> to vector<4x20xf32>
    %cst_236 = arith.constant dense<0.000000e+00> : vector<4x128xf32>
    %251 = tpu.matmul %250, %248, %cst_236 {dimension_numbers = #tpu.dot_dimension_numbers<[1], [0], [0], [1], [0, 0, 1, 1], [], []>} : vector<4x20xf32>, vector<20x128xf32>, vector<4x128xf32> -> vector<4x128xf32>
    %252 = arith.addf %245, %251 : vector<4x128xf32>
    %c0_237 = arith.constant 0 : index
    %c0_238 = arith.constant 0 : index
    %c0_239 = arith.constant 0 : index
    %c71 = arith.constant 71 : index
    %253 = vector.load %arg1[%c0_237, %c0_238, %c0_239, %c71] : memref<1x2x10x256xf32, #tpu.memory_space<vmem>>, vector<1x2x10x128xf32>
    %254 = vector.shape_cast %253 : vector<1x2x10x128xf32> to vector<2x10x128xf32>
    %255 = vector.shape_cast %254 : vector<2x10x128xf32> to vector<20x128xf32>
    %c36 = arith.constant 36 : index
    %c0_240 = arith.constant 0 : index
    %c0_241 = arith.constant 0 : index
    %256 = vector.load %arg2[%c36, %c0_240, %c0_241] : memref<49x4x20xf32, #tpu.memory_space<vmem>>, vector<1x4x20xf32>
    %257 = vector.shape_cast %256 : vector<1x4x20xf32> to vector<4x20xf32>
    %cst_242 = arith.constant dense<0.000000e+00> : vector<4x128xf32>
    %258 = tpu.matmul %257, %255, %cst_242 {dimension_numbers = #tpu.dot_dimension_numbers<[1], [0], [0], [1], [0, 0, 1, 1], [], []>} : vector<4x20xf32>, vector<20x128xf32>, vector<4x128xf32> -> vector<4x128xf32>
    %259 = arith.addf %252, %258 : vector<4x128xf32>
    %c0_243 = arith.constant 0 : index
    %c0_244 = arith.constant 0 : index
    %c0_245 = arith.constant 0 : index
    %c72 = arith.constant 72 : index
    %260 = vector.load %arg1[%c0_243, %c0_244, %c0_245, %c72] : memref<1x2x10x256xf32, #tpu.memory_space<vmem>>, vector<1x2x10x128xf32>
    %261 = vector.shape_cast %260 : vector<1x2x10x128xf32> to vector<2x10x128xf32>
    %262 = vector.shape_cast %261 : vector<2x10x128xf32> to vector<20x128xf32>
    %c37 = arith.constant 37 : index
    %c0_246 = arith.constant 0 : index
    %c0_247 = arith.constant 0 : index
    %263 = vector.load %arg2[%c37, %c0_246, %c0_247] : memref<49x4x20xf32, #tpu.memory_space<vmem>>, vector<1x4x20xf32>
    %264 = vector.shape_cast %263 : vector<1x4x20xf32> to vector<4x20xf32>
    %cst_248 = arith.constant dense<0.000000e+00> : vector<4x128xf32>
    %265 = tpu.matmul %264, %262, %cst_248 {dimension_numbers = #tpu.dot_dimension_numbers<[1], [0], [0], [1], [0, 0, 1, 1], [], []>} : vector<4x20xf32>, vector<20x128xf32>, vector<4x128xf32> -> vector<4x128xf32>
    %266 = arith.addf %259, %265 : vector<4x128xf32>
    %c0_249 = arith.constant 0 : index
    %c0_250 = arith.constant 0 : index
    %c0_251 = arith.constant 0 : index
    %c73 = arith.constant 73 : index
    %267 = vector.load %arg1[%c0_249, %c0_250, %c0_251, %c73] : memref<1x2x10x256xf32, #tpu.memory_space<vmem>>, vector<1x2x10x128xf32>
    %268 = vector.shape_cast %267 : vector<1x2x10x128xf32> to vector<2x10x128xf32>
    %269 = vector.shape_cast %268 : vector<2x10x128xf32> to vector<20x128xf32>
    %c38 = arith.constant 38 : index
    %c0_252 = arith.constant 0 : index
    %c0_253 = arith.constant 0 : index
    %270 = vector.load %arg2[%c38, %c0_252, %c0_253] : memref<49x4x20xf32, #tpu.memory_space<vmem>>, vector<1x4x20xf32>
    %271 = vector.shape_cast %270 : vector<1x4x20xf32> to vector<4x20xf32>
    %cst_254 = arith.constant dense<0.000000e+00> : vector<4x128xf32>
    %272 = tpu.matmul %271, %269, %cst_254 {dimension_numbers = #tpu.dot_dimension_numbers<[1], [0], [0], [1], [0, 0, 1, 1], [], []>} : vector<4x20xf32>, vector<20x128xf32>, vector<4x128xf32> -> vector<4x128xf32>
    %273 = arith.addf %266, %272 : vector<4x128xf32>
    %c0_255 = arith.constant 0 : index
    %c0_256 = arith.constant 0 : index
    %c0_257 = arith.constant 0 : index
    %c74 = arith.constant 74 : index
    %274 = vector.load %arg1[%c0_255, %c0_256, %c0_257, %c74] : memref<1x2x10x256xf32, #tpu.memory_space<vmem>>, vector<1x2x10x128xf32>
    %275 = vector.shape_cast %274 : vector<1x2x10x128xf32> to vector<2x10x128xf32>
    %276 = vector.shape_cast %275 : vector<2x10x128xf32> to vector<20x128xf32>
    %c39 = arith.constant 39 : index
    %c0_258 = arith.constant 0 : index
    %c0_259 = arith.constant 0 : index
    %277 = vector.load %arg2[%c39, %c0_258, %c0_259] : memref<49x4x20xf32, #tpu.memory_space<vmem>>, vector<1x4x20xf32>
    %278 = vector.shape_cast %277 : vector<1x4x20xf32> to vector<4x20xf32>
    %cst_260 = arith.constant dense<0.000000e+00> : vector<4x128xf32>
    %279 = tpu.matmul %278, %276, %cst_260 {dimension_numbers = #tpu.dot_dimension_numbers<[1], [0], [0], [1], [0, 0, 1, 1], [], []>} : vector<4x20xf32>, vector<20x128xf32>, vector<4x128xf32> -> vector<4x128xf32>
    %280 = arith.addf %273, %279 : vector<4x128xf32>
    %c0_261 = arith.constant 0 : index
    %c0_262 = arith.constant 0 : index
    %c0_263 = arith.constant 0 : index
    %c75 = arith.constant 75 : index
    %281 = vector.load %arg1[%c0_261, %c0_262, %c0_263, %c75] : memref<1x2x10x256xf32, #tpu.memory_space<vmem>>, vector<1x2x10x128xf32>
    %282 = vector.shape_cast %281 : vector<1x2x10x128xf32> to vector<2x10x128xf32>
    %283 = vector.shape_cast %282 : vector<2x10x128xf32> to vector<20x128xf32>
    %c40 = arith.constant 40 : index
    %c0_264 = arith.constant 0 : index
    %c0_265 = arith.constant 0 : index
    %284 = vector.load %arg2[%c40, %c0_264, %c0_265] : memref<49x4x20xf32, #tpu.memory_space<vmem>>, vector<1x4x20xf32>
    %285 = vector.shape_cast %284 : vector<1x4x20xf32> to vector<4x20xf32>
    %cst_266 = arith.constant dense<0.000000e+00> : vector<4x128xf32>
    %286 = tpu.matmul %285, %283, %cst_266 {dimension_numbers = #tpu.dot_dimension_numbers<[1], [0], [0], [1], [0, 0, 1, 1], [], []>} : vector<4x20xf32>, vector<20x128xf32>, vector<4x128xf32> -> vector<4x128xf32>
    %287 = arith.addf %280, %286 : vector<4x128xf32>
    %c0_267 = arith.constant 0 : index
    %c0_268 = arith.constant 0 : index
    %c0_269 = arith.constant 0 : index
    %c76 = arith.constant 76 : index
    %288 = vector.load %arg1[%c0_267, %c0_268, %c0_269, %c76] : memref<1x2x10x256xf32, #tpu.memory_space<vmem>>, vector<1x2x10x128xf32>
    %289 = vector.shape_cast %288 : vector<1x2x10x128xf32> to vector<2x10x128xf32>
    %290 = vector.shape_cast %289 : vector<2x10x128xf32> to vector<20x128xf32>
    %c41 = arith.constant 41 : index
    %c0_270 = arith.constant 0 : index
    %c0_271 = arith.constant 0 : index
    %291 = vector.load %arg2[%c41, %c0_270, %c0_271] : memref<49x4x20xf32, #tpu.memory_space<vmem>>, vector<1x4x20xf32>
    %292 = vector.shape_cast %291 : vector<1x4x20xf32> to vector<4x20xf32>
    %cst_272 = arith.constant dense<0.000000e+00> : vector<4x128xf32>
    %293 = tpu.matmul %292, %290, %cst_272 {dimension_numbers = #tpu.dot_dimension_numbers<[1], [0], [0], [1], [0, 0, 1, 1], [], []>} : vector<4x20xf32>, vector<20x128xf32>, vector<4x128xf32> -> vector<4x128xf32>
    %294 = arith.addf %287, %293 : vector<4x128xf32>
    %c0_273 = arith.constant 0 : index
    %c0_274 = arith.constant 0 : index
    %c0_275 = arith.constant 0 : index
    %c84 = arith.constant 84 : index
    %295 = vector.load %arg1[%c0_273, %c0_274, %c0_275, %c84] : memref<1x2x10x256xf32, #tpu.memory_space<vmem>>, vector<1x2x10x128xf32>
    %296 = vector.shape_cast %295 : vector<1x2x10x128xf32> to vector<2x10x128xf32>
    %297 = vector.shape_cast %296 : vector<2x10x128xf32> to vector<20x128xf32>
    %c42_276 = arith.constant 42 : index
    %c0_277 = arith.constant 0 : index
    %c0_278 = arith.constant 0 : index
    %298 = vector.load %arg2[%c42_276, %c0_277, %c0_278] : memref<49x4x20xf32, #tpu.memory_space<vmem>>, vector<1x4x20xf32>
    %299 = vector.shape_cast %298 : vector<1x4x20xf32> to vector<4x20xf32>
    %cst_279 = arith.constant dense<0.000000e+00> : vector<4x128xf32>
    %300 = tpu.matmul %299, %297, %cst_279 {dimension_numbers = #tpu.dot_dimension_numbers<[1], [0], [0], [1], [0, 0, 1, 1], [], []>} : vector<4x20xf32>, vector<20x128xf32>, vector<4x128xf32> -> vector<4x128xf32>
    %301 = arith.addf %294, %300 : vector<4x128xf32>
    %c0_280 = arith.constant 0 : index
    %c0_281 = arith.constant 0 : index
    %c0_282 = arith.constant 0 : index
    %c85 = arith.constant 85 : index
    %302 = vector.load %arg1[%c0_280, %c0_281, %c0_282, %c85] : memref<1x2x10x256xf32, #tpu.memory_space<vmem>>, vector<1x2x10x128xf32>
    %303 = vector.shape_cast %302 : vector<1x2x10x128xf32> to vector<2x10x128xf32>
    %304 = vector.shape_cast %303 : vector<2x10x128xf32> to vector<20x128xf32>
    %c43_283 = arith.constant 43 : index
    %c0_284 = arith.constant 0 : index
    %c0_285 = arith.constant 0 : index
    %305 = vector.load %arg2[%c43_283, %c0_284, %c0_285] : memref<49x4x20xf32, #tpu.memory_space<vmem>>, vector<1x4x20xf32>
    %306 = vector.shape_cast %305 : vector<1x4x20xf32> to vector<4x20xf32>
    %cst_286 = arith.constant dense<0.000000e+00> : vector<4x128xf32>
    %307 = tpu.matmul %306, %304, %cst_286 {dimension_numbers = #tpu.dot_dimension_numbers<[1], [0], [0], [1], [0, 0, 1, 1], [], []>} : vector<4x20xf32>, vector<20x128xf32>, vector<4x128xf32> -> vector<4x128xf32>
    %308 = arith.addf %301, %307 : vector<4x128xf32>
    %c0_287 = arith.constant 0 : index
    %c0_288 = arith.constant 0 : index
    %c0_289 = arith.constant 0 : index
    %c86 = arith.constant 86 : index
    %309 = vector.load %arg1[%c0_287, %c0_288, %c0_289, %c86] : memref<1x2x10x256xf32, #tpu.memory_space<vmem>>, vector<1x2x10x128xf32>
    %310 = vector.shape_cast %309 : vector<1x2x10x128xf32> to vector<2x10x128xf32>
    %311 = vector.shape_cast %310 : vector<2x10x128xf32> to vector<20x128xf32>
    %c44_290 = arith.constant 44 : index
    %c0_291 = arith.constant 0 : index
    %c0_292 = arith.constant 0 : index
    %312 = vector.load %arg2[%c44_290, %c0_291, %c0_292] : memref<49x4x20xf32, #tpu.memory_space<vmem>>, vector<1x4x20xf32>
    %313 = vector.shape_cast %312 : vector<1x4x20xf32> to vector<4x20xf32>
    %cst_293 = arith.constant dense<0.000000e+00> : vector<4x128xf32>
    %314 = tpu.matmul %313, %311, %cst_293 {dimension_numbers = #tpu.dot_dimension_numbers<[1], [0], [0], [1], [0, 0, 1, 1], [], []>} : vector<4x20xf32>, vector<20x128xf32>, vector<4x128xf32> -> vector<4x128xf32>
    %315 = arith.addf %308, %314 : vector<4x128xf32>
    %c0_294 = arith.constant 0 : index
    %c0_295 = arith.constant 0 : index
    %c0_296 = arith.constant 0 : index
    %c87 = arith.constant 87 : index
    %316 = vector.load %arg1[%c0_294, %c0_295, %c0_296, %c87] : memref<1x2x10x256xf32, #tpu.memory_space<vmem>>, vector<1x2x10x128xf32>
    %317 = vector.shape_cast %316 : vector<1x2x10x128xf32> to vector<2x10x128xf32>
    %318 = vector.shape_cast %317 : vector<2x10x128xf32> to vector<20x128xf32>
    %c45_297 = arith.constant 45 : index
    %c0_298 = arith.constant 0 : index
    %c0_299 = arith.constant 0 : index
    %319 = vector.load %arg2[%c45_297, %c0_298, %c0_299] : memref<49x4x20xf32, #tpu.memory_space<vmem>>, vector<1x4x20xf32>
    %320 = vector.shape_cast %319 : vector<1x4x20xf32> to vector<4x20xf32>
    %cst_300 = arith.constant dense<0.000000e+00> : vector<4x128xf32>
    %321 = tpu.matmul %320, %318, %cst_300 {dimension_numbers = #tpu.dot_dimension_numbers<[1], [0], [0], [1], [0, 0, 1, 1], [], []>} : vector<4x20xf32>, vector<20x128xf32>, vector<4x128xf32> -> vector<4x128xf32>
    %322 = arith.addf %315, %321 : vector<4x128xf32>
    %c0_301 = arith.constant 0 : index
    %c0_302 = arith.constant 0 : index
    %c0_303 = arith.constant 0 : index
    %c88 = arith.constant 88 : index
    %323 = vector.load %arg1[%c0_301, %c0_302, %c0_303, %c88] : memref<1x2x10x256xf32, #tpu.memory_space<vmem>>, vector<1x2x10x128xf32>
    %324 = vector.shape_cast %323 : vector<1x2x10x128xf32> to vector<2x10x128xf32>
    %325 = vector.shape_cast %324 : vector<2x10x128xf32> to vector<20x128xf32>
    %c46_304 = arith.constant 46 : index
    %c0_305 = arith.constant 0 : index
    %c0_306 = arith.constant 0 : index
    %326 = vector.load %arg2[%c46_304, %c0_305, %c0_306] : memref<49x4x20xf32, #tpu.memory_space<vmem>>, vector<1x4x20xf32>
    %327 = vector.shape_cast %326 : vector<1x4x20xf32> to vector<4x20xf32>
    %cst_307 = arith.constant dense<0.000000e+00> : vector<4x128xf32>
    %328 = tpu.matmul %327, %325, %cst_307 {dimension_numbers = #tpu.dot_dimension_numbers<[1], [0], [0], [1], [0, 0, 1, 1], [], []>} : vector<4x20xf32>, vector<20x128xf32>, vector<4x128xf32> -> vector<4x128xf32>
    %329 = arith.addf %322, %328 : vector<4x128xf32>
    %c0_308 = arith.constant 0 : index
    %c0_309 = arith.constant 0 : index
    %c0_310 = arith.constant 0 : index
    %c89 = arith.constant 89 : index
    %330 = vector.load %arg1[%c0_308, %c0_309, %c0_310, %c89] : memref<1x2x10x256xf32, #tpu.memory_space<vmem>>, vector<1x2x10x128xf32>
    %331 = vector.shape_cast %330 : vector<1x2x10x128xf32> to vector<2x10x128xf32>
    %332 = vector.shape_cast %331 : vector<2x10x128xf32> to vector<20x128xf32>
    %c47_311 = arith.constant 47 : index
    %c0_312 = arith.constant 0 : index
    %c0_313 = arith.constant 0 : index
    %333 = vector.load %arg2[%c47_311, %c0_312, %c0_313] : memref<49x4x20xf32, #tpu.memory_space<vmem>>, vector<1x4x20xf32>
    %334 = vector.shape_cast %333 : vector<1x4x20xf32> to vector<4x20xf32>
    %cst_314 = arith.constant dense<0.000000e+00> : vector<4x128xf32>
    %335 = tpu.matmul %334, %332, %cst_314 {dimension_numbers = #tpu.dot_dimension_numbers<[1], [0], [0], [1], [0, 0, 1, 1], [], []>} : vector<4x20xf32>, vector<20x128xf32>, vector<4x128xf32> -> vector<4x128xf32>
    %336 = arith.addf %329, %335 : vector<4x128xf32>
    %c0_315 = arith.constant 0 : index
    %c0_316 = arith.constant 0 : index
    %c0_317 = arith.constant 0 : index
    %c90 = arith.constant 90 : index
    %337 = vector.load %arg1[%c0_315, %c0_316, %c0_317, %c90] : memref<1x2x10x256xf32, #tpu.memory_space<vmem>>, vector<1x2x10x128xf32>
    %338 = vector.shape_cast %337 : vector<1x2x10x128xf32> to vector<2x10x128xf32>
    %339 = vector.shape_cast %338 : vector<2x10x128xf32> to vector<20x128xf32>
    %c48_318 = arith.constant 48 : index
    %c0_319 = arith.constant 0 : index
    %c0_320 = arith.constant 0 : index
    %340 = vector.load %arg2[%c48_318, %c0_319, %c0_320] : memref<49x4x20xf32, #tpu.memory_space<vmem>>, vector<1x4x20xf32>
    %341 = vector.shape_cast %340 : vector<1x4x20xf32> to vector<4x20xf32>
    %cst_321 = arith.constant dense<0.000000e+00> : vector<4x128xf32>
    %342 = tpu.matmul %341, %339, %cst_321 {dimension_numbers = #tpu.dot_dimension_numbers<[1], [0], [0], [1], [0, 0, 1, 1], [], []>} : vector<4x20xf32>, vector<20x128xf32>, vector<4x128xf32> -> vector<4x128xf32>
    %343 = arith.addf %336, %342 : vector<4x128xf32>
    %c0_322 = arith.constant 0 : index
    %344 = memref.load %arg3[%c0_322] : memref<2xf32, #tpu.memory_space<smem>>
    %345 = vector.broadcast %344 : f32 to vector<4x128xf32>
    %346 = arith.mulf %343, %345 : vector<4x128xf32>
    %c1_323 = arith.constant 1 : index
    %347 = memref.load %arg3[%c1_323] : memref<2xf32, #tpu.memory_space<smem>>
    %348 = vector.broadcast %347 : f32 to vector<4x128xf32>
    %349 = arith.addf %346, %348 : vector<4x128xf32>
    %350 = arith.negf %349 : vector<4x128xf32>
    %351 = math.exp %350 : vector<4x128xf32>
    %cst_324 = arith.constant 1.000000e+00 : f32
    %352 = vector.broadcast %cst_324 : f32 to vector<4x128xf32>
    %353 = arith.addf %352, %351 : vector<4x128xf32>
    %354 = arith.divf %352, %353 : vector<4x128xf32>
    %c0_325 = arith.constant 0 : index
    %c0_326 = arith.constant 0 : index
    %c0_327 = arith.constant 0 : index
    %355 = vector.load %arg4[%c0_325, %c0_326, %c0_327] : memref<1x4x128xf32, #tpu.memory_space<vmem>>, vector<1x4x128xf32>
    %356 = vector.shape_cast %355 : vector<1x4x128xf32> to vector<4x128xf32>
    %357 = vector.shape_cast %354 : vector<4x128xf32> to vector<1x4x128xf32>
    tpu.vector_store %arg4[%c0_325, %c0_326, %c0_327], %357 {strides = array<i32>} : memref<1x4x128xf32, #tpu.memory_space<vmem>>, vector<1x4x128xf32>,
    return
  }
  func.func @transform_0(%arg0: i32) -> (i32, i32, i32, i32) {
    %c0_i32 = arith.constant 0 : i32
    %c0_i32_0 = arith.constant 0 : i32
    %c0_i32_1 = arith.constant 0 : i32
    %c0_i32_2 = arith.constant 0 : i32
    return %arg0, %c0_i32, %c0_i32_0, %c0_i32_1 : i32, i32, i32, i32
  }
  func.func @transform_1(%arg0: i32) -> (i32, i32, i32) {
    %c0_i32 = arith.constant 0 : i32
    %c0_i32_0 = arith.constant 0 : i32
    %c0_i32_1 = arith.constant 0 : i32
    %c0_i32_2 = arith.constant 0 : i32
    return %c0_i32, %c0_i32_0, %c0_i32_1 : i32, i32, i32
  }
  func.func @transform_2(%arg0: i32) -> i32 {
    %c0_i32 = arith.constant 0 : i32
    %c0_i32_0 = arith.constant 0 : i32
    return %c0_i32 : i32
  }
  func.func @transform_3(%arg0: i32) -> (i32, i32, i32) {
    %c0_i32 = arith.constant 0 : i32
    %c0_i32_0 = arith.constant 0 : i32
    %c0_i32_1 = arith.constant 0 : i32
    return %arg0, %c0_i32, %c0_i32_0 : i32, i32, i32
  }
}

module attributes {stable_mosaic.version = 11 : i64} {
  func.func @_conv3_kernel(%arg0: i32, %arg1: memref<1x6x10x160xf32, #tpu.memory_space<vmem>>, %arg2: memref<9x160x128xf32, #tpu.memory_space<vmem>>, %arg3: memref<1x32x128xf32, #tpu.memory_space<vmem>>) attributes {dimension_semantics = [#tpu.dimension_semantics<parallel>], iteration_bounds = array<i64: 2>, scalar_prefetch = 0 : i64, scratch_operands = 0 : i64, tpu.core_type = #tpu.core_type<tc>, window_params = [{transform_indices = @transform_0, window_bounds = array<i64: 1, 6, 10, 160>}, {pipeline_mode = #tpu.pipeline_mode<synchronous>, transform_indices = @transform_1, window_bounds = array<i64: 9, 160, 128>}, {transform_indices = @transform_2, window_bounds = array<i64: 1, 32, 128>}]} {
    %cst = arith.constant 0.000000e+00 : f32
    %0 = vector.broadcast %cst : f32 to vector<32x128xf32>
    %c0 = arith.constant 0 : index
    %c0_0 = arith.constant 0 : index
    %c0_1 = arith.constant 0 : index
    %c0_2 = arith.constant 0 : index
    %1 = vector.load %arg1[%c0, %c0_0, %c0_1, %c0_2] : memref<1x6x10x160xf32, #tpu.memory_space<vmem>>, vector<1x4x8x160xf32>
    %2 = vector.shape_cast %1 : vector<1x4x8x160xf32> to vector<4x8x160xf32>
    %3 = vector.shape_cast %2 : vector<4x8x160xf32> to vector<32x160xf32>
    %c0_3 = arith.constant 0 : index
    %c0_4 = arith.constant 0 : index
    %c0_5 = arith.constant 0 : index
    %4 = vector.load %arg2[%c0_3, %c0_4, %c0_5] : memref<9x160x128xf32, #tpu.memory_space<vmem>>, vector<1x160x128xf32>
    %5 = vector.shape_cast %4 : vector<1x160x128xf32> to vector<160x128xf32>
    %cst_6 = arith.constant dense<0.000000e+00> : vector<32x128xf32>
    %6 = tpu.matmul %3, %5, %cst_6 {dimension_numbers = #tpu.dot_dimension_numbers<[1], [0], [0], [1], [0, 0, 1, 1], [], []>} : vector<32x160xf32>, vector<160x128xf32>, vector<32x128xf32> -> vector<32x128xf32>
    %7 = arith.addf %0, %6 : vector<32x128xf32>
    %c0_7 = arith.constant 0 : index
    %c0_8 = arith.constant 0 : index
    %c1 = arith.constant 1 : index
    %c0_9 = arith.constant 0 : index
    %8 = vector.load %arg1[%c0_7, %c0_8, %c1, %c0_9] : memref<1x6x10x160xf32, #tpu.memory_space<vmem>>, vector<1x4x8x160xf32>
    %9 = vector.shape_cast %8 : vector<1x4x8x160xf32> to vector<4x8x160xf32>
    %10 = vector.shape_cast %9 : vector<4x8x160xf32> to vector<32x160xf32>
    %c1_10 = arith.constant 1 : index
    %c0_11 = arith.constant 0 : index
    %c0_12 = arith.constant 0 : index
    %11 = vector.load %arg2[%c1_10, %c0_11, %c0_12] : memref<9x160x128xf32, #tpu.memory_space<vmem>>, vector<1x160x128xf32>
    %12 = vector.shape_cast %11 : vector<1x160x128xf32> to vector<160x128xf32>
    %cst_13 = arith.constant dense<0.000000e+00> : vector<32x128xf32>
    %13 = tpu.matmul %10, %12, %cst_13 {dimension_numbers = #tpu.dot_dimension_numbers<[1], [0], [0], [1], [0, 0, 1, 1], [], []>} : vector<32x160xf32>, vector<160x128xf32>, vector<32x128xf32> -> vector<32x128xf32>
    %14 = arith.addf %7, %13 : vector<32x128xf32>
    %c0_14 = arith.constant 0 : index
    %c0_15 = arith.constant 0 : index
    %c2 = arith.constant 2 : index
    %c0_16 = arith.constant 0 : index
    %15 = vector.load %arg1[%c0_14, %c0_15, %c2, %c0_16] : memref<1x6x10x160xf32, #tpu.memory_space<vmem>>, vector<1x4x8x160xf32>
    %16 = vector.shape_cast %15 : vector<1x4x8x160xf32> to vector<4x8x160xf32>
    %17 = vector.shape_cast %16 : vector<4x8x160xf32> to vector<32x160xf32>
    %c2_17 = arith.constant 2 : index
    %c0_18 = arith.constant 0 : index
    %c0_19 = arith.constant 0 : index
    %18 = vector.load %arg2[%c2_17, %c0_18, %c0_19] : memref<9x160x128xf32, #tpu.memory_space<vmem>>, vector<1x160x128xf32>
    %19 = vector.shape_cast %18 : vector<1x160x128xf32> to vector<160x128xf32>
    %cst_20 = arith.constant dense<0.000000e+00> : vector<32x128xf32>
    %20 = tpu.matmul %17, %19, %cst_20 {dimension_numbers = #tpu.dot_dimension_numbers<[1], [0], [0], [1], [0, 0, 1, 1], [], []>} : vector<32x160xf32>, vector<160x128xf32>, vector<32x128xf32> -> vector<32x128xf32>
    %21 = arith.addf %14, %20 : vector<32x128xf32>
    %c0_21 = arith.constant 0 : index
    %c1_22 = arith.constant 1 : index
    %c0_23 = arith.constant 0 : index
    %c0_24 = arith.constant 0 : index
    %22 = vector.load %arg1[%c0_21, %c1_22, %c0_23, %c0_24] : memref<1x6x10x160xf32, #tpu.memory_space<vmem>>, vector<1x4x8x160xf32>
    %23 = vector.shape_cast %22 : vector<1x4x8x160xf32> to vector<4x8x160xf32>
    %24 = vector.shape_cast %23 : vector<4x8x160xf32> to vector<32x160xf32>
    %c3 = arith.constant 3 : index
    %c0_25 = arith.constant 0 : index
    %c0_26 = arith.constant 0 : index
    %25 = vector.load %arg2[%c3, %c0_25, %c0_26] : memref<9x160x128xf32, #tpu.memory_space<vmem>>, vector<1x160x128xf32>
    %26 = vector.shape_cast %25 : vector<1x160x128xf32> to vector<160x128xf32>
    %cst_27 = arith.constant dense<0.000000e+00> : vector<32x128xf32>
    %27 = tpu.matmul %24, %26, %cst_27 {dimension_numbers = #tpu.dot_dimension_numbers<[1], [0], [0], [1], [0, 0, 1, 1], [], []>} : vector<32x160xf32>, vector<160x128xf32>, vector<32x128xf32> -> vector<32x128xf32>
    %28 = arith.addf %21, %27 : vector<32x128xf32>
    %c0_28 = arith.constant 0 : index
    %c1_29 = arith.constant 1 : index
    %c1_30 = arith.constant 1 : index
    %c0_31 = arith.constant 0 : index
    %29 = vector.load %arg1[%c0_28, %c1_29, %c1_30, %c0_31] : memref<1x6x10x160xf32, #tpu.memory_space<vmem>>, vector<1x4x8x160xf32>
    %30 = vector.shape_cast %29 : vector<1x4x8x160xf32> to vector<4x8x160xf32>
    %31 = vector.shape_cast %30 : vector<4x8x160xf32> to vector<32x160xf32>
    %c4 = arith.constant 4 : index
    %c0_32 = arith.constant 0 : index
    %c0_33 = arith.constant 0 : index
    %32 = vector.load %arg2[%c4, %c0_32, %c0_33] : memref<9x160x128xf32, #tpu.memory_space<vmem>>, vector<1x160x128xf32>
    %33 = vector.shape_cast %32 : vector<1x160x128xf32> to vector<160x128xf32>
    %cst_34 = arith.constant dense<0.000000e+00> : vector<32x128xf32>
    %34 = tpu.matmul %31, %33, %cst_34 {dimension_numbers = #tpu.dot_dimension_numbers<[1], [0], [0], [1], [0, 0, 1, 1], [], []>} : vector<32x160xf32>, vector<160x128xf32>, vector<32x128xf32> -> vector<32x128xf32>
    %35 = arith.addf %28, %34 : vector<32x128xf32>
    %c0_35 = arith.constant 0 : index
    %c1_36 = arith.constant 1 : index
    %c2_37 = arith.constant 2 : index
    %c0_38 = arith.constant 0 : index
    %36 = vector.load %arg1[%c0_35, %c1_36, %c2_37, %c0_38] : memref<1x6x10x160xf32, #tpu.memory_space<vmem>>, vector<1x4x8x160xf32>
    %37 = vector.shape_cast %36 : vector<1x4x8x160xf32> to vector<4x8x160xf32>
    %38 = vector.shape_cast %37 : vector<4x8x160xf32> to vector<32x160xf32>
    %c5 = arith.constant 5 : index
    %c0_39 = arith.constant 0 : index
    %c0_40 = arith.constant 0 : index
    %39 = vector.load %arg2[%c5, %c0_39, %c0_40] : memref<9x160x128xf32, #tpu.memory_space<vmem>>, vector<1x160x128xf32>
    %40 = vector.shape_cast %39 : vector<1x160x128xf32> to vector<160x128xf32>
    %cst_41 = arith.constant dense<0.000000e+00> : vector<32x128xf32>
    %41 = tpu.matmul %38, %40, %cst_41 {dimension_numbers = #tpu.dot_dimension_numbers<[1], [0], [0], [1], [0, 0, 1, 1], [], []>} : vector<32x160xf32>, vector<160x128xf32>, vector<32x128xf32> -> vector<32x128xf32>
    %42 = arith.addf %35, %41 : vector<32x128xf32>
    %c0_42 = arith.constant 0 : index
    %c2_43 = arith.constant 2 : index
    %c0_44 = arith.constant 0 : index
    %c0_45 = arith.constant 0 : index
    %43 = vector.load %arg1[%c0_42, %c2_43, %c0_44, %c0_45] : memref<1x6x10x160xf32, #tpu.memory_space<vmem>>, vector<1x4x8x160xf32>
    %44 = vector.shape_cast %43 : vector<1x4x8x160xf32> to vector<4x8x160xf32>
    %45 = vector.shape_cast %44 : vector<4x8x160xf32> to vector<32x160xf32>
    %c6 = arith.constant 6 : index
    %c0_46 = arith.constant 0 : index
    %c0_47 = arith.constant 0 : index
    %46 = vector.load %arg2[%c6, %c0_46, %c0_47] : memref<9x160x128xf32, #tpu.memory_space<vmem>>, vector<1x160x128xf32>
    %47 = vector.shape_cast %46 : vector<1x160x128xf32> to vector<160x128xf32>
    %cst_48 = arith.constant dense<0.000000e+00> : vector<32x128xf32>
    %48 = tpu.matmul %45, %47, %cst_48 {dimension_numbers = #tpu.dot_dimension_numbers<[1], [0], [0], [1], [0, 0, 1, 1], [], []>} : vector<32x160xf32>, vector<160x128xf32>, vector<32x128xf32> -> vector<32x128xf32>
    %49 = arith.addf %42, %48 : vector<32x128xf32>
    %c0_49 = arith.constant 0 : index
    %c2_50 = arith.constant 2 : index
    %c1_51 = arith.constant 1 : index
    %c0_52 = arith.constant 0 : index
    %50 = vector.load %arg1[%c0_49, %c2_50, %c1_51, %c0_52] : memref<1x6x10x160xf32, #tpu.memory_space<vmem>>, vector<1x4x8x160xf32>
    %51 = vector.shape_cast %50 : vector<1x4x8x160xf32> to vector<4x8x160xf32>
    %52 = vector.shape_cast %51 : vector<4x8x160xf32> to vector<32x160xf32>
    %c7 = arith.constant 7 : index
    %c0_53 = arith.constant 0 : index
    %c0_54 = arith.constant 0 : index
    %53 = vector.load %arg2[%c7, %c0_53, %c0_54] : memref<9x160x128xf32, #tpu.memory_space<vmem>>, vector<1x160x128xf32>
    %54 = vector.shape_cast %53 : vector<1x160x128xf32> to vector<160x128xf32>
    %cst_55 = arith.constant dense<0.000000e+00> : vector<32x128xf32>
    %55 = tpu.matmul %52, %54, %cst_55 {dimension_numbers = #tpu.dot_dimension_numbers<[1], [0], [0], [1], [0, 0, 1, 1], [], []>} : vector<32x160xf32>, vector<160x128xf32>, vector<32x128xf32> -> vector<32x128xf32>
    %56 = arith.addf %49, %55 : vector<32x128xf32>
    %c0_56 = arith.constant 0 : index
    %c2_57 = arith.constant 2 : index
    %c2_58 = arith.constant 2 : index
    %c0_59 = arith.constant 0 : index
    %57 = vector.load %arg1[%c0_56, %c2_57, %c2_58, %c0_59] : memref<1x6x10x160xf32, #tpu.memory_space<vmem>>, vector<1x4x8x160xf32>
    %58 = vector.shape_cast %57 : vector<1x4x8x160xf32> to vector<4x8x160xf32>
    %59 = vector.shape_cast %58 : vector<4x8x160xf32> to vector<32x160xf32>
    %c8 = arith.constant 8 : index
    %c0_60 = arith.constant 0 : index
    %c0_61 = arith.constant 0 : index
    %60 = vector.load %arg2[%c8, %c0_60, %c0_61] : memref<9x160x128xf32, #tpu.memory_space<vmem>>, vector<1x160x128xf32>
    %61 = vector.shape_cast %60 : vector<1x160x128xf32> to vector<160x128xf32>
    %cst_62 = arith.constant dense<0.000000e+00> : vector<32x128xf32>
    %62 = tpu.matmul %59, %61, %cst_62 {dimension_numbers = #tpu.dot_dimension_numbers<[1], [0], [0], [1], [0, 0, 1, 1], [], []>} : vector<32x160xf32>, vector<160x128xf32>, vector<32x128xf32> -> vector<32x128xf32>
    %63 = arith.addf %56, %62 : vector<32x128xf32>
    %c0_63 = arith.constant 0 : index
    %c0_64 = arith.constant 0 : index
    %c0_65 = arith.constant 0 : index
    %64 = vector.load %arg3[%c0_63, %c0_64, %c0_65] : memref<1x32x128xf32, #tpu.memory_space<vmem>>, vector<1x32x128xf32>
    %65 = vector.shape_cast %64 : vector<1x32x128xf32> to vector<32x128xf32>
    %66 = vector.shape_cast %63 : vector<32x128xf32> to vector<1x32x128xf32>
    tpu.vector_store %arg3[%c0_63, %c0_64, %c0_65], %66 {strides = array<i32>} : memref<1x32x128xf32, #tpu.memory_space<vmem>>, vector<1x32x128xf32>,
    return
  }
  func.func @transform_0(%arg0: i32) -> (i32, i32, i32, i32) {
    %c0_i32 = arith.constant 0 : i32
    %c0_i32_0 = arith.constant 0 : i32
    %c0_i32_1 = arith.constant 0 : i32
    %c0_i32_2 = arith.constant 0 : i32
    return %arg0, %c0_i32, %c0_i32_0, %c0_i32_1 : i32, i32, i32, i32
  }
  func.func @transform_1(%arg0: i32) -> (i32, i32, i32) {
    %c0_i32 = arith.constant 0 : i32
    %c0_i32_0 = arith.constant 0 : i32
    %c0_i32_1 = arith.constant 0 : i32
    %c0_i32_2 = arith.constant 0 : i32
    return %c0_i32, %c0_i32_0, %c0_i32_1 : i32, i32, i32
  }
  func.func @transform_2(%arg0: i32) -> (i32, i32, i32) {
    %c0_i32 = arith.constant 0 : i32
    %c0_i32_0 = arith.constant 0 : i32
    %c0_i32_1 = arith.constant 0 : i32
    return %arg0, %c0_i32, %c0_i32_0 : i32, i32, i32
  }
}

module attributes {stable_mosaic.version = 11 : i64} {
  func.func @_fuse_kernel(%arg0: i32, %arg1: i32, %arg2: memref<1x8x256xf32, #tpu.memory_space<vmem>>, %arg3: memref<1x8x256xf32, #tpu.memory_space<vmem>>, %arg4: memref<1x16x256xf32, #tpu.memory_space<vmem>>, %arg5: memref<1x16x1xf32, #tpu.memory_space<vmem>>, %arg6: memref<1x1x256xf32, #tpu.memory_space<vmem>>, %arg7: memref<8x1xf32, #tpu.memory_space<vmem>>, %arg8: memref<8x1xf32, #tpu.memory_space<vmem>>, %arg9: memref<8x8xf32, #tpu.memory_space<vmem>>, %arg10: memref<8x8xf32, #tpu.memory_space<vmem>>, %arg11: memref<8x1xf32, #tpu.memory_space<vmem>>, %arg12: memref<1x8x256xf32, #tpu.memory_space<vmem>>) attributes {dimension_semantics = [#tpu.dimension_semantics<parallel>, #tpu.dimension_semantics<parallel>], iteration_bounds = array<i64: 2, 1>, scalar_prefetch = 0 : i64, scratch_operands = 0 : i64, tpu.core_type = #tpu.core_type<tc>, window_params = [{transform_indices = @transform_0, window_bounds = array<i64: 1, 8, 256>}, {transform_indices = @transform_1, window_bounds = array<i64: 1, 8, 256>}, {transform_indices = @transform_2, window_bounds = array<i64: 1, 16, 256>}, {transform_indices = @transform_3, window_bounds = array<i64: 1, 16, 1>}, {transform_indices = @transform_4, window_bounds = array<i64: 1, 1, 256>}, {pipeline_mode = #tpu.pipeline_mode<synchronous>, transform_indices = @transform_5, window_bounds = array<i64: 8, 1>}, {pipeline_mode = #tpu.pipeline_mode<synchronous>, transform_indices = @transform_6, window_bounds = array<i64: 8, 1>}, {pipeline_mode = #tpu.pipeline_mode<synchronous>, transform_indices = @transform_7, window_bounds = array<i64: 8, 8>}, {pipeline_mode = #tpu.pipeline_mode<synchronous>, transform_indices = @transform_8, window_bounds = array<i64: 8, 8>}, {pipeline_mode = #tpu.pipeline_mode<synchronous>, transform_indices = @transform_9, window_bounds = array<i64: 8, 1>}, {transform_indices = @transform_10, window_bounds = array<i64: 1, 8, 256>}]} {
    %c0 = arith.constant 0 : index
    %c0_0 = arith.constant 0 : index
    %c0_1 = arith.constant 0 : index
    %0 = vector.load %arg2[%c0, %c0_0, %c0_1] : memref<1x8x256xf32, #tpu.memory_space<vmem>>, vector<1x8x256xf32>
    %1 = vector.shape_cast %0 : vector<1x8x256xf32> to vector<8x256xf32>
    %c0_2 = arith.constant 0 : index
    %c0_3 = arith.constant 0 : index
    %c0_4 = arith.constant 0 : index
    %2 = vector.load %arg3[%c0_2, %c0_3, %c0_4] : memref<1x8x256xf32, #tpu.memory_space<vmem>>, vector<1x8x256xf32>
    %3 = vector.shape_cast %2 : vector<1x8x256xf32> to vector<8x256xf32>
    %c0_5 = arith.constant 0 : index
    %c0_6 = arith.constant 0 : index
    %4 = vector.load %arg7[%c0_5, %c0_6] : memref<8x1xf32, #tpu.memory_space<vmem>>, vector<8x1xf32>
    %c0_7 = arith.constant 0 : index
    %c0_8 = arith.constant 0 : index
    %5 = vector.load %arg8[%c0_7, %c0_8] : memref<8x1xf32, #tpu.memory_space<vmem>>, vector<8x1xf32>
    %6 = arith.addf %1, %3 : vector<8x256xf32>
    %7 = vector.broadcast %4 : vector<8x1xf32> to vector<8x256xf32>
    %8 = arith.mulf %6, %7 : vector<8x256xf32>
    %cst = arith.constant 2.000000e+00 : f32
    %9 = vector.broadcast %cst : f32 to vector<8x1xf32>
    %10 = arith.mulf %9, %5 : vector<8x1xf32>
    %11 = vector.broadcast %10 : vector<8x1xf32> to vector<8x256xf32>
    %12 = arith.addf %8, %11 : vector<8x256xf32>
    %13 = arith.negf %12 : vector<8x256xf32>
    %14 = math.exp %13 : vector<8x256xf32>
    %cst_9 = arith.constant 1.000000e+00 : f32
    %15 = vector.broadcast %cst_9 : f32 to vector<8x256xf32>
    %16 = arith.addf %15, %14 : vector<8x256xf32>
    %17 = arith.divf %15, %16 : vector<8x256xf32>
    %c0_10 = arith.constant 0 : index
    %c0_11 = arith.constant 0 : index
    %c0_12 = arith.constant 0 : index
    %18 = vector.load %arg5[%c0_10, %c0_11, %c0_12] : memref<1x16x1xf32, #tpu.memory_space<vmem>>, vector<1x16x1xf32>
    %19 = vector.shape_cast %18 : vector<1x16x1xf32> to vector<16x1xf32>
    %c0_13 = arith.constant 0 : index
    %c0_14 = arith.constant 0 : index
    %c0_15 = arith.constant 0 : index
    %20 = vector.load %arg6[%c0_13, %c0_14, %c0_15] : memref<1x1x256xf32, #tpu.memory_space<vmem>>, vector<1x1x256xf32>
    %21 = vector.shape_cast %20 : vector<1x1x256xf32> to vector<1x256xf32>
    %c0_16 = arith.constant 0 : index
    %c0_17 = arith.constant 0 : index
    %c0_18 = arith.constant 0 : index
    %22 = vector.load %arg4[%c0_16, %c0_17, %c0_18] : memref<1x16x256xf32, #tpu.memory_space<vmem>>, vector<1x16x256xf32>
    %23 = vector.shape_cast %22 : vector<1x16x256xf32> to vector<16x256xf32>
    %24 = vector.extract_strided_slice %19 {offsets = [0, 0], sizes = [8, 1], strides = [1, 1]} : vector<16x1xf32> to vector<8x1xf32>
    %25 = vector.broadcast %24 : vector<8x1xf32> to vector<8x256xf32>
    %26 = arith.mulf %1, %25 : vector<8x256xf32>
    %27 = vector.extract_strided_slice %19 {offsets = [8, 0], sizes = [8, 1], strides = [1, 1]} : vector<16x1xf32> to vector<8x1xf32>
    %28 = vector.broadcast %27 : vector<8x1xf32> to vector<8x256xf32>
    %29 = arith.mulf %3, %28 : vector<8x256xf32>
    %30 = vector.extract_strided_slice %23 {offsets = [0, 0], sizes = [8, 256], strides = [1, 1]} : vector<16x256xf32> to vector<8x256xf32>
    %31 = vector.broadcast %21 : vector<1x256xf32> to vector<8x256xf32>
    %32 = arith.mulf %26, %31 : vector<8x256xf32>
    %33 = arith.mulf %30, %32 : vector<8x256xf32>
    %34 = arith.mulf %33, %1 : vector<8x256xf32>
    %35 = vector.extract_strided_slice %23 {offsets = [8, 0], sizes = [8, 256], strides = [1, 1]} : vector<16x256xf32> to vector<8x256xf32>
    %36 = vector.broadcast %21 : vector<1x256xf32> to vector<8x256xf32>
    %37 = arith.mulf %29, %36 : vector<8x256xf32>
    %38 = arith.mulf %35, %37 : vector<8x256xf32>
    %39 = arith.mulf %38, %3 : vector<8x256xf32>
    %c0_19 = arith.constant 0 : index
    %c0_20 = arith.constant 0 : index
    %40 = vector.load %arg9[%c0_19, %c0_20] : memref<8x8xf32, #tpu.memory_space<vmem>>, vector<8x8xf32>
    %cst_21 = arith.constant dense<0.000000e+00> : vector<8x256xf32>
    %41 = tpu.matmul %40, %34, %cst_21 {dimension_numbers = #tpu.dot_dimension_numbers<[1], [0], [0], [1], [0, 0, 1, 1], [], []>} : vector<8x8xf32>, vector<8x256xf32>, vector<8x256xf32> -> vector<8x256xf32>
    %c0_22 = arith.constant 0 : index
    %c0_23 = arith.constant 0 : index
    %42 = vector.load %arg10[%c0_22, %c0_23] : memref<8x8xf32, #tpu.memory_space<vmem>>, vector<8x8xf32>
    %cst_24 = arith.constant dense<0.000000e+00> : vector<8x256xf32>
    %43 = tpu.matmul %42, %39, %cst_24 {dimension_numbers = #tpu.dot_dimension_numbers<[1], [0], [0], [1], [0, 0, 1, 1], [], []>} : vector<8x8xf32>, vector<8x256xf32>, vector<8x256xf32> -> vector<8x256xf32>
    %44 = arith.addf %41, %43 : vector<8x256xf32>
    %c0_25 = arith.constant 0 : index
    %c0_26 = arith.constant 0 : index
    %45 = vector.load %arg11[%c0_25, %c0_26] : memref<8x1xf32, #tpu.memory_space<vmem>>, vector<8x1xf32>
    %46 = vector.broadcast %45 : vector<8x1xf32> to vector<8x256xf32>
    %47 = arith.addf %44, %46 : vector<8x256xf32>
    %48 = arith.mulf %17, %47 : vector<8x256xf32>
    %c0_27 = arith.constant 0 : index
    %c0_28 = arith.constant 0 : index
    %c0_29 = arith.constant 0 : index
    %49 = vector.load %arg12[%c0_27, %c0_28, %c0_29] : memref<1x8x256xf32, #tpu.memory_space<vmem>>, vector<1x8x256xf32>
    %50 = vector.shape_cast %49 : vector<1x8x256xf32> to vector<8x256xf32>
    %51 = vector.shape_cast %48 : vector<8x256xf32> to vector<1x8x256xf32>
    tpu.vector_store %arg12[%c0_27, %c0_28, %c0_29], %51 {strides = array<i32>} : memref<1x8x256xf32, #tpu.memory_space<vmem>>, vector<1x8x256xf32>,
    return
  }
  func.func @transform_0(%arg0: i32, %arg1: i32) -> (i32, i32, i32) {
    %c0_i32 = arith.constant 0 : i32
    %c0_i32_0 = arith.constant 0 : i32
    return %arg0, %c0_i32, %arg1 : i32, i32, i32
  }
  func.func @transform_1(%arg0: i32, %arg1: i32) -> (i32, i32, i32) {
    %c0_i32 = arith.constant 0 : i32
    %c0_i32_0 = arith.constant 0 : i32
    return %arg0, %c0_i32, %arg1 : i32, i32, i32
  }
  func.func @transform_2(%arg0: i32, %arg1: i32) -> (i32, i32, i32) {
    %c0_i32 = arith.constant 0 : i32
    %c0_i32_0 = arith.constant 0 : i32
    return %arg0, %c0_i32, %arg1 : i32, i32, i32
  }
  func.func @transform_3(%arg0: i32, %arg1: i32) -> (i32, i32, i32) {
    %c0_i32 = arith.constant 0 : i32
    %c0_i32_0 = arith.constant 0 : i32
    %c0_i32_1 = arith.constant 0 : i32
    return %arg0, %c0_i32, %c0_i32_0 : i32, i32, i32
  }
  func.func @transform_4(%arg0: i32, %arg1: i32) -> (i32, i32, i32) {
    %c0_i32 = arith.constant 0 : i32
    %c0_i32_0 = arith.constant 0 : i32
    return %arg0, %c0_i32, %arg1 : i32, i32, i32
  }
  func.func @transform_5(%arg0: i32, %arg1: i32) -> (i32, i32) {
    %c0_i32 = arith.constant 0 : i32
    %c0_i32_0 = arith.constant 0 : i32
    %c0_i32_1 = arith.constant 0 : i32
    return %c0_i32, %c0_i32_0 : i32, i32
  }
  func.func @transform_6(%arg0: i32, %arg1: i32) -> (i32, i32) {
    %c0_i32 = arith.constant 0 : i32
    %c0_i32_0 = arith.constant 0 : i32
    %c0_i32_1 = arith.constant 0 : i32
    return %c0_i32, %c0_i32_0 : i32, i32
  }
  func.func @transform_7(%arg0: i32, %arg1: i32) -> (i32, i32) {
    %c0_i32 = arith.constant 0 : i32
    %c0_i32_0 = arith.constant 0 : i32
    %c0_i32_1 = arith.constant 0 : i32
    return %c0_i32, %c0_i32_0 : i32, i32
  }
  func.func @transform_8(%arg0: i32, %arg1: i32) -> (i32, i32) {
    %c0_i32 = arith.constant 0 : i32
    %c0_i32_0 = arith.constant 0 : i32
    %c0_i32_1 = arith.constant 0 : i32
    return %c0_i32, %c0_i32_0 : i32, i32
  }
  func.func @transform_9(%arg0: i32, %arg1: i32) -> (i32, i32) {
    %c0_i32 = arith.constant 0 : i32
    %c0_i32_0 = arith.constant 0 : i32
    %c0_i32_1 = arith.constant 0 : i32
    return %c0_i32, %c0_i32_0 : i32, i32
  }
  func.func @transform_10(%arg0: i32, %arg1: i32) -> (i32, i32, i32) {
    %c0_i32 = arith.constant 0 : i32
    %c0_i32_0 = arith.constant 0 : i32
    return %arg0, %c0_i32, %arg1 : i32, i32, i32
  }
}

</mosaic_0001>

<bundles_post_ra>
// kernel: mutifuse_forward.6
= control target key start
LH: loop header
LB: loop body
LE: loop exit
PB: predicated region body
PF: predicated region fallthrough
CT: control target
= control target key end

     0   :  { %s653_s15 = smov 0   ;;  %s655_s16 = smov 0   ;;  %s699_s0 = inlined_call_operand.vmem [shape: f32[2,8,256], index: 0, kind: input, shape index: {}]   ;;  %s700_s1 = inlined_call_operand.vmem [shape: f32[2,8,256], index: 1, kind: input, shape index: {}]   ;;  %s701_s2 = inlined_call_operand.vmem [shape: f32[2,16,1], index: 2, kind: input, shape index: {}]   ;;  %s702_s3 = inlined_call_operand.vmem [shape: f32[2,1,256], index: 3, kind: output, shape index: {0}]   ;;  %s703_s4 = inlined_call_operand.vmem [shape: f32[2,1,256], index: 4, kind: output, shape index: {1}]  }
   0x1   :  { %s657_s17 = smov 0  }
   0x2 LB: > { %s27_s18 = sadd.s32 1, %s621_s16  ;;  %p563_p0 = scmp.ge.s32.totalorder %s625_s17, 1  ;;  %s625_s17 = sphi %s657_s17, %s15_s17   ;;  %s621_s16 = sphi %s655_s16, %s705_s16   ;;  %s617_s15 = sphi %s653_s15, %s704_s15  }
   0x3   : > { %p29_p1 = scmp.ge.s32.totalorder %s27_s18, 2  ;;  %p215_p2 = scmp.lt.s32.totalorder %s625_s17, 3 }
   0x5   : > { %s707_s18 = smov (%p29_p1, %s27_s18), 0  ;;  %p216_p3 = pnand %p563_p0, %p215_p2 }
   0x6   : > { %p271_p4 = scmp.lt.s32.totalorder (!%p216_p3), %s617_s15, 1 }
   0x7   : > { %219 = sbr.rel (%p216_p3) target bundleno = 161 (0xa1), region = 32 }
   0xc   : > { %v627_v0 = vmov 0   ;;  %s709_s15 = smov (!%p271_p4, %s617_s15), 1  ;;  %v393_v52 = vlaneseq  ;;  %vm390_vm0 = vcmask 1040384  }
   0xd   : > { %602 = vset.pattern.permute.xlu0 %v627_v0  ;;  %s574_s19 = sshll.u32 %s709_s15, 4  ;;  %s570_s29 = sshll.u32 %s709_s15, 1 }
   0xe   : > { %s294_s22 = scalar_lea.vmem %s701_s2, %s574_s19  ;;  %s278_s25 = scalar_lea.vmem %s699_s0, %s574_s19  ;;  %vm395_vm1 = vcmp.lt.s32.totalorder %v393_v52, 256 }
   0xf   : > { %v317_v1 = vld [vmem:[%s294_s22] sm:$0xff]  ;;  %v318_v2 = vld [vmem:[%s294_s22 + $0x8] sm:$0xff]  ;;  %s288_s28 = scalar_lea.vmem %s700_s1, %s574_s19  ;;  %s302_s6 = scalar_lea.vmem %s702_s3, %s570_s29 }
  0x10   : > { %321 = vperm.xlu0 %602, %v317_v1   ;;  %v313_v3 = vld [vmem:[%s278_s25] sm:$0xff]  ;;  %v314_v4 = vld [vmem:[%s278_s25 + $0x8] sm:$0xff]  ;;  %s311_s9 = scalar_lea.vmem %s703_s4, %s570_s29 }
  0x11   : > { %v315_v14 = vld [vmem:[%s288_s28] sm:$0xff]  ;;  %v316_v15 = vld [vmem:[%s288_s28 + $0x8] sm:$0xff] }
  0x18   : > { %328 = vperm.xlu0 %602, %v318_v2  }
  0x82   : > { %v322_v5 = vpop.permute.xlu0 %321 }
  0x83   : > { %v324_v6 = vmul.f32 %v322_v5, %v313_v3  ;;  %v325_v7 = vmul.f32 %v322_v5, %v314_v4 }
  0x85   : > { %v333_v8 = vrot.slane %v324_v6, 4  ;;  %v339_v9 = vrot.slane %v325_v7, 4 }
  0x87   : > { %v340_v10 = vmax.f32 %v325_v7, %v339_v9  ;;  %v360_v11 = vadd.f32 %v333_v8, %v324_v6  ;;  %v366_v12 = vadd.f32 %v339_v9, %v325_v7  ;;  %v334_v13 = vmax.f32 %v324_v6, %v333_v8 }
  0x89   : > { %v341_v17 = vrot.slane %v340_v10, 2  ;;  %v361_v18 = vrot.slane %v360_v11, 2  ;;  %v367_v19 = vrot.slane %v366_v12, 2  ;;  %v335_v22 = vrot.slane %v334_v13, 2 }
  0x8a   : > { %v329_v16 = vpop.permute.xlu0 %328 }
  0x8b   : > { %v331_v20 = vmul.f32 %v329_v16, %v315_v14  ;;  %v332_v21 = vmul.f32 %v329_v16, %v316_v15  ;;  %v342_v25 = vmax.f32 %v340_v10, %v341_v17  ;;  %v362_v26 = vadd.f32 %v361_v18, %v360_v11 }
  0x8c   : > { %v368_v27 = vadd.f32 %v367_v19, %v366_v12  ;;  %v336_v32 = vmax.f32 %v334_v13, %v335_v22 }
  0x8d   : > { %v345_v23 = vrot.slane %v331_v20, 4  ;;  %v351_v24 = vrot.slane %v332_v21, 4  ;;  %v343_v37 = vrot.slane %v342_v25, 1  ;;  %v363_v38 = vrot.slane %v362_v26, 1 }
  0x8e   : > { %v369_v39 = vrot.slane %v368_v27, 1  ;;  %v337_v44 = vrot.slane %v336_v32, 1 }
  0x8f   : > { %v346_v28 = vmax.f32 %v331_v20, %v345_v23  ;;  %v352_v29 = vmax.f32 %v332_v21, %v351_v24  ;;  %v372_v30 = vadd.f32 %v345_v23, %v331_v20  ;;  %v378_v31 = vadd.f32 %v351_v24, %v332_v21 }
  0x90   : > { %v344_v49 = vmax.f32 %v342_v25, %v343_v37  ;;  %v364_v50 = vadd.f32 %v363_v38, %v362_v26  ;;  %v370_v51 = vadd.f32 %v369_v39, %v368_v27  ;;  %v338_v57 = vmax.f32 %v336_v32, %v337_v44 }
  0x91   : > { %v347_v33 = vrot.slane %v346_v28, 2  ;;  %v353_v34 = vrot.slane %v352_v29, 2  ;;  %v373_v35 = vrot.slane %v372_v30, 2  ;;  %v379_v36 = vrot.slane %v378_v31, 2 }
  0x93   : > { %v348_v40 = vmax.f32 %v346_v28, %v347_v33  ;;  %v354_v41 = vmax.f32 %v352_v29, %v353_v34  ;;  %v374_v42 = vadd.f32 %v373_v35, %v372_v30  ;;  %v380_v43 = vadd.f32 %v379_v36, %v378_v31 }
  0x95   : > { %v349_v45 = vrot.slane %v348_v40, 1  ;;  %v355_v46 = vrot.slane %v354_v41, 1  ;;  %v375_v47 = vrot.slane %v374_v42, 1  ;;  %v381_v48 = vrot.slane %v380_v43, 1 }
  0x97   : > { %v350_v53 = vmax.f32 %v348_v40, %v349_v45  ;;  %v356_v54 = vmax.f32 %v354_v41, %v355_v46  ;;  %v376_v55 = vadd.f32 %v375_v47, %v374_v42  ;;  %v382_v56 = vadd.f32 %v381_v48, %v380_v43 }
  0x99   : > { %v358_v58 = vmax.f32 %v344_v49, %v356_v54  ;;  %v383_v59 = vadd.f32 %v376_v55, %v364_v50  ;;  %v384_v60 = vadd.f32 %v382_v56, %v370_v51  ;;  %v357_v61 = vmax.f32 %v338_v57, %v350_v53 }
  0x9b   : > { %v386_v62 = vmul.f32 0.0625, %v384_v60  ;;  %v389_v63 = vrot.slane %v358_v58, 7  ;;  %v385_v0 = vmul.f32 0.0625, %v383_v59 }
  0x9d   : > { %v391_v1 = vsel %vm390_vm0, %v357_v61, %v389_v63  ;;  %v400_v2 = vrot.slane %v386_v62, 7 }
  0x9e   : > { %397 = vst.msk [vmem:[%s302_s6] sm:$0x3] %vm395_vm1, %v391_v1 }
  0x9f   : > { %v401_v3 = vsel %vm390_vm0, %v385_v0, %v400_v2 }
  0xa0   : > { %403 = vst.msk [vmem:[%s311_s9] sm:$0x3] %vm395_vm1, %v401_v3 }
  0xa1 PF: > { %s15_s17 = sadd.s32 1, %s625_s17   ;;  %s704_s15 = smov %s621_s16 }
  0xa2   : > { %p12_p5 = scmp.ge.s32.totalorder %s15_s17, 4   ;;  %s705_s16 = smov %s707_s18 }
  0xa4   :  { %14 = sbr.rel (!%p12_p5) target bundleno = 2 (0x2), region = 80 }

// kernel: mutifuse_forward.5
= control target key start
LH: loop header
LB: loop body
LE: loop exit
PB: predicated region body
PF: predicated region fallthrough
CT: control target
= control target key end

     0   :  { %s809_s26 = smov 0   ;;  %s811_s27 = smov 0   ;;  %s882_s0 = inlined_call_operand.vmem [shape: f32[2,8,256], index: 0, kind: input, shape index: {}]   ;;  %s883_s1 = inlined_call_operand.vmem [shape: f32[2,8,256], index: 1, kind: input, shape index: {}]   ;;  %s884_s2 = inlined_call_operand.vmem [shape: f32[1,8], index: 2, kind: input, shape index: {}]   ;;  %s885_s3 = inlined_call_operand.vmem [shape: f32[1,8], index: 3, kind: input, shape index: {}]   ;;  %s886_s4 = inlined_call_operand.<no memory space> [shape: f32[1,1], index: 4, kind: input, shape index: {}]   ;;  %s887_s5 = inlined_call_operand.vmem [shape: f32[16,1], index: 5, kind: input, shape index: {}]   ;;  %s888_s6 = inlined_call_operand.vmem [shape: f32[16,1], index: 6, kind: input, shape index: {}]   ;;  %s889_s7 = inlined_call_operand.vmem [shape: f32[2,16,1], index: 7, kind: output, shape index: {}]  }
   0x1   :  { %v12_v0 = vstv %s886_s4  ;;  %s813_s28 = smov 0  }
   0x2   :  { %13 = vst [vmem:[#allocation6] sm:$0x1] %v12_v0 }
   0x3 LB: > { %s31_s4 = sadd.s32 1, %s758_s27  ;;  %p682_p0 = scmp.ge.s32.totalorder %s762_s28, 1  ;;  %s762_s28 = sphi %s813_s28, %s19_s28   ;;  %s758_s27 = sphi %s811_s27, %s891_s27   ;;  %s754_s26 = sphi %s809_s26, %s890_s26  }
   0x4   : > { %p33_p1 = scmp.ge.s32.totalorder %s31_s4, 2  ;;  %p275_p2 = scmp.lt.s32.totalorder %s762_s28, 3 }
   0x6   : > { %s893_s4 = smov (%p33_p1, %s31_s4), 0  ;;  %p276_p3 = pnand %p682_p0, %p275_p2 }
   0x7   : > { %p321_p4 = scmp.lt.s32.totalorder (!%p276_p3), %s754_s26, 1 }
   0x8   : > { %279 = sbr.rel (%p276_p3) target bundleno = 464 (0x1d0), region = 48 }
   0xd   : > { %vm353_vm0 = vcmask 7168   ;;  %v764_v1 = vmov 0.0   ;;  %s895_s26 = smov (!%p321_p4, %s754_s26), 1  ;;  %v765_v10 = vmov -inf   ;;  %v386_v26 = vld [vmem:[%s884_s2] sm:$0x1] }
   0xe   : > { %354 = vst.msk [vmem:[#allocation2] sm:$0xff] %vm353_vm0, %v764_v1  ;;  %s829_s29 = sshll.u32 %s895_s26, 4  ;;  %vm397_vm1 = vcmask 64512   ;;  %v387_v29 = vld [vmem:[%s885_s3] sm:$0x1]  ;;  %vm452_vm2 = vcmask 1040384  }
   0xf   : > { %355 = vst.msk [vmem:[#allocation3] sm:$0xff] %vm353_vm0, %v764_v1  ;;  %s328_s9 = scalar_lea.vmem %s882_s0, %s829_s29  ;;  %s338_s12 = scalar_lea.vmem %s883_s1, %s829_s29  ;;  %v388_v33 = vld [vmem:[#allocation6] sm:$0x1]  ;;  %v390_v43 = vld [vmem:[%s887_s5 + $0x8] sm:$0xff] }
  0x10   : > { %v345_v2 = vld [vmem:[%s328_s9] sm:$0xff]  ;;  %v346_v3 = vld [vmem:[%s328_s9 + $0x8] sm:$0xff]  ;;  %357 = vst.msk [vmem:[#allocation5] sm:$0xff] %vm353_vm0, %v765_v10  ;;  %s344_s30 = scalar_lea.vmem %s889_s7, %s829_s29 }
  0x11   : > { %v359_v4 = vadd.f32 %v346_v3, %v345_v2  ;;  %v347_v5 = vld [vmem:[%s338_s12] sm:$0xff]  ;;  %v348_v6 = vld [vmem:[%s338_s12 + $0x8] sm:$0xff]  ;;  %v372_v9 = vmax.f32 %v345_v2, %v346_v3  ;;  %356 = vst.msk [vmem:[#allocation4] sm:$0xff] %vm353_vm0, %v765_v10 }
  0x12   : > { %v378_v7 = vmax.f32 %v347_v5, %v348_v6  ;;  %v366_v8 = vadd.f32 %v348_v6, %v347_v5  ;;  %v389_v37 = vld [vmem:[%s887_s5] sm:$0xff]  ;;  %v392_v50 = vld [vmem:[%s888_s6 + $0x8] sm:$0xff] }
  0x13   : > { %360 = vadd.xlane.f32.xlu0 %v359_v4  ;;  %v391_v44 = vld [vmem:[%s888_s6] sm:$0xff] }
  0x14   : > { %379 = vmax.xlane.f32.xlu1 %v378_v7 }
  0x15   : > { %v358_v11 = vld [vmem:[#allocation2] sm:$0xff] }
  0x16   : > { %v365_v17 = vld [vmem:[#allocation3] sm:$0xff] }
  0x17   : > { %v377_v12 = vld [vmem:[#allocation5] sm:$0xff] }
  0x18   : > { %v371_v18 = vld [vmem:[#allocation4] sm:$0xff] }
  0x1b   : > { %367 = vadd.xlane.f32.xlu0 %v366_v8 }
  0x1c   : > { %373 = vmax.xlane.f32.xlu1 %v372_v9 }
  0x86   : > { %v361_v13 = vpop.xlane.xlu0 %360 }
  0x87   : > { %v362_v14 = vadd.f32 %v361_v13, %v358_v11  ;;  %v380_v15 = vpop.xlane.xlu1 %379 }
  0x88   : > { %v381_v16 = vmax.f32 %v377_v12, %v380_v15 }
  0x89   : > { %364 = vst.msk [vmem:[#allocation2] sm:$0xff] %vm353_vm0, %v362_v14 }
  0x8a   : > { %382 = vst.msk [vmem:[#allocation5] sm:$0xff] %vm353_vm0, %v381_v16 }
  0x8e   : > { %v368_v19 = vpop.xlane.xlu0 %367 }
  0x8f   : > { %v369_v20 = vadd.f32 %v368_v19, %v365_v17  ;;  %v374_v21 = vpop.xlane.xlu1 %373 }
  0x90   : > { %v375_v22 = vmax.f32 %v371_v18, %v374_v21  ;;  %v393_v23 = vld [vmem:[#allocation2] sm:$0xff] }
  0x91   : > { %370 = vst.msk [vmem:[#allocation3] sm:$0xff] %vm353_vm0, %v369_v20  ;;  %v394_v24 = vmul.f32 0.00390625, %v393_v23  ;;  %v480_v25 = vld [vmem:[#allocation5] sm:$0xff] }
  0x92   : > { %376 = vst.msk [vmem:[#allocation4] sm:$0xff] %vm353_vm0, %v375_v22 }
  0x93   : > { %439 = vmatpush.msra.mxu3 %v394_v24 }
  0x94   : > { %690 = vmatmul.msk.f32.vlgmr.msra.gmra.mxu3 %vm397_vm1, %v386_v26 }
  0x95   : > { %496 = vmatpush.msrb.mxu3 %v480_v25 }
  0x98   : > { %v395_v27 = vld [vmem:[#allocation3] sm:$0xff] }
  0x99   : > { %v396_v28 = vmul.f32 0.00390625, %v395_v27  ;;  %v479_v30 = vld [vmem:[#allocation4] sm:$0xff] }
  0x9b   : > { %416 = vmatpush.msra.mxu0 %v396_v28 }
  0x9c   : > { %689 = vmatmul.msk.f32.vlgmr.msra.gmra.mxu0 %vm397_vm1, %v387_v29  ;;  %694 = vmatmul.msk.f32.vlgmr.msrb.gmra.mxu3 %vm397_vm1, %v387_v29 }
  0x9d   : > { %516 = vmatpush.msrb.mxu0 %v479_v30 }
  0xa4   : > { %695 = vmatmul.msk.f32.vlgmr.msrb.gmra.mxu0 %vm397_vm1, %v386_v26 }
 0x117   : > { %v441_v31 = vpop.f32.mrf.mxu3 }
 0x119   : > { %v418_v32 = vpop.f32.mrf.mxu0 }
 0x11a   : > { %v442_v34 = vadd.f32 %v441_v31, %v418_v32 }
 0x11c   : > { %v444_v35 = vadd.f32 %v442_v34, %v388_v33 }
 0x11e   : > { %v445_v36 = vmax.f32 %v444_v35, 0.0 }
 0x11f   : > { %v498_v38 = vpop.f32.mrf.mxu3 }
 0x120   : > { %691 = vmatpush.msk.msra.mxu2 %vm452_vm2, %v445_v36 }
 0x121   : > { %v518_v39 = vpop.f32.mrf.mxu0  ;;  %692 = vmatmul.msk.f32.vlgmr.msra.gmra.mxu2 %vm353_vm0, %v389_v37 }
 0x122   : > { %v519_v40 = vadd.f32 %v518_v39, %v498_v38 }
 0x124   : > { %v521_v41 = vadd.f32 %v519_v40, %v388_v33 }
 0x126   : > { %v522_v42 = vmax.f32 %v521_v41, 0.0 }
 0x128   : > { %696 = vmatpush.msk.msra.mxu1 %vm452_vm2, %v522_v42 }
 0x129   : > { %697 = vmatmul.msk.f32.vlgmr.msra.gmra.mxu1 %vm353_vm0, %v389_v37  ;;  %693 = vmatmul.msk.f32.gmra.mxu2 %vm353_vm0, %v390_v43 }
 0x131   : > { %698 = vmatmul.msk.f32.gmra.mxu1 %vm353_vm0, %v390_v43 }
 0x1a4   : > { %v473_v45 = vpop.f32.mrf.mxu2 }
 0x1a5   : > { %v474_v46 = vadd.f32 %v473_v45, %v391_v44 }
 0x1a6   : > { %v543_v47 = vpop.f32.mrf.mxu1 }
 0x1a7   : > { %v544_v48 = vadd.f32 %v543_v47, %v391_v44 }
 0x1a9   : > { %v549_v49 = vadd.f32 %v544_v48, %v474_v46 }
 0x1ab   : > { %v699_v51 = vmul.f32 -1.442695, %v549_v49 }
 0x1ac   : > { %v476_v52 = vpop.f32.mrf.mxu2 }
 0x1ad   : > { %732 = vpow2.f32 %v699_v51  ;;  %v477_v53 = vadd.f32 %v476_v52, %v392_v50 }
 0x1ae   : > { %v546_v54 = vpop.f32.mrf.mxu1 }
 0x1af   : > { %v547_v55 = vadd.f32 %v546_v54, %v392_v50 }
 0x1b1   : > { %v550_v56 = vadd.f32 %v547_v55, %v477_v53 }
 0x1b3   : > { %v733_v57 = vpop.eup %732  ;;  %v700_v58 = vmul.f32 -1.442695, %v550_v56 }
 0x1b4   : > { %v557_v59 = vadd.f32 1.0, %v733_v57 }
 0x1b5   : > { %734 = vpow2.f32 %v700_v58 }
 0x1b6   : > { %736 = vrcp.f32 %v557_v59  ;;  %v570_v1 = vand.u32 2147483648, %v557_v59  ;;  %v568_v3 = vand.u32 2147483647, %v557_v59  ;;  %vm564_vm4 = vweird.f32 %v557_v59 }
 0x1b8   : > { %v571_v6 = vor.u32 1.1754944e-38, %v570_v1  ;;  %vm569_vm6 = vcmp.eq.f32.partialorder %v568_v3, 8.507059e+37 }
 0x1bb   : > { %v735_v60 = vpop.eup %734 }
 0x1bc   : > { %v737_v61 = vpop.eup %736  ;;  %v558_v62 = vadd.f32 1.0, %v735_v60 }
 0x1bd   : > { %v560_v63 = vmul.f32 %v737_v61, %v557_v59  ;;  %vm565_vm3 = vweird.f32 %v737_v61 }
 0x1be   : > { %738 = vrcp.f32 %v558_v62  ;;  %vm566_vm5 = vmor %vm564_vm4, %vm565_vm3  ;;  %v585_v11 = vand.u32 2147483648, %v558_v62  ;;  %v583_v13 = vand.u32 2147483647, %v558_v62  ;;  %vm579_vm8 = vweird.f32 %v558_v62 }
 0x1bf   : > { %v561_v0 = vsub.f32 1.0, %v560_v63 }
 0x1c0   : > { %v586_v15 = vor.u32 1.1754944e-38, %v585_v11  ;;  %vm584_vm10 = vcmp.eq.f32.partialorder %v583_v13, 8.507059e+37 }
 0x1c1   : > { %v562_v2 = vmul.f32 %v737_v61, %v561_v0 }
 0x1c3   : > { %v563_v4 = vadd.f32 %v737_v61, %v562_v2 }
 0x1c4   : > { %v739_v5 = vpop.eup %738 }
 0x1c5   : > { %v567_v7 = vsel %vm566_vm5, %v737_v61, %v563_v4  ;;  %v575_v8 = vmul.f32 %v739_v5, %v558_v62  ;;  %vm580_vm7 = vweird.f32 %v739_v5 }
 0x1c6   : > { %v572_v9 = vsel %vm569_vm6, %v571_v6, %v567_v7  ;;  %vm581_vm9 = vmor %vm579_vm8, %vm580_vm7 }
 0x1c7   : > { %589 = vst.msk [vmem:[%s344_s30] sm:$0xff] %vm353_vm0, %v572_v9  ;;  %v576_v10 = vsub.f32 1.0, %v575_v8 }
 0x1c9   : > { %v577_v12 = vmul.f32 %v739_v5, %v576_v10 }
 0x1cb   : > { %v578_v14 = vadd.f32 %v739_v5, %v577_v12 }
 0x1cd   : > { %v582_v16 = vsel %vm581_vm9, %v739_v5, %v578_v14 }
 0x1ce   : > { %v587_v17 = vsel %vm584_vm10, %v586_v15, %v582_v16 }
 0x1cf   : > { %590 = vst.msk [vmem:[%s344_s30 + $0x8] sm:$0xff] %vm353_vm0, %v587_v17 }
 0x1d0 PF: > { %s19_s28 = sadd.s32 1, %s762_s28   ;;  %s890_s26 = smov %s758_s27 }
 0x1d1   : > { %p16_p5 = scmp.ge.s32.totalorder %s19_s28, 4   ;;  %s891_s27 = smov %s893_s4 }
 0x1d3   :  { %18 = sbr.rel (!%p16_p5) target bundleno = 3 (0x3), region = 89 }

// kernel: mutifuse_forward.8
= control target key start
LH: loop header
LB: loop body
LE: loop exit
PB: predicated region body
PF: predicated region fallthrough
CT: control target
= control target key end

     0   :  { %8 = vsyncpa [#allocation3], 0  ;;  %s6182_s12 = smov 0   ;;  %s8454_s0 = inlined_call_operand.vmem [shape: f32[2,2,10,256], index: 0, kind: input, shape index: {}]   ;;  %s8455_s1 = inlined_call_operand.vmem [shape: f32[49,4,20], index: 1, kind: input, shape index: {}]   ;;  %s8456_s2 = inlined_call_operand.vmem [shape: f32[2], index: 2, kind: input, shape index: {}]   ;;  %s8457_s3 = inlined_call_operand.vmem [shape: f32[2,4,128], index: 3, kind: output, shape index: {}]  }
   0x1 LB: > { %s5373_s13 = sadd.s32 4294967295, %s6111_s12   ;;  %p5375_p0 = scmp.ge.s32.totalorder %s6111_s12, 1  ;;  %s6111_s12 = sphi %s6182_s12, %s14_s12  }
   0x2   : > { %p113_p1 = scmp.lt.s32.totalorder %s6111_s12, 3  ;;  %s128_s16 = sshll.u32 %s8456_s2, 4  ;;  %s129_s16 = int_to_ptr.vmem [resolvable:$true] %s128_s16 }
   0x3   : > { %p5542_p3 = scmp.eq.s32.totalorder %s5373_s13, 0  ;;  %s6113_s17 = smov [#allocation2]  }
   0x4   : > { %p114_p2 = pnand %p5375_p0, %p113_p1 }
   0x6   : > { %p5538_p4 = pneg %p114_p2  ;;  %149 = sbr.rel (%p114_p2) target bundleno = 1346 (0x542), region = 32 }
   0x8   : > { %p5539_p5 = pnand %p5542_p3, %p5538_p4 }
   0xa   : > { %5541 = dma.vmem_to_smem (!%p5539_p5), %s129_s16, 16, %s6113_s17, [#allocation3]  }
   0xb   : > { %6106 = dma.done.wait (%p5542_p3), [#allocation3], 16  }
   0xc   : > { %6108 = vsyncadd (%p5542_p3), [#allocation3], 4294967280 }
   0xd   : > { %156 = sfence }
   0xe   : > { %p174_p6 = scmp.lt.s32.totalorder %s5373_s13, 1  ;;  %vm210_vm0 = vcmask 1041408   ;;  %vm212_vm1 = vcmask 1043458   ;;  %vm215_vm2 = vcmask 1045508   ;;  %vm218_vm3 = vcmask 1045504   ;;  %s6114_s22 = smov 127  }
   0xf   : > { %s6115_s23 = smov 126   ;;  %s6116_s24 = smov 125   ;;  %vm1470_vm4 = vcmask 891904   ;;  %vm267_vm5 = vcmask 1039360   ;;  %vm277_vm6 = vcmask 1043456   ;;  %vm420_vm7 = vcmask 1031168  }
  0x10   : > { %s8546_s13 = smov (!%p174_p6, %s5373_s13), 1  ;;  %s6117_s25 = smov 124   ;;  %vm525_vm8 = vcmask 1022976   ;;  %vm630_vm9 = vcmask 1014784   ;;  %vm735_vm10 = vcmask 1006592   ;;  %vm840_vm11 = vcmask 998400  }
  0x11   : > { %s5533_s18 = sshll.u32 %s8546_s13, 6  ;;  %s6118_s26 = smov 123   ;;  %vm1050_vm12 = vcmask 924672   ;;  %vm945_vm13 = vcmask 932864   ;;  %vm273_vm14 = vcmask 162816   ;;  %vm1155_vm15 = vcmask 916480  }
  0x12   : > { %s6199_s21 = scalar_lea.vmem %s8454_s0, %s5533_s18  ;;  %s6119_s27 = smov 114  }
  0x13   : > { %v6202_v0 = vld [vmem:[%s6199_s21] sm:$0xff]  ;;  %v198_v1 = vld [vmem:[%s6199_s21 + $0x8] sm:$0xff]  ;;  %v199_v4 = vld [vmem:[%s6199_s21 + $0x18] sm:$0x3]  ;;  %s6120_s28 = smov 122   ;;  %s6121_s29 = smov 111  }
  0x14   : > { %v200_v2 = vld [vmem:[%s6199_s21 + $0x28] sm:$0xff]  ;;  %v6206_v3 = vrot.slane %v198_v1, 6  ;;  %v184_v9 = vld [vmem:[%s6199_s21 + $0x10] sm:$0x3]  ;;  %v185_v14 = vld [vmem:[%s6199_s21 + $0x20] sm:$0xff]  ;;  %v207_v15 = vrot.slane %v199_v4, 6 }
  0x15   : > { %v208_v10 = vrot.slane %v200_v2, 6  ;;  %v201_v18 = vld [vmem:[%s6199_s21 + $0x38] sm:$0x3]  ;;  %v186_v25 = vld [vmem:[%s6199_s21 + $0x30] sm:$0x3]  ;;  %v194_v31 = vrot.slane %v185_v14, 2 }
  0x16   : > { %v6212_v5 = vsel %vm210_vm0, %v6202_v0, %v6206_v3  ;;  %v213_v6 = vsel %vm212_vm1, %v6202_v0, %v6206_v3  ;;  %v216_v7 = vsel %vm215_vm2, %v6202_v0, %v6206_v3  ;;  %v219_v8 = vsel %vm218_vm3, %v6206_v3, %v6202_v0  ;;  %v350_v35 = vld [vmem:[%s6199_s21 + $0x18] sm:$0x3]  ;;  %v349_v42 = vld [vmem:[%s6199_s21 + $0x10] sm:$0x3]  ;;  %s6122_s30 = smov 113   ;;  %s6123_s4 = smov 112  }
  0x17   : > { %v6224_v11 = vrot.slane %v213_v6, 2  ;;  %v6226_v12 = vrot.slane %v216_v7, 4  ;;  %v6228_v13 = vrot.slane %v219_v8, 6  ;;  %232 = vst [vmem:[#allocation1] ss:$4 sm:$0xff] %v6212_v5  ;;  %v223_v16 = vsel %vm212_vm1, %v185_v14, %v208_v10  ;;  %s6124_s5 = smov 110  }
  0x18   : > { %v225_v17 = vsel %vm215_vm2, %v185_v14, %v208_v10  ;;  %v221_v19 = vsel %vm210_vm0, %v184_v9, %v207_v15  ;;  %v6239_v20 = vsel %vm210_vm0, %v185_v14, %v208_v10  ;;  %v6241_v21 = vrot.slane %v223_v16, 2  ;;  %v455_v46 = vld [vmem:[%s6199_s21 + $0x18] sm:$0x3]  ;;  %v454_v49 = vld [vmem:[%s6199_s21 + $0x10] sm:$0x3]  ;;  %s6125_s6 = smov 108  }
  0x19   : > { %234 = vst [vmem:[#allocation1 + $0x1] ss:$4 sm:$0xff] %v6224_v11  ;;  %v6244_v22 = vrot.slane %v225_v17, 4  ;;  %v227_v23 = vsel %vm218_vm3, %v208_v10, %v185_v14  ;;  %v209_v24 = vrot.slane %v201_v18, 6  ;;  %v195_v32 = vrot.slane %v185_v14, 4  ;;  %s6126_s7 = smov 109  }
  0x1a   : > { %236 = vst [vmem:[#allocation1 + $0x2] ss:$4 sm:$0xff] %v6226_v12  ;;  %v6250_v26 = vrot.slane %v227_v23, 6  ;;  %v191_v36 = vrot.slane %v6202_v0, 2  ;;  %v364_v37 = vrot.slane %v350_v35, 6  ;;  %v192_v38 = vrot.slane %v6202_v0, 4 }
  0x1b   : > { %238 = vst [vmem:[#allocation1 + $0x3] ss:$4 sm:$0xff] %v6228_v13  ;;  %v229_v27 = vsel %vm210_vm0, %v186_v25, %v209_v24  ;;  %v193_v39 = vrot.slane %v6202_v0, 6  ;;  %v196_v45 = vrot.slane %v185_v14, 6  ;;  %v469_v47 = vrot.slane %v455_v46, 6  ;;  %s6127_s8 = smov 98  }
  0x1c   : > { %240 = vst [vmem:[#allocation1 + $0x20] ss:$4 sm:$0xff] %v221_v19  ;;  %v374_v43 = vsel %vm210_vm0, %v349_v42, %v364_v37  ;;  %v560_v53 = vld [vmem:[%s6199_s21 + $0x18] sm:$0x3]  ;;  %v559_v56 = vld [vmem:[%s6199_s21 + $0x10] sm:$0x3] }
  0x1d   : > { %242 = vst [vmem:[#allocation1 + $0x21] ss:$4 sm:$0xff] %v6239_v20  ;;  %v479_v50 = vsel %vm210_vm0, %v454_v49, %v469_v47  ;;  %v574_v55 = vrot.slane %v560_v53, 6  ;;  %v354_v57 = vld [vmem:[%s6199_s21 + $0x38] sm:$0x3]  ;;  %s6128_s9 = smov 100  }
  0x1e   : > { %244 = vst [vmem:[#allocation1 + $0x22] ss:$4 sm:$0xff] %v6241_v21  ;;  %v366_v59 = vrot.slane %v354_v57, 6  ;;  %v353_v62 = vld [vmem:[%s6199_s21 + $0x30] sm:$0x3]  ;;  %s6129_s10 = smov 99  }
  0x1f   : > { %246 = vst [vmem:[#allocation1 + $0x23] ss:$4 sm:$0xff] %v6244_v22  ;;  %v584_v58 = vsel %vm210_vm0, %v559_v56, %v574_v55  ;;  %v665_v1 = vld [vmem:[%s6199_s21 + $0x18] sm:$0x3]  ;;  %v664_v8 = vld [vmem:[%s6199_s21 + $0x10] sm:$0x3] }
  0x20   : > { %v382_v2 = vsel %vm210_vm0, %v353_v62, %v366_v59  ;;  %v679_v7 = vrot.slane %v665_v1, 6  ;;  %v459_v23 = vld [vmem:[%s6199_s21 + $0x38] sm:$0x3]  ;;  %v563_v49 = vld [vmem:[%s6199_s21 + $0x30] sm:$0x3]  ;;  %s6130_s11 = smov 97  }
  0x21   : > { %v770_v24 = vld [vmem:[%s6199_s21 + $0x18] sm:$0x3]  ;;  %v979_v56 = vld [vmem:[%s6199_s21 + $0x10] sm:$0x3]  ;;  %s6131_s14 = smov 95   ;;  %s6132_s15 = smov 96  }
  0x22   : > { %v247_v28 = vld.sshfl [vmem:[#allocation1] sm:$0xff pattern:$0x73625140]  ;;  %v248_v29 = vld.sshfl [vmem:[#allocation1 + $0x8] sm:$0xff pattern:$0x73625140] }
  0x23   : > { %251 = vst [vmem:[#allocation1] ss:$4 sm:$0xff] %v6250_v26  ;;  %v5601_v30 = vpack.i.bf16 %v248_v29, %v247_v28  ;;  %v784_v28 = vrot.slane %v770_v24, 6  ;;  %v769_v29 = vld [vmem:[%s6199_s21 + $0x10] sm:$0x3]  ;;  %s6133_s16 = smov 85  }
  0x24   : > { %252 = vst [vmem:[#allocation1 + $0x1] ss:$4 sm:$0xff] %v229_v27  ;;  %v458_v27 = vld [vmem:[%s6199_s21 + $0x30] sm:$0x3]  ;;  %v875_v37 = vld [vmem:[%s6199_s21 + $0x18] sm:$0x3] }
  0x25   : > { %5602 = vrot.lane.b32.xlu0 %v5601_v30, %s6114_s22  ;;  %v564_v42 = vld [vmem:[%s6199_s21 + $0x38] sm:$0x3]  ;;  %s6134_s17 = smov 94   ;;  %s6135_s18 = smov 86  }
  0x26   : > { %v6256_v33 = vld.sshfl [vmem:[#allocation1 + $0x20] sm:$0xff pattern:$0x73625140]  ;;  %v6258_v34 = vld.sshfl [vmem:[#allocation1 + $0x28] sm:$0xff pattern:$0x73625140] }
  0x27   : > { %308 = vst [vmem:[#allocation1 + $0x20] ss:$4 sm:$0xff] %v184_v9  ;;  %v576_v47 = vrot.slane %v564_v42, 6  ;;  %v980_v53 = vld [vmem:[%s6199_s21 + $0x18] sm:$0x3]  ;;  %s6136_s19 = smov 84  }
  0x28   : > { %310 = vst [vmem:[#allocation1 + $0x21] ss:$4 sm:$0xff] %v185_v14  ;;  %v689_v14 = vsel %vm210_vm0, %v664_v8, %v679_v7  ;;  %v994_v55 = vrot.slane %v980_v53, 6  ;;  %s6137_s20 = smov 82  }
  0x29   : > { %312 = vst [vmem:[#allocation1 + $0x22] ss:$4 sm:$0xff] %v194_v31 }
  0x2a   : > { %314 = vst [vmem:[#allocation1 + $0x23] ss:$4 sm:$0xff] %v195_v32  ;;  %v1004_v57 = vsel %vm210_vm0, %v979_v56, %v994_v55  ;;  %v879_v55 = vld [vmem:[%s6199_s21 + $0x38] sm:$0x3] }
  0x2b   : > { %v253_v40 = vld.sshfl [vmem:[#allocation1] sm:$0xff pattern:$0x73625140]  ;;  %v254_v41 = vld.sshfl [vmem:[#allocation1 + $0x8] sm:$0xff pattern:$0x73625140] }
  0x2c   : > { %263 = vrot.lane.b32.xlu1 %v253_v40, %s6114_s22  ;;  %300 = vst [vmem:[#allocation1] ss:$4 sm:$0xff] %v6202_v0  ;;  %v5606_v0 = vpack.i.bf16 %v6258_v34, %v6256_v33  ;;  %v794_v33 = vsel %vm210_vm0, %v769_v29, %v784_v28  ;;  %v774_v28 = vld [vmem:[%s6199_s21 + $0x38] sm:$0x3] }
  0x2d   : > { %302 = vst [vmem:[#allocation1 + $0x1] ss:$4 sm:$0xff] %v191_v36  ;;  %v1400_v56 = vld [vmem:[%s6199_s21 + $0x18] sm:$0x3] }
  0x2e   : > { %304 = vst [vmem:[#allocation1 + $0x2] ss:$4 sm:$0xff] %v192_v38  ;;  %5607 = vrot.lane.b32.xlu0 %v5606_v0, %s6114_s22  ;;  %v874_v38 = vld [vmem:[%s6199_s21 + $0x10] sm:$0x3]  ;;  %v1085_v0 = vld [vmem:[%s6199_s21 + $0x18] sm:$0x3] }
  0x2f   : > { %306 = vst [vmem:[#allocation1 + $0x3] ss:$4 sm:$0xff] %v193_v39  ;;  %v889_v39 = vrot.slane %v875_v37, 6  ;;  %v1295_v37 = vld [vmem:[%s6199_s21 + $0x18] sm:$0x3] }
  0x31   : > { %v6268_v44 = vld.sshfl [vmem:[#allocation1 + $0x20] sm:$0xff pattern:$0x73625140] }
  0x32   : > { %393 = vst [vmem:[#allocation1 + $0x20] ss:$4 sm:$0xff] %v374_v43  ;;  %v899_v43 = vsel %vm210_vm0, %v874_v38, %v889_v39  ;;  %v6412_v38 = vld [vmem:[%s6199_s21 + $0x20] sm:$0xff] }
  0x33   : > { %395 = vst [vmem:[#allocation1 + $0x21] ss:$4 sm:$0xff] %v6239_v20 }
  0x34   : > { %265 = vrot.lane.b32.xlu1 %v254_v41, %s6114_s22  ;;  %397 = vst [vmem:[#allocation1 + $0x22] ss:$4 sm:$0xff] %v6241_v21  ;;  %s6138_s22 = smov 83  }
  0x35   : > { %399 = vst [vmem:[#allocation1 + $0x23] ss:$4 sm:$0xff] %v6244_v22 }
  0x36   : > { %v6275_v48 = vld.sshfl [vmem:[#allocation1] sm:$0xff pattern:$0x73625140] }
  0x37   : > { %317 = vst [vmem:[#allocation1] ss:$4 sm:$0xff] %v196_v45 }
  0x38   : > { %318 = vst [vmem:[#allocation1 + $0x1] ss:$4 sm:$0xff] %v186_v25  ;;  %v471_v25 = vrot.slane %v459_v23, 6 }
  0x3a   : > { %v487_v30 = vsel %vm210_vm0, %v458_v27, %v471_v25 }
  0x3c   : > { %v402_v51 = vld.sshfl [vmem:[#allocation1 + $0x20] sm:$0xff pattern:$0x73625140]  ;;  %v403_v52 = vld.sshfl [vmem:[#allocation1 + $0x28] sm:$0xff pattern:$0x73625140] }
  0x3d   : > { %498 = vst [vmem:[#allocation1 + $0x20] ss:$4 sm:$0xff] %v479_v50  ;;  %v5611_v63 = vpack.i.bf16 %v403_v52, %v402_v51  ;;  %v592_v50 = vsel %vm210_vm0, %v563_v49, %v576_v47 }
  0x3e   : > { %500 = vst [vmem:[#allocation1 + $0x21] ss:$4 sm:$0xff] %v6239_v20 }
  0x3f   : > { %502 = vst [vmem:[#allocation1 + $0x22] ss:$4 sm:$0xff] %v6241_v21  ;;  %v6282_v54 = vld.sshfl [vmem:[#allocation1] sm:$0xff pattern:$0x73625140]  ;;  %5612 = vrot.lane.b32.xlu2 %v5611_v63, %s6115_s23 }
  0x40   : > { %504 = vst [vmem:[#allocation1 + $0x23] ss:$4 sm:$0xff] %v6244_v22  ;;  %v669_v63 = vld [vmem:[%s6199_s21 + $0x38] sm:$0x3]  ;;  %5386 = vmatpush.msk.msra.mxu1 %vm277_vm6, %v6282_v54 }
  0x41   : > { %385 = vst [vmem:[#allocation1] ss:$4 sm:$0xff] %v6212_v5  ;;  %v681_v1 = vrot.slane %v669_v63, 6  ;;  %v4445_v54 = vld [vmem:[%s6199_s21 + $0x18] sm:$0x3] }
  0x42   : > { %387 = vst [vmem:[#allocation1 + $0x1] ss:$4 sm:$0xff] %v6224_v11  ;;  %341 = vmatpush.msra.mxu1 %v6268_v44 }
  0x43   : > { %389 = vst [vmem:[#allocation1 + $0x2] ss:$4 sm:$0xff] %v6226_v12 }
  0x44   : > { %391 = vst [vmem:[#allocation1 + $0x3] ss:$4 sm:$0xff] %v6228_v13  ;;  %342 = vmatpush.msra.mxu1 %v6275_v48 }
  0x47   : > { %v507_v60 = vld.sshfl [vmem:[#allocation1 + $0x20] sm:$0xff pattern:$0x73625140]  ;;  %v508_v61 = vld.sshfl [vmem:[#allocation1 + $0x28] sm:$0xff pattern:$0x73625140] }
  0x48   : > { %603 = vst [vmem:[#allocation1 + $0x20] ss:$4 sm:$0xff] %v584_v58  ;;  %v5616_v10 = vpack.i.bf16 %v508_v61, %v507_v60 }
  0x49   : > { %605 = vst [vmem:[#allocation1 + $0x21] ss:$4 sm:$0xff] %v6239_v20 }
  0x4a   : > { %607 = vst [vmem:[#allocation1 + $0x22] ss:$4 sm:$0xff] %v6241_v21  ;;  %5617 = vrot.lane.b32.xlu0 %v5616_v10, %s6116_s24 }
  0x4b   : > { %609 = vst [vmem:[#allocation1 + $0x23] ss:$4 sm:$0xff] %v6244_v22  ;;  %v400_v4 = vld.sshfl [vmem:[#allocation1] sm:$0xff pattern:$0x73625140] }
  0x4c   : > { %v401_v6 = vld.sshfl [vmem:[#allocation1 + $0x8] sm:$0xff pattern:$0x73625140] }
  0x4d   : > { %404 = vst [vmem:[#allocation1] ss:$4 sm:$0xff] %v6250_v26  ;;  %v5621_v9 = vpack.i.bf16 %v401_v6, %v400_v4  ;;  %v1099_v4 = vrot.slane %v1085_v0, 6  ;;  %v1084_v6 = vld [vmem:[%s6199_s21 + $0x10] sm:$0x3] }
  0x4e   : > { %405 = vst [vmem:[#allocation1 + $0x1] ss:$4 sm:$0xff] %v382_v2  ;;  %v668_v2 = vld [vmem:[%s6199_s21 + $0x30] sm:$0x3] }
  0x4f   : > { %5622 = vrot.lane.b32.xlu2 %v5621_v9, %s6115_s23  ;;  %v697_v7 = vsel %vm210_vm0, %v668_v2, %v681_v1  ;;  %v1109_v10 = vsel %vm210_vm0, %v1084_v6, %v1099_v4  ;;  %v1505_v6 = vld [vmem:[%s6199_s21 + $0x18] sm:$0x3] }
  0x52   : > { %v612_v15 = vld.sshfl [vmem:[#allocation1 + $0x20] sm:$0xff pattern:$0x73625140]  ;;  %v613_v16 = vld.sshfl [vmem:[#allocation1 + $0x28] sm:$0xff pattern:$0x73625140] }
  0x53   : > { %v5626_v17 = vpack.i.bf16 %v613_v16, %v612_v15  ;;  %708 = vst [vmem:[#allocation1 + $0x20] ss:$4 sm:$0xff] %v689_v14  ;;  %v1190_v16 = vld [vmem:[%s6199_s21 + $0x18] sm:$0x3] }
  0x54   : > { %710 = vst [vmem:[#allocation1 + $0x21] ss:$4 sm:$0xff] %v6239_v20 }
  0x55   : > { %5627 = vrot.lane.b32.xlu1 %v5626_v17, %s6117_s25  ;;  %v406_v18 = vld.sshfl [vmem:[#allocation1] sm:$0xff pattern:$0x73625140]  ;;  %v407_v19 = vld.sshfl [vmem:[#allocation1 + $0x8] sm:$0xff pattern:$0x73625140] }
  0x56   : > { %490 = vst [vmem:[#allocation1] ss:$4 sm:$0xff] %v6212_v5  ;;  %416 = vrot.lane.b32.xlu0 %v406_v18, %s6115_s23  ;;  %v1189_v17 = vld [vmem:[%s6199_s21 + $0x10] sm:$0x3]  ;;  %v1204_v18 = vrot.slane %v1190_v16, 6 }
  0x57   : > { %492 = vst [vmem:[#allocation1 + $0x1] ss:$4 sm:$0xff] %v6224_v11  ;;  %v984_v16 = vld [vmem:[%s6199_s21 + $0x38] sm:$0x3] }
  0x58   : > { %494 = vst [vmem:[#allocation1 + $0x2] ss:$4 sm:$0xff] %v6226_v12  ;;  %v1214_v29 = vsel %vm210_vm0, %v1189_v17, %v1204_v18 }
  0x59   : > { %496 = vst [vmem:[#allocation1 + $0x3] ss:$4 sm:$0xff] %v6228_v13 }
  0x5a   : > { %712 = vst [vmem:[#allocation1 + $0x22] ss:$4 sm:$0xff] %v6241_v21 }
  0x5b   : > { %714 = vst [vmem:[#allocation1 + $0x23] ss:$4 sm:$0xff] %v6244_v22 }
  0x5d   : > { %418 = vrot.lane.b32.xlu1 %v407_v19, %s6115_s23  ;;  %s6139_s23 = smov 81  }
  0x60   : > { %v6322_v31 = vld.sshfl [vmem:[#allocation1] sm:$0xff pattern:$0x73625140]  ;;  %v6324_v32 = vld.sshfl [vmem:[#allocation1 + $0x8] sm:$0xff pattern:$0x73625140] }
  0x61   : > { %509 = vst [vmem:[#allocation1] ss:$4 sm:$0xff] %v6250_v26  ;;  %v5636_v24 = vpack.i.bf16 %v6324_v32, %v6322_v31  ;;  %v786_v32 = vrot.slane %v774_v28, 6 }
  0x62   : > { %510 = vst [vmem:[#allocation1 + $0x1] ss:$4 sm:$0xff] %v487_v30  ;;  %v717_v34 = vld.sshfl [vmem:[#allocation1 + $0x20] sm:$0xff pattern:$0x73625140] }
  0x63   : > { %v718_v35 = vld.sshfl [vmem:[#allocation1 + $0x28] sm:$0xff pattern:$0x73625140] }
  0x64   : > { %v5631_v36 = vpack.i.bf16 %v718_v35, %v717_v34  ;;  %813 = vst [vmem:[#allocation1 + $0x20] ss:$4 sm:$0xff] %v794_v33  ;;  %v773_v34 = vld [vmem:[%s6199_s21 + $0x30] sm:$0x3]  ;;  %v1297_v35 = vld [vmem:[%s6199_s21 + $0x28] sm:$0xff] }
  0x65   : > { %815 = vst [vmem:[#allocation1 + $0x21] ss:$4 sm:$0xff] %v6239_v20  ;;  %v802_v39 = vsel %vm210_vm0, %v773_v34, %v786_v32 }
  0x66   : > { %5632 = vrot.lane.b32.xlu2 %v5631_v36, %s6118_s26  ;;  %817 = vst [vmem:[#allocation1 + $0x22] ss:$4 sm:$0xff] %v6241_v21  ;;  %v6407_v36 = vrot.slane %v1297_v35, 6 }
  0x67   : > { %819 = vst [vmem:[#allocation1 + $0x23] ss:$4 sm:$0xff] %v6244_v22 }
  0x69   : > { %v511_v40 = vld.sshfl [vmem:[#allocation1] sm:$0xff pattern:$0x73625140]  ;;  %v6334_v41 = vld.sshfl [vmem:[#allocation1 + $0x8] sm:$0xff pattern:$0x73625140] }
  0x6a   : > { %521 = vrot.lane.b32.xlu1 %v511_v40, %s6116_s24  ;;  %595 = vst [vmem:[#allocation1] ss:$4 sm:$0xff] %v6212_v5  ;;  %v1309_v40 = vrot.slane %v1295_v37, 6 }
  0x6b   : > { %597 = vst [vmem:[#allocation1 + $0x1] ss:$4 sm:$0xff] %v6224_v11 }
  0x6c   : > { %599 = vst [vmem:[#allocation1 + $0x2] ss:$4 sm:$0xff] %v6226_v12 }
  0x6d   : > { %601 = vst [vmem:[#allocation1 + $0x3] ss:$4 sm:$0xff] %v6228_v13 }
  0x6e   : > { %v822_v45 = vld.sshfl [vmem:[#allocation1 + $0x20] sm:$0xff pattern:$0x73625140]  ;;  %v823_v46 = vld.sshfl [vmem:[#allocation1 + $0x28] sm:$0xff pattern:$0x73625140]  ;;  %5637 = vrot.lane.b32.xlu2 %v5636_v24, %s6116_s24 }
  0x6f   : > { %918 = vst [vmem:[#allocation1 + $0x20] ss:$4 sm:$0xff] %v899_v43  ;;  %v5641_v25 = vpack.i.bf16 %v823_v46, %v822_v45  ;;  %v996_v24 = vrot.slane %v984_v16, 6 }
  0x70   : > { %920 = vst [vmem:[#allocation1 + $0x21] ss:$4 sm:$0xff] %v6239_v20 }
  0x71   : > { %922 = vst [vmem:[#allocation1 + $0x22] ss:$4 sm:$0xff] %v6241_v21  ;;  %5642 = vrot.lane.b32.xlu0 %v5641_v25, %s6120_s28  ;;  %v983_v25 = vld [vmem:[%s6199_s21 + $0x30] sm:$0x3] }
  0x72   : > { %924 = vst [vmem:[#allocation1 + $0x23] ss:$4 sm:$0xff] %v6244_v22  ;;  %v1012_v28 = vsel %vm210_vm0, %v983_v25, %v996_v24 }
  0x74   : > { %v6348_v51 = vld.sshfl [vmem:[#allocation1] sm:$0xff pattern:$0x73625140]  ;;  %v6350_v52 = vld.sshfl [vmem:[#allocation1 + $0x8] sm:$0xff pattern:$0x73625140] }
  0x75   : > { %614 = vst [vmem:[#allocation1] ss:$4 sm:$0xff] %v6250_v26  ;;  %v5651_v33 = vpack.i.bf16 %v6350_v52, %v6348_v51 }
  0x76   : > { %615 = vst [vmem:[#allocation1 + $0x1] ss:$4 sm:$0xff] %v592_v50  ;;  %523 = vrot.lane.b32.xlu2 %v6334_v41, %s6116_s24  ;;  %v6431_v41 = vsel %vm210_vm0, %v6412_v38, %v6407_v36  ;;  %v1323_v50 = vsel %vm215_vm2, %v6412_v38, %v6407_v36  ;;  %s6140_s24 = smov 72  }
  0x77   : > { %v6446_v53 = vrot.slane %v1323_v50, 4 }
  0x79   : > { %v927_v58 = vld.sshfl [vmem:[#allocation1 + $0x20] sm:$0xff pattern:$0x73625140]  ;;  %v928_v59 = vld.sshfl [vmem:[#allocation1 + $0x28] sm:$0xff pattern:$0x73625140]  ;;  %5652 = vrot.lane.b32.xlu0 %v5651_v33, %s6117_s25 }
  0x7a   : > { %v5646_v60 = vpack.i.bf16 %v928_v59, %v927_v58  ;;  %1023 = vst [vmem:[#allocation1 + $0x20] ss:$4 sm:$0xff] %v1004_v57  ;;  %v891_v57 = vrot.slane %v879_v55, 6  ;;  %v878_v58 = vld [vmem:[%s6199_s21 + $0x30] sm:$0x3]  ;;  %v1414_v59 = vrot.slane %v1400_v56, 6  ;;  %v6522_v55 = vsel %vm218_vm3, %v6407_v36, %v6412_v38 }
  0x7b   : > { %1025 = vst [vmem:[#allocation1 + $0x21] ss:$4 sm:$0xff] %v6239_v20  ;;  %v1714_v56 = vld [vmem:[%s6199_s21 + $0x10] sm:$0x3] }
  0x7c   : > { %5647 = vrot.lane.b32.xlu1 %v5646_v60, %s6119_s27  ;;  %1027 = vst [vmem:[#allocation1 + $0x22] ss:$4 sm:$0xff] %v6241_v21  ;;  %v1399_v60 = vld [vmem:[%s6199_s21 + $0x10] sm:$0x3] }
  0x7d   : > { %v6359_v61 = vld.sshfl [vmem:[#allocation1] sm:$0xff pattern:$0x73625140]  ;;  %v6361_v62 = vld.sshfl [vmem:[#allocation1 + $0x8] sm:$0xff pattern:$0x73625140]  ;;  %v1424_v1 = vsel %vm210_vm0, %v1399_v60, %v1414_v59 }
  0x7e   : > { %700 = vst [vmem:[#allocation1] ss:$4 sm:$0xff] %v6212_v5 }
  0x7f   : > { %702 = vst [vmem:[#allocation1 + $0x1] ss:$4 sm:$0xff] %v6224_v11 }
  0x80   : > { %704 = vst [vmem:[#allocation1 + $0x2] ss:$4 sm:$0xff] %v6226_v12 }
  0x81   : > { %706 = vst [vmem:[#allocation1 + $0x3] ss:$4 sm:$0xff] %v6228_v13  ;;  %628 = vrot.lane.b32.xlu0 %v6361_v62, %s6117_s25  ;;  %v907_v62 = vsel %vm210_vm0, %v878_v58, %v891_v57  ;;  %v1819_v58 = vld [vmem:[%s6199_s21 + $0x10] sm:$0x3] }
  0x82   : > { %1029 = vst [vmem:[#allocation1 + $0x23] ss:$4 sm:$0xff] %v6244_v22 }
  0x88   : > { %v715_v8 = vld.sshfl [vmem:[#allocation1] sm:$0xff pattern:$0x73625140]  ;;  %v716_v9 = vld.sshfl [vmem:[#allocation1 + $0x8] sm:$0xff pattern:$0x73625140] }
  0x89   : > { %719 = vst [vmem:[#allocation1] ss:$4 sm:$0xff] %v6250_v26  ;;  %v6375_v14 = vld.sshfl [vmem:[#allocation1 + $0x20] sm:$0xff pattern:$0x73625140]  ;;  %v5666_v27 = vpack.i.bf16 %v716_v9, %v715_v8  ;;  %v1519_v8 = vrot.slane %v1505_v6, 6 }
  0x8a   : > { %720 = vst [vmem:[#allocation1 + $0x1] ss:$4 sm:$0xff] %v697_v7  ;;  %v6377_v15 = vld.sshfl [vmem:[#allocation1 + $0x28] sm:$0xff pattern:$0x73625140] }
  0x8b   : > { %1128 = vst [vmem:[#allocation1 + $0x20] ss:$4 sm:$0xff] %v1109_v10  ;;  %5667 = vrot.lane.b32.xlu1 %v5666_v27, %s6118_s26  ;;  %v1504_v7 = vld [vmem:[%s6199_s21 + $0x10] sm:$0x3]  ;;  %v1610_v27 = vld [vmem:[%s6199_s21 + $0x18] sm:$0x3] }
  0x8c   : > { %1130 = vst [vmem:[#allocation1 + $0x21] ss:$4 sm:$0xff] %v6239_v20  ;;  %v1529_v17 = vsel %vm210_vm0, %v1504_v7, %v1519_v8  ;;  %v1624_v32 = vrot.slane %v1610_v27, 6  ;;  %v1292_v8 = vld [vmem:[%s6199_s21] sm:$0xff] }
  0x8d   : > { %1132 = vst [vmem:[#allocation1 + $0x22] ss:$4 sm:$0xff] %v6241_v21  ;;  %v1313_v16 = vsel %vm212_vm1, %v1292_v8, %v6206_v3  ;;  %v1315_v24 = vsel %vm215_vm2, %v1292_v8, %v6206_v3  ;;  %v1317_v25 = vsel %vm218_vm3, %v6206_v3, %v1292_v8  ;;  %v1312_v27 = vsel %vm210_vm0, %v1292_v8, %v6206_v3 }
  0x8e   : > { %1134 = vst [vmem:[#allocation1 + $0x23] ss:$4 sm:$0xff] %v6244_v22 }
  0x91   : > { %v6384_v19 = vld.sshfl [vmem:[#allocation1] sm:$0xff pattern:$0x73625140]  ;;  %v722_v23 = vld.sshfl [vmem:[#allocation1 + $0x8] sm:$0xff pattern:$0x73625140] }
  0x92   : > { %805 = vst [vmem:[#allocation1] ss:$4 sm:$0xff] %v6212_v5 }
  0x93   : > { %807 = vst [vmem:[#allocation1 + $0x1] ss:$4 sm:$0xff] %v6224_v11 }
  0x94   : > { %809 = vst [vmem:[#allocation1 + $0x2] ss:$4 sm:$0xff] %v6226_v12 }
  0x95   : > { %811 = vst [vmem:[#allocation1 + $0x3] ss:$4 sm:$0xff] %v6228_v13  ;;  %v6397_v30 = vld.sshfl [vmem:[#allocation1 + $0x20] sm:$0xff pattern:$0x73625140] }
  0x96   : > { %v6399_v31 = vld.sshfl [vmem:[#allocation1 + $0x28] sm:$0xff pattern:$0x73625140] }
  0x97   : > { %1233 = vst [vmem:[#allocation1 + $0x20] ss:$4 sm:$0xff] %v1214_v29  ;;  %v1609_v29 = vld [vmem:[%s6199_s21 + $0x10] sm:$0x3] }
  0x98   : > { %1235 = vst [vmem:[#allocation1 + $0x21] ss:$4 sm:$0xff] %v6239_v20  ;;  %v1634_v35 = vsel %vm210_vm0, %v1609_v29, %v1624_v32  ;;  %v1316_v29 = vrot.slane %v1315_v24, 4  ;;  %v1318_v32 = vrot.slane %v1317_v25, 6  ;;  %v2134_v24 = vld [vmem:[%s6199_s21 + $0x10] sm:$0x3] }
  0x99   : > { %1237 = vst [vmem:[#allocation1 + $0x22] ss:$4 sm:$0xff] %v6241_v21  ;;  %v1294_v21 = vld [vmem:[%s6199_s21 + $0x10] sm:$0x3]  ;;  %v1404_v25 = vld [vmem:[%s6199_s21 + $0x38] sm:$0x3] }
  0x9a   : > { %1239 = vst [vmem:[#allocation1 + $0x23] ss:$4 sm:$0xff] %v6244_v22  ;;  %v1321_v22 = vsel %vm212_vm1, %v6412_v38, %v6407_v36  ;;  %v1319_v43 = vsel %vm210_vm0, %v1294_v21, %v1309_v40  ;;  %v1820_v38 = vld [vmem:[%s6199_s21 + $0x18] sm:$0x3] }
  0x9b   : > { %v6433_v45 = vrot.slane %v1321_v22, 2  ;;  %v1089_v22 = vld [vmem:[%s6199_s21 + $0x38] sm:$0x3]  ;;  %v1834_v59 = vrot.slane %v1820_v38, 6 }
  0x9c   : > { %v6418_v42 = vld.sshfl [vmem:[#allocation1] sm:$0xff pattern:$0x73625140]  ;;  %v6420_v20 = vld.sshfl [vmem:[#allocation1 + $0x8] sm:$0xff pattern:$0x73625140] }
  0x9d   : > { %824 = vst [vmem:[#allocation1] ss:$4 sm:$0xff] %v6250_v26  ;;  %v1844_v6 = vsel %vm210_vm0, %v1819_v58, %v1834_v59 }
  0x9e   : > { %825 = vst [vmem:[#allocation1 + $0x1] ss:$4 sm:$0xff] %v802_v39 }
  0xa1   : > { %v1242_v46 = vld.sshfl [vmem:[#allocation1 + $0x20] sm:$0xff pattern:$0x73625140]  ;;  %v1243_v47 = vld.sshfl [vmem:[#allocation1 + $0x28] sm:$0xff pattern:$0x73625140] }
  0xa2   : > { %v5671_v49 = vpack.i.bf16 %v1243_v47, %v1242_v46  ;;  %1338 = vst [vmem:[#allocation1 + $0x20] ss:$4 sm:$0xff] %v1319_v43  ;;  %v1715_v43 = vld [vmem:[%s6199_s21 + $0x18] sm:$0x3]  ;;  %v1101_v46 = vrot.slane %v1089_v22, 6 }
  0xa3   : > { %1340 = vst [vmem:[#allocation1 + $0x21] ss:$4 sm:$0xff] %v6431_v41  ;;  %v1088_v47 = vld [vmem:[%s6199_s21 + $0x30] sm:$0x3]  ;;  %v1729_v50 = vrot.slane %v1715_v43, 6 }
  0xa4   : > { %5672 = vrot.lane.b32.xlu1 %v5671_v49, %s6121_s29  ;;  %1342 = vst [vmem:[#allocation1 + $0x22] ss:$4 sm:$0xff] %v6433_v45  ;;  %v5656_v49 = vpack.i.bf16 %v6377_v15, %v6375_v14  ;;  %v1117_v57 = vsel %vm210_vm0, %v1088_v47, %v1101_v46  ;;  %v1299_v47 = vld [vmem:[%s6199_s21 + $0x38] sm:$0x3] }
  0xa5   : > { %v826_v51 = vld.sshfl [vmem:[#allocation1] sm:$0xff pattern:$0x73625140]  ;;  %v6443_v52 = vld.sshfl [vmem:[#allocation1 + $0x8] sm:$0xff pattern:$0x73625140] }
  0xa6   : > { %910 = vst [vmem:[#allocation1] ss:$4 sm:$0xff] %v6212_v5  ;;  %5657 = vrot.lane.b32.xlu2 %v5656_v49, %s6122_s30  ;;  %v1311_v3 = vrot.slane %v1299_v47, 6  ;;  %v5681_v49 = vpack.i.bf16 %v6420_v20, %v6418_v42 }
  0xa7   : > { %912 = vst [vmem:[#allocation1 + $0x1] ss:$4 sm:$0xff] %v6224_v11 }
  0xa8   : > { %914 = vst [vmem:[#allocation1 + $0x2] ss:$4 sm:$0xff] %v6226_v12 }
  0xa9   : > { %916 = vst [vmem:[#allocation1 + $0x3] ss:$4 sm:$0xff] %v6228_v13 }
  0xaa   : > { %1344 = vst [vmem:[#allocation1 + $0x23] ss:$4 sm:$0xff] %v6446_v53 }
  0xac   : > { %733 = vrot.lane.b32.xlu1 %v722_v23, %s6118_s26 }
  0xae   : > { %626 = vrot.lane.b32.xlu2 %v6359_v61, %s6117_s25  ;;  %v1194_v61 = vld [vmem:[%s6199_s21 + $0x38] sm:$0x3]  ;;  %s6141_s25 = smov 80  }
  0xb0   : > { %v6458_v63 = vld.sshfl [vmem:[#allocation1] sm:$0xff pattern:$0x73625140]  ;;  %v6460_v0 = vld.sshfl [vmem:[#allocation1 + $0x8] sm:$0xff pattern:$0x73625140] }
  0xb1   : > { %929 = vst [vmem:[#allocation1] ss:$4 sm:$0xff] %v6250_v26  ;;  %v6464_v2 = vld.sshfl [vmem:[#allocation1 + $0x20] sm:$0xff pattern:$0x73625140] }
  0xb2   : > { %930 = vst [vmem:[#allocation1 + $0x1] ss:$4 sm:$0xff] %v907_v62  ;;  %v6466_v4 = vld.sshfl [vmem:[#allocation1 + $0x28] sm:$0xff pattern:$0x73625140] }
  0xb3   : > { %1443 = vst [vmem:[#allocation1 + $0x20] ss:$4 sm:$0xff] %v1424_v1  ;;  %v5676_v1 = vpack.i.bf16 %v6466_v4, %v6464_v2  ;;  %v1193_v2 = vld [vmem:[%s6199_s21 + $0x30] sm:$0x3] }
  0xb4   : > { %836 = vrot.lane.b32.xlu1 %v826_v51, %s6120_s28  ;;  %1445 = vst [vmem:[#allocation1 + $0x21] ss:$4 sm:$0xff] %v6431_v41  ;;  %v5661_v51 = vpack.i.bf16 %v6399_v31, %v6397_v30  ;;  %v1739_v30 = vsel %vm210_vm0, %v1714_v56, %v1729_v50  ;;  %v2030_v50 = vld [vmem:[%s6199_s21 + $0x18] sm:$0x3]  ;;  %v1398_v56 = vld [vmem:[%s6199_s21 + $0x8] sm:$0xff] }
  0xb5   : > { %1447 = vst [vmem:[#allocation1 + $0x22] ss:$4 sm:$0xff] %v6433_v45  ;;  %v2044_v42 = vrot.slane %v2030_v50, 6  ;;  %v1413_v58 = vrot.slane %v1398_v56, 6 }
  0xb6   : > { %1449 = vst [vmem:[#allocation1 + $0x23] ss:$4 sm:$0xff] %v6446_v53  ;;  %5662 = vrot.lane.b32.xlu0 %v5661_v51, %s6123_s4  ;;  %5677 = vrot.lane.b32.xlu2 %v5676_v1, %s6124_s5  ;;  %v1298_v51 = vld [vmem:[%s6199_s21 + $0x30] sm:$0x3] }
  0xb7   : > { %v1327_v20 = vsel %vm210_vm0, %v1298_v51, %v1311_v3 }
  0xb9   : > { %v6474_v9 = vld.sshfl [vmem:[#allocation1] sm:$0xff pattern:$0x73625140]  ;;  %v6476_v10 = vld.sshfl [vmem:[#allocation1 + $0x8] sm:$0xff pattern:$0x73625140] }
  0xba   : > { %1015 = vst [vmem:[#allocation1] ss:$4 sm:$0xff] %v6212_v5 }
  0xbb   : > { %1017 = vst [vmem:[#allocation1 + $0x1] ss:$4 sm:$0xff] %v6224_v11 }
  0xbc   : > { %1019 = vst [vmem:[#allocation1 + $0x2] ss:$4 sm:$0xff] %v6226_v12 }
  0xbd   : > { %1021 = vst [vmem:[#allocation1 + $0x3] ss:$4 sm:$0xff] %v6228_v13  ;;  %v6484_v18 = vld.sshfl [vmem:[#allocation1 + $0x20] sm:$0xff pattern:$0x73625140] }
  0xbe   : > { %v6486_v23 = vld.sshfl [vmem:[#allocation1 + $0x28] sm:$0xff pattern:$0x73625140]  ;;  %731 = vrot.lane.b32.xlu0 %v6384_v19, %s6118_s26  ;;  %5682 = vrot.lane.b32.xlu2 %v5681_v49, %s6120_s28  ;;  %s6142_s26 = smov 71  }
  0xbf   : > { %1548 = vst [vmem:[#allocation1 + $0x20] ss:$4 sm:$0xff] %v1529_v17  ;;  %v1925_v17 = vld [vmem:[%s6199_s21 + $0x18] sm:$0x3] }
  0xc0   : > { %1550 = vst [vmem:[#allocation1 + $0x21] ss:$4 sm:$0xff] %v6431_v41 }
  0xc1   : > { %1552 = vst [vmem:[#allocation1 + $0x22] ss:$4 sm:$0xff] %v6433_v45 }
  0xc2   : > { %1554 = vst [vmem:[#allocation1 + $0x23] ss:$4 sm:$0xff] %v6446_v53 }
  0xc4   : > { %v6495_v33 = vld.sshfl [vmem:[#allocation1] sm:$0xff pattern:$0x73625140]  ;;  %v6497_v34 = vld.sshfl [vmem:[#allocation1 + $0x8] sm:$0xff pattern:$0x73625140] }
  0xc5   : > { %1034 = vst [vmem:[#allocation1] ss:$4 sm:$0xff] %v6250_v26  ;;  %v5711_v38 = vpack.i.bf16 %v6497_v34, %v6495_v33  ;;  %v1420_v33 = vsel %vm215_vm2, %v1292_v8, %v1413_v58 }
  0xc6   : > { %1035 = vst [vmem:[#allocation1 + $0x1] ss:$4 sm:$0xff] %v1012_v28  ;;  %v1314_v28 = vrot.slane %v1313_v16, 2  ;;  %838 = vrot.lane.b32.xlu2 %v6443_v52, %s6120_s28  ;;  %v6639_v52 = vrot.slane %v1420_v33, 4  ;;  %s6144_s28 = smov 69  }
  0xc9   : > { %v1557_v37 = vld.sshfl [vmem:[#allocation1 + $0x20] sm:$0xff pattern:$0x73625140]  ;;  %v1558_v39 = vld.sshfl [vmem:[#allocation1 + $0x28] sm:$0xff pattern:$0x73625140] }
  0xca   : > { %1653 = vst [vmem:[#allocation1 + $0x20] ss:$4 sm:$0xff] %v1634_v35  ;;  %v1924_v35 = vld [vmem:[%s6199_s21 + $0x10] sm:$0x3] }
  0xcb   : > { %1655 = vst [vmem:[#allocation1 + $0x21] ss:$4 sm:$0xff] %v6431_v41 }
  0xcc   : > { %1657 = vst [vmem:[#allocation1 + $0x22] ss:$4 sm:$0xff] %v6433_v45 }
  0xcd   : > { %v6503_v40 = vld.sshfl [vmem:[#allocation1] sm:$0xff pattern:$0x73625140]  ;;  %v6505_v21 = vld.sshfl [vmem:[#allocation1 + $0x8] sm:$0xff pattern:$0x73625140] }
  0xce   : > { %1120 = vst [vmem:[#allocation1] ss:$4 sm:$0xff] %v6212_v5 }
  0xcf   : > { %1122 = vst [vmem:[#allocation1 + $0x1] ss:$4 sm:$0xff] %v6224_v11 }
  0xd0   : > { %1124 = vst [vmem:[#allocation1 + $0x2] ss:$4 sm:$0xff] %v6226_v12 }
  0xd1   : > { %1126 = vst [vmem:[#allocation1 + $0x3] ss:$4 sm:$0xff] %v6228_v13 }
  0xd2   : > { %1659 = vst [vmem:[#allocation1 + $0x23] ss:$4 sm:$0xff] %v6446_v53 }
  0xd8   : > { %v6528_v14 = vld.sshfl [vmem:[#allocation1] sm:$0xff pattern:$0x73625140]  ;;  %v6530_v15 = vld.sshfl [vmem:[#allocation1 + $0x8] sm:$0xff pattern:$0x73625140] }
  0xd9   : > { %1139 = vst [vmem:[#allocation1] ss:$4 sm:$0xff] %v6250_v26  ;;  %v6534_v31 = vld.sshfl [vmem:[#allocation1 + $0x20] sm:$0xff pattern:$0x73625140] }
  0xda   : > { %1140 = vst [vmem:[#allocation1 + $0x1] ss:$4 sm:$0xff] %v1117_v57  ;;  %v6536_v36 = vld.sshfl [vmem:[#allocation1 + $0x28] sm:$0xff pattern:$0x73625140]  ;;  %v6600_v57 = vrot.slane %v6522_v55, 6 }
  0xdb   : > { %1758 = vst [vmem:[#allocation1 + $0x20] ss:$4 sm:$0xff] %v1739_v30  ;;  %v5686_v30 = vpack.i.bf16 %v6486_v23, %v6484_v18  ;;  %v2029_v55 = vld [vmem:[%s6199_s21 + $0x10] sm:$0x3]  ;;  %v1418_v23 = vsel %vm212_vm1, %v1292_v8, %v1413_v58  ;;  %v5701_v47 = vpack.i.bf16 %v6536_v36, %v6534_v31  ;;  %v1509_v31 = vld [vmem:[%s6199_s21 + $0x38] sm:$0x3] }
  0xdc   : > { %1760 = vst [vmem:[#allocation1 + $0x21] ss:$4 sm:$0xff] %v6431_v41  ;;  %v2054_v18 = vsel %vm210_vm0, %v2029_v55, %v2044_v42  ;;  %v6634_v16 = vrot.slane %v1418_v23, 2 }
  0xdd   : > { %1762 = vst [vmem:[#allocation1 + $0x22] ss:$4 sm:$0xff] %v6433_v45  ;;  %5687 = vrot.lane.b32.xlu0 %v5686_v30, %s6126_s7  ;;  %5702 = vrot.lane.b32.xlu2 %v5701_v47, %s6128_s9  ;;  %v1521_v30 = vrot.slane %v1509_v31, 6 }
  0xde   : > { %1764 = vst [vmem:[#allocation1 + $0x23] ss:$4 sm:$0xff] %v6446_v53 }
  0xe1   : > { %v6547_v60 = vld.sshfl [vmem:[#allocation1] sm:$0xff pattern:$0x73625140]  ;;  %v6549_v62 = vld.sshfl [vmem:[#allocation1 + $0x8] sm:$0xff pattern:$0x73625140] }
  0xe2   : > { %1225 = vst [vmem:[#allocation1] ss:$4 sm:$0xff] %v6212_v5  ;;  %v1206_v5 = vrot.slane %v1194_v61, 6 }
  0xe3   : > { %1227 = vst [vmem:[#allocation1 + $0x1] ss:$4 sm:$0xff] %v6224_v11  ;;  %v5691_v11 = vpack.i.bf16 %v1558_v39, %v1557_v37 }
  0xe4   : > { %1229 = vst [vmem:[#allocation1 + $0x2] ss:$4 sm:$0xff] %v6226_v12  ;;  %v1222_v12 = vsel %vm210_vm0, %v1193_v2, %v1206_v5  ;;  %v5696_v5 = vpack.i.bf16 %v6460_v0, %v6458_v63 }
  0xe5   : > { %1231 = vst [vmem:[#allocation1 + $0x3] ss:$4 sm:$0xff] %v6228_v13  ;;  %v6559_v19 = vld.sshfl [vmem:[#allocation1 + $0x20] sm:$0xff pattern:$0x73625140]  ;;  %5692 = vrot.lane.b32.xlu1 %v5691_v11, %s6125_s6  ;;  %941 = vrot.lane.b32.xlu2 %v6474_v9, %s6119_s27 }
  0xe6   : > { %v6562_v7 = vld.sshfl [vmem:[#allocation1 + $0x28] sm:$0xff pattern:$0x73625140]  ;;  %v2135_v11 = vld [vmem:[%s6199_s21 + $0x18] sm:$0x3]  ;;  %5697 = vrot.lane.b32.xlu0 %v5696_v5, %s6119_s27 }
  0xe7   : > { %1863 = vst [vmem:[#allocation1 + $0x20] ss:$4 sm:$0xff] %v1844_v6  ;;  %v1422_v6 = vsel %vm218_vm3, %v1413_v58, %v1292_v8  ;;  %v2149_v0 = vrot.slane %v2135_v11, 6  ;;  %v5706_v36 = vpack.i.bf16 %v6562_v7, %v6559_v19 }
  0xe8   : > { %1865 = vst [vmem:[#allocation1 + $0x21] ss:$4 sm:$0xff] %v6431_v41  ;;  %v6641_v63 = vrot.slane %v1422_v6, 6 }
  0xe9   : > { %1867 = vst [vmem:[#allocation1 + $0x22] ss:$4 sm:$0xff] %v6433_v45 }
  0xea   : > { %1869 = vst [vmem:[#allocation1 + $0x23] ss:$4 sm:$0xff] %v6446_v53 }
  0xec   : > { %v6569_v13 = vld.sshfl [vmem:[#allocation1] sm:$0xff pattern:$0x73625140]  ;;  %v6571_v4 = vld.sshfl [vmem:[#allocation1 + $0x8] sm:$0xff pattern:$0x73625140] }
  0xed   : > { %1244 = vst [vmem:[#allocation1] ss:$4 sm:$0xff] %v6250_v26  ;;  %v1939_v26 = vrot.slane %v1925_v17, 6  ;;  %5712 = vrot.lane.b32.xlu1 %v5711_v38, %s6122_s30  ;;  %v1508_v38 = vld [vmem:[%s6199_s21 + $0x30] sm:$0x3] }
  0xee   : > { %1245 = vst [vmem:[#allocation1 + $0x1] ss:$4 sm:$0xff] %v1222_v12  ;;  %v6632_v12 = vsel %vm210_vm0, %v1292_v8, %v1413_v58  ;;  %943 = vrot.lane.b32.xlu0 %v6476_v10, %s6119_s27  ;;  %v1537_v58 = vsel %vm210_vm0, %v1508_v38, %v1521_v30  ;;  %v6791_v30 = vpop.permute.xlu2 %5612  ;;  %s6143_s27 = smov 70  }
  0xef   : > { %v1949_v46 = vsel %vm210_vm0, %v1924_v35, %v1939_v26  ;;  %v2240_v35 = vld [vmem:[%s6199_s21 + $0x18] sm:$0x3]  ;;  %v5615_v44 = vunpack.i.h.bf16 %v6791_v30 }
  0xf1   : > { %v1872_v22 = vld.sshfl [vmem:[#allocation1 + $0x20] sm:$0xff pattern:$0x73625140]  ;;  %v1873_v43 = vld.sshfl [vmem:[#allocation1 + $0x28] sm:$0xff pattern:$0x73625140] }
  0xf2   : > { %1968 = vst [vmem:[#allocation1 + $0x20] ss:$4 sm:$0xff] %v1949_v46  ;;  %v5716_v2 = vpack.i.bf16 %v1873_v43, %v1872_v22  ;;  %v2254_v43 = vrot.slane %v2240_v35, 6  ;;  %v2555_v35 = vld [vmem:[%s6199_s21 + $0x18] sm:$0x3] }
  0xf3   : > { %1970 = vst [vmem:[#allocation1 + $0x21] ss:$4 sm:$0xff] %v6431_v41 }
  0xf4   : > { %1972 = vst [vmem:[#allocation1 + $0x22] ss:$4 sm:$0xff] %v6433_v45 }
  0xf5   : > { %v6586_v37 = vld.sshfl [vmem:[#allocation1] sm:$0xff pattern:$0x73625140]  ;;  %v6588_v39 = vld.sshfl [vmem:[#allocation1 + $0x8] sm:$0xff pattern:$0x73625140]  ;;  %5717 = vrot.lane.b32.xlu1 %v5716_v2, %s6127_s8 }
  0xf6   : > { %1330 = vst [vmem:[#allocation1] ss:$4 sm:$0xff] %v1312_v27  ;;  %v2159_v27 = vsel %vm210_vm0, %v2134_v24, %v2149_v0  ;;  %5707 = vrot.lane.b32.xlu0 %v5706_v36, %s6129_s10  ;;  %v1614_v2 = vld [vmem:[%s6199_s21 + $0x38] sm:$0x3]  ;;  %v2557_v24 = vld [vmem:[%s6199_s21 + $0x28] sm:$0xff] }
  0xf7   : > { %1332 = vst [vmem:[#allocation1 + $0x1] ss:$4 sm:$0xff] %v1314_v28  ;;  %v1416_v28 = vrot.slane %v1404_v25, 6  ;;  %v1626_v0 = vrot.slane %v1614_v2, 6 }
  0xf8   : > { %1334 = vst [vmem:[#allocation1 + $0x2] ss:$4 sm:$0xff] %v1316_v29 }
  0xf9   : > { %1336 = vst [vmem:[#allocation1 + $0x3] ss:$4 sm:$0xff] %v1318_v32  ;;  %v1403_v32 = vld [vmem:[%s6199_s21 + $0x30] sm:$0x3] }
  0xfa   : > { %1974 = vst [vmem:[#allocation1 + $0x23] ss:$4 sm:$0xff] %v6446_v53  ;;  %v1432_v22 = vsel %vm210_vm0, %v1403_v32, %v1416_v28  ;;  %v1613_v28 = vld [vmem:[%s6199_s21 + $0x30] sm:$0x3]  ;;  %v5726_v32 = vpack.i.bf16 %v6530_v15, %v6528_v14  ;;  %v2556_v14 = vld [vmem:[%s6199_s21 + $0x20] sm:$0xff] }
  0xfb   : > { %v2554_v15 = vld [vmem:[%s6199_s21 + $0x10] sm:$0x3] }
  0xfd   : > { %1048 = vrot.lane.b32.xlu1 %v6505_v21, %s6122_s30  ;;  %v2239_v21 = vld [vmem:[%s6199_s21 + $0x10] sm:$0x3] }
  0xfe   : > { %v2264_v3 = vsel %vm210_vm0, %v2239_v21, %v2254_v43  ;;  %1046 = vrot.lane.b32.xlu0 %v6503_v40, %s6122_s30  ;;  %v1642_v43 = vsel %vm210_vm0, %v1613_v28, %v1626_v0  ;;  %v2765_v0 = vld [vmem:[%s6199_s21 + $0x18] sm:$0x3]  ;;  %s6146_s30 = smov 67  }
 0x100   : > { %v6612_v59 = vld.sshfl [vmem:[#allocation1] sm:$0xff pattern:$0x73625140]  ;;  %v6614_v1 = vld.sshfl [vmem:[#allocation1 + $0x8] sm:$0xff pattern:$0x73625140] }
 0x101   : > { %1349 = vst [vmem:[#allocation1] ss:$4 sm:$0xff] %v6600_v57  ;;  %v6620_v34 = vld.sshfl [vmem:[#allocation1 + $0x20] sm:$0xff pattern:$0x73625140]  ;;  %v5756_v47 = vpack.i.bf16 %v6614_v1, %v6612_v59 }
 0x102   : > { %1350 = vst [vmem:[#allocation1 + $0x1] ss:$4 sm:$0xff] %v1327_v20  ;;  %v6622_v61 = vld.sshfl [vmem:[#allocation1 + $0x28] sm:$0xff pattern:$0x73625140] }
 0x103   : > { %2073 = vst [vmem:[#allocation1 + $0x20] ss:$4 sm:$0xff] %v2054_v18  ;;  %v2344_v20 = vld [vmem:[%s6199_s21 + $0x10] sm:$0x3]  ;;  %v5721_v9 = vpack.i.bf16 %v6622_v61, %v6620_v34  ;;  %v2450_v34 = vld [vmem:[%s6199_s21 + $0x18] sm:$0x3] }
 0x104   : > { %2075 = vst [vmem:[#allocation1 + $0x21] ss:$4 sm:$0xff] %v6431_v41  ;;  %v2449_v61 = vld [vmem:[%s6199_s21 + $0x10] sm:$0x3]  ;;  %v2464_v6 = vrot.slane %v2450_v34, 6 }
 0x105   : > { %2077 = vst [vmem:[#allocation1 + $0x22] ss:$4 sm:$0xff] %v6433_v45  ;;  %1151 = vrot.lane.b32.xlu1 %v6547_v60, %s6123_s4  ;;  %v2345_v60 = vld [vmem:[%s6199_s21 + $0x18] sm:$0x3]  ;;  %5722 = vrot.lane.b32.xlu2 %v5721_v9, %s6130_s11  ;;  %v1718_v9 = vld [vmem:[%s6199_s21 + $0x30] sm:$0x3] }
 0x106   : > { %2079 = vst [vmem:[#allocation1 + $0x23] ss:$4 sm:$0xff] %v6446_v53  ;;  %v2359_v42 = vrot.slane %v2345_v60, 6  ;;  %v2474_v11 = vsel %vm210_vm0, %v2449_v61, %v2464_v6 }
 0x108   : > { %v2369_v7 = vsel %vm210_vm0, %v2344_v20, %v2359_v42  ;;  %v2660_v42 = vld [vmem:[%s6199_s21 + $0x18] sm:$0x3]  ;;  %v6797_v20 = vpop.permute.xlu1 %263 }
 0x109   : > { %v6644_v17 = vld.sshfl [vmem:[#allocation1] sm:$0xff pattern:$0x73625140]  ;;  %v6646_v8 = vld.sshfl [vmem:[#allocation1 + $0x8] sm:$0xff pattern:$0x73625140] }
 0x10a   : > { %1435 = vst [vmem:[#allocation1] ss:$4 sm:$0xff] %v6632_v12 }
 0x10b   : > { %1437 = vst [vmem:[#allocation1 + $0x1] ss:$4 sm:$0xff] %v6634_v16 }
 0x10c   : > { %1439 = vst [vmem:[#allocation1 + $0x2] ss:$4 sm:$0xff] %v6639_v52 }
 0x10d   : > { %1441 = vst [vmem:[#allocation1 + $0x3] ss:$4 sm:$0xff] %v6641_v63  ;;  %v6659_v26 = vld.sshfl [vmem:[#allocation1 + $0x20] sm:$0xff pattern:$0x73625140]  ;;  %5727 = vrot.lane.b32.xlu2 %v5726_v32, %s6123_s4 }
 0x10e   : > { %v6661_v29 = vld.sshfl [vmem:[#allocation1 + $0x28] sm:$0xff pattern:$0x73625140] }
 0x10f   : > { %2178 = vst [vmem:[#allocation1 + $0x20] ss:$4 sm:$0xff] %v2159_v27  ;;  %v5731_v21 = vpack.i.bf16 %v6661_v29, %v6659_v26 }
 0x110   : > { %2180 = vst [vmem:[#allocation1 + $0x21] ss:$4 sm:$0xff] %v6431_v41 }
 0x111   : > { %2182 = vst [vmem:[#allocation1 + $0x22] ss:$4 sm:$0xff] %v6433_v45  ;;  %5732 = vrot.lane.b32.xlu0 %v5731_v21, %s6132_s15 }
 0x112   : > { %2184 = vst [vmem:[#allocation1 + $0x23] ss:$4 sm:$0xff] %v6446_v53 }
 0x114   : > { %v6669_v10 = vld.sshfl [vmem:[#allocation1] sm:$0xff pattern:$0x73625140]  ;;  %v6671_v46 = vld.sshfl [vmem:[#allocation1 + $0x8] sm:$0xff pattern:$0x73625140] }
 0x115   : > { %1454 = vst [vmem:[#allocation1] ss:$4 sm:$0xff] %v6600_v57  ;;  %1153 = vrot.lane.b32.xlu2 %v6549_v62, %s6123_s4  ;;  %s6147_s4 = smov 66  }
 0x116   : > { %1455 = vst [vmem:[#allocation1 + $0x1] ss:$4 sm:$0xff] %v1432_v22  ;;  %v6744_v22 = vrot.slane %v2557_v24, 6  ;;  %v2779_v24 = vrot.slane %v2765_v0, 6 }
 0x118   : > { %v2581_v26 = vsel %vm212_vm1, %v2556_v14, %v6744_v22  ;;  %v6767_v59 = vsel %vm210_vm0, %v2556_v14, %v6744_v22  ;;  %v2583_v36 = vsel %vm215_vm2, %v2556_v14, %v6744_v22  ;;  %v1823_v14 = vld [vmem:[%s6199_s21 + $0x30] sm:$0x3] }
 0x119   : > { %v2187_v49 = vld.sshfl [vmem:[#allocation1 + $0x20] sm:$0xff pattern:$0x73625140]  ;;  %v2188_v50 = vld.sshfl [vmem:[#allocation1 + $0x28] sm:$0xff pattern:$0x73625140] }
 0x11a   : > { %2283 = vst [vmem:[#allocation1 + $0x20] ss:$4 sm:$0xff] %v2264_v3  ;;  %v5736_v33 = vpack.i.bf16 %v2188_v50, %v2187_v49  ;;  %v6769_v1 = vrot.slane %v2581_v26, 2  ;;  %v5741_v50 = vpack.i.bf16 %v6571_v4, %v6569_v13  ;;  %v6786_v13 = vrot.slane %v2583_v36, 4  ;;  %v1719_v4 = vld [vmem:[%s6199_s21 + $0x38] sm:$0x3] }
 0x11b   : > { %2285 = vst [vmem:[#allocation1 + $0x21] ss:$4 sm:$0xff] %v6431_v41 }
 0x11c   : > { %2287 = vst [vmem:[#allocation1 + $0x22] ss:$4 sm:$0xff] %v6433_v45  ;;  %5737 = vrot.lane.b32.xlu1 %v5736_v33, %s6131_s14  ;;  %5742 = vrot.lane.b32.xlu0 %v5741_v50, %s6121_s29 }
 0x11d   : > { %v6682_v51 = vld.sshfl [vmem:[#allocation1] sm:$0xff pattern:$0x73625140]  ;;  %v6684_v56 = vld.sshfl [vmem:[#allocation1 + $0x8] sm:$0xff pattern:$0x73625140] }
 0x11e   : > { %1540 = vst [vmem:[#allocation1] ss:$4 sm:$0xff] %v6632_v12 }
 0x11f   : > { %1542 = vst [vmem:[#allocation1 + $0x1] ss:$4 sm:$0xff] %v6634_v16 }
 0x120   : > { %1544 = vst [vmem:[#allocation1 + $0x2] ss:$4 sm:$0xff] %v6639_v52 }
 0x121   : > { %1546 = vst [vmem:[#allocation1 + $0x3] ss:$4 sm:$0xff] %v6641_v63 }
 0x122   : > { %2289 = vst [vmem:[#allocation1 + $0x23] ss:$4 sm:$0xff] %v6446_v53 }
 0x124   : > { %5757 = vrot.lane.b32.xlu1 %v5756_v47, %s6124_s5  ;;  %1258 = vrot.lane.b32.xlu0 %v6588_v39, %s6121_s29  ;;  %v6814_v39 = vpop.permute.xlu2 %5622 }
 0x128   : > { %v6704_v55 = vld.sshfl [vmem:[#allocation1] sm:$0xff pattern:$0x73625140]  ;;  %v6706_v19 = vld.sshfl [vmem:[#allocation1 + $0x8] sm:$0xff pattern:$0x73625140] }
 0x129   : > { %1559 = vst [vmem:[#allocation1] ss:$4 sm:$0xff] %v6600_v57  ;;  %v6711_v18 = vld.sshfl [vmem:[#allocation1 + $0x20] sm:$0xff pattern:$0x73625140] }
 0x12a   : > { %1560 = vst [vmem:[#allocation1 + $0x1] ss:$4 sm:$0xff] %v1537_v58  ;;  %v6715_v23 = vld.sshfl [vmem:[#allocation1 + $0x28] sm:$0xff pattern:$0x73625140]  ;;  %v1731_v58 = vrot.slane %v1719_v4, 6 }
 0x12b   : > { %2388 = vst [vmem:[#allocation1 + $0x20] ss:$4 sm:$0xff] %v2369_v7  ;;  %v5746_v38 = vpack.i.bf16 %v6715_v23, %v6711_v18  ;;  %v2674_v7 = vrot.slane %v2660_v42, 6  ;;  %v2659_v18 = vld [vmem:[%s6199_s21 + $0x10] sm:$0x3] }
 0x12c   : > { %2390 = vst [vmem:[#allocation1 + $0x21] ss:$4 sm:$0xff] %v6431_v41  ;;  %v1747_v23 = vsel %vm210_vm0, %v1718_v9, %v1731_v58  ;;  %v6838_v28 = vpop.permute.xlu2 %5632 }
 0x12d   : > { %2392 = vst [vmem:[#allocation1 + $0x22] ss:$4 sm:$0xff] %v6433_v45  ;;  %5747 = vrot.lane.b32.xlu2 %v5746_v38, %s6134_s17  ;;  %v2684_v61 = vsel %vm210_vm0, %v2659_v18, %v2674_v7  ;;  %v6876_v7 = vpop.permute.xlu0 %5602  ;;  %v1929_v18 = vld [vmem:[%s6199_s21 + $0x38] sm:$0x3] }
 0x12e   : > { %2394 = vst [vmem:[#allocation1 + $0x23] ss:$4 sm:$0xff] %v6446_v53 }
 0x131   : > { %v6723_v5 = vld.sshfl [vmem:[#allocation1] sm:$0xff pattern:$0x73625140]  ;;  %v6725_v40 = vld.sshfl [vmem:[#allocation1 + $0x8] sm:$0xff pattern:$0x73625140] }
 0x132   : > { %1645 = vst [vmem:[#allocation1] ss:$4 sm:$0xff] %v6632_v12 }
 0x133   : > { %1647 = vst [vmem:[#allocation1 + $0x1] ss:$4 sm:$0xff] %v6634_v16 }
 0x134   : > { %1649 = vst [vmem:[#allocation1 + $0x2] ss:$4 sm:$0xff] %v6639_v52  ;;  %v6863_v50 = vpop.permute.xlu2 %5637 }
 0x135   : > { %1651 = vst [vmem:[#allocation1 + $0x3] ss:$4 sm:$0xff] %v6641_v63  ;;  %v6734_v25 = vld.sshfl [vmem:[#allocation1 + $0x20] sm:$0xff pattern:$0x73625140]  ;;  %1256 = vrot.lane.b32.xlu2 %v6586_v37, %s6121_s29  ;;  %s6145_s29 = smov 68  }
 0x136   : > { %v6736_v27 = vld.sshfl [vmem:[#allocation1 + $0x28] sm:$0xff pattern:$0x73625140]  ;;  %v2764_v37 = vld [vmem:[%s6199_s21 + $0x10] sm:$0x3] }
 0x137   : > { %2493 = vst [vmem:[#allocation1 + $0x20] ss:$4 sm:$0xff] %v2474_v11  ;;  %v6820_v11 = vpop.permute.xlu1 %265  ;;  %v2789_v32 = vsel %vm210_vm0, %v2764_v37, %v2779_v24  ;;  %v2974_v37 = vld [vmem:[%s6199_s21 + $0x10] sm:$0x3] }
 0x138   : > { %2495 = vst [vmem:[#allocation1 + $0x21] ss:$4 sm:$0xff] %v6431_v41  ;;  %v2569_v41 = vrot.slane %v2555_v35, 6 }
 0x139   : > { %2497 = vst [vmem:[#allocation1 + $0x22] ss:$4 sm:$0xff] %v6433_v45 }
 0x13a   : > { %2499 = vst [vmem:[#allocation1 + $0x23] ss:$4 sm:$0xff] %v6446_v53  ;;  %v2579_v53 = vsel %vm210_vm0, %v2554_v15, %v2569_v41  ;;  %v2870_v15 = vld [vmem:[%s6199_s21 + $0x18] sm:$0x3] }
 0x13b   : > { %v2884_v26 = vrot.slane %v2870_v15, 6 }
 0x13c   : > { %v6755_v3 = vld.sshfl [vmem:[#allocation1] sm:$0xff pattern:$0x73625140]  ;;  %v6757_v45 = vld.sshfl [vmem:[#allocation1 + $0x8] sm:$0xff pattern:$0x73625140] }
 0x13d   : > { %1665 = vst [vmem:[#allocation1 + $0x1] ss:$4 sm:$0xff] %v1642_v43 }
 0x13e   : > { %1664 = vst [vmem:[#allocation1] ss:$4 sm:$0xff] %v6600_v57 }
 0x13f   : > { %v6846_v43 = vpop.permute.xlu1 %5627 }
 0x141   : > { %v2502_v29 = vld.sshfl [vmem:[#allocation1 + $0x20] sm:$0xff pattern:$0x73625140]  ;;  %v2503_v49 = vld.sshfl [vmem:[#allocation1 + $0x28] sm:$0xff pattern:$0x73625140] }
 0x142   : > { %v5761_v31 = vpack.i.bf16 %v2503_v49, %v2502_v29  ;;  %2598 = vst [vmem:[#allocation1 + $0x20] ss:$4 sm:$0xff] %v2579_v53  ;;  %v2869_v49 = vld [vmem:[%s6199_s21 + $0x10] sm:$0x3] }
 0x143   : > { %2600 = vst [vmem:[#allocation1 + $0x21] ss:$4 sm:$0xff] %v6767_v59  ;;  %v2894_v36 = vsel %vm210_vm0, %v2869_v49, %v2884_v26 }
 0x144   : > { %5762 = vrot.lane.b32.xlu1 %v5761_v31, %s6133_s16  ;;  %2602 = vst [vmem:[#allocation1 + $0x22] ss:$4 sm:$0xff] %v6769_v1 }
 0x145   : > { %v6781_v60 = vld.sshfl [vmem:[#allocation1] sm:$0xff pattern:$0x73625140]  ;;  %v6783_v62 = vld.sshfl [vmem:[#allocation1 + $0x8] sm:$0xff pattern:$0x73625140] }
 0x146   : > { %1750 = vst [vmem:[#allocation1] ss:$4 sm:$0xff] %v6632_v12 }
 0x147   : > { %1752 = vst [vmem:[#allocation1 + $0x1] ss:$4 sm:$0xff] %v6634_v16  ;;  %v6865_v31 = vpop.permute.xlu1 %418 }
 0x148   : > { %1754 = vst [vmem:[#allocation1 + $0x2] ss:$4 sm:$0xff] %v6639_v52 }
 0x149   : > { %1756 = vst [vmem:[#allocation1 + $0x3] ss:$4 sm:$0xff] %v6641_v63 }
 0x14a   : > { %2604 = vst [vmem:[#allocation1 + $0x23] ss:$4 sm:$0xff] %v6786_v13 }
 0x14c   : > { %1363 = vrot.lane.b32.xlu1 %v6646_v8, %s6124_s5  ;;  %v5751_v8 = vpack.i.bf16 %v6736_v27, %v6734_v25 }
 0x14e   : > { %5752 = vrot.lane.b32.xlu0 %v5751_v8, %s6135_s18  ;;  %v1941_v8 = vrot.slane %v1929_v18, 6  ;;  %v5786_v18 = vpack.i.bf16 %v6706_v19, %v6704_v55  ;;  %v3184_v19 = vld [vmem:[%s6199_s21 + $0x10] sm:$0x3] }
 0x150   : > { %v6808_v33 = vld.sshfl [vmem:[#allocation1] sm:$0xff pattern:$0x73625140]  ;;  %v6810_v34 = vld.sshfl [vmem:[#allocation1 + $0x8] sm:$0xff pattern:$0x73625140] }
 0x151   : > { %1769 = vst [vmem:[#allocation1] ss:$4 sm:$0xff] %v6600_v57  ;;  %v2607_v6 = vld.sshfl [vmem:[#allocation1 + $0x20] sm:$0xff pattern:$0x73625140] }
 0x152   : > { %1770 = vst [vmem:[#allocation1 + $0x1] ss:$4 sm:$0xff] %v1747_v23  ;;  %v2608_v2 = vld.sshfl [vmem:[#allocation1 + $0x28] sm:$0xff pattern:$0x73625140]  ;;  %v6880_v23 = vpop.permute.xlu2 %523 }
 0x153   : > { %2703 = vst [vmem:[#allocation1 + $0x20] ss:$4 sm:$0xff] %v2684_v61  ;;  %v5766_v41 = vpack.i.bf16 %v2608_v2, %v2607_v6  ;;  %v6883_v61 = vpop.permute.xlu1 %521  ;;  %v2975_v6 = vld [vmem:[%s6199_s21 + $0x18] sm:$0x3]  ;;  %v1928_v2 = vld [vmem:[%s6199_s21 + $0x30] sm:$0x3] }
 0x154   : > { %1466 = vrot.lane.b32.xlu1 %v6682_v51, %s6126_s7  ;;  %2705 = vst [vmem:[#allocation1 + $0x21] ss:$4 sm:$0xff] %v6767_v59  ;;  %v1824_v51 = vld [vmem:[%s6199_s21 + $0x38] sm:$0x3]  ;;  %v2989_v0 = vrot.slane %v2975_v6, 6  ;;  %v1957_v24 = vsel %vm210_vm0, %v1928_v2, %v1941_v8 }
 0x155   : > { %2707 = vst [vmem:[#allocation1 + $0x22] ss:$4 sm:$0xff] %v6769_v1  ;;  %v1836_v47 = vrot.slane %v1824_v51, 6  ;;  %5767 = vrot.lane.b32.xlu2 %v5766_v41, %s6136_s19 }
 0x156   : > { %2709 = vst [vmem:[#allocation1 + $0x23] ss:$4 sm:$0xff] %v6786_v13  ;;  %1361 = vrot.lane.b32.xlu0 %v6644_v17, %s6124_s5  ;;  %s6148_s5 = smov 58  }
 0x157   : > { %v1852_v17 = vsel %vm210_vm0, %v1823_v14, %v1836_v47  ;;  %v6896_v47 = vpop.permute.xlu0 %5607  ;;  %v2999_v14 = vsel %vm210_vm0, %v2974_v37, %v2989_v0 }
 0x159   : > { %v6830_v25 = vld.sshfl [vmem:[#allocation1] sm:$0xff pattern:$0x73625140]  ;;  %v6832_v27 = vld.sshfl [vmem:[#allocation1 + $0x8] sm:$0xff pattern:$0x73625140] }
 0x15a   : > { %1855 = vst [vmem:[#allocation1] ss:$4 sm:$0xff] %v6632_v12  ;;  %v6899_v15 = vpop.permute.xlu2 %5657 }
 0x15b   : > { %1857 = vst [vmem:[#allocation1 + $0x1] ss:$4 sm:$0xff] %v6634_v16  ;;  %v6903_v49 = vpop.permute.xlu1 %5647 }
 0x15c   : > { %1859 = vst [vmem:[#allocation1 + $0x2] ss:$4 sm:$0xff] %v6639_v52 }
 0x15d   : > { %1861 = vst [vmem:[#allocation1 + $0x3] ss:$4 sm:$0xff] %v6641_v63  ;;  %v6844_v35 = vld.sshfl [vmem:[#allocation1 + $0x20] sm:$0xff pattern:$0x73625140] }
 0x15e   : > { %v6848_v21 = vld.sshfl [vmem:[#allocation1 + $0x28] sm:$0xff pattern:$0x73625140] }
 0x15f   : > { %2808 = vst [vmem:[#allocation1 + $0x20] ss:$4 sm:$0xff] %v2789_v32 }
 0x160   : > { %2810 = vst [vmem:[#allocation1 + $0x21] ss:$4 sm:$0xff] %v6767_v59 }
 0x161   : > { %2812 = vst [vmem:[#allocation1 + $0x22] ss:$4 sm:$0xff] %v6769_v1 }
 0x162   : > { %2814 = vst [vmem:[#allocation1 + $0x23] ss:$4 sm:$0xff] %v6786_v13 }
 0x163   : > { %v6935_v8 = vpop.permute.xlu1 %5667 }
 0x164   : > { %v6857_v53 = vld.sshfl [vmem:[#allocation1] sm:$0xff pattern:$0x73625140]  ;;  %v6859_v29 = vld.sshfl [vmem:[#allocation1 + $0x8] sm:$0xff pattern:$0x73625140] }
 0x165   : > { %1874 = vst [vmem:[#allocation1] ss:$4 sm:$0xff] %v6600_v57 }
 0x166   : > { %1875 = vst [vmem:[#allocation1 + $0x1] ss:$4 sm:$0xff] %v1852_v17  ;;  %v5771_v17 = vpack.i.bf16 %v6671_v46, %v6669_v10  ;;  %v3079_v10 = vld [vmem:[%s6199_s21 + $0x10] sm:$0x3] }
 0x167   : > { %8483 = vst [vmem:[#allocation5_spill] sm:$0xff] %v6935_v8 }
 0x168   : > { %5772 = vrot.lane.b32.xlu2 %v5771_v17, %s6126_s7 }
 0x169   : > { %v2817_v4 = vld.sshfl [vmem:[#allocation1 + $0x20] sm:$0xff pattern:$0x73625140]  ;;  %v2818_v38 = vld.sshfl [vmem:[#allocation1 + $0x28] sm:$0xff pattern:$0x73625140] }
 0x16a   : > { %v5781_v42 = vpack.i.bf16 %v2818_v38, %v2817_v4  ;;  %2913 = vst [vmem:[#allocation1 + $0x20] ss:$4 sm:$0xff] %v2894_v36  ;;  %v5776_v36 = vpack.i.bf16 %v6848_v21, %v6844_v35  ;;  %v5801_v4 = vpack.i.bf16 %v6757_v45, %v6755_v3  ;;  %v3080_v38 = vld [vmem:[%s6199_s21 + $0x18] sm:$0x3]  ;;  %v6923_v3 = vpop.permute.xlu0 %5617 }
 0x16b   : > { %2915 = vst [vmem:[#allocation1 + $0x21] ss:$4 sm:$0xff] %v6767_v59  ;;  %v3094_v46 = vrot.slane %v3080_v38, 6  ;;  %v2034_v45 = vld [vmem:[%s6199_s21 + $0x38] sm:$0x3] }
 0x16c   : > { %5782 = vrot.lane.b32.xlu1 %v5781_v42, %s6137_s20  ;;  %2917 = vst [vmem:[#allocation1 + $0x22] ss:$4 sm:$0xff] %v6769_v1  ;;  %5777 = vrot.lane.b32.xlu0 %v5776_v36, %s6138_s22  ;;  %v6927_v42 = vpop.permute.xlu2 %626  ;;  %v2046_v37 = vrot.slane %v2034_v45, 6 }
 0x16d   : > { %v6869_v58 = vld.sshfl [vmem:[#allocation1] sm:$0xff pattern:$0x73625140]  ;;  %v6871_v9 = vld.sshfl [vmem:[#allocation1 + $0x8] sm:$0xff pattern:$0x73625140]  ;;  %v3104_v6 = vsel %vm210_vm0, %v3079_v10, %v3094_v46  ;;  %v6957_v46 = vpop.permute.xlu1 %5672 }
 0x16e   : > { %1960 = vst [vmem:[#allocation1] ss:$4 sm:$0xff] %v6632_v12 }
 0x16f   : > { %1962 = vst [vmem:[#allocation1 + $0x1] ss:$4 sm:$0xff] %v6634_v16 }
 0x170   : > { %1964 = vst [vmem:[#allocation1 + $0x2] ss:$4 sm:$0xff] %v6639_v52  ;;  %1468 = vrot.lane.b32.xlu2 %v6684_v56, %s6126_s7  ;;  %v3185_v56 = vld [vmem:[%s6199_s21 + $0x18] sm:$0x3]  ;;  %s6150_s7 = smov 55  }
 0x171   : > { %1966 = vst [vmem:[#allocation1 + $0x3] ss:$4 sm:$0xff] %v6641_v63 }
 0x172   : > { %2919 = vst [vmem:[#allocation1 + $0x23] ss:$4 sm:$0xff] %v6786_v13 }
 0x173   : > { %8485 = vst [vmem:[#allocation7_spill] sm:$0xff] %v6957_v46  ;;  %v7171_v46 = vld [vmem:[%s6199_s21 + $0x20] sm:$0xff] }
 0x174   : > { %5802 = vrot.lane.b32.xlu1 %v5801_v4, %s6128_s9  ;;  %5787 = vrot.lane.b32.xlu0 %v5786_v18, %s6125_s6  ;;  %v6950_v4 = vpop.permute.xlu0 %416  ;;  %v6952_v38 = vpop.permute.xlu2 %5677 }
 0x175   : > { %8484 = vst [vmem:[#allocation6_spill] sm:$0xff] %v6952_v38  ;;  %v3920_v38 = vld [vmem:[%s6199_s21 + $0x18] sm:$0x3] }
 0x178   : > { %v6891_v51 = vld.sshfl [vmem:[#allocation1] sm:$0xff pattern:$0x73625140]  ;;  %v6893_v32 = vld.sshfl [vmem:[#allocation1 + $0x8] sm:$0xff pattern:$0x73625140] }
 0x179   : > { %1979 = vst [vmem:[#allocation1] ss:$4 sm:$0xff] %v6600_v57  ;;  %v2922_v41 = vld.sshfl [vmem:[#allocation1 + $0x20] sm:$0xff pattern:$0x73625140] }
 0x17a   : > { %1980 = vst [vmem:[#allocation1 + $0x1] ss:$4 sm:$0xff] %v1957_v24  ;;  %v2923_v26 = vld.sshfl [vmem:[#allocation1 + $0x28] sm:$0xff pattern:$0x73625140] }
 0x17b   : > { %3018 = vst [vmem:[#allocation1 + $0x20] ss:$4 sm:$0xff] %v2999_v14  ;;  %v2033_v24 = vld [vmem:[%s6199_s21 + $0x30] sm:$0x3]  ;;  %v3199_v14 = vrot.slane %v3185_v56, 6  ;;  %v5791_v45 = vpack.i.bf16 %v2923_v26, %v2922_v41 }
 0x17c   : > { %3020 = vst [vmem:[#allocation1 + $0x21] ss:$4 sm:$0xff] %v6767_v59  ;;  %v2062_v55 = vsel %vm210_vm0, %v2033_v24, %v2046_v37  ;;  %1573 = vrot.lane.b32.xlu0 %v6725_v40, %s6125_s6  ;;  %v6970_v26 = vpop.permute.xlu0 %5642  ;;  %v3290_v56 = vld [vmem:[%s6199_s21 + $0x18] sm:$0x3] }
 0x17d   : > { %3022 = vst [vmem:[#allocation1 + $0x22] ss:$4 sm:$0xff] %v6769_v1  ;;  %v3209_v10 = vsel %vm210_vm0, %v3184_v19, %v3199_v14  ;;  %5792 = vrot.lane.b32.xlu2 %v5791_v45, %s6139_s23  ;;  %v2138_v19 = vld [vmem:[%s6199_s21 + $0x30] sm:$0x3] }
 0x17e   : > { %3024 = vst [vmem:[#allocation1 + $0x23] ss:$4 sm:$0xff] %v6786_v13  ;;  %v3289_v14 = vld [vmem:[%s6199_s21 + $0x10] sm:$0x3] }
 0x181   : > { %v6917_v35 = vld.sshfl [vmem:[#allocation1] sm:$0xff pattern:$0x73625140]  ;;  %v6919_v21 = vld.sshfl [vmem:[#allocation1 + $0x8] sm:$0xff pattern:$0x73625140] }
 0x182   : > { %2065 = vst [vmem:[#allocation1] ss:$4 sm:$0xff] %v6632_v12 }
 0x183   : > { %2067 = vst [vmem:[#allocation1 + $0x1] ss:$4 sm:$0xff] %v6634_v16 }
 0x184   : > { %2069 = vst [vmem:[#allocation1 + $0x2] ss:$4 sm:$0xff] %v6639_v52  ;;  %v6996_v45 = vpop.permute.xlu0 %5652 }
 0x185   : > { %2071 = vst [vmem:[#allocation1 + $0x3] ss:$4 sm:$0xff] %v6641_v63  ;;  %v3027_v2 = vld.sshfl [vmem:[#allocation1 + $0x20] sm:$0xff pattern:$0x73625140]  ;;  %1571 = vrot.lane.b32.xlu2 %v6723_v5, %s6125_s6  ;;  %s6149_s6 = smov 56  }
 0x186   : > { %v3028_v0 = vld.sshfl [vmem:[#allocation1 + $0x28] sm:$0xff pattern:$0x73625140] }
 0x187   : > { %3123 = vst [vmem:[#allocation1 + $0x20] ss:$4 sm:$0xff] %v3104_v6  ;;  %v5796_v24 = vpack.i.bf16 %v3028_v0, %v3027_v2  ;;  %v2139_v2 = vld [vmem:[%s6199_s21 + $0x38] sm:$0x3]  ;;  %v6974_v0 = vpop.permute.xlu2 %5682 }
 0x188   : > { %3125 = vst [vmem:[#allocation1 + $0x21] ss:$4 sm:$0xff] %v6767_v59 }
 0x189   : > { %3127 = vst [vmem:[#allocation1 + $0x22] ss:$4 sm:$0xff] %v6769_v1  ;;  %5797 = vrot.lane.b32.xlu0 %v5796_v24, %s6141_s25  ;;  %v3395_v24 = vld [vmem:[%s6199_s21 + $0x18] sm:$0x3] }
 0x18a   : > { %3129 = vst [vmem:[#allocation1 + $0x23] ss:$4 sm:$0xff] %v6786_v13 }
 0x18b   : > { %8486 = vst [vmem:[#allocation8_spill] sm:$0xff] %v6974_v0 }
 0x18c   : > { %v6945_v17 = vld.sshfl [vmem:[#allocation1] sm:$0xff pattern:$0x73625140]  ;;  %v6947_v36 = vld.sshfl [vmem:[#allocation1 + $0x8] sm:$0xff pattern:$0x73625140] }
 0x18d   : > { %2084 = vst [vmem:[#allocation1] ss:$4 sm:$0xff] %v6600_v57 }
 0x18e   : > { %2085 = vst [vmem:[#allocation1 + $0x1] ss:$4 sm:$0xff] %v2062_v55  ;;  %v6978_v55 = vpop.permute.xlu1 %733 }
 0x191   : > { %v3132_v18 = vld.sshfl [vmem:[#allocation1 + $0x20] sm:$0xff pattern:$0x73625140]  ;;  %v3133_v6 = vld.sshfl [vmem:[#allocation1 + $0x28] sm:$0xff pattern:$0x73625140]  ;;  %1676 = vrot.lane.b32.xlu0 %v6781_v60, %s6128_s9 }
 0x192   : > { %v5806_v37 = vpack.i.bf16 %v3133_v6, %v3132_v18  ;;  %3228 = vst [vmem:[#allocation1 + $0x20] ss:$4 sm:$0xff] %v3209_v10  ;;  %v6998_v18 = vpop.permute.xlu2 %838 }
 0x193   : > { %3230 = vst [vmem:[#allocation1 + $0x21] ss:$4 sm:$0xff] %v6767_v59 }
 0x194   : > { %5807 = vrot.lane.b32.xlu1 %v5806_v37, %s6140_s24  ;;  %3232 = vst [vmem:[#allocation1 + $0x22] ss:$4 sm:$0xff] %v6769_v1 }
 0x195   : > { %v6963_v40 = vld.sshfl [vmem:[#allocation1] sm:$0xff pattern:$0x73625140]  ;;  %v6965_v41 = vld.sshfl [vmem:[#allocation1 + $0x8] sm:$0xff pattern:$0x73625140] }
 0x196   : > { %2170 = vst [vmem:[#allocation1] ss:$4 sm:$0xff] %v6632_v12  ;;  %v2151_v12 = vrot.slane %v2139_v2, 6  ;;  %v7000_v37 = vpop.permute.xlu1 %836  ;;  %v3409_v2 = vrot.slane %v3395_v24, 6 }
 0x197   : > { %2172 = vst [vmem:[#allocation1 + $0x1] ss:$4 sm:$0xff] %v6634_v16  ;;  %v3304_v16 = vrot.slane %v3290_v56, 6  ;;  %v3394_v56 = vld [vmem:[%s6199_s21 + $0x10] sm:$0x3] }
 0x198   : > { %2174 = vst [vmem:[#allocation1 + $0x2] ss:$4 sm:$0xff] %v6639_v52  ;;  %v2167_v52 = vsel %vm210_vm0, %v2138_v19, %v2151_v12  ;;  %v5816_v12 = vpack.i.bf16 %v6810_v34, %v6808_v33  ;;  %v7012_v19 = vpop.permute.xlu0 %628  ;;  %v3499_v34 = vld [vmem:[%s6199_s21 + $0x10] sm:$0x3] }
 0x199   : > { %2176 = vst [vmem:[#allocation1 + $0x3] ss:$4 sm:$0xff] %v6641_v63  ;;  %v3314_v5 = vsel %vm210_vm0, %v3289_v14, %v3304_v16 }
 0x19a   : > { %3234 = vst [vmem:[#allocation1 + $0x23] ss:$4 sm:$0xff] %v6786_v13  ;;  %v7015_v16 = vpop.permute.xlu2 %5702 }
 0x19b   : > { %8487 = vst [vmem:[#allocation9_spill] sm:$0xff] %v7015_v16 }
 0x19c   : > { %1678 = vrot.lane.b32.xlu1 %v6783_v62, %s6128_s9  ;;  %s6152_s9 = smov 53  }
 0x1a0   : > { %v6990_v63 = vld.sshfl [vmem:[#allocation1] sm:$0xff pattern:$0x73625140]  ;;  %v6992_v10 = vld.sshfl [vmem:[#allocation1 + $0x8] sm:$0xff pattern:$0x73625140]  ;;  %v7028_v24 = vpop.permute.xlu0 %5662 }
 0x1a1   : > { %2189 = vst [vmem:[#allocation1] ss:$4 sm:$0xff] %v6600_v57  ;;  %v3237_v62 = vld.sshfl [vmem:[#allocation1 + $0x20] sm:$0xff pattern:$0x73625140] }
 0x1a2   : > { %2190 = vst [vmem:[#allocation1 + $0x1] ss:$4 sm:$0xff] %v2167_v52  ;;  %v3238_v6 = vld.sshfl [vmem:[#allocation1 + $0x28] sm:$0xff pattern:$0x73625140] }
 0x1a3   : > { %v5811_v60 = vpack.i.bf16 %v3238_v6, %v3237_v62  ;;  %3333 = vst [vmem:[#allocation1 + $0x20] ss:$4 sm:$0xff] %v3314_v5  ;;  %v7018_v5 = vpop.permute.xlu1 %5692  ;;  %v3500_v6 = vld [vmem:[%s6199_s21 + $0x18] sm:$0x3] }
 0x1a4   : > { %1781 = vrot.lane.b32.xlu1 %v6830_v25, %s6129_s10  ;;  %3335 = vst [vmem:[#allocation1 + $0x21] ss:$4 sm:$0xff] %v6767_v59  ;;  %v3419_v25 = vsel %vm210_vm0, %v3394_v56, %v3409_v2  ;;  %v3514_v33 = vrot.slane %v3500_v6, 6  ;;  %v7032_v2 = vpop.permute.xlu2 %941  ;;  %v5846_v6 = vpack.i.bf16 %v6893_v32, %v6891_v51  ;;  %v3710_v51 = vld [vmem:[%s6199_s21 + $0x18] sm:$0x3]  ;;  %v2238_v32 = vld [vmem:[%s6199_s21 + $0x8] sm:$0xff] }
 0x1a5   : > { %5812 = vrot.lane.b32.xlu2 %v5811_v60, %s6142_s26  ;;  %3337 = vst [vmem:[#allocation1 + $0x22] ss:$4 sm:$0xff] %v6769_v1  ;;  %v5831_v60 = vpack.i.bf16 %v6859_v29, %v6857_v53  ;;  %v3605_v53 = vld [vmem:[%s6199_s21 + $0x18] sm:$0x3]  ;;  %v3604_v29 = vld [vmem:[%s6199_s21 + $0x10] sm:$0x3] }
 0x1a6   : > { %3339 = vst [vmem:[#allocation1 + $0x23] ss:$4 sm:$0xff] %v6786_v13  ;;  %v3524_v56 = vsel %vm210_vm0, %v3499_v34, %v3514_v33 }
 0x1a7   : > { %8488 = vst [vmem:[#allocation10_spill] sm:$0xff] %v7018_v5 }
 0x1a8   : > { %8489 = vst [vmem:[#allocation11_spill] sm:$0xff] %v7028_v24 }
 0x1a9   : > { %8490 = vst [vmem:[#allocation12_spill] sm:$0xff] %v7032_v2  ;;  %v4340_v2 = vld [vmem:[%s6199_s21 + $0x18] sm:$0x3] }
 0x1ac   : > { %v7048_v33 = vpop.permute.xlu2 %5722 }
 0x1ad   : > { %v3342_v14 = vld.sshfl [vmem:[#allocation1 + $0x20] sm:$0xff pattern:$0x73625140]  ;;  %v3343_v52 = vld.sshfl [vmem:[#allocation1 + $0x28] sm:$0xff pattern:$0x73625140]  ;;  %5817 = vrot.lane.b32.xlu2 %v5816_v12, %s6129_s10 }
 0x1ae   : > { %3438 = vst [vmem:[#allocation1 + $0x20] ss:$4 sm:$0xff] %v3419_v25  ;;  %v5821_v62 = vpack.i.bf16 %v3343_v52, %v3342_v14  ;;  %v7035_v14 = vpop.permute.xlu1 %5712 }
 0x1af   : > { %3440 = vst [vmem:[#allocation1 + $0x21] ss:$4 sm:$0xff] %v6767_v59 }
 0x1b0   : > { %3442 = vst [vmem:[#allocation1 + $0x22] ss:$4 sm:$0xff] %v6769_v1  ;;  %5822 = vrot.lane.b32.xlu0 %v5821_v62, %s6143_s27  ;;  %v7044_v62 = vpop.permute.xlu0 %731 }
 0x1b1   : > { %3444 = vst [vmem:[#allocation1 + $0x23] ss:$4 sm:$0xff] %v6786_v13 }
 0x1b2   : > { %8491 = vst [vmem:[#allocation13_spill] sm:$0xff] %v7035_v14  ;;  %v2243_v14 = vld [vmem:[%s6199_s21 + $0x30] sm:$0x3] }
 0x1b3   : > { %8492 = vst [vmem:[#allocation14_spill] sm:$0xff] %v7048_v33  ;;  %v7072_v33 = vld.sshfl [vmem:[#allocation1] sm:$0xff pattern:$0x73625140] }
 0x1b5   : > { %1783 = vrot.lane.b32.xlu2 %v6832_v27, %s6129_s10  ;;  %v3619_v27 = vrot.slane %v3605_v53, 6  ;;  %v3709_v53 = vld [vmem:[%s6199_s21 + $0x10] sm:$0x3]  ;;  %s6153_s10 = smov 52  }
 0x1b7   : > { %v3629_v34 = vsel %vm210_vm0, %v3604_v29, %v3619_v27  ;;  %v2253_v27 = vrot.slane %v2238_v32, 6  ;;  %v7065_v29 = vpop.permute.xlu2 %5727  ;;  %v7077_v32 = vld.sshfl [vmem:[#allocation1 + $0x8] sm:$0xff pattern:$0x73625140] }
 0x1b8   : > { %v3447_v12 = vld.sshfl [vmem:[#allocation1 + $0x20] sm:$0xff pattern:$0x73625140]  ;;  %v3448_v25 = vld.sshfl [vmem:[#allocation1 + $0x28] sm:$0xff pattern:$0x73625140]  ;;  %5832 = vrot.lane.b32.xlu0 %v5831_v60, %s6127_s8  ;;  %v7053_v60 = vpop.permute.xlu1 %5717 }
 0x1b9   : > { %v5826_v52 = vpack.i.bf16 %v3448_v25, %v3447_v12  ;;  %3543 = vst [vmem:[#allocation1 + $0x20] ss:$4 sm:$0xff] %v3524_v56 }
 0x1ba   : > { %3545 = vst [vmem:[#allocation1 + $0x21] ss:$4 sm:$0xff] %v6767_v59 }
 0x1bb   : > { %5827 = vrot.lane.b32.xlu1 %v5826_v52, %s6144_s28  ;;  %3547 = vst [vmem:[#allocation1 + $0x22] ss:$4 sm:$0xff] %v6769_v1  ;;  %v7062_v52 = vpop.permute.xlu0 %5687 }
 0x1bc   : > { %3549 = vst [vmem:[#allocation1 + $0x23] ss:$4 sm:$0xff] %v6786_v13 }
 0x1bd   : > { %8493 = vst [vmem:[#allocation15_spill] sm:$0xff] %v7053_v60 }
 0x1be   : > { %8494 = vst [vmem:[#allocation16_spill] sm:$0xff] %v7062_v52 }
 0x1bf   : > { %8495 = vst [vmem:[#allocation17_spill] sm:$0xff] %v7065_v29 }
 0x1c0   : > { %1888 = vrot.lane.b32.xlu0 %v6871_v9, %s6127_s8  ;;  %v3724_v9 = vrot.slane %v3710_v51, 6 }
 0x1c3   : > { %5847 = vrot.lane.b32.xlu1 %v5846_v6, %s6130_s11  ;;  %v3552_v56 = vld.sshfl [vmem:[#allocation1 + $0x20] sm:$0xff pattern:$0x73625140]  ;;  %v3553_v12 = vld.sshfl [vmem:[#allocation1 + $0x28] sm:$0xff pattern:$0x73625140] }
 0x1c4   : > { %3648 = vst [vmem:[#allocation1 + $0x20] ss:$4 sm:$0xff] %v3629_v34  ;;  %v5836_v25 = vpack.i.bf16 %v3553_v12, %v3552_v56  ;;  %v2237_v6 = vld [vmem:[%s6199_s21] sm:$0xff]  ;;  %v3734_v34 = vsel %vm210_vm0, %v3709_v53, %v3724_v9  ;;  %v7069_v56 = vpop.permute.xlu1 %1048  ;;  %v3815_v53 = vld [vmem:[%s6199_s21 + $0x18] sm:$0x3] }
 0x1c5   : > { %3650 = vst [vmem:[#allocation1 + $0x21] ss:$4 sm:$0xff] %v6767_v59  ;;  %v2258_v12 = vsel %vm212_vm1, %v2237_v6, %v2253_v27  ;;  %v2260_v51 = vsel %vm215_vm2, %v2237_v6, %v2253_v27  ;;  %v2262_v9 = vsel %vm218_vm3, %v2253_v27, %v2237_v6  ;;  %v7083_v5 = vsel %vm210_vm0, %v2237_v6, %v2253_v27  ;;  %v7097_v27 = vpop.permute.xlu2 %1153  ;;  %v3814_v6 = vld [vmem:[%s6199_s21 + $0x10] sm:$0x3] }
 0x1c6   : > { %3652 = vst [vmem:[#allocation1 + $0x22] ss:$4 sm:$0xff] %v6769_v1  ;;  %5837 = vrot.lane.b32.xlu2 %v5836_v25, %s6145_s29  ;;  %v7085_v29 = vrot.slane %v2258_v12, 2 }
 0x1c7   : > { %3654 = vst [vmem:[#allocation1 + $0x23] ss:$4 sm:$0xff] %v6786_v13 }
 0x1c8   : > { %2275 = vst [vmem:[#allocation1] ss:$4 sm:$0xff] %v7083_v5 }
 0x1c9   : > { %8497 = vst [vmem:[#allocation19_spill] sm:$0xff] %v7097_v27 }
 0x1ca   : > { %2277 = vst [vmem:[#allocation1 + $0x1] ss:$4 sm:$0xff] %v7085_v29 }
 0x1ce   : > { %v3657_v25 = vld.sshfl [vmem:[#allocation1 + $0x20] sm:$0xff pattern:$0x73625140]  ;;  %v3658_v60 = vld.sshfl [vmem:[#allocation1 + $0x28] sm:$0xff pattern:$0x73625140]  ;;  %1886 = vrot.lane.b32.xlu2 %v6869_v58, %s6127_s8 }
 0x1cf   : > { %3753 = vst [vmem:[#allocation1 + $0x20] ss:$4 sm:$0xff] %v3734_v34  ;;  %v5841_v16 = vpack.i.bf16 %v3658_v60, %v3657_v25  ;;  %v7089_v58 = vrot.slane %v2260_v51, 4  ;;  %v7092_v60 = vrot.slane %v2262_v9, 6  ;;  %v7094_v34 = vpop.permute.xlu0 %5697  ;;  %v3829_v25 = vrot.slane %v3815_v53, 6  ;;  %s6151_s8 = smov 54  }
 0x1d0   : > { %3755 = vst [vmem:[#allocation1 + $0x21] ss:$4 sm:$0xff] %v6767_v59  ;;  %v2244_v51 = vld [vmem:[%s6199_s21 + $0x38] sm:$0x3] }
 0x1d1   : > { %3757 = vst [vmem:[#allocation1 + $0x22] ss:$4 sm:$0xff] %v6769_v1  ;;  %5842 = vrot.lane.b32.xlu0 %v5841_v16, %s6146_s30  ;;  %v7102_v16 = vpop.permute.xlu1 %1151  ;;  %v3839_v12 = vsel %vm210_vm0, %v3814_v6, %v3829_v25  ;;  %v2256_v27 = vrot.slane %v2244_v51, 6  ;;  %v3919_v51 = vld [vmem:[%s6199_s21 + $0x10] sm:$0x3] }
 0x1d2   : > { %3759 = vst [vmem:[#allocation1 + $0x23] ss:$4 sm:$0xff] %v6786_v13 }
 0x1d3   : > { %8496 = vst [vmem:[#allocation18_spill] sm:$0xff] %v7094_v34 }
 0x1d4   : > { %2279 = vst [vmem:[#allocation1 + $0x2] ss:$4 sm:$0xff] %v7089_v58 }
 0x1d5   : > { %8498 = vst [vmem:[#allocation20_spill] sm:$0xff] %v7102_v16 }
 0x1d6   : > { %2281 = vst [vmem:[#allocation1 + $0x3] ss:$4 sm:$0xff] %v7092_v60 }
 0x1d7   : > { %v7114_v25 = vpop.permute.xlu0 %943 }
 0x1d8   : > { %8499 = vst [vmem:[#allocation21_spill] sm:$0xff] %v7114_v25 }
 0x1d9   : > { %v3762_v9 = vld.sshfl [vmem:[#allocation1 + $0x20] sm:$0xff pattern:$0x73625140]  ;;  %v3763_v52 = vld.sshfl [vmem:[#allocation1 + $0x28] sm:$0xff pattern:$0x73625140]  ;;  %1991 = vrot.lane.b32.xlu0 %v6917_v35, %s6130_s11  ;;  %v2272_v35 = vsel %vm210_vm0, %v2243_v14, %v2256_v27 }
 0x1da   : > { %v5851_v53 = vpack.i.bf16 %v3763_v52, %v3762_v9  ;;  %3858 = vst [vmem:[#allocation1 + $0x20] ss:$4 sm:$0xff] %v3839_v12  ;;  %v7120_v52 = vpop.permute.xlu2 %5747  ;;  %v3934_v12 = vrot.slane %v3920_v38, 6  ;;  %v4025_v38 = vld [vmem:[%s6199_s21 + $0x18] sm:$0x3] }
 0x1db   : > { %3860 = vst [vmem:[#allocation1 + $0x21] ss:$4 sm:$0xff] %v6767_v59 }
 0x1dc   : > { %5852 = vrot.lane.b32.xlu1 %v5851_v53, %s6147_s4  ;;  %3862 = vst [vmem:[#allocation1 + $0x22] ss:$4 sm:$0xff] %v6769_v1  ;;  %v7126_v53 = vpop.permute.xlu1 %5737  ;;  %v3944_v16 = vsel %vm210_vm0, %v3919_v51, %v3934_v12  ;;  %v5861_v51 = vpack.i.bf16 %v6947_v36, %v6945_v17  ;;  %v2348_v36 = vld [vmem:[%s6199_s21 + $0x30] sm:$0x3] }
 0x1dd   : > { %3864 = vst [vmem:[#allocation1 + $0x23] ss:$4 sm:$0xff] %v6786_v13  ;;  %v7117_v6 = vld.sshfl [vmem:[#allocation1] sm:$0xff pattern:$0x73625140] }
 0x1de   : > { %8500 = vst [vmem:[#allocation22_spill] sm:$0xff] %v7120_v52  ;;  %v7122_v9 = vld.sshfl [vmem:[#allocation1 + $0x8] sm:$0xff pattern:$0x73625140] }
 0x1df   : > { %2294 = vst [vmem:[#allocation1] ss:$4 sm:$0xff] %v6600_v57  ;;  %v7133_v27 = vpop.permute.xlu0 %5707 }
 0x1e0   : > { %8501 = vst [vmem:[#allocation23_spill] sm:$0xff] %v7126_v53  ;;  %v4342_v53 = vld [vmem:[%s6199_s21 + $0x28] sm:$0xff] }
 0x1e1   : > { %2295 = vst [vmem:[#allocation1 + $0x1] ss:$4 sm:$0xff] %v2272_v35  ;;  %v7163_v17 = vrot.slane %v4342_v53, 6 }
 0x1e2   : > { %8502 = vst [vmem:[#allocation24_spill] sm:$0xff] %v7133_v27 }
 0x1e4   : > { %1993 = vrot.lane.b32.xlu1 %v6919_v21, %s6130_s11  ;;  %v3867_v34 = vld.sshfl [vmem:[#allocation1 + $0x20] sm:$0xff pattern:$0x73625140]  ;;  %v3868_v24 = vld.sshfl [vmem:[#allocation1 + $0x28] sm:$0xff pattern:$0x73625140]  ;;  %v7139_v21 = vpop.permute.xlu2 %1256  ;;  %v7146_v12 = vpop.permute.xlu1 %5757 }
 0x1e5   : > { %v5856_v14 = vpack.i.bf16 %v3868_v24, %v3867_v34  ;;  %3963 = vst [vmem:[#allocation1 + $0x20] ss:$4 sm:$0xff] %v3944_v16  ;;  %v4039_v34 = vrot.slane %v4025_v38, 6  ;;  %v4024_v16 = vld [vmem:[%s6199_s21 + $0x10] sm:$0x3]  ;;  %s6154_s11 = smov 44  }
 0x1e6   : > { %3965 = vst [vmem:[#allocation1 + $0x21] ss:$4 sm:$0xff] %v6767_v59 }
 0x1e7   : > { %5857 = vrot.lane.b32.xlu2 %v5856_v14, %s6148_s5  ;;  %3967 = vst [vmem:[#allocation1 + $0x22] ss:$4 sm:$0xff] %v6769_v1  ;;  %v2349_v14 = vld [vmem:[%s6199_s21 + $0x38] sm:$0x3]  ;;  %v4049_v38 = vsel %vm210_vm0, %v4024_v16, %v4039_v34  ;;  %v7179_v16 = vsel %vm218_vm3, %v7163_v17, %v7171_v46 }
 0x1e8   : > { %v7137_v35 = vld.sshfl [vmem:[#allocation1 + $0x8] sm:$0xff pattern:$0x73625140]  ;;  %8503 = vst [vmem:[#allocation25_spill] sm:$0xff] %v7139_v21  ;;  %v2361_v52 = vrot.slane %v2349_v14, 6  ;;  %v7166_v21 = vpop.permute.xlu0 %1046 }
 0x1e9   : > { %3969 = vst [vmem:[#allocation1 + $0x23] ss:$4 sm:$0xff] %v6786_v13  ;;  %v7142_v24 = vld.sshfl [vmem:[#allocation1] sm:$0xff pattern:$0x73625140] }
 0x1ea   : > { %2380 = vst [vmem:[#allocation1] ss:$4 sm:$0xff] %v7083_v5  ;;  %v2377_v53 = vsel %vm210_vm0, %v2348_v36, %v2361_v52 }
 0x1eb   : > { %8504 = vst [vmem:[#allocation26_spill] sm:$0xff] %v7146_v12 }
 0x1ec   : > { %2382 = vst [vmem:[#allocation1 + $0x1] ss:$4 sm:$0xff] %v7085_v29  ;;  %2096 = vrot.lane.b32.xlu1 %v6963_v40, %s6132_s15  ;;  %v4130_v40 = vld [vmem:[%s6199_s21 + $0x18] sm:$0x3]  ;;  %v7174_v34 = vpop.permute.xlu2 %5767 }
 0x1ed   : > { %2384 = vst [vmem:[#allocation1 + $0x2] ss:$4 sm:$0xff] %v7089_v58  ;;  %v4144_v14 = vrot.slane %v4130_v40, 6 }
 0x1ee   : > { %2386 = vst [vmem:[#allocation1 + $0x3] ss:$4 sm:$0xff] %v7092_v60 }
 0x1ef   : > { %5862 = vrot.lane.b32.xlu2 %v5861_v51, %s6132_s15  ;;  %8507 = vst [vmem:[#allocation29_spill] sm:$0xff] %v7174_v34 }
 0x1f0   : > { %v7158_v27 = vld.sshfl [vmem:[#allocation1 + $0x20] sm:$0xff pattern:$0x73625140]  ;;  %v7160_v12 = vld.sshfl [vmem:[#allocation1 + $0x28] sm:$0xff pattern:$0x73625140]  ;;  %v7194_v52 = vpop.permute.xlu0 %5732 }
 0x1f1   : > { %8505 = vst [vmem:[#allocation27_spill] sm:$0xff] %v7158_v27  ;;  %v4129_v27 = vld [vmem:[%s6199_s21 + $0x10] sm:$0x3] }
 0x1f2   : > { %8506 = vst [vmem:[#allocation28_spill] sm:$0xff] %v7160_v12 }
 0x1f3   : > { %4068 = vst [vmem:[#allocation1 + $0x20] ss:$4 sm:$0xff] %v4049_v38  ;;  %v7185_v38 = vpop.permute.xlu1 %5762 }
 0x1f4   : > { %4070 = vst [vmem:[#allocation1 + $0x21] ss:$4 sm:$0xff] %v6767_v59  ;;  %v7197_v40 = vpop.permute.xlu2 %5772 }
 0x1f5   : > { %4072 = vst [vmem:[#allocation1 + $0x22] ss:$4 sm:$0xff] %v6769_v1  ;;  %v7183_v51 = vld.sshfl [vmem:[#allocation1] sm:$0xff pattern:$0x73625140] }
 0x1f6   : > { %8508 = vst [vmem:[#allocation30_spill] sm:$0xff] %v7179_v16  ;;  %v7187_v12 = vld.sshfl [vmem:[#allocation1 + $0x8] sm:$0xff pattern:$0x73625140]  ;;  %v4154_v16 = vsel %vm210_vm0, %v4129_v27, %v4144_v14  ;;  %v2454_v14 = vld [vmem:[%s6199_s21 + $0x38] sm:$0x3] }
 0x1f7   : > { %4074 = vst [vmem:[#allocation1 + $0x23] ss:$4 sm:$0xff] %v6786_v13  ;;  %2098 = vrot.lane.b32.xlu2 %v6965_v41, %s6132_s15  ;;  %v5901_v48 = vpack.i.bf16 %v7187_v12, %v7183_v51  ;;  %v6085_v51 = vld [vmem:[%s6199_s21 + $0x20] sm:$0xff]  ;;  %s6156_s15 = smov 42  }
 0x1f8   : > { %8509 = vst [vmem:[#allocation31_spill] sm:$0xff] %v7185_v38  ;;  %v4235_v38 = vld [vmem:[%s6199_s21 + $0x18] sm:$0x3] }
 0x1f9   : > { %2399 = vst [vmem:[#allocation1] ss:$4 sm:$0xff] %v6600_v57 }
 0x1fa   : > { %2400 = vst [vmem:[#allocation1 + $0x1] ss:$4 sm:$0xff] %v2377_v53  ;;  %v5871_v53 = vpack.i.bf16 %v6992_v10, %v6990_v63  ;;  %v2453_v10 = vld [vmem:[%s6199_s21 + $0x30] sm:$0x3] }
 0x1fb   : > { %8510 = vst [vmem:[#allocation32_spill] sm:$0xff] %v7194_v52  ;;  %v7205_v27 = vpop.permute.xlu1 %1363 }
 0x1fc   : > { %8511 = vst [vmem:[#allocation33_spill] sm:$0xff] %v7197_v40  ;;  %v7220_v40 = vpop.permute.xlu0 %5742  ;;  %v1469_v8 = vpop.permute.xlu2 %1468 }
 0x1fd   : > { %8512 = vst [vmem:[#allocation34_spill] sm:$0xff] %v7205_v27 }
 0x1fe   : > { %v4077_v34 = vld.sshfl [vmem:[#allocation1 + $0x20] sm:$0xff pattern:$0x73625140]  ;;  %v4078_v0 = vld.sshfl [vmem:[#allocation1 + $0x28] sm:$0xff pattern:$0x73625140] }
 0x1ff   : > { %4173 = vst [vmem:[#allocation1 + $0x20] ss:$4 sm:$0xff] %v4154_v16  ;;  %v5866_v36 = vpack.i.bf16 %v4078_v0, %v4077_v34  ;;  %v4249_v0 = vrot.slane %v4235_v38, 6  ;;  %2201 = vrot.lane.b32.xlu2 %v7072_v33, %s6131_s14  ;;  %v4234_v34 = vld [vmem:[%s6199_s21 + $0x10] sm:$0x3] }
 0x200   : > { %4175 = vst [vmem:[#allocation1 + $0x21] ss:$4 sm:$0xff] %v6767_v59 }
 0x201   : > { %4177 = vst [vmem:[#allocation1 + $0x22] ss:$4 sm:$0xff] %v6769_v1  ;;  %5867 = vrot.lane.b32.xlu0 %v5866_v36, %s6149_s6  ;;  %v7202_v41 = vld.sshfl [vmem:[#allocation1] sm:$0xff pattern:$0x73625140]  ;;  %v4259_v38 = vsel %vm210_vm0, %v4234_v34, %v4249_v0  ;;  %v2466_v36 = vrot.slane %v2454_v14, 6 }
 0x202   : > { %4179 = vst [vmem:[#allocation1 + $0x23] ss:$4 sm:$0xff] %v6786_v13  ;;  %v7207_v16 = vld.sshfl [vmem:[#allocation1 + $0x8] sm:$0xff pattern:$0x73625140]  ;;  %v4354_v34 = vrot.slane %v4340_v2, 6 }
 0x203   : > { %2485 = vst [vmem:[#allocation1] ss:$4 sm:$0xff] %v7083_v5  ;;  %v1467_v63 = vpop.permute.xlu1 %1466  ;;  %v2482_v0 = vsel %vm210_vm0, %v2453_v10, %v2466_v36  ;;  %v4339_v14 = vld [vmem:[%s6199_s21 + $0x10] sm:$0x3]  ;;  %v4459_v10 = vrot.slane %v4445_v54, 6  ;;  %v528_v54 = vsel %vm525_vm8, %v6883_v61, %v6880_v23  ;;  %v5629_v23 = vunpack.i.l.bf16 %v6846_v43 }
 0x204   : > { %2487 = vst [vmem:[#allocation1 + $0x1] ss:$4 sm:$0xff] %v7085_v29  ;;  %v7227_v25 = vsel %vm1470_vm4, %v1467_v63, %v1469_v8  ;;  %v5609_v8 = vunpack.i.l.bf16 %v6896_v47  ;;  %v4364_v2 = vsel %vm210_vm0, %v4339_v14, %v4354_v34  ;;  %v5604_v63 = vunpack.i.l.bf16 %v6876_v7  ;;  %5392 = vmatpush.msk.msra.mxu3 %vm277_vm6, %v528_v54 }
 0x205   : > { %2489 = vst [vmem:[#allocation1 + $0x2] ss:$4 sm:$0xff] %v7089_v58 }
 0x206   : > { %2491 = vst [vmem:[#allocation1 + $0x3] ss:$4 sm:$0xff] %v7092_v60 }
 0x209   : > { %v4182_v52 = vld.sshfl [vmem:[#allocation1 + $0x20] sm:$0xff pattern:$0x73625140]  ;;  %v4183_v33 = vld.sshfl [vmem:[#allocation1 + $0x28] sm:$0xff pattern:$0x73625140]  ;;  %5872 = vrot.lane.b32.xlu0 %v5871_v53, %s6131_s14 }
 0x20a   : > { %v5876_v27 = vpack.i.bf16 %v4183_v33, %v4182_v52  ;;  %4278 = vst [vmem:[#allocation1 + $0x20] ss:$4 sm:$0xff] %v4259_v38  ;;  %v5605_v33 = vunpack.i.h.bf16 %v6876_v7 }
 0x20b   : > { %4280 = vst [vmem:[#allocation1 + $0x21] ss:$4 sm:$0xff] %v6767_v59  ;;  %v5610_v59 = vunpack.i.h.bf16 %v6896_v47 }
 0x20c   : > { %5877 = vrot.lane.b32.xlu1 %v5876_v27, %s6150_s7  ;;  %4282 = vst [vmem:[#allocation1 + $0x22] ss:$4 sm:$0xff] %v6769_v1  ;;  %v5886_v27 = vpack.i.bf16 %v7122_v9, %v7117_v6  ;;  %v4366_v1 = vsel %vm212_vm1, %v7171_v46, %v7163_v17  ;;  %v7261_v9 = vpop.permute.xlu0 %1258  ;;  %v268_v34 = vsel %vm267_vm5, %v5604_v63, %v5605_v33  ;;  %v4549_v63 = vld [vmem:[%s6199_s21 + $0x10] sm:$0x3] }
 0x20d   : > { %4284 = vst [vmem:[#allocation1 + $0x23] ss:$4 sm:$0xff] %v6786_v13  ;;  %v7232_v52 = vld.sshfl [vmem:[#allocation1] sm:$0xff pattern:$0x73625140]  ;;  %v4368_v13 = vsel %vm215_vm2, %v7171_v46, %v7163_v17  ;;  %v7257_v47 = vrot.slane %v4366_v1, 2 }
 0x20e   : > { %v7235_v53 = vld.sshfl [vmem:[#allocation1 + $0x8] sm:$0xff pattern:$0x73625140]  ;;  %v7259_v6 = vrot.slane %v4368_v13, 4 }
 0x20f   : > { %2504 = vst [vmem:[#allocation1] ss:$4 sm:$0xff] %v6600_v57  ;;  %v7255_v57 = vsel %vm210_vm0, %v7171_v46, %v7163_v17  ;;  %v269_v46 = vsel %vm267_vm5, %v5609_v8, %v5610_v59  ;;  %v5916_v12 = vpack.i.bf16 %v7235_v53, %v7232_v52  ;;  %v2558_v53 = vld [vmem:[%s6199_s21 + $0x30] sm:$0x3] }
 0x210   : > { %2505 = vst [vmem:[#allocation1 + $0x1] ss:$4 sm:$0xff] %v2482_v0  ;;  %v4444_v0 = vld [vmem:[%s6199_s21 + $0x10] sm:$0x3] }
 0x211   : > { %2203 = vrot.lane.b32.xlu0 %v7077_v32, %s6131_s14  ;;  %v270_v32 = vsel %vm267_vm5, %v6797_v20, %v6820_v11  ;;  %v5614_v11 = vunpack.i.l.bf16 %v6791_v30  ;;  %v2559_v30 = vld [vmem:[%s6199_s21 + $0x38] sm:$0x3]  ;;  %v4469_v8 = vsel %vm210_vm0, %v4444_v0, %v4459_v10  ;;  %v7340_v0 = vpop.permute.xlu1 %5782  ;;  %s6155_s14 = smov 43   ;;  %vm1260_vm5 = vcmask 908288  }
 0x212   : > { %5384 = vmatpush.msk.msra.mxu0 %vm277_vm6, %v270_v32  ;;  %v5624_v32 = vunpack.i.l.bf16 %v6814_v39 }
 0x213   : > { %v422_v59 = vsel %vm420_vm7, %v5614_v11, %v5615_v44  ;;  %v5620_v44 = vunpack.i.h.bf16 %v6923_v3  ;;  %v5619_v11 = vunpack.i.l.bf16 %v6923_v3 }
 0x214   : > { %5887 = vrot.lane.b32.xlu1 %v5886_v27, %s6134_s17  ;;  %v4287_v38 = vld.sshfl [vmem:[#allocation1 + $0x20] sm:$0xff pattern:$0x73625140]  ;;  %v4288_v36 = vld.sshfl [vmem:[#allocation1 + $0x28] sm:$0xff pattern:$0x73625140]  ;;  %294 = vmatpush.msra.mxu0 %v269_v46  ;;  %v7301_v14 = vpop.permute.xlu0 %5752  ;;  %v2585_v27 = vsel %vm218_vm3, %v6744_v22, %v6085_v51 }
 0x215   : > { %4383 = vst [vmem:[#allocation1 + $0x20] ss:$4 sm:$0xff] %v4364_v2  ;;  %v5881_v17 = vpack.i.bf16 %v4288_v36, %v4287_v38  ;;  %v5625_v2 = vunpack.i.h.bf16 %v6814_v39  ;;  %v7316_v38 = vrot.slane %v2585_v27, 6  ;;  %v4550_v22 = vld [vmem:[%s6199_s21 + $0x18] sm:$0x3] }
 0x216   : > { %4385 = vst [vmem:[#allocation1 + $0x21] ss:$4 sm:$0xff] %v7255_v57  ;;  %295 = vmatpush.msra.mxu0 %v268_v34  ;;  %v4564_v46 = vrot.slane %v4550_v22, 6  ;;  %v5630_v34 = vunpack.i.h.bf16 %v6846_v43  ;;  %v4655_v43 = vld [vmem:[%s6199_s21 + $0x18] sm:$0x3] }
 0x217   : > { %4387 = vst [vmem:[#allocation1 + $0x22] ss:$4 sm:$0xff] %v7257_v47  ;;  %5882 = vrot.lane.b32.xlu2 %v5881_v17, %s6151_s8  ;;  %v7278_v20 = vld.sshfl [vmem:[#allocation1 + $0x8] sm:$0xff pattern:$0x73625140]  ;;  %v421_v17 = vsel %vm420_vm7, %v5624_v32, %v5625_v2 }
 0x218   : > { %4389 = vst [vmem:[#allocation1 + $0x23] ss:$4 sm:$0xff] %v7259_v6  ;;  %v7284_v7 = vld.sshfl [vmem:[#allocation1] sm:$0xff pattern:$0x73625140] }
 0x219   : > { %2306 = vrot.lane.b32.xlu0 %v7142_v24, %s6134_s17  ;;  %2590 = vst [vmem:[#allocation1] ss:$4 sm:$0xff] %v7083_v5  ;;  %v423_v24 = vsel %vm420_vm7, %v6950_v4, %v6865_v31  ;;  %v7310_v31 = vpop.permute.xlu2 %5792  ;;  %v2571_v4 = vrot.slane %v2559_v30, 6  ;;  %v4654_v51 = vld [vmem:[%s6199_s21 + $0x10] sm:$0x3]  ;;  %vm1365_vm7 = vcmask 900096  }
 0x21a   : > { %2592 = vst [vmem:[#allocation1 + $0x1] ss:$4 sm:$0xff] %v7085_v29  ;;  %5389 = vmatpush.msk.msra.mxu2 %vm277_vm6, %v423_v24  ;;  %v527_v24 = vsel %vm525_vm8, %v5619_v11, %v5620_v44  ;;  %v2664_v27 = vld [vmem:[%s6199_s21 + $0x38] sm:$0x3]  ;;  %v4759_v11 = vld [vmem:[%s6199_s21 + $0x10] sm:$0x3] }
 0x21b   : > { %2594 = vst [vmem:[#allocation1 + $0x2] ss:$4 sm:$0xff] %v7089_v58  ;;  %v2587_v39 = vsel %vm210_vm0, %v2558_v53, %v2571_v4  ;;  %550 = vmatpush.msra.mxu3 %v527_v24  ;;  %v2663_v53 = vld [vmem:[%s6199_s21 + $0x30] sm:$0x3]  ;;  %v4760_v22 = vld [vmem:[%s6199_s21 + $0x18] sm:$0x3] }
 0x21c   : > { %2596 = vst [vmem:[#allocation1 + $0x3] ss:$4 sm:$0xff] %v7092_v60  ;;  %445 = vmatpush.msra.mxu2 %v422_v59  ;;  %v7338_v10 = vpop.permute.xlu0 %1361 }
 0x21e   : > { %446 = vmatpush.msra.mxu2 %v421_v17  ;;  %v4774_v17 = vrot.slane %v4760_v22, 6 }
 0x21f   : > { %v4392_v1 = vld.sshfl [vmem:[#allocation1 + $0x20] sm:$0xff pattern:$0x73625140]  ;;  %v4393_v13 = vld.sshfl [vmem:[#allocation1 + $0x28] sm:$0xff pattern:$0x73625140]  ;;  %5902 = vrot.lane.b32.xlu2 %v5901_v48, %s6135_s18  ;;  %v4574_v48 = vsel %vm210_vm0, %v4549_v63, %v4564_v46 }
 0x220   : > { %v5891_v52 = vpack.i.bf16 %v4393_v13, %v4392_v1  ;;  %4488 = vst [vmem:[#allocation1 + $0x20] ss:$4 sm:$0xff] %v4469_v8  ;;  %v2676_v13 = vrot.slane %v2664_v27, 6 }
 0x221   : > { %4490 = vst [vmem:[#allocation1 + $0x21] ss:$4 sm:$0xff] %v7255_v57  ;;  %5917 = vrot.lane.b32.xlu0 %v5916_v12, %s6133_s16  ;;  %v7346_v61 = vpop.permute.xlu2 %1571  ;;  %v4669_v12 = vrot.slane %v4655_v43, 6 }
 0x222   : > { %5892 = vrot.lane.b32.xlu1 %v5891_v52, %s6152_s9  ;;  %4492 = vst [vmem:[#allocation1 + $0x22] ss:$4 sm:$0xff] %v7257_v47 }
 0x223   : > { %4494 = vst [vmem:[#allocation1 + $0x23] ss:$4 sm:$0xff] %v7259_v6  ;;  %v7324_v36 = vld.sshfl [vmem:[#allocation1] sm:$0xff pattern:$0x73625140]  ;;  %v4679_v1 = vsel %vm210_vm0, %v4654_v51, %v4669_v12 }
 0x224   : > { %v7328_v33 = vld.sshfl [vmem:[#allocation1 + $0x8] sm:$0xff pattern:$0x73625140]  ;;  %v4864_v51 = vld [vmem:[%s6199_s21 + $0x10] sm:$0x3] }
 0x225   : > { %2609 = vst [vmem:[#allocation1] ss:$4 sm:$0xff] %v7316_v38 }
 0x226   : > { %2610 = vst [vmem:[#allocation1 + $0x1] ss:$4 sm:$0xff] %v2587_v39  ;;  %v2692_v39 = vsel %vm210_vm0, %v2663_v53, %v2676_v13  ;;  %v4970_v53 = vld [vmem:[%s6199_s21 + $0x18] sm:$0x3] }
 0x227   : > { %2413 = vrot.lane.b32.xlu2 %v7207_v16, %s6135_s18  ;;  %v633_v16 = vsel %vm630_vm9, %v6927_v42, %v7012_v19  ;;  %v7368_v42 = vpop.permute.xlu0 %5777  ;;  %v7370_v19 = vpop.permute.xlu1 %5802 }
 0x228   : > { %5395 = vmatpush.msk.msrb.mxu0 %vm277_vm6, %v633_v16  ;;  %v4865_v16 = vld [vmem:[%s6199_s21 + $0x18] sm:$0x3] }
 0x229   : > { %2518 = vrot.lane.b32.xlu0 %v7278_v20, %s6133_s16  ;;  %v632_v20 = vsel %vm630_vm9, %v5629_v23, %v5630_v34  ;;  %v7376_v4 = vpop.permute.xlu2 %5812  ;;  %v5635_v23 = vunpack.i.h.bf16 %v6838_v28 }
 0x22a   : > { %2308 = vrot.lane.b32.xlu1 %v7137_v35, %s6134_s17  ;;  %v4497_v3 = vld.sshfl [vmem:[#allocation1 + $0x20] sm:$0xff pattern:$0x73625140]  ;;  %v4498_v30 = vld.sshfl [vmem:[#allocation1 + $0x28] sm:$0xff pattern:$0x73625140]  ;;  %655 = vmatpush.msrb.mxu0 %v632_v20  ;;  %v738_v20 = vsel %vm735_vm10, %v7044_v62, %v6978_v55  ;;  %v5931_v62 = vpack.i.bf16 %v7328_v33, %v7324_v36  ;;  %v5639_v36 = vunpack.i.l.bf16 %v6863_v50 }
 0x22b   : > { %4593 = vst [vmem:[#allocation1 + $0x20] ss:$4 sm:$0xff] %v4574_v48  ;;  %v5896_v59 = vpack.i.bf16 %v4498_v30, %v4497_v3  ;;  %v5634_v48 = vunpack.i.l.bf16 %v6838_v28  ;;  %v4784_v3 = vsel %vm210_vm0, %v4759_v11, %v4774_v17  ;;  %5398 = vmatpush.msk.msrb.mxu1 %vm277_vm6, %v738_v20  ;;  %v4879_v55 = vrot.slane %v4865_v16, 6  ;;  %v4969_v16 = vld [vmem:[%s6199_s21 + $0x10] sm:$0x3]  ;;  %s6159_s17 = smov 39  }
 0x22c   : > { %4595 = vst [vmem:[#allocation1 + $0x21] ss:$4 sm:$0xff] %v7255_v57  ;;  %v4984_v17 = vrot.slane %v4970_v53, 6  ;;  %v5645_v20 = vunpack.i.h.bf16 %v6970_v26  ;;  %v5660_v53 = vunpack.i.h.bf16 %v6899_v15 }
 0x22d   : > { %4597 = vst [vmem:[#allocation1 + $0x22] ss:$4 sm:$0xff] %v7257_v47  ;;  %v2611_v35 = vld.sshfl [vmem:[#allocation1] sm:$0xff pattern:$0x73625140]  ;;  %v737_v28 = vsel %vm735_vm10, %v5634_v48, %v5635_v23  ;;  %v4889_v13 = vsel %vm210_vm0, %v4864_v51, %v4879_v55 }
 0x22e   : > { %4599 = vst [vmem:[#allocation1 + $0x23] ss:$4 sm:$0xff] %v7259_v6  ;;  %v7363_v8 = vld.sshfl [vmem:[#allocation1 + $0x8] sm:$0xff pattern:$0x73625140]  ;;  %760 = vmatpush.msrb.mxu1 %v737_v28  ;;  %v5644_v28 = vunpack.i.l.bf16 %v6970_v26 }
 0x22f   : > { %2695 = vst [vmem:[#allocation1] ss:$4 sm:$0xff] %v7083_v5  ;;  %v7391_v54 = vpop.permute.xlu0 %5787  ;;  %v7393_v44 = vpop.permute.xlu1 %5807 }
 0x230   : > { %2697 = vst [vmem:[#allocation1 + $0x1] ss:$4 sm:$0xff] %v7085_v29 }
 0x231   : > { %2621 = vrot.lane.b32.xlu0 %v2611_v35, %s6136_s19  ;;  %2699 = vst [vmem:[#allocation1 + $0x2] ss:$4 sm:$0xff] %v7089_v58  ;;  %v7397_v34 = vpop.permute.xlu2 %5817 }
 0x232   : > { %5897 = vrot.lane.b32.xlu1 %v5896_v59, %s6153_s10  ;;  %2701 = vst [vmem:[#allocation1 + $0x3] ss:$4 sm:$0xff] %v7092_v60 }
 0x235   : > { %v4602_v2 = vld.sshfl [vmem:[#allocation1 + $0x20] sm:$0xff pattern:$0x73625140]  ;;  %v4603_v32 = vld.sshfl [vmem:[#allocation1 + $0x28] sm:$0xff pattern:$0x73625140] }
 0x236   : > { %v5906_v52 = vpack.i.bf16 %v4603_v32, %v4602_v2  ;;  %4698 = vst [vmem:[#allocation1 + $0x20] ss:$4 sm:$0xff] %v4679_v1  ;;  %v2769_v1 = vld [vmem:[%s6199_s21 + $0x38] sm:$0x3]  ;;  %v5640_v32 = vunpack.i.h.bf16 %v6863_v50 }
 0x237   : > { %4700 = vst [vmem:[#allocation1 + $0x21] ss:$4 sm:$0xff] %v7255_v57  ;;  %v7418_v59 = vpop.permute.xlu0 %1573  ;;  %v7420_v12 = vpop.permute.xlu1 %1678  ;;  %v2781_v2 = vrot.slane %v2769_v1, 6 }
 0x238   : > { %4702 = vst [vmem:[#allocation1 + $0x22] ss:$4 sm:$0xff] %v7257_v47  ;;  %v526_v23 = vsel %vm525_vm8, %v5639_v36, %v5640_v32  ;;  %v5655_v32 = vunpack.i.h.bf16 %v6996_v45  ;;  %v5654_v36 = vunpack.i.l.bf16 %v6996_v45  ;;  %v1053_v45 = vsel %vm1050_vm12, %v7166_v21, %v7069_v56  ;;  %v8513_v56 = vld [vmem:[#allocation21_spill] sm:$0xff]  ;;  %v8514_v21 = vld [vmem:[#allocation12_spill] sm:$0xff] }
 0x239   : > { %4704 = vst [vmem:[#allocation1 + $0x23] ss:$4 sm:$0xff] %v7259_v6  ;;  %v7386_v46 = vld.sshfl [vmem:[#allocation1] sm:$0xff pattern:$0x73625140]  ;;  %v7426_v27 = vpop.permute.xlu2 %1783  ;;  %551 = vmatpush.msra.mxu3 %v526_v23  ;;  %vm1575_vm8 = vcmask 883712  }
 0x23a   : > { %5907 = vrot.lane.b32.xlu1 %v5906_v52, %s6154_s11  ;;  %v7389_v63 = vld.sshfl [vmem:[#allocation1 + $0x8] sm:$0xff pattern:$0x73625140] }
 0x23b   : > { %2714 = vst [vmem:[#allocation1] ss:$4 sm:$0xff] %v7316_v38 }
 0x23c   : > { %2715 = vst [vmem:[#allocation1 + $0x1] ss:$4 sm:$0xff] %v2692_v39  ;;  %v2768_v39 = vld [vmem:[%s6199_s21 + $0x30] sm:$0x3] }
 0x23d   : > { %v2797_v48 = vsel %vm210_vm0, %v2768_v39, %v2781_v2  ;;  %v5649_v39 = vunpack.i.l.bf16 %v6903_v49 }
 0x23f   : > { %v7442_v11 = vpop.permute.xlu0 %5797  ;;  %v7444_v50 = vpop.permute.xlu1 %1781 }
 0x240   : > { %v4707_v30 = vld.sshfl [vmem:[#allocation1 + $0x20] sm:$0xff pattern:$0x73625140]  ;;  %v4708_v24 = vld.sshfl [vmem:[#allocation1 + $0x28] sm:$0xff pattern:$0x73625140] }
 0x241   : > { %v5911_v43 = vpack.i.bf16 %v4708_v24, %v4707_v30  ;;  %4803 = vst [vmem:[#allocation1 + $0x20] ss:$4 sm:$0xff] %v4784_v3  ;;  %v7448_v3 = vpop.permute.xlu2 %5837  ;;  %v843_v30 = vsel %vm840_vm11, %v7000_v37, %v6998_v18  ;;  %v4994_v18 = vsel %vm210_vm0, %v4969_v16, %v4984_v17  ;;  %v2874_v17 = vld [vmem:[%s6199_s21 + $0x38] sm:$0x3] }
 0x242   : > { %2411 = vrot.lane.b32.xlu1 %v7202_v41, %s6135_s18  ;;  %4805 = vst [vmem:[#allocation1 + $0x21] ss:$4 sm:$0xff] %v7255_v57  ;;  %5401 = vmatpush.msk.msrb.mxu2 %vm277_vm6, %v843_v30  ;;  %s6160_s18 = smov 57  }
 0x243   : > { %5912 = vrot.lane.b32.xlu2 %v5911_v43, %s6155_s14  ;;  %4807 = vst [vmem:[#allocation1 + $0x22] ss:$4 sm:$0xff] %v7257_v47  ;;  %v7413_v35 = vld.sshfl [vmem:[#allocation1] sm:$0xff pattern:$0x73625140] }
 0x244   : > { %4809 = vst [vmem:[#allocation1 + $0x23] ss:$4 sm:$0xff] %v7259_v6  ;;  %v7416_v41 = vld.sshfl [vmem:[#allocation1 + $0x8] sm:$0xff pattern:$0x73625140] }
 0x245   : > { %2800 = vst [vmem:[#allocation1] ss:$4 sm:$0xff] %v7083_v5 }
 0x246   : > { %2802 = vst [vmem:[#allocation1 + $0x1] ss:$4 sm:$0xff] %v7085_v29 }
 0x247   : > { %2804 = vst [vmem:[#allocation1 + $0x2] ss:$4 sm:$0xff] %v7089_v58  ;;  %v7468_v51 = vpop.permute.xlu0 %1676  ;;  %v7470_v1 = vpop.permute.xlu1 %5827 }
 0x248   : > { %2806 = vst [vmem:[#allocation1 + $0x3] ss:$4 sm:$0xff] %v7092_v60 }
 0x249   : > { %v7474_v26 = vpop.permute.xlu2 %1886 }
 0x24a   : > { %5932 = vrot.lane.b32.xlu1 %v5931_v62, %s6136_s19  ;;  %v842_v62 = vsel %vm840_vm11, %v5644_v28, %v5645_v20 }
 0x24b   : > { %v4812_v33 = vld.sshfl [vmem:[#allocation1 + $0x20] sm:$0xff pattern:$0x73625140]  ;;  %v4813_v52 = vld.sshfl [vmem:[#allocation1 + $0x28] sm:$0xff pattern:$0x73625140]  ;;  %865 = vmatpush.msrb.mxu2 %v842_v62 }
 0x24c   : > { %v5921_v22 = vpack.i.bf16 %v4813_v52, %v4812_v33  ;;  %4908 = vst [vmem:[#allocation1 + $0x20] ss:$4 sm:$0xff] %v4889_v13  ;;  %v5074_v52 = vld [vmem:[%s6199_s21 + $0x10] sm:$0x3]  ;;  %v8515_v62 = vld [vmem:[#allocation5_spill] sm:$0xff] }
 0x24d   : > { %4910 = vst [vmem:[#allocation1 + $0x21] ss:$4 sm:$0xff] %v7255_v57 }
 0x24e   : > { %4912 = vst [vmem:[#allocation1 + $0x22] ss:$4 sm:$0xff] %v7257_v47  ;;  %5922 = vrot.lane.b32.xlu2 %v5921_v22, %s6156_s15  ;;  %v5659_v22 = vunpack.i.l.bf16 %v6899_v15  ;;  %v631_v15 = vsel %vm630_vm9, %v5654_v36, %v5655_v32  ;;  %v8516_v32 = vld [vmem:[#allocation8_spill] sm:$0xff]  ;;  %vm1680_vm9 = vcmask 818176  }
 0x24f   : > { %4914 = vst [vmem:[#allocation1 + $0x23] ss:$4 sm:$0xff] %v7259_v6  ;;  %v7453_v24 = vld.sshfl [vmem:[#allocation1] sm:$0xff pattern:$0x73625140]  ;;  %656 = vmatpush.msrb.mxu0 %v631_v15  ;;  %v5685_v36 = vunpack.i.h.bf16 %v8516_v32  ;;  %v8519_v15 = vld [vmem:[#allocation18_spill] sm:$0xff] }
 0x250   : > { %v7455_v43 = vld.sshfl [vmem:[#allocation1 + $0x8] sm:$0xff pattern:$0x73625140]  ;;  %v1052_v28 = vsel %vm1050_vm12, %v5659_v22, %v5660_v53  ;;  %v8518_v53 = vld [vmem:[#allocation11_spill] sm:$0xff] }
 0x251   : > { %2819 = vst [vmem:[#allocation1] ss:$4 sm:$0xff] %v7316_v38  ;;  %v7512_v23 = vpop.permute.xlu2 %5857  ;;  %v5665_v22 = vunpack.i.h.bf16 %v8518_v53 }
 0x252   : > { %2623 = vrot.lane.b32.xlu1 %v7363_v8, %s6136_s19  ;;  %2820 = vst [vmem:[#allocation1 + $0x1] ss:$4 sm:$0xff] %v2797_v48  ;;  %v5075_v8 = vld [vmem:[%s6199_s21 + $0x18] sm:$0x3]  ;;  %v2886_v48 = vrot.slane %v2874_v17, 6  ;;  %s8481_s19 = smov 40  }
 0x253   : > { %v5089_v33 = vrot.slane %v5075_v8, 6  ;;  %v5670_v8 = vunpack.i.h.bf16 %v8515_v62 }
 0x256   : > { %v4917_v37 = vld.sshfl [vmem:[#allocation1 + $0x20] sm:$0xff pattern:$0x73625140]  ;;  %v4918_v55 = vld.sshfl [vmem:[#allocation1 + $0x28] sm:$0xff pattern:$0x73625140]  ;;  %2516 = vrot.lane.b32.xlu2 %v7284_v7, %s6133_s16 }
 0x257   : > { %5013 = vst [vmem:[#allocation1 + $0x20] ss:$4 sm:$0xff] %v4994_v18  ;;  %v5926_v7 = vpack.i.bf16 %v4918_v55, %v4917_v37  ;;  %s8479_s16 = smov 41   ;;  %v2873_v37 = vld [vmem:[%s6199_s21 + $0x30] sm:$0x3]  ;;  %v2973_v55 = vld [vmem:[%s6199_s21 + $0x8] sm:$0xff] }
 0x258   : > { %5015 = vst [vmem:[#allocation1 + $0x21] ss:$4 sm:$0xff] %v7255_v57 }
 0x259   : > { %5017 = vst [vmem:[#allocation1 + $0x22] ss:$4 sm:$0xff] %v7257_v47  ;;  %v7477_v13 = vld.sshfl [vmem:[#allocation1 + $0x8] sm:$0xff pattern:$0x73625140] }
 0x25a   : > { %5019 = vst [vmem:[#allocation1 + $0x23] ss:$4 sm:$0xff] %v7259_v6  ;;  %2726 = vrot.lane.b32.xlu1 %v7413_v35, %s6138_s22  ;;  %v7482_v2 = vld.sshfl [vmem:[#allocation1] sm:$0xff pattern:$0x73625140]  ;;  %v5650_v35 = vunpack.i.h.bf16 %v6903_v49  ;;  %v7504_v49 = vpop.permute.xlu1 %5847 }
 0x25b   : > { %2905 = vst [vmem:[#allocation1] ss:$4 sm:$0xff] %v7083_v5  ;;  %v5099_v5 = vsel %vm210_vm0, %v5074_v52, %v5089_v33  ;;  %v5684_v33 = vunpack.i.l.bf16 %v8516_v32  ;;  %v8517_v52 = vld [vmem:[#allocation7_spill] sm:$0xff] }
 0x25c   : > { %2907 = vst [vmem:[#allocation1 + $0x1] ss:$4 sm:$0xff] %v7085_v29  ;;  %v7502_v29 = vpop.permute.xlu0 %5822  ;;  %v947_v20 = vsel %vm945_vm13, %v5649_v39, %v5650_v35  ;;  %v5675_v35 = vunpack.i.h.bf16 %v8517_v52  ;;  %v5664_v39 = vunpack.i.l.bf16 %v8518_v53 }
 0x25d   : > { %2909 = vst [vmem:[#allocation1 + $0x2] ss:$4 sm:$0xff] %v7089_v58  ;;  %v5383_v58 = vld [vmem:[%s8455_s1 + $0x4] sm:$0xf] }
 0x25e   : > { %5927 = vrot.lane.b32.xlu2 %v5926_v7, %s8479_s16  ;;  %2911 = vst [vmem:[#allocation1 + $0x3] ss:$4 sm:$0xff] %v7092_v60  ;;  %v948_v60 = vsel %vm945_vm13, %v8514_v21, %v8513_v56  ;;  %5385 = vmatmul.msk.f32.vlgmr.msra.gmra.mxu0 %vm273_vm14, %v5383_v58  ;;  %v5669_v7 = vunpack.i.l.bf16 %v8515_v62  ;;  %v5700_v58 = vunpack.i.h.bf16 %v8519_v15  ;;  %v5699_v56 = vunpack.i.l.bf16 %v8519_v15 }
 0x25f   : > { %5404 = vmatpush.msk.msrb.mxu3 %vm277_vm6, %v948_v60  ;;  %5407 = vmatpush.msk.msra.mxu0 %vm277_vm6, %v1053_v45  ;;  %v2902_v45 = vsel %vm210_vm0, %v2873_v37, %v2886_v48  ;;  %v8520_v60 = vld [vmem:[#allocation19_spill] sm:$0xff]  ;;  %v841_v37 = vsel %vm840_vm11, %v5684_v33, %v5685_v36  ;;  %v8524_v36 = vld [vmem:[#allocation34_spill] sm:$0xff]  ;;  %v5946_v15 = vpack.i.bf16 %v7389_v63, %v7386_v46  ;;  %vm1890_vm11 = vcmask 801792  }
 0x260   : > { %866 = vmatpush.msrb.mxu2 %v841_v37  ;;  %v1368_v33 = vsel %vm1365_vm7, %v7338_v10, %v8524_v36  ;;  %v946_v10 = vsel %vm945_vm13, %v5699_v56, %v5700_v58  ;;  %v5951_v37 = vpack.i.bf16 %v7455_v43, %v7453_v24  ;;  %vm2205_vm13 = vcmask 777216  }
 0x261   : > { %v5022_v30 = vld.sshfl [vmem:[#allocation1 + $0x20] sm:$0xff pattern:$0x73625140]  ;;  %v5023_v16 = vld.sshfl [vmem:[#allocation1 + $0x28] sm:$0xff pattern:$0x73625140]  ;;  %970 = vmatpush.msrb.mxu3 %v947_v20  ;;  %1075 = vmatpush.msra.mxu0 %v1052_v28  ;;  %v736_v20 = vsel %vm735_vm10, %v5669_v7, %v5670_v8  ;;  %v7558_v7 = vpop.permute.xlu2 %5862 }
 0x262   : > { %5118 = vst [vmem:[#allocation1 + $0x20] ss:$4 sm:$0xff] %v5099_v5  ;;  %v5936_v18 = vpack.i.bf16 %v5023_v16, %v5022_v30  ;;  %v2988_v5 = vrot.slane %v2973_v55, 6  ;;  %v8521_v30 = vld [vmem:[#allocation20_spill] sm:$0xff]  ;;  %v7541_v48 = vpop.permute.xlu1 %5852  ;;  %v8522_v55 = vld [vmem:[#allocation6_spill] sm:$0xff]  ;;  %761 = vmatpush.msrb.mxu1 %v736_v20  ;;  %vm1785_vm10 = vcmask 809984  }
 0x263   : > { %5120 = vst [vmem:[#allocation1 + $0x21] ss:$4 sm:$0xff] %v7255_v57  ;;  %v5674_v57 = vunpack.i.l.bf16 %v8517_v52  ;;  %v197_v28 = vld [vmem:[%s8455_s1] sm:$0xf]  ;;  %v5680_v62 = vunpack.i.h.bf16 %v8522_v55  ;;  %v5679_v32 = vunpack.i.l.bf16 %v8522_v55  ;;  %v8523_v52 = vld [vmem:[#allocation25_spill] sm:$0xff]  ;;  %971 = vmatpush.msrb.mxu3 %v946_v10 }
 0x264   : > { %5122 = vst [vmem:[#allocation1 + $0x22] ss:$4 sm:$0xff] %v7257_v47  ;;  %v2972_v47 = vld [vmem:[%s6199_s21] sm:$0xff]  ;;  %v1263_v53 = vsel %vm1260_vm5, %v8523_v52, %v7261_v9  ;;  %v7556_v8 = vpop.permute.xlu0 %5832  ;;  %5387 = vmatmul.msk.f32.vlgmr.msra.gmra.mxu1 %vm273_vm14, %v197_v28  ;;  %v5391_v9 = vld [vmem:[%s8455_s1 + $0xc] sm:$0xf] }
 0x265   : > { %5124 = vst [vmem:[#allocation1 + $0x23] ss:$4 sm:$0xff] %v7259_v6  ;;  %v2920_v17 = vld.sshfl [vmem:[#allocation1] sm:$0xff pattern:$0x73625140]  ;;  %v1158_v6 = vsel %vm1155_vm15, %v8521_v30, %v8520_v60  ;;  %5393 = vmatmul.msk.f32.vlgmr.msra.gmra.mxu3 %vm273_vm14, %v5391_v9  ;;  %v1367_v46 = vsel %vm1365_vm7, %v5679_v32, %v5680_v62 }
 0x266   : > { %v2921_v21 = vld.sshfl [vmem:[#allocation1 + $0x8] sm:$0xff pattern:$0x73625140]  ;;  %5937 = vrot.lane.b32.xlu2 %v5936_v18, %s8481_s19  ;;  %5410 = vmatpush.msk.msra.mxu1 %vm277_vm6, %v1158_v6  ;;  %v2979_v28 = vld [vmem:[%s6199_s21 + $0x38] sm:$0x3] }
 0x267   : > { %v5956_v16 = vpack.i.bf16 %v2921_v21, %v2920_v17  ;;  %2924 = vst [vmem:[#allocation1] ss:$4 sm:$0xff] %v7316_v38  ;;  %v5388_v18 = vld [vmem:[%s8455_s1 + $0x8] sm:$0xf]  ;;  %v1157_v17 = vsel %vm1155_vm15, %v5664_v39, %v5665_v22  ;;  %v1262_v21 = vsel %vm1260_vm5, %v5674_v57, %v5675_v35  ;;  %v2995_v22 = vsel %vm215_vm2, %v2972_v47, %v2988_v5  ;;  %v2978_v52 = vld [vmem:[%s6199_s21 + $0x30] sm:$0x3] }
 0x268   : > { %2925 = vst [vmem:[#allocation1 + $0x1] ss:$4 sm:$0xff] %v2902_v45  ;;  %v2993_v45 = vsel %vm212_vm1, %v2972_v47, %v2988_v5  ;;  %5390 = vmatmul.msk.f32.vlgmr.msra.gmra.mxu2 %vm273_vm14, %v5388_v18  ;;  %v2997_v39 = vsel %vm218_vm3, %v2988_v5, %v2972_v47  ;;  %1180 = vmatpush.msra.mxu1 %v1157_v17  ;;  %v7588_v58 = vrot.slane %v2995_v22, 4  ;;  %v8525_v18 = vld [vmem:[#allocation13_spill] sm:$0xff]  ;;  %v2991_v32 = vrot.slane %v2979_v28, 6  ;;  %v8528_v28 = vld [vmem:[#allocation10_spill] sm:$0xff] }
 0x269   : > { %5957 = vrot.lane.b32.xlu1 %v5956_v16, %s6139_s23  ;;  %5413 = vmatpush.msk.msra.mxu2 %vm277_vm6, %v1263_v53  ;;  %v7583_v35 = vsel %vm210_vm0, %v2972_v47, %v2988_v5  ;;  %v7585_v57 = vrot.slane %v2993_v45, 2  ;;  %v7590_v56 = vrot.slane %v2997_v39, 6  ;;  %v7598_v5 = vpop.permute.xlu2 %2098  ;;  %v5715_v55 = vunpack.i.h.bf16 %v8525_v18  ;;  %v8526_v53 = vld [vmem:[#allocation16_spill] sm:$0xff]  ;;  %v5394_v45 = vld [vmem:[%s8455_s1 + $0x10] sm:$0xf]  ;;  %v8527_v39 = vld [vmem:[#allocation17_spill] sm:$0xff] }
 0x26a   : > { %5416 = vmatpush.msk.msra.mxu3 %vm277_vm6, %v1368_v33  ;;  %v7595_v20 = vpop.permute.xlu1 %1993  ;;  %v5714_v62 = vunpack.i.l.bf16 %v8525_v18  ;;  %v5690_v36 = vunpack.i.h.bf16 %v8526_v53  ;;  %v5689_v33 = vunpack.i.l.bf16 %v8526_v53  ;;  %v3007_v43 = vsel %vm210_vm0, %v2978_v52, %v2991_v32  ;;  %5396 = vmatmul.msk.f32.vlgmr.msrb.gmra.mxu0 %vm273_vm14, %v5394_v45  ;;  %v5397_v53 = vld [vmem:[%s8455_s1 + $0x14] sm:$0xf] }
 0x26b   : > { %1285 = vmatpush.msra.mxu2 %v1262_v21  ;;  %v1578_v32 = vsel %vm1575_vm8, %v7346_v61, %v7418_v59  ;;  %v5400_v61 = vld [vmem:[%s8455_s1 + $0x18] sm:$0xf]  ;;  %v1683_v59 = vsel %vm1680_vm9, %v7468_v51, %v7420_v12  ;;  %v8530_v45 = vld [vmem:[#allocation26_spill] sm:$0xff] }
 0x26c   : > { %v5127_v60 = vld.sshfl [vmem:[#allocation1 + $0x20] sm:$0xff pattern:$0x73625140]  ;;  %v5128_v30 = vld.sshfl [vmem:[#allocation1 + $0x28] sm:$0xff pattern:$0x73625140]  ;;  %1390 = vmatpush.msra.mxu3 %v1367_v46  ;;  %v7602_v47 = vpop.permute.xlu0 %1888  ;;  %v1051_v9 = vsel %vm1050_vm12, %v5714_v62, %v5715_v55  ;;  %v1472_v10 = vsel %vm1470_vm4, %v5689_v33, %v5690_v36  ;;  %v5745_v46 = vunpack.i.h.bf16 %v7220_v40  ;;  %5399 = vmatmul.msk.f32.vlgmr.msrb.gmra.mxu1 %vm273_vm14, %v5397_v53 }
 0x26d   : > { %v5941_v63 = vpack.i.bf16 %v5128_v30, %v5127_v60  ;;  %1076 = vmatpush.msra.mxu0 %v1051_v9  ;;  %v5730_v60 = vunpack.i.h.bf16 %v8527_v39  ;;  %v5729_v30 = vunpack.i.l.bf16 %v8527_v39  ;;  %v8529_v55 = vld [vmem:[#allocation9_spill] sm:$0xff]  ;;  %v3084_v33 = vld [vmem:[%s6199_s21 + $0x38] sm:$0x3]  ;;  %vm2100_vm12 = vcmask 785408  }
 0x26e   : > { %5947 = vrot.lane.b32.xlu2 %v5946_v15, %s6138_s22  ;;  %v5705_v62 = vunpack.i.h.bf16 %v8529_v55  ;;  %v3096_v51 = vrot.slane %v3084_v33, 6  ;;  %v1893_v33 = vsel %vm1890_vm11, %v7474_v26, %v7602_v47 }
 0x26f   : > { %5942 = vrot.lane.b32.xlu0 %v5941_v63, %s6159_s17  ;;  %v2927_v6 = vld.sshfl [vmem:[#allocation1 + $0x8] sm:$0xff pattern:$0x73625140]  ;;  %v7593_v16 = vld.sshfl [vmem:[#allocation1] sm:$0xff pattern:$0x73625140]  ;;  %5419 = vmatpush.msk.msrb.mxu0 %vm277_vm6, %v7227_v25  ;;  %v5744_v63 = vunpack.i.l.bf16 %v7220_v40  ;;  %v5704_v40 = vunpack.i.l.bf16 %v8529_v55  ;;  %v1156_v52 = vsel %vm1155_vm15, %v5729_v30, %v5730_v60 }
 0x270   : > { %3010 = vst [vmem:[#allocation1] ss:$4 sm:$0xff] %v7583_v35  ;;  %1181 = vmatpush.msra.mxu1 %v1156_v52  ;;  %5402 = vmatmul.msk.f32.vlgmr.msrb.gmra.mxu2 %vm273_vm14, %v5400_v61  ;;  %v8532_v60 = vld [vmem:[#allocation24_spill] sm:$0xff]  ;;  %vm2310_vm15 = vcmask 769024  }
 0x271   : > { %2938 = vrot.lane.b32.xlu1 %v2927_v6, %s6139_s23  ;;  %3012 = vst [vmem:[#allocation1 + $0x1] ss:$4 sm:$0xff] %v7585_v57  ;;  %v7619_v24 = vpop.permute.xlu2 %2201  ;;  %1495 = vmatpush.msrb.mxu0 %v1472_v10  ;;  %v1261_v36 = vsel %vm1260_vm5, %v5744_v63, %v5745_v46  ;;  %v8531_v10 = vld [vmem:[#allocation33_spill] sm:$0xff]  ;;  %v5710_v30 = vunpack.i.h.bf16 %v8532_v60  ;;  %v3083_v46 = vld [vmem:[%s6199_s21 + $0x30] sm:$0x3]  ;;  %vm2415_vm5 = vcmask 703488  }
 0x272   : > { %3014 = vst [vmem:[#allocation1 + $0x2] ss:$4 sm:$0xff] %v7588_v58  ;;  %v7617_v17 = vpop.permute.xlu1 %2096  ;;  %5422 = vmatpush.msk.msrb.mxu1 %vm277_vm6, %v1578_v32  ;;  %1286 = vmatpush.msra.mxu2 %v1261_v36  ;;  %v5775_v39 = vunpack.i.h.bf16 %v8531_v10  ;;  %v5774_v12 = vunpack.i.l.bf16 %v8531_v10  ;;  %v3112_v32 = vsel %vm210_vm0, %v3083_v46, %v3096_v51  ;;  %v5406_v36 = vld [vmem:[%s8455_s1 + $0x20] sm:$0xf]  ;;  %v3189_v10 = vld [vmem:[%s6199_s21 + $0x38] sm:$0x3] }
 0x273   : > { %3016 = vst [vmem:[#allocation1 + $0x3] ss:$4 sm:$0xff] %v7590_v56  ;;  %5408 = vmatmul.msk.f32.vlgmr.msra.gmra.mxu0 %vm273_vm14, %v5406_v36  ;;  %v3201_v46 = vrot.slane %v3189_v10, 6  ;;  %v8535_v36 = vld [vmem:[#allocation32_spill] sm:$0xff]  ;;  %v5820_v10 = vunpack.i.h.bf16 %v7397_v34 }
 0x274   : > { %v7629_v21 = vpop.permute.xlu0 %5842  ;;  %5425 = vmatpush.msk.msrb.mxu2 %vm277_vm6, %v1683_v59  ;;  %v1471_v53 = vsel %vm1470_vm4, %v5774_v12, %v5775_v39  ;;  %vm1995_vm4 = vcmask 793600   ;;  %v8534_v12 = vld [vmem:[#allocation14_spill] sm:$0xff] }
 0x275   : > { %1496 = vmatpush.msrb.mxu0 %v1471_v53  ;;  %v5725_v51 = vunpack.i.h.bf16 %v8534_v12 }
 0x276   : > { %2728 = vrot.lane.b32.xlu2 %v7416_v41, %s6138_s22 }
 0x277   : > { %5952 = vrot.lane.b32.xlu0 %v5951_v37, %s6137_s20  ;;  %v5694_v37 = vunpack.i.l.bf16 %v8528_v28  ;;  %5431 = vmatpush.msk.msra.mxu0 %vm277_vm6, %v1893_v33  ;;  %v5735_v33 = vunpack.i.h.bf16 %v8535_v36 }
 0x279   : > { %v7643_v25 = vpop.permute.xlu2 %5882 }
 0x27a   : > { %v3025_v41 = vld.sshfl [vmem:[#allocation1] sm:$0xff pattern:$0x73625140]  ;;  %v3026_v15 = vld.sshfl [vmem:[#allocation1 + $0x8] sm:$0xff pattern:$0x73625140] }
 0x27b   : > { %3029 = vst [vmem:[#allocation1] ss:$4 sm:$0xff] %v7316_v38  ;;  %v5961_v6 = vpack.i.bf16 %v3026_v15, %v3025_v41  ;;  %v5760_v41 = vunpack.i.h.bf16 %v8530_v45  ;;  %v5759_v15 = vunpack.i.l.bf16 %v8530_v45 }
 0x27c   : > { %3030 = vst [vmem:[#allocation1 + $0x1] ss:$4 sm:$0xff] %v3007_v43  ;;  %v7662_v43 = vpop.permute.xlu0 %1991 }
 0x27d   : > { %v1366_v52 = vsel %vm1365_vm7, %v5759_v15, %v5760_v41  ;;  %vm2520_vm7 = vcmask 695296  }
 0x27e   : > { %2831 = vrot.lane.b32.xlu2 %v7482_v2, %s6137_s20  ;;  %v7637_v22 = vpop.permute.xlu1 %5877  ;;  %v5695_v2 = vunpack.i.h.bf16 %v8528_v28  ;;  %v5790_v28 = vunpack.i.h.bf16 %v7391_v54  ;;  %1391 = vmatpush.msra.mxu3 %v1366_v52  ;;  %v5805_v52 = vunpack.i.h.bf16 %v7370_v19 }
 0x27f   : > { %2833 = vrot.lane.b32.xlu0 %v7477_v13, %s6137_s20  ;;  %s5529_s20 = sld [smem:[#allocation2 + $0x1]] }
 0x280   : > { %v1577_v9 = vsel %vm1575_vm8, %v5694_v37, %v5695_v2  ;;  %v5789_v2 = vunpack.i.l.bf16 %v7391_v54  ;;  %v8533_v37 = vld [vmem:[#allocation15_spill] sm:$0xff] }
 0x281   : > { %1600 = vmatpush.msrb.mxu1 %v1577_v9  ;;  %v5719_v55 = vunpack.i.l.bf16 %v8533_v37  ;;  %v5403_v54 = vld [vmem:[%s8455_s1 + $0x1c] sm:$0xf] }
 0x282   : > { %5405 = vmatmul.msk.f32.vlgmr.msrb.gmra.mxu3 %vm273_vm14, %v5403_v54  ;;  %v1576_v9 = vsel %vm1575_vm8, %v5789_v2, %v5790_v28  ;;  %v3188_v28 = vld [vmem:[%s6199_s21 + $0x30] sm:$0x3]  ;;  %v5804_v54 = vunpack.i.l.bf16 %v7370_v19  ;;  %v3294_v19 = vld [vmem:[%s6199_s21 + $0x38] sm:$0x3]  ;;  %vm2625_vm8 = vcmask 687104  }
 0x283   : > { %v3031_v13 = vld.sshfl [vmem:[#allocation1] sm:$0xff pattern:$0x73625140]  ;;  %v3032_v18 = vld.sshfl [vmem:[#allocation1 + $0x8] sm:$0xff pattern:$0x73625140]  ;;  %1601 = vmatpush.msrb.mxu1 %v1576_v9 }
 0x284   : > { %3041 = vrot.lane.b32.xlu1 %v3031_v13, %s6141_s25  ;;  %3115 = vst [vmem:[#allocation1] ss:$4 sm:$0xff] %v7583_v35  ;;  %v5720_v13 = vunpack.i.h.bf16 %v8533_v37  ;;  %v7715_v45 = vpop.permute.xlu0 %5867  ;;  %v1681_v9 = vsel %vm1680_vm9, %v5804_v54, %v5805_v52  ;;  %v5415_v54 = vld [vmem:[%s8455_s1 + $0x2c] sm:$0xf] }
 0x285   : > { %3117 = vst [vmem:[#allocation1 + $0x1] ss:$4 sm:$0xff] %v7585_v57 }
 0x286   : > { %3119 = vst [vmem:[#allocation1 + $0x2] ss:$4 sm:$0xff] %v7588_v58  ;;  %5962 = vrot.lane.b32.xlu2 %v5961_v6, %s6141_s25  ;;  %v7685_v63 = vpop.permute.xlu1 %5887  ;;  %v5709_v6 = vunpack.i.l.bf16 %v8532_v60  ;;  %v1892_v26 = vsel %vm1890_vm11, %v5719_v55, %v5720_v13  ;;  %v1998_v60 = vsel %vm1995_vm4, %v7662_v43, %v7595_v20  ;;  %v3217_v13 = vsel %vm210_vm0, %v3188_v28, %v3201_v46  ;;  %v8536_v46 = vld [vmem:[#allocation22_spill] sm:$0xff] }
 0x287   : > { %2936 = vrot.lane.b32.xlu0 %v7593_v16, %s6139_s23  ;;  %3121 = vst [vmem:[#allocation1 + $0x3] ss:$4 sm:$0xff] %v7590_v56  ;;  %v1682_v16 = vsel %vm1680_vm9, %v5704_v40, %v5705_v62  ;;  %v7693_v62 = vpop.permute.xlu2 %5902  ;;  %v1788_v40 = vsel %vm1785_vm10, %v7444_v50, %v7426_v27  ;;  %1915 = vmatpush.msra.mxu0 %v1892_v26  ;;  %v5412_v26 = vld [vmem:[%s8455_s1 + $0x28] sm:$0xf]  ;;  %v5749_v28 = vunpack.i.l.bf16 %v8536_v46  ;;  %vm2730_vm9 = vcmask 678912  }
 0x288   : > { %1705 = vmatpush.msrb.mxu2 %v1682_v16  ;;  %v1787_v59 = vsel %vm1785_vm10, %v5709_v6, %v5710_v30  ;;  %5428 = vmatpush.msk.msrb.mxu3 %vm277_vm6, %v1788_v40  ;;  %v5724_v16 = vunpack.i.l.bf16 %v8534_v12  ;;  %v5409_v6 = vld [vmem:[%s8455_s1 + $0x24] sm:$0xf]  ;;  %v5819_v12 = vunpack.i.l.bf16 %v7397_v34 }
 0x289   : > { %5411 = vmatmul.msk.f32.vlgmr.msra.gmra.mxu1 %vm273_vm14, %v5409_v6  ;;  %5414 = vmatmul.msk.f32.vlgmr.msra.gmra.mxu2 %vm273_vm14, %v5412_v26  ;;  %v5750_v6 = vunpack.i.h.bf16 %v8536_v46  ;;  %v3398_v46 = vld [vmem:[%s6199_s21 + $0x30] sm:$0x3] }
 0x28a   : > { %1810 = vmatpush.msrb.mxu3 %v1787_v59  ;;  %5434 = vmatpush.msk.msra.mxu1 %vm277_vm6, %v1998_v60  ;;  %v1997_v2 = vsel %vm1995_vm4, %v5724_v16, %v5725_v51  ;;  %v2103_v59 = vsel %vm2100_vm12, %v7617_v17, %v7598_v5  ;;  %v3306_v17 = vrot.slane %v3294_v19, 6  ;;  %v5835_v51 = vunpack.i.h.bf16 %v7556_v8  ;;  %v3293_v60 = vld [vmem:[%s6199_s21 + $0x30] sm:$0x3] }
 0x28b   : > { %1706 = vmatpush.msrb.mxu2 %v1681_v9  ;;  %v5834_v16 = vunpack.i.l.bf16 %v7556_v8  ;;  %v1786_v52 = vsel %vm1785_vm10, %v5819_v12, %v5820_v10  ;;  %5417 = vmatmul.msk.f32.vlgmr.msra.gmra.mxu3 %vm273_vm14, %v5415_v54  ;;  %v5850_v10 = vunpack.i.h.bf16 %v7504_v49  ;;  %v5421_v54 = vld [vmem:[%s8455_s1 + $0x34] sm:$0xf]  ;;  %vm2835_vm10 = vcmask 670720  }
 0x28c   : > { %v7732_v39 = vpop.permute.xlu0 %5872  ;;  %2020 = vmatpush.msra.mxu1 %v1997_v2  ;;  %v8537_v2 = vld [vmem:[#allocation23_spill] sm:$0xff]  ;;  %1811 = vmatpush.msrb.mxu3 %v1786_v52 }
 0x28d   : > { %5437 = vmatpush.msk.msra.mxu2 %vm277_vm6, %v2103_v59 }
 0x28e   : > { %v3130_v61 = vld.sshfl [vmem:[#allocation1] sm:$0xff pattern:$0x73625140]  ;;  %v3131_v27 = vld.sshfl [vmem:[#allocation1 + $0x8] sm:$0xff pattern:$0x73625140]  ;;  %3043 = vrot.lane.b32.xlu2 %v3032_v18, %s6141_s25 }
 0x28f   : > { %v5966_v50 = vpack.i.bf16 %v3131_v27, %v3130_v61  ;;  %3134 = vst [vmem:[#allocation1] ss:$4 sm:$0xff] %v7316_v38  ;;  %v7724_v18 = vpop.permute.xlu2 %2413  ;;  %v5734_v61 = vunpack.i.l.bf16 %v8535_v36  ;;  %v1891_v36 = vsel %vm1890_vm11, %v5834_v16, %v5835_v51  ;;  %v5849_v51 = vunpack.i.l.bf16 %v7504_v49 }
 0x290   : > { %3135 = vst [vmem:[#allocation1 + $0x1] ss:$4 sm:$0xff] %v3112_v32  ;;  %1916 = vmatpush.msra.mxu0 %v1891_v36  ;;  %v5865_v16 = vunpack.i.h.bf16 %v7558_v7  ;;  %vm2940_vm11 = vcmask 662528  }
 0x291   : > { %5967 = vrot.lane.b32.xlu0 %v5966_v50, %s6140_s24  ;;  %v2102_v5 = vsel %vm2100_vm12, %v5734_v61, %v5735_v33  ;;  %v5418_v33 = vld [vmem:[%s8455_s1 + $0x30] sm:$0xf]  ;;  %5423 = vmatmul.msk.f32.vlgmr.msrb.gmra.mxu1 %vm273_vm14, %v5421_v54 }
 0x292   : > { %2125 = vmatpush.msra.mxu2 %v2102_v5  ;;  %5420 = vmatmul.msk.f32.vlgmr.msrb.gmra.mxu0 %vm273_vm14, %v5418_v33  ;;  %v8539_v33 = vld [vmem:[#allocation29_spill] sm:$0xff] }
 0x294   : > { %v7722_v47 = vpop.permute.xlu1 %5892  ;;  %v2204_v40 = vpop.permute.xlu0 %2203 }
 0x295   : > { %v2208_v34 = vsel %vm2205_vm13, %v7619_v24, %v2204_v40 }
 0x296   : > { %5440 = vmatpush.msk.msra.mxu3 %vm277_vm6, %v2208_v34  ;;  %v5754_v34 = vunpack.i.l.bf16 %v7301_v14 }
 0x297   : > { %v3137_v41 = vld.sshfl [vmem:[#allocation1 + $0x8] sm:$0xff pattern:$0x73625140]  ;;  %v3136_v15 = vld.sshfl [vmem:[#allocation1] sm:$0xff pattern:$0x73625140] }
 0x298   : > { %3220 = vst [vmem:[#allocation1] ss:$4 sm:$0xff] %v7583_v35  ;;  %3146 = vrot.lane.b32.xlu2 %v3136_v15, %s6140_s24 }
 0x299   : > { %3148 = vrot.lane.b32.xlu0 %v3137_v41, %s6140_s24  ;;  %3222 = vst [vmem:[#allocation1 + $0x1] ss:$4 sm:$0xff] %v7585_v57 }
 0x29a   : > { %3224 = vst [vmem:[#allocation1 + $0x2] ss:$4 sm:$0xff] %v7588_v58 }
 0x29b   : > { %3226 = vst [vmem:[#allocation1 + $0x3] ss:$4 sm:$0xff] %v7590_v56 }
 0x29c   : > { %v2309_v30 = vpop.permute.xlu1 %2308  ;;  %v2307_v15 = vpop.permute.xlu0 %2306 }
 0x29d   : > { %v7747_v37 = vpop.permute.xlu2 %5912  ;;  %v2313_v8 = vsel %vm2310_vm15, %v2307_v15, %v2309_v30  ;;  %v3399_v15 = vld [vmem:[%s6199_s21 + $0x38] sm:$0x3] }
 0x29e   : > { %5443 = vmatpush.msk.msrb.mxu0 %vm277_vm6, %v2313_v8  ;;  %v3411_v12 = vrot.slane %v3399_v15, 6  ;;  %v5427_v15 = vld [vmem:[%s8455_s1 + $0x3c] sm:$0xf] }
 0x29f   : > { %5429 = vmatmul.msk.f32.vlgmr.msrb.gmra.mxu3 %vm273_vm14, %v5427_v15  ;;  %v5436_v15 = vld [vmem:[%s8455_s1 + $0x48] sm:$0xf] }
 0x2a0   : > { %v3427_v49 = vsel %vm210_vm0, %v3398_v46, %v3411_v12  ;;  %v5890_v46 = vunpack.i.h.bf16 %v7685_v63 }
 0x2a2   : > { %v3235_v55 = vld.sshfl [vmem:[#allocation1] sm:$0xff pattern:$0x73625140]  ;;  %v3236_v20 = vld.sshfl [vmem:[#allocation1 + $0x8] sm:$0xff pattern:$0x73625140] }
 0x2a3   : > { %v5971_v43 = vpack.i.bf16 %v3236_v20, %v3235_v55  ;;  %3239 = vst [vmem:[#allocation1] ss:$4 sm:$0xff] %v7316_v38  ;;  %v5739_v55 = vunpack.i.l.bf16 %v8537_v2  ;;  %v3322_v20 = vsel %vm210_vm0, %v3293_v60, %v3306_v17  ;;  %v5864_v60 = vunpack.i.l.bf16 %v7558_v7 }
 0x2a4   : > { %3240 = vst [vmem:[#allocation1 + $0x1] ss:$4 sm:$0xff] %v3217_v13  ;;  %v7751_v32 = vpop.permute.xlu1 %5897  ;;  %v5740_v13 = vunpack.i.h.bf16 %v8537_v2  ;;  %v7805_v59 = vpop.permute.xlu0 %5917  ;;  %v8538_v2 = vld [vmem:[#allocation31_spill] sm:$0xff] }
 0x2a5   : > { %5972 = vrot.lane.b32.xlu1 %v5971_v43, %s6142_s26  ;;  %v2101_v36 = vsel %vm2100_vm12, %v5864_v60, %v5865_v16  ;;  %v3504_v60 = vld [vmem:[%s6199_s21 + $0x38] sm:$0x3]  ;;  %vm3150_vm12 = vcmask 588800  }
 0x2a6   : > { %v2207_v40 = vsel %vm2205_vm13, %v5739_v55, %v5740_v13  ;;  %v5765_v13 = vunpack.i.h.bf16 %v8538_v2  ;;  %v5764_v55 = vunpack.i.l.bf16 %v8538_v2  ;;  %2126 = vmatpush.msra.mxu2 %v2101_v36  ;;  %v5780_v2 = vunpack.i.h.bf16 %v7368_v42 }
 0x2a7   : > { %2230 = vmatpush.msra.mxu3 %v2207_v40 }
 0x2a8   : > { %v7756_v53 = vpop.permute.xlu2 %5922 }
 0x2ab   : > { %v3242_v27 = vld.sshfl [vmem:[#allocation1 + $0x8] sm:$0xff pattern:$0x73625140]  ;;  %v3241_v50 = vld.sshfl [vmem:[#allocation1] sm:$0xff pattern:$0x73625140] }
 0x2ac   : > { %3251 = vrot.lane.b32.xlu0 %v3241_v50, %s6142_s26  ;;  %3325 = vst [vmem:[#allocation1] ss:$4 sm:$0xff] %v7583_v35  ;;  %v7772_v41 = vpop.permute.xlu1 %5907  ;;  %v2312_v50 = vsel %vm2310_vm15, %v5749_v28, %v5750_v6  ;;  %v2519_v17 = vpop.permute.xlu0 %2518  ;;  %v5875_v6 = vunpack.i.h.bf16 %v7732_v39  ;;  %v5874_v28 = vunpack.i.l.bf16 %v7732_v39  ;;  %v1996_v39 = vsel %vm1995_vm4, %v5849_v51, %v5850_v10 }
 0x2ad   : > { %3253 = vrot.lane.b32.xlu1 %v3242_v27, %s6142_s26  ;;  %3327 = vst [vmem:[#allocation1 + $0x1] ss:$4 sm:$0xff] %v7585_v57  ;;  %2335 = vmatpush.msrb.mxu0 %v2312_v50  ;;  %vm3045_vm4 = vcmask 654336  }
 0x2ae   : > { %3329 = vst [vmem:[#allocation1 + $0x2] ss:$4 sm:$0xff] %v7588_v58  ;;  %2021 = vmatpush.msra.mxu1 %v1996_v39 }
 0x2af   : > { %3331 = vst [vmem:[#allocation1 + $0x3] ss:$4 sm:$0xff] %v7590_v56 }
 0x2b0   : > { %v2517_v43 = vpop.permute.xlu2 %2516 }
 0x2b1   : > { %v2523_v52 = vsel %vm2520_vm7, %v2517_v43, %v2519_v17 }
 0x2b4   : > { %v2412_v30 = vpop.permute.xlu1 %2411 }
 0x2b5   : > { %v2418_v7 = vsel %vm2415_vm5, %v2412_v30, %v7724_v18  ;;  %v5769_v18 = vunpack.i.l.bf16 %v8539_v33  ;;  %v2206_v30 = vsel %vm2205_vm13, %v5874_v28, %v5875_v6  ;;  %v5889_v6 = vunpack.i.l.bf16 %v7685_v63 }
 0x2b6   : > { %v3340_v61 = vld.sshfl [vmem:[#allocation1] sm:$0xff pattern:$0x73625140]  ;;  %v3341_v27 = vld.sshfl [vmem:[#allocation1 + $0x8] sm:$0xff pattern:$0x73625140]  ;;  %5446 = vmatpush.msk.msrb.mxu1 %vm277_vm6, %v2418_v7  ;;  %2231 = vmatpush.msra.mxu3 %v2206_v30 }
 0x2b7   : > { %3344 = vst [vmem:[#allocation1] ss:$4 sm:$0xff] %v7316_v38  ;;  %v5976_v24 = vpack.i.bf16 %v3341_v27, %v3340_v61  ;;  %v5770_v61 = vunpack.i.h.bf16 %v8539_v33  ;;  %v3516_v28 = vrot.slane %v3504_v60, 6  ;;  %v5430_v7 = vld [vmem:[%s8455_s1 + $0x40] sm:$0xf]  ;;  %v5905_v33 = vunpack.i.h.bf16 %v7693_v62 }
 0x2b8   : > { %3345 = vst [vmem:[#allocation1 + $0x1] ss:$4 sm:$0xff] %v3322_v20  ;;  %v7810_v19 = vpop.permute.xlu2 %5927  ;;  %v5755_v20 = vunpack.i.h.bf16 %v7301_v14  ;;  %v5424_v14 = vld [vmem:[%s8455_s1 + $0x38] sm:$0xf]  ;;  %5432 = vmatmul.msk.f32.vlgmr.msra.gmra.mxu0 %vm273_vm14, %v5430_v7  ;;  %vm3255_vm13 = vcmask 580608  }
 0x2b9   : > { %5977 = vrot.lane.b32.xlu2 %v5976_v24, %s6143_s27  ;;  %5426 = vmatmul.msk.f32.vlgmr.msrb.gmra.mxu2 %vm273_vm14, %v5424_v14  ;;  %v2627_v10 = vsel %vm2625_vm8, %v5769_v18, %v5770_v61  ;;  %v5904_v61 = vunpack.i.l.bf16 %v7693_v62  ;;  %v5920_v18 = vunpack.i.h.bf16 %v7805_v59 }
 0x2ba   : > { %v2417_v50 = vsel %vm2415_vm5, %v5754_v34, %v5755_v20  ;;  %5449 = vmatpush.msk.msrb.mxu2 %vm277_vm6, %v2523_v52 }
 0x2bb   : > { %2440 = vmatpush.msrb.mxu1 %v2417_v50  ;;  %v2416_v62 = vsel %vm2415_vm5, %v5904_v61, %v5905_v33  ;;  %v5800_v33 = vunpack.i.h.bf16 %v7442_v11  ;;  %v5799_v61 = vunpack.i.l.bf16 %v7442_v11  ;;  %v5439_v11 = vld [vmem:[%s8455_s1 + $0x4c] sm:$0xf]  ;;  %vm3465_vm5 = vcmask 564224  }
 0x2bc   : > { %v7817_v5 = vpop.permute.xlu1 %5932  ;;  %5441 = vmatmul.msk.f32.vlgmr.msra.gmra.mxu3 %vm273_vm14, %v5439_v11 }
 0x2bd   : > { %2441 = vmatpush.msrb.mxu1 %v2416_v62  ;;  %v5935_v7 = vunpack.i.h.bf16 %v7817_v5 }
 0x2bf   : > { %v3346_v9 = vld.sshfl [vmem:[#allocation1] sm:$0xff pattern:$0x73625140]  ;;  %v3347_v26 = vld.sshfl [vmem:[#allocation1 + $0x8] sm:$0xff pattern:$0x73625140] }
 0x2c0   : > { %3356 = vrot.lane.b32.xlu1 %v3346_v9, %s6143_s27  ;;  %3430 = vst [vmem:[#allocation1] ss:$4 sm:$0xff] %v7583_v35  ;;  %v7835_v8 = vpop.permute.xlu2 %5937  ;;  %v2522_v9 = vsel %vm2520_vm7, %v5764_v55, %v5765_v13  ;;  %v5779_v13 = vunpack.i.l.bf16 %v7368_v42  ;;  %v3503_v55 = vld [vmem:[%s6199_s21 + $0x30] sm:$0x3] }
 0x2c1   : > { %3432 = vst [vmem:[#allocation1 + $0x1] ss:$4 sm:$0xff] %v7585_v57  ;;  %3358 = vrot.lane.b32.xlu2 %v3347_v26, %s6143_s27  ;;  %v2622_v26 = vpop.permute.xlu0 %2621  ;;  %2545 = vmatpush.msrb.mxu2 %v2522_v9  ;;  %v3532_v52 = vsel %vm210_vm0, %v3503_v55, %v3516_v28 }
 0x2c2   : > { %3434 = vst [vmem:[#allocation1 + $0x2] ss:$4 sm:$0xff] %v7588_v58  ;;  %v2732_v42 = vsel %vm2730_vm9, %v5779_v13, %v5780_v2  ;;  %5438 = vmatmul.msk.f32.vlgmr.msra.gmra.mxu2 %vm273_vm14, %v5436_v15  ;;  %v3713_v15 = vld [vmem:[%s6199_s21 + $0x30] sm:$0x3] }
 0x2c3   : > { %3436 = vst [vmem:[#allocation1 + $0x3] ss:$4 sm:$0xff] %v7590_v56 }
 0x2c4   : > { %v2624_v43 = vpop.permute.xlu1 %2623 }
 0x2c5   : > { %v2628_v17 = vsel %vm2625_vm8, %v2622_v26, %v2624_v43  ;;  %v3609_v26 = vld [vmem:[%s6199_s21 + $0x38] sm:$0x3] }
 0x2c6   : > { %5452 = vmatpush.msk.msrb.mxu3 %vm277_vm6, %v2628_v17  ;;  %v3621_v17 = vrot.slane %v3609_v26, 6 }
 0x2c8   : > { %2650 = vmatpush.msrb.mxu3 %v2627_v10  ;;  %v7864_v12 = vpop.permute.xlu2 %5947  ;;  %v5785_v10 = vunpack.i.h.bf16 %v7340_v0 }
 0x2c9   : > { %v5949_v62 = vunpack.i.l.bf16 %v7864_v12 }
 0x2ca   : > { %v3445_v27 = vld.sshfl [vmem:[#allocation1] sm:$0xff pattern:$0x73625140]  ;;  %v3446_v24 = vld.sshfl [vmem:[#allocation1 + $0x8] sm:$0xff pattern:$0x73625140] }
 0x2cb   : > { %v5981_v40 = vpack.i.bf16 %v3446_v24, %v3445_v27  ;;  %3449 = vst [vmem:[#allocation1] ss:$4 sm:$0xff] %v7316_v38  ;;  %v5919_v27 = vunpack.i.l.bf16 %v7805_v59  ;;  %v5433_v59 = vld [vmem:[%s8455_s1 + $0x44] sm:$0xf] }
 0x2cc   : > { %3450 = vst [vmem:[#allocation1 + $0x1] ss:$4 sm:$0xff] %v3427_v49  ;;  %v2727_v20 = vpop.permute.xlu1 %2726  ;;  %v2311_v49 = vsel %vm2310_vm15, %v5889_v6, %v5890_v46  ;;  %5435 = vmatmul.msk.f32.vlgmr.msra.gmra.mxu1 %vm273_vm14, %v5433_v59  ;;  %vm3360_vm15 = vcmask 572416  }
 0x2cd   : > { %5982 = vrot.lane.b32.xlu0 %v5981_v40, %s6144_s28  ;;  %2336 = vmatpush.msrb.mxu0 %v2311_v49  ;;  %v2521_v9 = vsel %vm2520_vm7, %v5919_v27, %v5920_v18  ;;  %v5794_v49 = vunpack.i.l.bf16 %v7310_v31  ;;  %vm3570_vm7 = vcmask 556032  }
 0x2ce   : > { %2546 = vmatpush.msrb.mxu2 %v2521_v9 }
 0x2d0   : > { %v2729_v34 = vpop.permute.xlu2 %2728 }
 0x2d1   : > { %v2733_v39 = vsel %vm2730_vm9, %v2727_v20, %v2729_v34 }
 0x2d2   : > { %5455 = vmatpush.msk.msra.mxu0 %vm277_vm6, %v2733_v39 }
 0x2d3   : > { %v3452_v51 = vld.sshfl [vmem:[#allocation1 + $0x8] sm:$0xff pattern:$0x73625140]  ;;  %v3451_v16 = vld.sshfl [vmem:[#allocation1] sm:$0xff pattern:$0x73625140] }
 0x2d4   : > { %3535 = vst [vmem:[#allocation1] ss:$4 sm:$0xff] %v7583_v35  ;;  %3461 = vrot.lane.b32.xlu2 %v3451_v16, %s6144_s28  ;;  %2755 = vmatpush.msra.mxu0 %v2732_v42  ;;  %v3608_v16 = vld [vmem:[%s6199_s21 + $0x30] sm:$0x3] }
 0x2d5   : > { %3463 = vrot.lane.b32.xlu0 %v3452_v51, %s6144_s28  ;;  %3537 = vst [vmem:[#allocation1 + $0x1] ss:$4 sm:$0xff] %v7585_v57  ;;  %v5784_v51 = vunpack.i.l.bf16 %v7340_v0  ;;  %v3637_v46 = vsel %vm210_vm0, %v3608_v16, %v3621_v17  ;;  %v5795_v0 = vunpack.i.h.bf16 %v7310_v31  ;;  %v5442_v16 = vld [vmem:[%s8455_s1 + $0x50] sm:$0xf] }
 0x2d6   : > { %3539 = vst [vmem:[#allocation1 + $0x2] ss:$4 sm:$0xff] %v7588_v58  ;;  %5444 = vmatmul.msk.f32.vlgmr.msrb.gmra.mxu0 %vm273_vm14, %v5442_v16 }
 0x2d7   : > { %3541 = vst [vmem:[#allocation1 + $0x3] ss:$4 sm:$0xff] %v7590_v56  ;;  %v2837_v20 = vsel %vm2835_vm10, %v5784_v51, %v5785_v10 }
 0x2d8   : > { %v2832_v24 = vpop.permute.xlu2 %2831 }
 0x2db   : > { %v7897_v40 = vpop.permute.xlu1 %5957 }
 0x2de   : > { %v3550_v63 = vld.sshfl [vmem:[#allocation1] sm:$0xff pattern:$0x73625140]  ;;  %v3551_v54 = vld.sshfl [vmem:[#allocation1 + $0x8] sm:$0xff pattern:$0x73625140] }
 0x2df   : > { %v5986_v36 = vpack.i.bf16 %v3551_v54, %v3550_v63  ;;  %3554 = vst [vmem:[#allocation1] ss:$4 sm:$0xff] %v7316_v38  ;;  %v2942_v54 = vsel %vm2940_vm11, %v5794_v49, %v5795_v0 }
 0x2e0   : > { %3555 = vst [vmem:[#allocation1 + $0x1] ss:$4 sm:$0xff] %v3532_v52  ;;  %v7919_v60 = vpop.permute.xlu2 %5962  ;;  %v5934_v52 = vunpack.i.l.bf16 %v7817_v5 }
 0x2e1   : > { %5987 = vrot.lane.b32.xlu1 %v5986_v36, %s6145_s29  ;;  %v7889_v14 = vpop.permute.xlu0 %5942 }
 0x2e2   : > { %v2626_v27 = vsel %vm2625_vm8, %v5934_v52, %v5935_v7  ;;  %vm3675_vm8 = vcmask 547840  }
 0x2e3   : > { %v2939_v55 = vpop.permute.xlu1 %2938  ;;  %2651 = vmatpush.msrb.mxu3 %v2626_v27 }
 0x2e7   : > { %v3557_v43 = vld.sshfl [vmem:[#allocation1 + $0x8] sm:$0xff pattern:$0x73625140]  ;;  %v3556_v30 = vld.sshfl [vmem:[#allocation1] sm:$0xff pattern:$0x73625140] }
 0x2e8   : > { %3566 = vrot.lane.b32.xlu0 %v3556_v30, %s6145_s29  ;;  %3640 = vst [vmem:[#allocation1] ss:$4 sm:$0xff] %v7583_v35  ;;  %v3044_v42 = vpop.permute.xlu2 %3043  ;;  %v5950_v30 = vunpack.i.h.bf16 %v7864_v12  ;;  %v5445_v12 = vld [vmem:[%s8455_s1 + $0x54] sm:$0xf] }
 0x2e9   : > { %3568 = vrot.lane.b32.xlu1 %v3557_v43, %s6145_s29  ;;  %v7900_v50 = vpop.permute.xlu0 %5952  ;;  %3642 = vst [vmem:[#allocation1 + $0x1] ss:$4 sm:$0xff] %v7585_v57  ;;  %v3047_v43 = vsel %vm3045_vm4, %v5799_v61, %v5800_v33  ;;  %5447 = vmatmul.msk.f32.vlgmr.msrb.gmra.mxu1 %vm273_vm14, %v5445_v12  ;;  %v5815_v61 = vunpack.i.h.bf16 %v7376_v4  ;;  %v8541_v12 = vld [vmem:[#allocation28_spill] sm:$0xff]  ;;  %s5382_s29 = sshll.u32 %s8546_s13, 2 }
 0x2ea   : > { %3644 = vst [vmem:[#allocation1 + $0x2] ss:$4 sm:$0xff] %v7588_v58  ;;  %v5955_v59 = vunpack.i.h.bf16 %v7900_v50  ;;  %v5954_v9 = vunpack.i.l.bf16 %v7900_v50  ;;  %v2731_v51 = vsel %vm2730_vm9, %v5949_v62, %v5950_v30  ;;  %v5960_v62 = vunpack.i.h.bf16 %v7897_v40 }
 0x2eb   : > { %3646 = vst [vmem:[#allocation1 + $0x3] ss:$4 sm:$0xff] %v7590_v56  ;;  %2756 = vmatpush.msra.mxu0 %v2731_v51  ;;  %vm3780_vm9 = vcmask 539648  }
 0x2f1   : > { %v2834_v6 = vpop.permute.xlu0 %2833 }
 0x2f2   : > { %v3655_v28 = vld.sshfl [vmem:[#allocation1] sm:$0xff pattern:$0x73625140]  ;;  %v3656_v2 = vld.sshfl [vmem:[#allocation1 + $0x8] sm:$0xff pattern:$0x73625140]  ;;  %v2838_v13 = vsel %vm2835_vm10, %v2832_v24, %v2834_v6 }
 0x2f3   : > { %3659 = vst [vmem:[#allocation1] ss:$4 sm:$0xff] %v7316_v38  ;;  %5458 = vmatpush.msk.msra.mxu1 %vm277_vm6, %v2838_v13  ;;  %v5991_v34 = vpack.i.bf16 %v3656_v2, %v3655_v28  ;;  %v3714_v24 = vld [vmem:[%s6199_s21 + $0x38] sm:$0x3]  ;;  %v3147_v2 = vpop.permute.xlu2 %3146  ;;  %v5810_v13 = vunpack.i.h.bf16 %v7393_v44 }
 0x2f4   : > { %3660 = vst [vmem:[#allocation1 + $0x1] ss:$4 sm:$0xff] %v3637_v46  ;;  %v3726_v26 = vrot.slane %v3714_v24, 6  ;;  %v2836_v46 = vsel %vm2835_vm10, %v5954_v9, %v5955_v59  ;;  %v5959_v59 = vunpack.i.l.bf16 %v7897_v40  ;;  %v8540_v40 = vld [vmem:[#allocation27_spill] sm:$0xff]  ;;  %vm3885_vm10 = vcmask 474112  }
 0x2f5   : > { %2860 = vmatpush.msra.mxu1 %v2837_v20  ;;  %5992 = vrot.lane.b32.xlu2 %v5991_v34, %s6146_s30 }
 0x2f6   : > { %v3042_v36 = vpop.permute.xlu1 %3041  ;;  %v3742_v10 = vsel %vm210_vm0, %v3713_v15, %v3726_v26  ;;  %v3923_v26 = vld [vmem:[%s6199_s21 + $0x30] sm:$0x3]  ;;  %v4023_v15 = vld [vmem:[%s6199_s21 + $0x8] sm:$0xff] }
 0x2f7   : > { %v3048_v5 = vsel %vm3045_vm4, %v3042_v36, %v3044_v42  ;;  %2861 = vmatpush.msra.mxu1 %v2836_v46  ;;  %v4022_v46 = vld [vmem:[%s6199_s21] sm:$0xff] }
 0x2f8   : > { %5464 = vmatpush.msk.msra.mxu3 %vm277_vm6, %v3048_v5 }
 0x2f9   : > { %v2937_v39 = vpop.permute.xlu0 %2936 }
 0x2fa   : > { %v2943_v63 = vsel %vm2940_vm11, %v2937_v39, %v2939_v55  ;;  %3070 = vmatpush.msra.mxu3 %v3047_v43  ;;  %v5809_v55 = vunpack.i.l.bf16 %v7393_v44  ;;  %v3819_v44 = vld [vmem:[%s6199_s21 + $0x38] sm:$0x3]  ;;  %v3818_v39 = vld [vmem:[%s6199_s21 + $0x30] sm:$0x3] }
 0x2fb   : > { %v3661_v18 = vld.sshfl [vmem:[#allocation1] sm:$0xff pattern:$0x73625140]  ;;  %v3662_v31 = vld.sshfl [vmem:[#allocation1 + $0x8] sm:$0xff pattern:$0x73625140]  ;;  %5461 = vmatpush.msk.msra.mxu2 %vm277_vm6, %v2943_v63 }
 0x2fc   : > { %3671 = vrot.lane.b32.xlu1 %v3661_v18, %s6146_s30  ;;  %3745 = vst [vmem:[#allocation1] ss:$4 sm:$0xff] %v7583_v35  ;;  %v3152_v0 = vsel %vm3150_vm12, %v5809_v55, %v5810_v13  ;;  %v3831_v52 = vrot.slane %v3819_v44, 6  ;;  %v5814_v18 = vunpack.i.l.bf16 %v7376_v4  ;;  %v3924_v4 = vld [vmem:[%s6199_s21 + $0x38] sm:$0x3] }
 0x2fd   : > { %3747 = vst [vmem:[#allocation1 + $0x1] ss:$4 sm:$0xff] %v7585_v57  ;;  %2965 = vmatpush.msra.mxu2 %v2942_v54  ;;  %3673 = vrot.lane.b32.xlu2 %v3662_v31, %s6146_s30  ;;  %v3936_v9 = vrot.slane %v3924_v4, 6 }
 0x2fe   : > { %3749 = vst [vmem:[#allocation1 + $0x2] ss:$4 sm:$0xff] %v7588_v58  ;;  %v3847_v54 = vsel %vm210_vm0, %v3818_v39, %v3831_v52  ;;  %v3257_v11 = vsel %vm3255_vm13, %v5814_v18, %v5815_v61  ;;  %v4028_v18 = vld [vmem:[%s6199_s21 + $0x30] sm:$0x3] }
 0x2ff   : > { %3751 = vst [vmem:[#allocation1 + $0x3] ss:$4 sm:$0xff] %v7590_v56 }
 0x303   : > { %v7956_v17 = vpop.permute.xlu0 %5967 }
 0x306   : > { %v3760_v50 = vld.sshfl [vmem:[#allocation1] sm:$0xff pattern:$0x73625140]  ;;  %v3761_v6 = vld.sshfl [vmem:[#allocation1 + $0x8] sm:$0xff pattern:$0x73625140] }
 0x307   : > { %v5996_v28 = vpack.i.bf16 %v3761_v6, %v3760_v50  ;;  %3764 = vst [vmem:[#allocation1] ss:$4 sm:$0xff] %v7316_v38 }
 0x308   : > { %3765 = vst [vmem:[#allocation1 + $0x1] ss:$4 sm:$0xff] %v3742_v10  ;;  %v4038_v10 = vrot.slane %v4023_v15, 6 }
 0x309   : > { %5997 = vrot.lane.b32.xlu0 %v5996_v28, %s6147_s4  ;;  %v5825_v28 = vunpack.i.h.bf16 %v7502_v29 }
 0x30a   : > { %v4043_v13 = vsel %vm212_vm1, %v4022_v46, %v4038_v10 }
 0x30b   : > { %v3149_v20 = vpop.permute.xlu0 %3148 }
 0x30c   : > { %v3153_v34 = vsel %vm3150_vm12, %v3147_v2, %v3149_v20  ;;  %v5824_v2 = vunpack.i.l.bf16 %v7502_v29  ;;  %v4045_v20 = vsel %vm215_vm2, %v4022_v46, %v4038_v10  ;;  %v8027_v29 = vrot.slane %v4043_v13, 2 }
 0x30d   : > { %5467 = vmatpush.msk.msrb.mxu0 %vm277_vm6, %v3153_v34  ;;  %v4047_v34 = vsel %vm218_vm3, %v4038_v10, %v4022_v46  ;;  %v8030_v44 = vrot.slane %v4045_v20, 4 }
 0x30e   : > { %v8032_v52 = vrot.slane %v4047_v34, 6 }
 0x30f   : > { %v3767_v49 = vld.sshfl [vmem:[#allocation1 + $0x8] sm:$0xff pattern:$0x73625140]  ;;  %v3766_v7 = vld.sshfl [vmem:[#allocation1] sm:$0xff pattern:$0x73625140]  ;;  %3175 = vmatpush.msrb.mxu0 %v3152_v0 }
 0x310   : > { %3850 = vst [vmem:[#allocation1] ss:$4 sm:$0xff] %v7583_v35  ;;  %3776 = vrot.lane.b32.xlu2 %v3766_v7, %s6147_s4  ;;  %v3362_v7 = vsel %vm3360_vm15, %v5824_v2, %v5825_v28  ;;  %v5839_v2 = vunpack.i.l.bf16 %v7448_v3 }
 0x311   : > { %3778 = vrot.lane.b32.xlu0 %v3767_v49, %s6147_s4  ;;  %3852 = vst [vmem:[#allocation1 + $0x1] ss:$4 sm:$0xff] %v7585_v57  ;;  %v8025_v49 = vsel %vm210_vm0, %v4022_v46, %v4038_v10  ;;  %v5969_v10 = vunpack.i.l.bf16 %v7956_v17  ;;  %v5454_v46 = vld [vmem:[%s8455_s1 + $0x60] sm:$0xf] }
 0x312   : > { %3854 = vst [vmem:[#allocation1 + $0x2] ss:$4 sm:$0xff] %v7588_v58  ;;  %5456 = vmatmul.msk.f32.vlgmr.msra.gmra.mxu0 %vm273_vm14, %v5454_v46 }
 0x313   : > { %3856 = vst [vmem:[#allocation1 + $0x3] ss:$4 sm:$0xff] %v7590_v56  ;;  %v8000_v30 = vpop.permute.xlu2 %5977 }
 0x317   : > { %v7984_v63 = vpop.permute.xlu1 %5972 }
 0x31a   : > { %v3865_v42 = vld.sshfl [vmem:[#allocation1] sm:$0xff pattern:$0x73625140]  ;;  %v3866_v36 = vld.sshfl [vmem:[#allocation1 + $0x8] sm:$0xff pattern:$0x73625140] }
 0x31b   : > { %v6001_v33 = vpack.i.bf16 %v3866_v36, %v3865_v42  ;;  %3869 = vst [vmem:[#allocation1] ss:$4 sm:$0xff] %v7316_v38  ;;  %v3359_v6 = vpop.permute.xlu2 %3358  ;;  %v4029_v42 = vld [vmem:[%s6199_s21 + $0x38] sm:$0x3]  ;;  %v5965_v36 = vunpack.i.h.bf16 %v7919_v60 }
 0x31c   : > { %3870 = vst [vmem:[#allocation1 + $0x1] ss:$4 sm:$0xff] %v3847_v54  ;;  %v4041_v61 = vrot.slane %v4029_v42, 6  ;;  %v5974_v42 = vunpack.i.l.bf16 %v7984_v63 }
 0x31d   : > { %6002 = vrot.lane.b32.xlu1 %v6001_v33, %s6148_s5  ;;  %v5964_v33 = vunpack.i.l.bf16 %v7919_v60 }
 0x31e   : > { %v3252_v31 = vpop.permute.xlu0 %3251 }
 0x31f   : > { %v3254_v5 = vpop.permute.xlu1 %3253 }
 0x320   : > { %v3258_v27 = vsel %vm3255_vm13, %v3252_v31, %v3254_v5  ;;  %v4057_v5 = vsel %vm210_vm0, %v4028_v18, %v4041_v61 }
 0x321   : > { %5470 = vmatpush.msk.msrb.mxu1 %vm277_vm6, %v3258_v27  ;;  %v3046_v27 = vsel %vm3045_vm4, %v5964_v33, %v5965_v36  ;;  %v4238_v33 = vld [vmem:[%s6199_s21 + $0x30] sm:$0x3]  ;;  %vm4200_vm4 = vcmask 449536  }
 0x322   : > { %3071 = vmatpush.msra.mxu3 %v3046_v27 }
 0x323   : > { %v3872_v24 = vld.sshfl [vmem:[#allocation1 + $0x8] sm:$0xff pattern:$0x73625140]  ;;  %v3871_v43 = vld.sshfl [vmem:[#allocation1] sm:$0xff pattern:$0x73625140]  ;;  %3280 = vmatpush.msrb.mxu1 %v3257_v11 }
 0x324   : > { %3881 = vrot.lane.b32.xlu0 %v3871_v43, %s6148_s5  ;;  %3955 = vst [vmem:[#allocation1] ss:$4 sm:$0xff] %v7583_v35  ;;  %v2941_v35 = vsel %vm2940_vm11, %v5959_v59, %v5960_v62  ;;  %v5451_v11 = vld [vmem:[%s8455_s1 + $0x5c] sm:$0xf]  ;;  %v5830_v62 = vunpack.i.h.bf16 %v7470_v1  ;;  %v5829_v59 = vunpack.i.l.bf16 %v7470_v1  ;;  %v4134_v1 = vld [vmem:[%s6199_s21 + $0x38] sm:$0x3] }
 0x325   : > { %3883 = vrot.lane.b32.xlu1 %v3872_v24, %s6148_s5  ;;  %3957 = vst [vmem:[#allocation1 + $0x1] ss:$4 sm:$0xff] %v7585_v57  ;;  %v5448_v57 = vld [vmem:[%s8455_s1 + $0x58] sm:$0xf]  ;;  %2966 = vmatpush.msra.mxu2 %v2941_v35  ;;  %vm4095_vm11 = vcmask 457728   ;;  %s8544_s5 = smov 40  }
 0x326   : > { %3959 = vst [vmem:[#allocation1 + $0x2] ss:$4 sm:$0xff] %v7588_v58  ;;  %v3952_v58 = vsel %vm210_vm0, %v3923_v26, %v3936_v9  ;;  %5450 = vmatmul.msk.f32.vlgmr.msrb.gmra.mxu2 %vm273_vm14, %v5448_v57  ;;  %5453 = vmatmul.msk.f32.vlgmr.msrb.gmra.mxu3 %vm273_vm14, %v5451_v11  ;;  %v3467_v15 = vsel %vm3465_vm5, %v5829_v59, %v5830_v62 }
 0x327   : > { %3961 = vst [vmem:[#allocation1 + $0x3] ss:$4 sm:$0xff] %v7590_v56 }
 0x32e   : > { %v3970_v51 = vld.sshfl [vmem:[#allocation1] sm:$0xff pattern:$0x73625140]  ;;  %v3971_v56 = vld.sshfl [vmem:[#allocation1 + $0x8] sm:$0xff pattern:$0x73625140]  ;;  %v3462_v60 = vpop.permute.xlu2 %3461 }
 0x32f   : > { %3974 = vst [vmem:[#allocation1] ss:$4 sm:$0xff] %v7316_v38  ;;  %v6006_v16 = vpack.i.bf16 %v8540_v40, %v3970_v51  ;;  %v6011_v50 = vpack.i.bf16 %v3971_v56, %v8541_v12  ;;  %v4146_v51 = vrot.slane %v4134_v1, 6  ;;  %v4133_v56 = vld [vmem:[%s6199_s21 + $0x30] sm:$0x3] }
 0x330   : > { %3975 = vst [vmem:[#allocation1 + $0x1] ss:$4 sm:$0xff] %v3952_v58  ;;  %v5970_v58 = vunpack.i.h.bf16 %v7956_v17  ;;  %v5840_v17 = vunpack.i.h.bf16 %v7448_v3  ;;  %v4239_v3 = vld [vmem:[%s6199_s21 + $0x38] sm:$0x3]  ;;  %v8542_v1 = vld [vmem:[#allocation30_spill] sm:$0xff] }
 0x331   : > { %6007 = vrot.lane.b32.xlu2 %v6006_v16, %s6160_s18  ;;  %6012 = vrot.lane.b32.xlu1 %v6011_v50, %s6160_s18  ;;  %v4162_v12 = vsel %vm210_vm0, %v4133_v56, %v4146_v51  ;;  %v4251_v36 = vrot.slane %v4239_v3, 6  ;;  %v4448_v3 = vld [vmem:[%s6199_s21 + $0x30] sm:$0x3] }
 0x332   : > { %v3357_v55 = vpop.permute.xlu1 %3356  ;;  %v3151_v16 = vsel %vm3150_vm12, %v5969_v10, %v5970_v58  ;;  %v3572_v34 = vsel %vm3570_vm7, %v5839_v2, %v5840_v17  ;;  %v8118_v58 = vrot.slane %v8542_v1, 6  ;;  %vm4305_vm12 = vcmask 441344  }
 0x333   : > { %v3363_v0 = vsel %vm3360_vm15, %v3357_v55, %v3359_v6  ;;  %3176 = vmatpush.msrb.mxu0 %v3151_v16  ;;  %v4267_v61 = vsel %vm210_vm0, %v4238_v33, %v4251_v36  ;;  %v5460_v16 = vld [vmem:[%s8455_s1 + $0x68] sm:$0xf]  ;;  %v5463_v33 = vld [vmem:[%s8455_s1 + $0x6c] sm:$0xf] }
 0x334   : > { %5473 = vmatpush.msk.msrb.mxu2 %vm277_vm6, %v3363_v0  ;;  %5465 = vmatmul.msk.f32.vlgmr.msra.gmra.mxu3 %vm273_vm14, %v5463_v33 }
 0x335   : > { %5462 = vmatmul.msk.f32.vlgmr.msra.gmra.mxu2 %vm273_vm14, %v5460_v16 }
 0x336   : > { %3385 = vmatpush.msrb.mxu2 %v3362_v7 }
 0x337   : > { %v3977_v39 = vld.sshfl [vmem:[#allocation1 + $0x8] sm:$0xff pattern:$0x73625140]  ;;  %v3976_v54 = vld.sshfl [vmem:[#allocation1] sm:$0xff pattern:$0x73625140] }
 0x338   : > { %3988 = vrot.lane.b32.xlu0 %v3977_v39, %s6160_s18  ;;  %4060 = vst [vmem:[#allocation1] ss:$4 sm:$0xff] %v8025_v49 }
 0x339   : > { %4062 = vst [vmem:[#allocation1 + $0x1] ss:$4 sm:$0xff] %v8027_v29  ;;  %3986 = vrot.lane.b32.xlu2 %v3976_v54, %s6160_s18  ;;  %v5975_v54 = vunpack.i.h.bf16 %v7984_v63  ;;  %v5845_v63 = vunpack.i.h.bf16 %v7629_v21 }
 0x33a   : > { %4064 = vst [vmem:[#allocation1 + $0x2] ss:$4 sm:$0xff] %v8030_v44 }
 0x33b   : > { %4066 = vst [vmem:[#allocation1 + $0x3] ss:$4 sm:$0xff] %v8032_v52  ;;  %v3256_v18 = vsel %vm3255_vm13, %v5974_v42, %v5975_v54  ;;  %vm3990_vm13 = vcmask 465920  }
 0x33c   : > { %3281 = vmatpush.msrb.mxu1 %v3256_v18 }
 0x33f   : > { %v8042_v31 = vpop.permute.xlu0 %5982 }
 0x342   : > { %v4075_v24 = vld.sshfl [vmem:[#allocation1] sm:$0xff pattern:$0x73625140]  ;;  %v4076_v43 = vld.sshfl [vmem:[#allocation1 + $0x8] sm:$0xff pattern:$0x73625140] }
 0x343   : > { %4079 = vst [vmem:[#allocation1] ss:$4 sm:$0xff] %v7316_v38  ;;  %v6016_v4 = vpack.i.bf16 %v4076_v43, %v4075_v24  ;;  %v5844_v43 = vunpack.i.l.bf16 %v7629_v21 }
 0x344   : > { %4080 = vst [vmem:[#allocation1 + $0x1] ss:$4 sm:$0xff] %v4057_v5  ;;  %v5457_v5 = vld [vmem:[%s8455_s1 + $0x64] sm:$0xf] }
 0x345   : > { %6017 = vrot.lane.b32.xlu2 %v6016_v4, %s6149_s6  ;;  %5459 = vmatmul.msk.f32.vlgmr.msra.gmra.mxu1 %vm273_vm14, %v5457_v5  ;;  %v3677_v62 = vsel %vm3675_vm8, %v5844_v43, %v5845_v63 }
 0x347   : > { %v3464_v9 = vpop.permute.xlu0 %3463 }
 0x348   : > { %v3468_v26 = vsel %vm3465_vm5, %v3462_v60, %v3464_v9  ;;  %v4344_v9 = vld [vmem:[%s6199_s21 + $0x38] sm:$0x3] }
 0x349   : > { %5476 = vmatpush.msk.msrb.mxu3 %vm277_vm6, %v3468_v26  ;;  %v5980_v26 = vunpack.i.h.bf16 %v8000_v30 }
 0x34b   : > { %v4082_v35 = vld.sshfl [vmem:[#allocation1 + $0x8] sm:$0xff pattern:$0x73625140]  ;;  %v4081_v57 = vld.sshfl [vmem:[#allocation1] sm:$0xff pattern:$0x73625140]  ;;  %3490 = vmatpush.msrb.mxu3 %v3467_v15  ;;  %v5979_v15 = vunpack.i.l.bf16 %v8000_v30 }
 0x34c   : > { %4093 = vrot.lane.b32.xlu0 %v4082_v35, %s6149_s6  ;;  %4165 = vst [vmem:[#allocation1] ss:$4 sm:$0xff] %v8025_v49  ;;  %v4356_v35 = vrot.slane %v4344_v9, 6 }
 0x34d   : > { %4167 = vst [vmem:[#allocation1 + $0x1] ss:$4 sm:$0xff] %v8027_v29  ;;  %4091 = vrot.lane.b32.xlu2 %v4081_v57, %s6149_s6  ;;  %v4343_v57 = vld [vmem:[%s6199_s21 + $0x30] sm:$0x3]  ;;  %v3361_v56 = vsel %vm3360_vm15, %v5979_v15, %v5980_v26  ;;  %vm4830_vm15 = vcmask 343040  }
 0x34e   : > { %4169 = vst [vmem:[#allocation1 + $0x2] ss:$4 sm:$0xff] %v8030_v44  ;;  %v4372_v51 = vsel %vm210_vm0, %v4343_v57, %v4356_v35  ;;  %3386 = vmatpush.msrb.mxu2 %v3361_v56 }
 0x34f   : > { %4171 = vst [vmem:[#allocation1 + $0x3] ss:$4 sm:$0xff] %v8032_v52  ;;  %v8088_v39 = vpop.permute.xlu2 %5992 }
 0x353   : > { %v8067_v40 = vpop.permute.xlu1 %5987 }
 0x356   : > { %v4180_v50 = vld.sshfl [vmem:[#allocation1] sm:$0xff pattern:$0x73625140]  ;;  %v4181_v6 = vld.sshfl [vmem:[#allocation1 + $0x8] sm:$0xff pattern:$0x73625140] }
 0x357   : > { %v6021_v28 = vpack.i.bf16 %v4181_v6, %v4180_v50  ;;  %4184 = vst [vmem:[#allocation1] ss:$4 sm:$0xff] %v7316_v38  ;;  %v3674_v24 = vpop.permute.xlu2 %3673  ;;  %v5855_v6 = vunpack.i.h.bf16 %v7541_v48 }
 0x358   : > { %4185 = vst [vmem:[#allocation1 + $0x1] ss:$4 sm:$0xff] %v4162_v12 }
 0x359   : > { %6022 = vrot.lane.b32.xlu1 %v6021_v28, %s6150_s7  ;;  %v5854_v28 = vunpack.i.l.bf16 %v7541_v48  ;;  %v4449_v48 = vld [vmem:[%s6199_s21 + $0x38] sm:$0x3] }
 0x35a   : > { %v3567_v13 = vpop.permute.xlu0 %3566 }
 0x35b   : > { %v3569_v55 = vpop.permute.xlu1 %3568 }
 0x35c   : > { %v3573_v20 = vsel %vm3570_vm7, %v3567_v13, %v3569_v55  ;;  %v3782_v13 = vsel %vm3780_vm9, %v5854_v28, %v5855_v6 }
 0x35d   : > { %5479 = vmatpush.msk.msra.mxu0 %vm277_vm6, %v3573_v20 }
 0x35f   : > { %v4187_v0 = vld.sshfl [vmem:[#allocation1 + $0x8] sm:$0xff pattern:$0x73625140]  ;;  %v4186_v7 = vld.sshfl [vmem:[#allocation1] sm:$0xff pattern:$0x73625140]  ;;  %3595 = vmatpush.msra.mxu0 %v3572_v34  ;;  %v5985_v34 = vunpack.i.h.bf16 %v8042_v31 }
 0x360   : > { %4196 = vrot.lane.b32.xlu0 %v4186_v7, %s6150_s7  ;;  %4270 = vst [vmem:[#allocation1] ss:$4 sm:$0xff] %v8025_v49  ;;  %v4461_v7 = vrot.slane %v4449_v48, 6  ;;  %v5869_v48 = vunpack.i.l.bf16 %v7715_v45 }
 0x361   : > { %4198 = vrot.lane.b32.xlu1 %v4187_v0, %s6150_s7  ;;  %4272 = vst [vmem:[#allocation1 + $0x1] ss:$4 sm:$0xff] %v8027_v29  ;;  %v5984_v0 = vunpack.i.l.bf16 %v8042_v31  ;;  %v5860_v31 = vunpack.i.h.bf16 %v7512_v23  ;;  %s5282_s7 = sld [smem:[#allocation2]] }
 0x362   : > { %4274 = vst [vmem:[#allocation1 + $0x2] ss:$4 sm:$0xff] %v8030_v44  ;;  %v4477_v42 = vsel %vm210_vm0, %v4448_v3, %v4461_v7 }
 0x363   : > { %4276 = vst [vmem:[#allocation1 + $0x3] ss:$4 sm:$0xff] %v8032_v52  ;;  %v3466_v36 = vsel %vm3465_vm5, %v5984_v0, %v5985_v34  ;;  %vm4935_vm5 = vcmask 334848  }
 0x364   : > { %3491 = vmatpush.msrb.mxu3 %v3466_v36 }
 0x36a   : > { %v4285_v27 = vld.sshfl [vmem:[#allocation1] sm:$0xff pattern:$0x73625140]  ;;  %v4286_v11 = vld.sshfl [vmem:[#allocation1 + $0x8] sm:$0xff pattern:$0x73625140]  ;;  %v3777_v30 = vpop.permute.xlu2 %3776 }
 0x36b   : > { %4289 = vst [vmem:[#allocation1] ss:$4 sm:$0xff] %v7316_v38  ;;  %v6026_v21 = vpack.i.bf16 %v4286_v11, %v4285_v27  ;;  %v5859_v27 = vunpack.i.l.bf16 %v7512_v23  ;;  %v4554_v23 = vld [vmem:[%s6199_s21 + $0x38] sm:$0x3] }
 0x36c   : > { %4290 = vst [vmem:[#allocation1 + $0x1] ss:$4 sm:$0xff] %v4267_v61 }
 0x36d   : > { %6027 = vrot.lane.b32.xlu1 %v6026_v21, %s6151_s8  ;;  %v3887_v43 = vsel %vm3885_vm10, %v5859_v27, %v5860_v31 }
 0x36e   : > { %v3672_v4 = vpop.permute.xlu1 %3671 }
 0x36f   : > { %v3678_v60 = vsel %vm3675_vm8, %v3672_v4, %v3674_v24 }
 0x370   : > { %5482 = vmatpush.msk.msra.mxu1 %vm277_vm6, %v3678_v60 }
 0x372   : > { %3700 = vmatpush.msra.mxu1 %v3677_v62 }
 0x373   : > { %v4292_v38 = vld.sshfl [vmem:[#allocation1 + $0x8] sm:$0xff pattern:$0x73625140]  ;;  %v4291_v59 = vld.sshfl [vmem:[#allocation1] sm:$0xff pattern:$0x73625140] }
 0x374   : > { %4303 = vrot.lane.b32.xlu0 %v4292_v38, %s6151_s8  ;;  %4375 = vst [vmem:[#allocation1] ss:$4 sm:$0xff] %v8025_v49  ;;  %4301 = vrot.lane.b32.xlu2 %v4291_v59, %s6151_s8  ;;  %v4566_v38 = vrot.slane %v4554_v23, 6  ;;  %v4553_v59 = vld [vmem:[%s6199_s21 + $0x30] sm:$0x3] }
 0x375   : > { %4377 = vst [vmem:[#allocation1 + $0x1] ss:$4 sm:$0xff] %v8027_v29 }
 0x376   : > { %4379 = vst [vmem:[#allocation1 + $0x2] ss:$4 sm:$0xff] %v8030_v44  ;;  %v4582_v21 = vsel %vm210_vm0, %v4553_v59, %v4566_v38 }
 0x377   : > { %4381 = vst [vmem:[#allocation1 + $0x3] ss:$4 sm:$0xff] %v8032_v52 }
 0x37b   : > { %v8120_v10 = vpop.permute.xlu0 %5997 }
 0x37c   : > { %v6000_v33 = vunpack.i.h.bf16 %v8120_v10 }
 0x37e   : > { %v4390_v46 = vld.sshfl [vmem:[#allocation1] sm:$0xff pattern:$0x73625140]  ;;  %v4391_v12 = vld.sshfl [vmem:[#allocation1 + $0x8] sm:$0xff pattern:$0x73625140] }
 0x37f   : > { %v6031_v50 = vpack.i.bf16 %v4391_v12, %v4390_v46  ;;  %4394 = vst [vmem:[#allocation1] ss:$4 sm:$0xff] %v8118_v58  ;;  %v5995_v46 = vunpack.i.h.bf16 %v8088_v39  ;;  %v5994_v12 = vunpack.i.l.bf16 %v8088_v39 }
 0x380   : > { %4395 = vst [vmem:[#allocation1 + $0x1] ss:$4 sm:$0xff] %v4372_v51  ;;  %v4659_v51 = vld [vmem:[%s6199_s21 + $0x38] sm:$0x3] }
 0x381   : > { %6032 = vrot.lane.b32.xlu0 %v6031_v50, %s6152_s9  ;;  %v4671_v50 = vrot.slane %v4659_v51, 6  ;;  %v3676_v28 = vsel %vm3675_vm8, %v5994_v12, %v5995_v46  ;;  %v4868_v51 = vld [vmem:[%s6199_s21 + $0x30] sm:$0x3]  ;;  %v5475_v12 = vld [vmem:[%s8455_s1 + $0x7c] sm:$0xf]  ;;  %vm5145_vm8 = vcmask 318464  }
 0x382   : > { %3701 = vmatpush.msra.mxu1 %v3676_v28  ;;  %5477 = vmatmul.msk.f32.vlgmr.msrb.gmra.mxu3 %vm273_vm14, %v5475_v12  ;;  %v5885_v28 = vunpack.i.h.bf16 %v7643_v25 }
 0x383   : > { %v3779_v17 = vpop.permute.xlu0 %3778 }
 0x384   : > { %v3783_v2 = vsel %vm3780_vm9, %v3777_v30, %v3779_v17  ;;  %v4658_v30 = vld [vmem:[%s6199_s21 + $0x30] sm:$0x3]  ;;  %v5469_v17 = vld [vmem:[%s8455_s1 + $0x74] sm:$0xf] }
 0x385   : > { %5485 = vmatpush.msk.msra.mxu2 %vm277_vm6, %v3783_v2  ;;  %v4687_v6 = vsel %vm210_vm0, %v4658_v30, %v4671_v50  ;;  %5471 = vmatmul.msk.f32.vlgmr.msrb.gmra.mxu1 %vm273_vm14, %v5469_v17  ;;  %v5884_v17 = vunpack.i.l.bf16 %v7643_v25 }
 0x387   : > { %v4397_v55 = vld.sshfl [vmem:[#allocation1 + $0x8] sm:$0xff pattern:$0x73625140]  ;;  %v4396_v20 = vld.sshfl [vmem:[#allocation1] sm:$0xff pattern:$0x73625140]  ;;  %3805 = vmatpush.msra.mxu2 %v3782_v13 }
 0x388   : > { %4480 = vst [vmem:[#allocation1] ss:$4 sm:$0xff] %v8025_v49  ;;  %4406 = vrot.lane.b32.xlu2 %v4396_v20, %s6152_s9  ;;  %v5870_v20 = vunpack.i.h.bf16 %v7715_v45  ;;  %v4764_v45 = vld [vmem:[%s6199_s21 + $0x38] sm:$0x3] }
 0x389   : > { %4408 = vrot.lane.b32.xlu0 %v4397_v55, %s6152_s9  ;;  %4482 = vst [vmem:[#allocation1 + $0x1] ss:$4 sm:$0xff] %v8027_v29 }
 0x38a   : > { %4484 = vst [vmem:[#allocation1 + $0x2] ss:$4 sm:$0xff] %v8030_v44  ;;  %v4097_v3 = vsel %vm4095_vm11, %v5869_v48, %v5870_v20  ;;  %v4307_v20 = vsel %vm4305_vm12, %v5884_v17, %v5885_v28 }
 0x38b   : > { %4486 = vst [vmem:[#allocation1 + $0x3] ss:$4 sm:$0xff] %v8032_v52  ;;  %v8166_v62 = vpop.permute.xlu2 %6007 }
 0x38f   : > { %v8145_v54 = vpop.permute.xlu1 %6002 }
 0x392   : > { %v4495_v61 = vld.sshfl [vmem:[#allocation1] sm:$0xff pattern:$0x73625140]  ;;  %v4496_v18 = vld.sshfl [vmem:[#allocation1 + $0x8] sm:$0xff pattern:$0x73625140] }
 0x393   : > { %v6036_v5 = vpack.i.bf16 %v4496_v18, %v4495_v61  ;;  %4499 = vst [vmem:[#allocation1] ss:$4 sm:$0xff] %v8118_v58  ;;  %v8172_v35 = vpop.permute.xlu2 %3986  ;;  %v5999_v61 = vunpack.i.l.bf16 %v8120_v10  ;;  %v4776_v18 = vrot.slane %v4764_v45, 6  ;;  %v5880_v10 = vunpack.i.h.bf16 %v7637_v22 }
 0x394   : > { %4500 = vst [vmem:[#allocation1 + $0x1] ss:$4 sm:$0xff] %v4477_v42 }
 0x395   : > { %6037 = vrot.lane.b32.xlu0 %v6036_v5, %s6153_s10  ;;  %v4763_v5 = vld [vmem:[%s6199_s21 + $0x30] sm:$0x3]  ;;  %v3781_v27 = vsel %vm3780_vm9, %v5999_v61, %v6000_v33  ;;  %vm5250_vm9 = vcmask 310272  }
 0x396   : > { %v3882_v11 = vpop.permute.xlu0 %3881  ;;  %3806 = vmatpush.msra.mxu2 %v3781_v27  ;;  %v4973_v33 = vld [vmem:[%s6199_s21 + $0x30] sm:$0x3] }
 0x397   : > { %v3884_v24 = vpop.permute.xlu1 %3883 }
 0x398   : > { %v3888_v63 = vsel %vm3885_vm10, %v3882_v11, %v3884_v24  ;;  %v5472_v11 = vld [vmem:[%s8455_s1 + $0x78] sm:$0xf]  ;;  %v4792_v24 = vsel %vm210_vm0, %v4763_v5, %v4776_v18  ;;  %v5182_v18 = vld [vmem:[%s6199_s21 + $0x28] sm:$0xff] }
 0x399   : > { %5488 = vmatpush.msk.msra.mxu3 %vm277_vm6, %v3888_v63  ;;  %5474 = vmatmul.msk.f32.vlgmr.msrb.gmra.mxu2 %vm273_vm14, %v5472_v11 }
 0x39b   : > { %v4502_v4 = vld.sshfl [vmem:[#allocation1 + $0x8] sm:$0xff pattern:$0x73625140]  ;;  %v4501_v60 = vld.sshfl [vmem:[#allocation1] sm:$0xff pattern:$0x73625140]  ;;  %3910 = vmatpush.msra.mxu3 %v3887_v43 }
 0x39c   : > { %4585 = vst [vmem:[#allocation1] ss:$4 sm:$0xff] %v8025_v49  ;;  %4511 = vrot.lane.b32.xlu2 %v4501_v60, %s6153_s10  ;;  %v5879_v60 = vunpack.i.l.bf16 %v7637_v22  ;;  %v4869_v22 = vld [vmem:[%s6199_s21 + $0x38] sm:$0x3] }
 0x39d   : > { %4513 = vrot.lane.b32.xlu0 %v4502_v4, %s6153_s10  ;;  %4587 = vst [vmem:[#allocation1 + $0x1] ss:$4 sm:$0xff] %v8027_v29  ;;  %s182_s10 = scalar_lea.vmem %s8457_s3, %s5382_s29 }
 0x39e   : > { %4589 = vst [vmem:[#allocation1 + $0x2] ss:$4 sm:$0xff] %v8030_v44 }
 0x39f   : > { %4591 = vst [vmem:[#allocation1 + $0x3] ss:$4 sm:$0xff] %v8032_v52  ;;  %v8181_v56 = vpop.permute.xlu2 %6017 }
 0x3a0   : > { %v6020_v28 = vunpack.i.h.bf16 %v8181_v56  ;;  %v6019_v17 = vunpack.i.l.bf16 %v8181_v56  ;;  %v5484_v56 = vld [vmem:[%s8455_s1 + $0x88] sm:$0xf] }
 0x3a1   : > { %5486 = vmatmul.msk.f32.vlgmr.msra.gmra.mxu2 %vm273_vm14, %v5484_v56  ;;  %v5493_v56 = vld [vmem:[%s8455_s1 + $0x94] sm:$0xf] }
 0x3a3   : > { %v8201_v7 = vpop.permute.xlu1 %6012 }
 0x3a6   : > { %v4600_v9 = vld.sshfl [vmem:[#allocation1] sm:$0xff pattern:$0x73625140]  ;;  %v4601_v26 = vld.sshfl [vmem:[#allocation1 + $0x8] sm:$0xff pattern:$0x73625140] }
 0x3a7   : > { %v6041_v15 = vpack.i.bf16 %v4601_v26, %v4600_v9  ;;  %4604 = vst [vmem:[#allocation1] ss:$4 sm:$0xff] %v8118_v58  ;;  %v4092_v39 = vpop.permute.xlu2 %4091 }
 0x3a8   : > { %4605 = vst [vmem:[#allocation1 + $0x1] ss:$4 sm:$0xff] %v4582_v21  ;;  %v4202_v21 = vsel %vm4200_vm4, %v5879_v60, %v5880_v10  ;;  %v8293_v10 = vld [vmem:[%s6199_s21 + $0x20] sm:$0xff]  ;;  %v5179_v60 = vld [vmem:[%s6199_s21 + $0x10] sm:$0x3] }
 0x3a9   : > { %6042 = vrot.lane.b32.xlu1 %v6041_v15, %s6154_s11  ;;  %v6005_v15 = vunpack.i.h.bf16 %v8145_v54 }
 0x3aa   : > { %v8184_v16 = vpop.permute.xlu0 %3988 }
 0x3ab   : > { %v3993_v25 = vsel %vm3990_vm13, %v8172_v35, %v8184_v16  ;;  %v6009_v35 = vunpack.i.l.bf16 %v8166_v62  ;;  %v6015_v16 = vunpack.i.h.bf16 %v8201_v7 }
 0x3ad   : > { %v3991_v11 = vsel %vm3990_vm13, %v6009_v35, %v6015_v16  ;;  %v5900_v35 = vunpack.i.h.bf16 %v7751_v32  ;;  %v5899_v16 = vunpack.i.l.bf16 %v7751_v32  ;;  %v5184_v32 = vld [vmem:[%s6199_s21 + $0x38] sm:$0x3] }
 0x3af   : > { %v4607_v57 = vld.sshfl [vmem:[#allocation1 + $0x8] sm:$0xff pattern:$0x73625140]  ;;  %v4606_v1 = vld.sshfl [vmem:[#allocation1] sm:$0xff pattern:$0x73625140] }
 0x3b0   : > { %4690 = vst [vmem:[#allocation1] ss:$4 sm:$0xff] %v8025_v49  ;;  %4616 = vrot.lane.b32.xlu0 %v4606_v1, %s6154_s11  ;;  %v4881_v1 = vrot.slane %v4869_v22, 6 }
 0x3b1   : > { %4618 = vrot.lane.b32.xlu1 %v4607_v57, %s6154_s11  ;;  %4692 = vst [vmem:[#allocation1 + $0x1] ss:$4 sm:$0xff] %v8027_v29  ;;  %v6004_v57 = vunpack.i.l.bf16 %v8145_v54 }
 0x3b2   : > { %4694 = vst [vmem:[#allocation1 + $0x2] ss:$4 sm:$0xff] %v8030_v44  ;;  %v4897_v50 = vsel %vm210_vm0, %v4868_v51, %v4881_v1 }
 0x3b3   : > { %4696 = vst [vmem:[#allocation1 + $0x3] ss:$4 sm:$0xff] %v8032_v52  ;;  %v3886_v46 = vsel %vm3885_vm10, %v6004_v57, %v6005_v15  ;;  %v5895_v15 = vunpack.i.h.bf16 %v7722_v47  ;;  %v5894_v57 = vunpack.i.l.bf16 %v7722_v47  ;;  %v5079_v47 = vld [vmem:[%s6199_s21 + $0x38] sm:$0x3] }
 0x3b4   : > { %3911 = vmatpush.msra.mxu3 %v3886_v46 }
 0x3ba   : > { %v4705_v2 = vld.sshfl [vmem:[#allocation1] sm:$0xff pattern:$0x73625140]  ;;  %v4706_v13 = vld.sshfl [vmem:[#allocation1 + $0x8] sm:$0xff pattern:$0x73625140] }
 0x3bb   : > { %4709 = vst [vmem:[#allocation1] ss:$4 sm:$0xff] %v8118_v58  ;;  %v6046_v55 = vpack.i.bf16 %v4706_v13, %v4705_v2 }
 0x3bc   : > { %4710 = vst [vmem:[#allocation1 + $0x1] ss:$4 sm:$0xff] %v4687_v6 }
 0x3bd   : > { %6047 = vrot.lane.b32.xlu2 %v6046_v55, %s6155_s14  ;;  %v5990_v55 = vunpack.i.h.bf16 %v8067_v40 }
 0x3be   : > { %v4094_v34 = vpop.permute.xlu0 %4093 }
 0x3bf   : > { %v4098_v0 = vsel %vm4095_vm11, %v4092_v39, %v4094_v34  ;;  %v5989_v39 = vunpack.i.l.bf16 %v8067_v40  ;;  %v5466_v40 = vld [vmem:[%s8455_s1 + $0x70] sm:$0xf] }
 0x3c0   : > { %5494 = vmatpush.msk.msrb.mxu1 %vm277_vm6, %v4098_v0  ;;  %5468 = vmatmul.msk.f32.vlgmr.msrb.gmra.mxu0 %vm273_vm14, %v5466_v40 }
 0x3c1   : > { %v3571_v0 = vsel %vm3570_vm7, %v5989_v39, %v5990_v55  ;;  %v5091_v55 = vrot.slane %v5079_v47, 6  ;;  %v5078_v39 = vld [vmem:[%s6199_s21 + $0x30] sm:$0x3]  ;;  %vm5040_vm7 = vcmask 326656  }
 0x3c2   : > { %4120 = vmatpush.msrb.mxu1 %v4097_v3  ;;  %v4974_v3 = vld [vmem:[%s6199_s21 + $0x38] sm:$0x3]  ;;  %3596 = vmatpush.msra.mxu0 %v3571_v0  ;;  %v5490_v47 = vld [vmem:[%s8455_s1 + $0x90] sm:$0xf] }
 0x3c3   : > { %v4712_v42 = vld.sshfl [vmem:[#allocation1 + $0x8] sm:$0xff pattern:$0x73625140]  ;;  %v4711_v36 = vld.sshfl [vmem:[#allocation1] sm:$0xff pattern:$0x73625140]  ;;  %v5107_v40 = vsel %vm210_vm0, %v5078_v39, %v5091_v55  ;;  %v5914_v55 = vunpack.i.l.bf16 %v7747_v37 }
 0x3c4   : > { %4723 = vrot.lane.b32.xlu0 %v4712_v42, %s6155_s14  ;;  %4795 = vst [vmem:[#allocation1] ss:$4 sm:$0xff] %v8025_v49  ;;  %v6010_v42 = vunpack.i.h.bf16 %v8166_v62  ;;  %5491 = vmatpush.msk.msrb.mxu0 %vm277_vm6, %v3993_v25  ;;  %v4986_v45 = vrot.slane %v4974_v3, 6  ;;  %v5478_v62 = vld [vmem:[%s8455_s1 + $0x80] sm:$0xf] }
 0x3c5   : > { %4797 = vst [vmem:[#allocation1 + $0x1] ss:$4 sm:$0xff] %v8027_v29  ;;  %4721 = vrot.lane.b32.xlu2 %v4711_v36, %s6155_s14  ;;  %v6014_v36 = vunpack.i.l.bf16 %v8201_v7 }
 0x3c6   : > { %4799 = vst [vmem:[#allocation1 + $0x2] ss:$4 sm:$0xff] %v8030_v44  ;;  %v5002_v5 = vsel %vm210_vm0, %v4973_v33, %v4986_v45 }
 0x3c7   : > { %4801 = vst [vmem:[#allocation1 + $0x3] ss:$4 sm:$0xff] %v8032_v52  ;;  %v3992_v27 = vsel %vm3990_vm13, %v6010_v42, %v6014_v36 }
 0x3c8   : > { %4015 = vmatpush.msrb.mxu0 %v3992_v27 }
 0x3c9   : > { %5480 = vmatmul.msk.f32.vlgmr.msra.gmra.mxu0 %vm273_vm14, %v5478_v62 }
 0x3ca   : > { %4016 = vmatpush.msrb.mxu0 %v3991_v11 }
 0x3cb   : > { %v8214_v31 = vpop.permute.xlu1 %6022 }
 0x3ce   : > { %v4810_v63 = vld.sshfl [vmem:[#allocation1] sm:$0xff pattern:$0x73625140]  ;;  %v4811_v43 = vld.sshfl [vmem:[#allocation1 + $0x8] sm:$0xff pattern:$0x73625140]  ;;  %v4302_v54 = vpop.permute.xlu2 %4301 }
 0x3cf   : > { %v6051_v4 = vpack.i.bf16 %v4811_v43, %v4810_v63  ;;  %4814 = vst [vmem:[#allocation1] ss:$4 sm:$0xff] %v8118_v58 }
 0x3d0   : > { %4815 = vst [vmem:[#allocation1 + $0x1] ss:$4 sm:$0xff] %v4792_v24  ;;  %v8287_v24 = vrot.slane %v5182_v18, 6 }
 0x3d1   : > { %6052 = vrot.lane.b32.xlu1 %v6051_v4, %s6156_s15  ;;  %v5180_v4 = vld [vmem:[%s6199_s21 + $0x18] sm:$0x3]  ;;  %5492 = vmatmul.msk.f32.vlgmr.msrb.gmra.mxu0 %vm273_vm14, %v5490_v47 }
 0x3d2   : > { %v4197_v23 = vpop.permute.xlu0 %4196 }
 0x3d3   : > { %v4199_v38 = vpop.permute.xlu1 %4198 }
 0x3d4   : > { %v4203_v59 = vsel %vm4200_vm4, %v4197_v23, %v4199_v38  ;;  %v5194_v23 = vrot.slane %v5180_v4, 6  ;;  %v5206_v38 = vsel %vm212_vm1, %v8293_v10, %v8287_v24  ;;  %vm4410_vm1 = vcmask 433152  }
 0x3d5   : > { %5497 = vmatpush.msk.msrb.mxu2 %vm277_vm6, %v4203_v59  ;;  %v5208_v59 = vsel %vm215_vm2, %v8293_v10, %v8287_v24  ;;  %v4412_v12 = vsel %vm4410_vm1, %v5894_v57, %v5895_v15  ;;  %vm4515_vm2 = vcmask 424960   ;;  %v5196_v4 = vrot.slane %v5184_v32, 6 }
 0x3d6   : > { %v5209_v22 = vrot.slane %v5208_v59, 4  ;;  %v5204_v1 = vsel %vm210_vm0, %v5179_v60, %v5194_v23  ;;  %v4517_v18 = vsel %vm4515_vm2, %v5899_v16, %v5900_v35 }
 0x3d7   : > { %v4817_v9 = vld.sshfl [vmem:[#allocation1 + $0x8] sm:$0xff pattern:$0x73625140]  ;;  %v4816_v26 = vld.sshfl [vmem:[#allocation1] sm:$0xff pattern:$0x73625140]  ;;  %4225 = vmatpush.msrb.mxu2 %v4202_v21 }
 0x3d8   : > { %4826 = vrot.lane.b32.xlu0 %v4816_v26, %s6156_s15  ;;  %4900 = vst [vmem:[#allocation1] ss:$4 sm:$0xff] %v8025_v49  ;;  %v5207_v26 = vrot.slane %v5206_v38, 2 }
 0x3d9   : > { %4828 = vrot.lane.b32.xlu1 %v4817_v9, %s6156_s15  ;;  %4902 = vst [vmem:[#allocation1 + $0x1] ss:$4 sm:$0xff] %v8027_v29  ;;  %s8543_s15 = smov 41   ;;  %v5205_v9 = vsel %vm210_vm0, %v8293_v10, %v8287_v24 }
 0x3da   : > { %4904 = vst [vmem:[#allocation1 + $0x2] ss:$4 sm:$0xff] %v8030_v44 }
 0x3db   : > { %4906 = vst [vmem:[#allocation1 + $0x3] ss:$4 sm:$0xff] %v8032_v52 }
 0x3dc   : > { %5225 = vst [vmem:[#allocation1 + $0x21] ss:$4 sm:$0xff] %v5205_v9 }
 0x3dd   : > { %5223 = vst [vmem:[#allocation1 + $0x20] ss:$4 sm:$0xff] %v5204_v1 }
 0x3de   : > { %5227 = vst [vmem:[#allocation1 + $0x22] ss:$4 sm:$0xff] %v5207_v26 }
 0x3df   : > { %5229 = vst [vmem:[#allocation1 + $0x23] ss:$4 sm:$0xff] %v5209_v22  ;;  %v6028_v33 = vpop.permute.xlu1 %6027 }
 0x3e0   : > { %v6030_v27 = vunpack.i.h.bf16 %v6028_v33  ;;  %v6029_v11 = vunpack.i.l.bf16 %v6028_v33 }
 0x3e2   : > { %v8244_v30 = vld.sshfl [vmem:[#allocation1] sm:$0xff pattern:$0x73625140]  ;;  %v8246_v6 = vld.sshfl [vmem:[#allocation1 + $0x8] sm:$0xff pattern:$0x73625140]  ;;  %v4407_v21 = vpop.permute.xlu2 %4406 }
 0x3e3   : > { %4919 = vst [vmem:[#allocation1] ss:$4 sm:$0xff] %v8118_v58 }
 0x3e4   : > { %4920 = vst [vmem:[#allocation1 + $0x1] ss:$4 sm:$0xff] %v4897_v50 }
 0x3e6   : > { %v4304_v2 = vpop.permute.xlu0 %4303  ;;  %v5232_v23 = vld.sshfl [vmem:[#allocation1 + $0x20] sm:$0xff pattern:$0x73625140]  ;;  %v5233_v38 = vld.sshfl [vmem:[#allocation1 + $0x28] sm:$0xff pattern:$0x73625140] }
 0x3e7   : > { %v4308_v13 = vsel %vm4305_vm12, %v4302_v54, %v4304_v2  ;;  %v6025_v2 = vunpack.i.h.bf16 %v8214_v31 }
 0x3e8   : > { %5500 = vmatpush.msk.msrb.mxu3 %vm277_vm6, %v4308_v13  ;;  %v6024_v13 = vunpack.i.l.bf16 %v8214_v31 }
 0x3ea   : > { %4330 = vmatpush.msrb.mxu3 %v4307_v20  ;;  %v4201_v25 = vsel %vm4200_vm4, %v6024_v13, %v6025_v2  ;;  %v5915_v13 = vunpack.i.h.bf16 %v7747_v37  ;;  %v5925_v37 = vunpack.i.h.bf16 %v7756_v53 }
 0x3eb   : > { %v4922_v48 = vld.sshfl [vmem:[#allocation1 + $0x8] sm:$0xff pattern:$0x73625140]  ;;  %v4921_v34 = vld.sshfl [vmem:[#allocation1] sm:$0xff pattern:$0x73625140]  ;;  %4226 = vmatpush.msrb.mxu2 %v4201_v25 }
 0x3ec   : > { %4933 = vrot.lane.b32.xlu1 %v4922_v48, %s8543_s15  ;;  %4931 = vrot.lane.b32.xlu0 %v4921_v34, %s8543_s15  ;;  %5005 = vst [vmem:[#allocation1] ss:$4 sm:$0xff] %v8025_v49  ;;  %v4096_v48 = vsel %vm4095_vm11, %v6019_v17, %v6020_v28  ;;  %v5481_v34 = vld [vmem:[%s8455_s1 + $0x84] sm:$0xf] }
 0x3ed   : > { %5007 = vst [vmem:[#allocation1 + $0x1] ss:$4 sm:$0xff] %v8027_v29  ;;  %4121 = vmatpush.msrb.mxu1 %v4096_v48 }
 0x3ee   : > { %5009 = vst [vmem:[#allocation1 + $0x2] ss:$4 sm:$0xff] %v8030_v44  ;;  %5483 = vmatmul.msk.f32.vlgmr.msra.gmra.mxu1 %vm273_vm14, %v5481_v34 }
 0x3ef   : > { %5011 = vst [vmem:[#allocation1 + $0x3] ss:$4 sm:$0xff] %v8032_v52 }
 0x3f3   : > { %v8278_v61 = vpop.permute.xlu0 %6032 }
 0x3f4   : > { %v6035_v62 = vunpack.i.h.bf16 %v8278_v61 }
 0x3f6   : > { %v5020_v7 = vld.sshfl [vmem:[#allocation1] sm:$0xff pattern:$0x73625140]  ;;  %v5021_v63 = vld.sshfl [vmem:[#allocation1 + $0x8] sm:$0xff pattern:$0x73625140]  ;;  %v4512_v42 = vpop.permute.xlu2 %4511  ;;  %5495 = vmatmul.msk.f32.vlgmr.msrb.gmra.mxu1 %vm273_vm14, %v5493_v56 }
 0x3f7   : > { %5024 = vst [vmem:[#allocation1] ss:$4 sm:$0xff] %v8118_v58  ;;  %v6056_v43 = vpack.i.bf16 %v5021_v63, %v5020_v7  ;;  %v6034_v7 = vunpack.i.l.bf16 %v8278_v61  ;;  %v4306_v63 = vsel %vm4305_vm12, %v6029_v11, %v6030_v27  ;;  %v5487_v61 = vld [vmem:[%s8455_s1 + $0x8c] sm:$0xf] }
 0x3f8   : > { %5025 = vst [vmem:[#allocation1 + $0x1] ss:$4 sm:$0xff] %v5002_v5  ;;  %4331 = vmatpush.msrb.mxu3 %v4306_v63  ;;  %v5502_v63 = vld [vmem:[%s8455_s1 + $0xa0] sm:$0xf] }
 0x3f9   : > { %6057 = vrot.lane.b32.xlu2 %v6056_v43, %s8544_s5  ;;  %v6066_v43 = vpack.i.bf16 %v8246_v6, %v8244_v30  ;;  %5489 = vmatmul.msk.f32.vlgmr.msra.gmra.mxu3 %vm273_vm14, %v5487_v61  ;;  %v5511_v61 = vld [vmem:[%s8455_s1 + $0xac] sm:$0xf] }
 0x3fb   : > { %v4409_v51 = vpop.permute.xlu0 %4408 }
 0x3fc   : > { %v4413_v46 = vsel %vm4410_vm1, %v4407_v21, %v4409_v51  ;;  %v5909_v21 = vunpack.i.l.bf16 %v7772_v41 }
 0x3fd   : > { %5503 = vmatpush.msk.msra.mxu0 %vm277_vm6, %v4413_v46 }
 0x3ff   : > { %v5026_v50 = vld.sshfl [vmem:[#allocation1] sm:$0xff pattern:$0x73625140]  ;;  %v5027_v54 = vld.sshfl [vmem:[#allocation1 + $0x8] sm:$0xff pattern:$0x73625140]  ;;  %4435 = vmatpush.msra.mxu0 %v4412_v12 }
 0x400   : > { %5036 = vrot.lane.b32.xlu1 %v5026_v50, %s8544_s5  ;;  %5110 = vst [vmem:[#allocation1] ss:$4 sm:$0xff] %v8025_v49 }
 0x401   : > { %5112 = vst [vmem:[#allocation1 + $0x1] ss:$4 sm:$0xff] %v8027_v29  ;;  %5038 = vrot.lane.b32.xlu2 %v5027_v54, %s8544_s5 }
 0x402   : > { %5114 = vst [vmem:[#allocation1 + $0x2] ss:$4 sm:$0xff] %v8030_v44 }
 0x403   : > { %5116 = vst [vmem:[#allocation1 + $0x3] ss:$4 sm:$0xff] %v8032_v52 }
 0x407   : > { %v8324_v20 = vpop.permute.xlu0 %6037 }
 0x408   : > { %v6040_v51 = vunpack.i.h.bf16 %v8324_v20  ;;  %v6039_v46 = vunpack.i.l.bf16 %v8324_v20 }
 0x40a   : > { %v5125_v31 = vld.sshfl [vmem:[#allocation1] sm:$0xff pattern:$0x73625140]  ;;  %v5126_v0 = vld.sshfl [vmem:[#allocation1 + $0x8] sm:$0xff pattern:$0x73625140]  ;;  %v4516_v28 = vsel %vm4515_vm2, %v6039_v46, %v6040_v51 }
 0x40b   : > { %v6061_v3 = vpack.i.bf16 %v5126_v0, %v5125_v31  ;;  %5129 = vst [vmem:[#allocation1] ss:$4 sm:$0xff] %v8118_v58  ;;  %v5924_v0 = vunpack.i.l.bf16 %v7756_v53  ;;  %v5930_v53 = vunpack.i.h.bf16 %v7810_v19 }
 0x40c   : > { %5130 = vst [vmem:[#allocation1 + $0x1] ss:$4 sm:$0xff] %v5107_v40 }
 0x40d   : > { %6062 = vrot.lane.b32.xlu0 %v6061_v3, %s6159_s17 }
 0x40f   : > { %v4514_v36 = vpop.permute.xlu0 %4513 }
 0x410   : > { %v4518_v45 = vsel %vm4515_vm2, %v4512_v42, %v4514_v36 }
 0x411   : > { %5506 = vmatpush.msk.msra.mxu1 %vm277_vm6, %v4518_v45  ;;  %v4832_v45 = vsel %vm4830_vm15, %v5924_v0, %v5925_v37 }
 0x413   : > { %v5132_v5 = vld.sshfl [vmem:[#allocation1 + $0x8] sm:$0xff pattern:$0x73625140]  ;;  %v5131_v58 = vld.sshfl [vmem:[#allocation1] sm:$0xff pattern:$0x73625140]  ;;  %4540 = vmatpush.msra.mxu1 %v4517_v18 }
 0x414   : > { %5143 = vrot.lane.b32.xlu1 %v5132_v5, %s6159_s17  ;;  %5215 = vst [vmem:[#allocation1] ss:$4 sm:$0xff] %v8025_v49  ;;  %v5210_v49 = vsel %vm218_vm3, %v8287_v24, %v8293_v10  ;;  %v6071_v24 = vpack.i.bf16 %v5233_v38, %v5232_v23  ;;  %v5910_v10 = vunpack.i.h.bf16 %v7772_v41  ;;  %vm4620_vm3 = vcmask 359424   ;;  %v5496_v18 = vld [vmem:[%s8455_s1 + $0x98] sm:$0xf] }
 0x415   : > { %5141 = vrot.lane.b32.xlu0 %v5131_v58, %s6159_s17  ;;  %5217 = vst [vmem:[#allocation1 + $0x1] ss:$4 sm:$0xff] %v8027_v29  ;;  %v4411_v29 = vsel %vm4410_vm1, %v6034_v7, %v6035_v62  ;;  %4541 = vmatpush.msra.mxu1 %v4516_v28  ;;  %v5929_v5 = vunpack.i.l.bf16 %v7810_v19  ;;  %v5499_v62 = vld [vmem:[%s8455_s1 + $0x9c] sm:$0xf]  ;;  %v5508_v19 = vld [vmem:[%s8455_s1 + $0xa8] sm:$0xf] }
 0x416   : > { %5219 = vst [vmem:[#allocation1 + $0x2] ss:$4 sm:$0xff] %v8030_v44  ;;  %4436 = vmatpush.msra.mxu0 %v4411_v29  ;;  %v5183_v44 = vld [vmem:[%s6199_s21 + $0x30] sm:$0x3]  ;;  %s6161_s21 = smov 38   ;;  %v4622_v15 = vsel %vm4620_vm3, %v5909_v21, %v5910_v10  ;;  %5498 = vmatmul.msk.f32.vlgmr.msrb.gmra.mxu2 %vm273_vm14, %v5496_v18  ;;  %v5940_v29 = vunpack.i.h.bf16 %v7835_v8  ;;  %v344_v10 = vpop.f32.mrf.mxu1 }
 0x417   : > { %5221 = vst [vmem:[#allocation1 + $0x3] ss:$4 sm:$0xff] %v8032_v52  ;;  %v5211_v52 = vrot.slane %v5210_v49, 6  ;;  %v5212_v30 = vsel %vm210_vm0, %v5183_v44, %v5196_v4  ;;  %v6048_v50 = vpop.permute.xlu2 %6047  ;;  %vm4725_vm0 = vcmask 351232   ;;  %v4937_v7 = vsel %vm4935_vm5, %v5929_v5, %v5930_v53  ;;  %5501 = vmatmul.msk.f32.vlgmr.msrb.gmra.mxu3 %vm273_vm14, %v5499_v62  ;;  %5504 = vmatmul.msk.f32.vlgmr.msra.gmra.mxu0 %vm273_vm14, %v5502_v63  ;;  %v5514_v23 = vld [vmem:[%s8455_s1 + $0xb0] sm:$0xf] }
 0x418   : > { %v4727_v48 = vsel %vm4725_vm0, %v5914_v55, %v5915_v13  ;;  %v6050_v34 = vunpack.i.h.bf16 %v6048_v50  ;;  %v6049_v25 = vunpack.i.l.bf16 %v6048_v50  ;;  %v5939_v4 = vunpack.i.l.bf16 %v7835_v8  ;;  %v5520_v8 = vld [vmem:[%s8455_s1 + $0xb8] sm:$0xf]  ;;  %v5523_v13 = vld [vmem:[%s8455_s1 + $0xbc] sm:$0xf] }
 0x41a   : > { %v4726_v40 = vsel %vm4725_vm0, %v6049_v25, %v6050_v34 }
 0x41b   : > { %v6043_v60 = vpop.permute.xlu1 %6042 }
 0x41c   : > { %6067 = vrot.lane.b32.xlu1 %v6066_v43, %s8543_s15  ;;  %v6045_v41 = vunpack.i.h.bf16 %v6043_v60  ;;  %v6044_v12 = vunpack.i.l.bf16 %v6043_v60  ;;  %v5505_v43 = vld [vmem:[%s8455_s1 + $0xa4] sm:$0xf] }
 0x41d   : > { %5507 = vmatmul.msk.f32.vlgmr.msra.gmra.mxu1 %vm273_vm14, %v5505_v43 }
 0x41e   : > { %v5230_v6 = vld.sshfl [vmem:[#allocation1] sm:$0xff pattern:$0x73625140]  ;;  %v5231_v59 = vld.sshfl [vmem:[#allocation1 + $0x8] sm:$0xff pattern:$0x73625140]  ;;  %v4621_v17 = vsel %vm4620_vm3, %v6044_v12, %v6045_v41  ;;  %v763_v47 = vpop.f32.mrf.mxu1 }
 0x41f   : > { %5234 = vst [vmem:[#allocation1] ss:$4 sm:$0xff] %v5211_v52  ;;  %v6076_v54 = vpack.i.bf16 %v5231_v59, %v5230_v6  ;;  %v4722_v2 = vpop.permute.xlu2 %4721 }
 0x420   : > { %5235 = vst [vmem:[#allocation1 + $0x1] ss:$4 sm:$0xff] %v5212_v30  ;;  %v5042_v30 = vsel %vm5040_vm7, %v5939_v4, %v5940_v29 }
 0x422   : > { %v4617_v9 = vpop.permute.xlu0 %4616 }
 0x423   : > { %v4619_v26 = vpop.permute.xlu1 %4618 }
 0x424   : > { %6072 = vrot.lane.b32.xlu1 %v6071_v24, %s6161_s21  ;;  %v4623_v22 = vsel %vm4620_vm3, %v4617_v9, %v4619_v26  ;;  %v297_v24 = vpop.f32.mrf.mxu0  ;;  %v448_v9 = vpop.f32.mrf.mxu2 }
 0x425   : > { %5509 = vmatpush.msk.msra.mxu2 %vm277_vm6, %v4623_v22  ;;  %v345_v21 = vadd.f32 %v344_v10, %v297_v24  ;;  %v553_v26 = vpop.f32.mrf.mxu3 }
 0x427   : > { %v5237_v57 = vld.sshfl [vmem:[#allocation1 + $0x8] sm:$0xff pattern:$0x73625140]  ;;  %v5236_v1 = vld.sshfl [vmem:[#allocation1] sm:$0xff pattern:$0x73625140]  ;;  %4645 = vmatpush.msra.mxu2 %v4622_v15  ;;  %v451_v22 = vadd.f32 %v448_v9, %v345_v21  ;;  %v5945_v15 = vunpack.i.h.bf16 %v7889_v14 }
 0x428   : > { %5248 = vrot.lane.b32.xlu0 %v5237_v57, %s6161_s21  ;;  %5246 = vrot.lane.b32.xlu2 %v5236_v1, %s6161_s21  ;;  %v5944_v57 = vunpack.i.l.bf16 %v7889_v14 }
 0x429   : > { %4646 = vmatpush.msra.mxu2 %v4621_v17  ;;  %v556_v51 = vadd.f32 %v553_v26, %v451_v22 }
 0x42a   : > { %5510 = vmatmul.msk.f32.vlgmr.msra.gmra.mxu2 %vm273_vm14, %v5508_v19  ;;  %v5147_v28 = vsel %vm5145_vm8, %v5944_v57, %v5945_v15 }
 0x42d   : > { %v973_v14 = vpop.f32.mrf.mxu3 }
 0x430   : > { %6077 = vrot.lane.b32.xlu2 %v6076_v54, %s6161_s21  ;;  %v658_v54 = vpop.f32.mrf.mxu0 }
 0x431   : > { %v661_v17 = vadd.f32 %v658_v54, %v556_v51 }
 0x436   : > { %v4724_v39 = vpop.permute.xlu0 %4723 }
 0x437   : > { %v4728_v20 = vsel %vm4725_vm0, %v4722_v2, %v4724_v39  ;;  %v868_v2 = vpop.f32.mrf.mxu2 }
 0x438   : > { %5512 = vmatpush.msk.msra.mxu3 %vm277_vm6, %v4728_v20  ;;  %v766_v20 = vadd.f32 %v763_v47, %v661_v17  ;;  %v1078_v0 = vpop.f32.mrf.mxu0 }
 0x43a   : > { %4750 = vmatpush.msra.mxu3 %v4727_v48  ;;  %v871_v34 = vadd.f32 %v868_v2, %v766_v20 }
 0x43c   : > { %4751 = vmatpush.msra.mxu3 %v4726_v40  ;;  %v5517_v40 = vld [vmem:[%s8455_s1 + $0xb4] sm:$0xf] }
 0x43d   : > { %5513 = vmatmul.msk.f32.vlgmr.msra.gmra.mxu3 %vm273_vm14, %v5511_v61 }
 0x440   : > { %v1498_v62 = vpop.f32.mrf.mxu0 }
 0x443   : > { %v6053_v31 = vpop.permute.xlu1 %6052 }
 0x444   : > { %v6055_v3 = vunpack.i.h.bf16 %v6053_v31  ;;  %v6054_v42 = vunpack.i.l.bf16 %v6053_v31  ;;  %v976_v31 = vadd.f32 %v973_v14, %v871_v34 }
 0x446   : > { %v4831_v33 = vsel %vm4830_vm15, %v6054_v42, %v6055_v3  ;;  %v1183_v3 = vpop.f32.mrf.mxu1  ;;  %v1081_v42 = vadd.f32 %v1078_v0, %v976_v31 }
 0x44a   : > { %v4827_v35 = vpop.permute.xlu0 %4826 }
 0x44b   : > { %v4829_v16 = vpop.permute.xlu1 %4828 }
 0x44c   : > { %v4833_v36 = vsel %vm4830_vm15, %v4827_v35, %v4829_v16  ;;  %v1288_v35 = vpop.f32.mrf.mxu2  ;;  %v1393_v16 = vpop.f32.mrf.mxu3 }
 0x44d   : > { %5515 = vmatpush.msk.msrb.mxu0 %vm277_vm6, %v4833_v36  ;;  %v1186_v36 = vadd.f32 %v1183_v3, %v1081_v42 }
 0x44f   : > { %4855 = vmatpush.msrb.mxu0 %v4832_v45  ;;  %v1291_v18 = vadd.f32 %v1288_v35, %v1186_v36 }
 0x451   : > { %4856 = vmatpush.msrb.mxu0 %v4831_v33 }
 0x452   : > { %5516 = vmatmul.msk.f32.vlgmr.msrb.gmra.mxu0 %vm273_vm14, %v5514_v23  ;;  %v1918_v23 = vpop.f32.mrf.mxu0 }
 0x453   : > { %v6058_v32 = vpop.permute.xlu2 %6057 }
 0x454   : > { %v6060_v44 = vunpack.i.h.bf16 %v6058_v32  ;;  %v6059_v52 = vunpack.i.l.bf16 %v6058_v32  ;;  %v1708_v43 = vpop.f32.mrf.mxu2  ;;  %v1813_v4 = vpop.f32.mrf.mxu3 }
 0x456   : > { %v5041_v6 = vsel %vm5040_vm7, %v6059_v52, %v6060_v44  ;;  %v5526_v44 = vld [vmem:[%s8455_s1 + $0xc0] sm:$0xf] }
 0x45a   : > { %v2338_v21 = vpop.f32.mrf.mxu0 }
 0x45b   : > { %v5039_v49 = vpop.permute.xlu2 %5038 }
 0x45c   : > { %v2233_v24 = vpop.f32.mrf.mxu3 }
 0x45e   : > { %v4934_v58 = vpop.permute.xlu1 %4933  ;;  %v4932_v27 = vpop.permute.xlu0 %4931 }
 0x45f   : > { %v4938_v11 = vsel %vm4935_vm5, %v4932_v27, %v4934_v58  ;;  %v1396_v58 = vadd.f32 %v1393_v16, %v1291_v18 }
 0x460   : > { %5518 = vmatpush.msk.msrb.mxu1 %vm277_vm6, %v4938_v11 }
 0x461   : > { %v1501_v19 = vadd.f32 %v1498_v62, %v1396_v58 }
 0x462   : > { %4960 = vmatpush.msrb.mxu1 %v4937_v7  ;;  %v1603_v7 = vpop.f32.mrf.mxu1 }
 0x472   : > { %v5037_v60 = vpop.permute.xlu1 %5036 }
 0x473   : > { %v5043_v38 = vsel %vm5040_vm7, %v5037_v60, %v5039_v49  ;;  %v1606_v49 = vadd.f32 %v1603_v7, %v1501_v19 }
 0x474   : > { %5521 = vmatpush.msk.msrb.mxu2 %vm277_vm6, %v5043_v38 }
 0x475   : > { %v1711_v52 = vadd.f32 %v1708_v43, %v1606_v49 }
 0x476   : > { %5065 = vmatpush.msrb.mxu2 %v5042_v30  ;;  %v2023_v30 = vpop.f32.mrf.mxu1 }
 0x477   : > { %v1816_v60 = vadd.f32 %v1813_v4, %v1711_v52 }
 0x478   : > { %5066 = vmatpush.msrb.mxu2 %v5041_v6 }
 0x479   : > { %5522 = vmatmul.msk.f32.vlgmr.msrb.gmra.mxu2 %vm273_vm14, %v5520_v8  ;;  %v1921_v38 = vadd.f32 %v1918_v23, %v1816_v60  ;;  %v2128_v8 = vpop.f32.mrf.mxu2 }
 0x47b   : > { %v2026_v6 = vadd.f32 %v2023_v30, %v1921_v38  ;;  %v5283_v38 = vstv %s5282_s7 }
 0x47e   : > { %v2443_v26 = vpop.f32.mrf.mxu1 }
 0x47f   : > { %v6063_v59 = vpop.permute.xlu0 %6062 }
 0x480   : > { %v6065_v41 = vunpack.i.h.bf16 %v6063_v59  ;;  %v6064_v12 = vunpack.i.l.bf16 %v6063_v59  ;;  %v2131_v59 = vadd.f32 %v2128_v8, %v2026_v6  ;;  %v5286_v6 = vstv %s5529_s20 }
 0x481   : > { %v2548_v15 = vpop.f32.mrf.mxu2 }
 0x482   : > { %v5146_v55 = vsel %vm5145_vm8, %v6064_v12, %v6065_v41  ;;  %v5247_v39 = vpop.permute.xlu2 %5246  ;;  %v2236_v10 = vadd.f32 %v2233_v24, %v2131_v59 }
 0x484   : > { %v2341_v9 = vadd.f32 %v2338_v21, %v2236_v10 }
 0x486   : > { %v5144_v1 = vpop.permute.xlu1 %5143  ;;  %v2446_v22 = vadd.f32 %v2443_v26, %v2341_v9  ;;  %v2863_v12 = vpop.f32.mrf.mxu1 }
 0x487   : > { %v5142_v46 = vpop.permute.xlu0 %5141 }
 0x488   : > { %v5148_v50 = vsel %vm5145_vm8, %v5142_v46, %v5144_v1  ;;  %v2551_v57 = vadd.f32 %v2548_v15, %v2446_v22  ;;  %v2653_v1 = vpop.f32.mrf.mxu3  ;;  %v2758_v46 = vpop.f32.mrf.mxu0 }
 0x489   : > { %5524 = vmatpush.msk.msrb.mxu3 %vm277_vm6, %v5148_v50  ;;  %v2968_v54 = vpop.f32.mrf.mxu2 }
 0x48a   : > { %v6078_v33 = vpop.permute.xlu2 %6077  ;;  %v2656_v51 = vadd.f32 %v2653_v1, %v2551_v57 }
 0x48b   : > { %5170 = vmatpush.msrb.mxu3 %v5147_v28  ;;  %v6080_v27 = vunpack.i.h.bf16 %v6078_v33  ;;  %v6079_v11 = vunpack.i.l.bf16 %v6078_v33 }
 0x48c   : > { %v2761_v41 = vadd.f32 %v2758_v46, %v2656_v51 }
 0x48d   : > { %5171 = vmatpush.msrb.mxu3 %v5146_v55  ;;  %v5251_v29 = vsel %vm5250_vm9, %v6079_v11, %v6080_v27 }
 0x48e   : > { %v6068_v48 = vpop.permute.xlu1 %6067  ;;  %5525 = vmatmul.msk.f32.vlgmr.msrb.gmra.mxu3 %vm273_vm14, %v5523_v13  ;;  %v2866_v50 = vadd.f32 %v2863_v12, %v2761_v41  ;;  %v3283_v14 = vpop.f32.mrf.mxu1 }
 0x48f   : > { %v6070_v25 = vunpack.i.h.bf16 %v6068_v48  ;;  %v6069_v56 = vunpack.i.l.bf16 %v6068_v48 }
 0x490   : > { %v2971_v47 = vadd.f32 %v2968_v54, %v2866_v50  ;;  %v3073_v28 = vpop.f32.mrf.mxu3  ;;  %v3178_v2 = vpop.f32.mrf.mxu0 }
 0x491   : > { %v4936_v37 = vsel %vm4935_vm5, %v6069_v56, %v6070_v25 }
 0x492   : > { %4961 = vmatpush.msrb.mxu1 %v4936_v37  ;;  %v3076_v17 = vadd.f32 %v3073_v28, %v2971_v47 }
 0x493   : > { %5519 = vmatmul.msk.f32.vlgmr.msrb.gmra.mxu1 %vm273_vm14, %v5517_v40 }
 0x494   : > { %v3181_v13 = vadd.f32 %v3178_v2, %v3076_v17 }
 0x496   : > { %v6073_v45 = vpop.permute.xlu1 %6072  ;;  %v3286_v55 = vadd.f32 %v3283_v14, %v3181_v13  ;;  %v3703_v40 = vpop.f32.mrf.mxu1 }
 0x497   : > { %v6075_v53 = vunpack.i.h.bf16 %v6073_v45  ;;  %v6074_v5 = vunpack.i.l.bf16 %v6073_v45 }
 0x498   : > { %v3493_v48 = vpop.f32.mrf.mxu3  ;;  %v3598_v25 = vpop.f32.mrf.mxu0 }
 0x499   : > { %v5252_v61 = vsel %vm5250_vm9, %v6074_v5, %v6075_v53 }
 0x49a   : > { %v5249_v32 = vpop.permute.xlu0 %5248 }
 0x49b   : > { %v5253_v63 = vsel %vm5250_vm9, %v5247_v39, %v5249_v32  ;;  %v3388_v39 = vpop.f32.mrf.mxu2 }
 0x49c   : > { %5527 = vmatpush.msk.msra.mxu0 %vm277_vm6, %v5253_v63  ;;  %v3391_v20 = vadd.f32 %v3388_v39, %v3286_v55 }
 0x49e   : > { %5275 = vmatpush.msra.mxu0 %v5252_v61  ;;  %v3496_v34 = vadd.f32 %v3493_v48, %v3391_v20  ;;  %v4123_v36 = vpop.f32.mrf.mxu1 }
 0x4a0   : > { %5276 = vmatpush.msra.mxu0 %v5251_v29  ;;  %v3601_v56 = vadd.f32 %v3598_v25, %v3496_v34  ;;  %v3913_v3 = vpop.f32.mrf.mxu3  ;;  %v4018_v35 = vpop.f32.mrf.mxu0 }
 0x4a1   : > { %5528 = vmatmul.msk.f32.vlgmr.msra.gmra.mxu0 %vm273_vm14, %v5526_v44 }
 0x4a2   : > { %v3706_v31 = vadd.f32 %v3703_v40, %v3601_v56 }
 0x4a3   : > { %v3808_v37 = vpop.f32.mrf.mxu2 }
 0x4a4   : > { %v3811_v0 = vadd.f32 %v3808_v37, %v3706_v31 }
 0x4a6   : > { %v3916_v42 = vadd.f32 %v3913_v3, %v3811_v0  ;;  %v4543_v11 = vpop.f32.mrf.mxu1 }
 0x4a8   : > { %v4021_v16 = vadd.f32 %v4018_v35, %v3916_v42  ;;  %v4333_v53 = vpop.f32.mrf.mxu3  ;;  %v4438_v58 = vpop.f32.mrf.mxu0 }
 0x4aa   : > { %v4126_v45 = vadd.f32 %v4123_v36, %v4021_v16 }
 0x4ab   : > { %v4228_v33 = vpop.f32.mrf.mxu2 }
 0x4ac   : > { %v4231_v18 = vadd.f32 %v4228_v33, %v4126_v45 }
 0x4ae   : > { %v4336_v5 = vadd.f32 %v4333_v53, %v4231_v18 }
 0x4b0   : > { %v4441_v27 = vadd.f32 %v4438_v58, %v4336_v5 }
 0x4b2   : > { %v4546_v62 = vadd.f32 %v4543_v11, %v4441_v27 }
 0x4b3   : > { %v4648_v7 = vpop.f32.mrf.mxu2 }
 0x4b4   : > { %v4651_v32 = vadd.f32 %v4648_v7, %v4546_v62 }
 0x4c0   : > { %v4753_v19 = vpop.f32.mrf.mxu3 }
 0x4c1   : > { %v4756_v63 = vadd.f32 %v4753_v19, %v4651_v32 }
 0x4cf   : > { %v4858_v61 = vpop.f32.mrf.mxu0 }
 0x4d0   : > { %v4861_v43 = vadd.f32 %v4858_v61, %v4756_v63 }
 0x4fc   : > { %v5068_v4 = vpop.f32.mrf.mxu2 }
 0x510   : > { %v4963_v49 = vpop.f32.mrf.mxu1 }
 0x511   : > { %v4966_v29 = vadd.f32 %v4963_v49, %v4861_v43  ;;  %v5173_v52 = vpop.f32.mrf.mxu3 }
 0x513   : > { %v5071_v44 = vadd.f32 %v5068_v4, %v4966_v29 }
 0x515   : > { %v5176_v60 = vadd.f32 %v5173_v52, %v5071_v44 }
 0x51e   : > { %v5278_v23 = vpop.f32.mrf.mxu0 }
 0x51f   : > { %v5281_v30 = vadd.f32 %v5278_v23, %v5176_v60 }
 0x521   : > { %v5284_v8 = vmul.f32 %v5283_v38, %v5281_v30 }
 0x523   : > { %v5287_v59 = vadd.f32 %v5286_v6, %v5284_v8 }
 0x525   : > { %v5530_v24 = vmul.f32 -1.442695, %v5287_v59 }
 0x527   : > { %6081 = vpow2.f32 %v5530_v24 }
 0x52d   : > { %v6082_v10 = vpop.eup %6081 }
 0x52e   : > { %v5291_v21 = vadd.f32 1.0, %v6082_v10 }
 0x530   : > { %6083 = vrcp.f32 %v5291_v21  ;;  %v5303_v15 = vand.u32 2147483648, %v5291_v21  ;;  %v5301_v1 = vand.u32 2147483647, %v5291_v21  ;;  %vm5297_vm14 = vweird.f32 %v5291_v21 }
 0x532   : > { %v5304_v46 = vor.u32 1.1754944e-38, %v5303_v15  ;;  %vm5302_vm11 = vcmp.eq.f32.partialorder %v5301_v1, 8.507059e+37 }
 0x536   : > { %v6084_v9 = vpop.eup %6083 }
 0x537   : > { %v5293_v26 = vmul.f32 %v6084_v9, %v5291_v21  ;;  %vm5298_vm6 = vweird.f32 %v6084_v9 }
 0x538   : > { %vm5299_vm10 = vmor %vm5297_vm14, %vm5298_vm6 }
 0x539   : > { %v5294_v22 = vsub.f32 1.0, %v5293_v26 }
 0x53b   : > { %v5295_v57 = vmul.f32 %v6084_v9, %v5294_v22 }
 0x53d   : > { %v5296_v51 = vadd.f32 %v6084_v9, %v5295_v57 }
 0x53f   : > { %v5300_v41 = vsel %vm5299_vm10, %v6084_v9, %v5296_v51 }
 0x540   : > { %v5305_v12 = vsel %vm5302_vm11, %v5304_v46, %v5300_v41 }
 0x541   : > { %5307 = vst [vmem:[%s182_s10] sm:$0xf] %v5305_v12 }
 0x542 PF: > { %s14_s12 = sadd.s32 1, %s6111_s12  }
 0x543   : > { %p11_p7 = scmp.ge.s32.totalorder %s14_s12, 4  }
 0x545   :  { %13 = sbr.rel (!%p11_p7) target bundleno = 1 (0x1), region = 458 }
 0x54a   :  { %5327 = vsyncpa [#allocation3], 1 }
 0x54b   :  { %5329 = vsyncpa [#allocation3 + $0x1], 1 }

// kernel: mutifuse_forward.7
= control target key start
LH: loop header
LB: loop body
LE: loop exit
PB: predicated region body
PF: predicated region fallthrough
CT: control target
= control target key end

     0   :  { %s1733_s9 = smov 0   ;;  %s2554_s0 = inlined_call_operand.vmem [shape: f32[2,6,10,160], index: 0, kind: input, shape index: {}]   ;;  %s2555_s1 = inlined_call_operand.vmem [shape: f32[9,160,128], index: 1, kind: input, shape index: {}]   ;;  %s2556_s2 = inlined_call_operand.vmem [shape: f32[2,32,128], index: 2, kind: output, shape index: {}]  }
   0x1 LB: > { %s1414_s10 = sadd.s32 4294967295, %s1716_s9   ;;  %p1418_p0 = scmp.ge.s32.totalorder %s1716_s9, 1  ;;  %s1716_s9 = sphi %s1733_s9, %s12_s9  }
   0x2   : > { %p112_p1 = scmp.lt.s32.totalorder %s1716_s9, 3 }
   0x4   : > { %p113_p2 = pnand %p1418_p0, %p112_p1 }
   0x5   : > { %p134_p3 = scmp.lt.s32.totalorder (!%p113_p2), %s1414_s10, 1 }
   0x6   : > { %116 = sbr.rel (%p113_p2) target bundleno = 310 (0x136), region = 28 }
   0xb   : > { %v1437_v0 = vld [vmem:[%s2555_s1 + $0x118] sm:$0xff]  ;;  %v1436_v3 = vld [vmem:[%s2555_s1 + $0x110] sm:$0xff]  ;;  %v1435_v6 = vld [vmem:[%s2555_s1 + $0x108] sm:$0xff]  ;;  %s2558_s10 = smov (!%p134_p3, %s1414_s10), 1  ;;  %vm254_vm0 = vcmask 261120   ;;  %vm204_vm1 = vcmask 1046528  }
   0xc   : > { %v167_v1 = vld [vmem:[%s2555_s1 + $0x78] sm:$0xff]  ;;  %263 = vmatpush.msra.mxu0 %v1437_v0  ;;  %v166_v4 = vld [vmem:[%s2555_s1 + $0x70] sm:$0xff]  ;;  %v165_v7 = vld [vmem:[%s2555_s1 + $0x68] sm:$0xff]  ;;  %s1701_s7 = smul.u32 192, %s2558_s10  ;;  %vm423_vm2 = vcmask 1045504  }
   0xd   : > { %v171_v2 = vld [vmem:[%s2555_s1 + $0x98] sm:$0xff]  ;;  %333 = vmatpush.msra.mxu2 %v167_v1  ;;  %v170_v5 = vld [vmem:[%s2555_s1 + $0x90] sm:$0xff]  ;;  %v169_v8 = vld [vmem:[%s2555_s1 + $0x88] sm:$0xff] }
   0xe   : > { %374 = vmatpush.msra.mxu3 %v171_v2  ;;  %264 = vmatpush.msra.mxu0 %v1436_v3  ;;  %v1441_v9 = vld [vmem:[%s2555_s1 + $0x138] sm:$0xff]  ;;  %v1434_v10 = vld [vmem:[%s2555_s1 + $0x100] sm:$0xff]  ;;  %v1440_v13 = vld [vmem:[%s2555_s1 + $0x130] sm:$0xff]  ;;  %s1789_s16 = scalar_lea.vmem %s2554_s0, %s1701_s7 }
   0xf   : > { %334 = vmatpush.msra.mxu2 %v166_v4  ;;  %304 = vmatpush.msra.mxu1 %v1441_v9  ;;  %v164_v11 = vld [vmem:[%s2555_s1 + $0x60] sm:$0xff]  ;;  %v1469_v14 = vld [vmem:[%s2555_s1 + $0x1d8] sm:$0xff]  ;;  %v1439_v16 = vld [vmem:[%s2555_s1 + $0x128] sm:$0xff] }
  0x10   : > { %375 = vmatpush.msra.mxu3 %v170_v5  ;;  %265 = vmatpush.msra.mxu0 %v1435_v6  ;;  %v168_v12 = vld [vmem:[%s2555_s1 + $0x80] sm:$0xff]  ;;  %v1433_v15 = vld [vmem:[%s2555_s1 + $0xf8] sm:$0xff]  ;;  %v145_v17 = vld [vmem:[%s1789_s16 + $0x8] sm:$0xff] }
  0x11   : > { %335 = vmatpush.msra.mxu2 %v165_v7  ;;  %305 = vmatpush.msra.mxu1 %v1440_v13  ;;  %v163_v18 = vld [vmem:[%s2555_s1 + $0x58] sm:$0xff]  ;;  %v1432_v19 = vld [vmem:[%s2555_s1 + $0xf0] sm:$0xff]  ;;  %v1438_v20 = vld [vmem:[%s2555_s1 + $0x120] sm:$0xff] }
  0x12   : > { %376 = vmatpush.msra.mxu3 %v169_v8  ;;  %266 = vmatpush.msra.mxu0 %v1434_v10  ;;  %v173_v21 = vld [vmem:[%s1789_s16 + $0x8] sm:$0xfe]  ;;  %v175_v22 = vld [vmem:[%s1789_s16 + $0x18] sm:$0x1]  ;;  %v162_v23 = vld [vmem:[%s2555_s1 + $0x50] sm:$0xff] }
  0x13   : > { %336 = vmatpush.msra.mxu2 %v164_v11  ;;  %306 = vmatpush.msra.mxu1 %v1439_v16  ;;  %v208_v24 = vrot.slane %v173_v21, 1  ;;  %v209_v25 = vrot.slane %v175_v22, 1  ;;  %v1431_v26 = vld [vmem:[%s2555_s1 + $0xe8] sm:$0xff]  ;;  %v1465_v27 = vld [vmem:[%s2555_s1 + $0x1b8] sm:$0xff]  ;;  %v1468_v30 = vld [vmem:[%s2555_s1 + $0x1d0] sm:$0xff] }
  0x14   : > { %377 = vmatpush.msra.mxu3 %v168_v12  ;;  %267 = vmatpush.msra.mxu0 %v1433_v15  ;;  %v161_v28 = vld [vmem:[%s2555_s1 + $0x48] sm:$0xff]  ;;  %v1430_v31 = vld [vmem:[%s2555_s1 + $0xe0] sm:$0xff]  ;;  %v1464_v32 = vld [vmem:[%s2555_s1 + $0x1b0] sm:$0xff] }
  0x15   : > { %1446 = vmatmul.msk.f32.vlgmr.msra.gmra.mxu3 %vm254_vm0, %v145_v17  ;;  %337 = vmatpush.msra.mxu2 %v163_v18  ;;  %v210_v29 = vsel %vm204_vm1, %v208_v24, %v209_v25  ;;  %v160_v33 = vld [vmem:[%s2555_s1 + $0x40] sm:$0xff]  ;;  %v177_v34 = vld [vmem:[%s1789_s16 + $0x28] sm:$0xfe]  ;;  %v179_v35 = vld [vmem:[%s1789_s16 + $0x38] sm:$0x1] }
  0x16   : > { %522 = vmatpush.msrb.mxu3 %v1469_v14  ;;  %268 = vmatpush.msra.mxu0 %v1432_v19  ;;  %v1842_v36 = vld [vmem:[%s1789_s16 + $0x28] sm:$0xff]  ;;  %v1429_v37 = vld [vmem:[%s2555_s1 + $0xd8] sm:$0xff]  ;;  %v214_v38 = vrot.slane %v177_v34, 1  ;;  %v215_v39 = vrot.slane %v179_v35, 1  ;;  %v1428_v43 = vld [vmem:[%s2555_s1 + $0xd0] sm:$0xff] }
  0x17   : > { %307 = vmatpush.msra.mxu1 %v1438_v20  ;;  %338 = vmatpush.msra.mxu2 %v162_v23  ;;  %v159_v40 = vld [vmem:[%s2555_s1 + $0x38] sm:$0xff]  ;;  %v1463_v41 = vld [vmem:[%s2555_s1 + $0x1a8] sm:$0xff]  ;;  %v158_v44 = vld [vmem:[%s2555_s1 + $0x30] sm:$0xff] }
  0x18   : > { %1442 = vmatmul.msk.f32.vlgmr.msra.gmra.mxu1 %vm254_vm0, %v210_v29  ;;  %269 = vmatpush.msra.mxu0 %v1431_v26  ;;  %v1467_v42 = vld [vmem:[%s2555_s1 + $0x1c8] sm:$0xff]  ;;  %v1462_v45 = vld [vmem:[%s2555_s1 + $0x1a0] sm:$0xff]  ;;  %v216_v47 = vsel %vm204_vm1, %v214_v38, %v215_v39  ;;  %v1461_v50 = vld [vmem:[%s2555_s1 + $0x198] sm:$0xff] }
  0x19   : > { %481 = vmatpush.msrb.mxu1 %v1465_v27  ;;  %339 = vmatpush.msra.mxu2 %v161_v28  ;;  %v1427_v46 = vld [vmem:[%s2555_s1 + $0xc8] sm:$0xff]  ;;  %v183_v51 = vld [vmem:[%s1789_s16 + $0x58] sm:$0x1]  ;;  %v1426_v52 = vld [vmem:[%s2555_s1 + $0xc0] sm:$0xff] }
  0x1a   : > { %523 = vmatpush.msrb.mxu3 %v1468_v30  ;;  %270 = vmatpush.msra.mxu0 %v1430_v31  ;;  %v181_v48 = vld [vmem:[%s1789_s16 + $0x48] sm:$0xfe]  ;;  %v156_v53 = vld [vmem:[%s2555_s1 + $0x20] sm:$0xff]  ;;  %v1460_v55 = vld [vmem:[%s2555_s1 + $0x190] sm:$0xff]  ;;  %v221_v58 = vrot.slane %v183_v51, 1 }
  0x1b   : > { %482 = vmatpush.msrb.mxu1 %v1464_v32  ;;  %340 = vmatpush.msra.mxu2 %v160_v33  ;;  %v157_v49 = vld [vmem:[%s2555_s1 + $0x28] sm:$0xff]  ;;  %v1425_v56 = vld [vmem:[%s2555_s1 + $0xb8] sm:$0xff]  ;;  %v220_v57 = vrot.slane %v181_v48, 1  ;;  %v172_v59 = vld [vmem:[%s1789_s16] sm:$0xfe] }
  0x1c   : > { %524 = vmatpush.msrb.mxu3 %v1467_v42  ;;  %271 = vmatpush.msra.mxu0 %v1429_v37  ;;  %v1887_v54 = vld [vmem:[%s1789_s16 + $0x48] sm:$0xff]  ;;  %v174_v60 = vld [vmem:[%s1789_s16 + $0x10] sm:$0x1]  ;;  %v1466_v61 = vld [vmem:[%s2555_s1 + $0x1c0] sm:$0xff]  ;;  %v205_v3 = vrot.slane %v172_v59, 1 }
  0x1d   : > { %1447 = vmatmul.msk.f32.gmra.mxu3 %vm254_vm0, %v1842_v36  ;;  %341 = vmatpush.msra.mxu2 %v159_v40  ;;  %v155_v62 = vld [vmem:[%s2555_s1 + $0x18] sm:$0xff]  ;;  %v1459_v63 = vld [vmem:[%s2555_s1 + $0x188] sm:$0xff]  ;;  %v1424_v0 = vld [vmem:[%s2555_s1 + $0xb0] sm:$0xff]  ;;  %v206_v4 = vrot.slane %v174_v60, 1  ;;  %v222_v7 = vsel %vm204_vm1, %v220_v57, %v221_v58 }
  0x1e   : > { %483 = vmatpush.msrb.mxu1 %v1463_v41  ;;  %272 = vmatpush.msra.mxu0 %v1428_v43  ;;  %v154_v1 = vld [vmem:[%s2555_s1 + $0x10] sm:$0xff]  ;;  %v1458_v2 = vld [vmem:[%s2555_s1 + $0x180] sm:$0xff]  ;;  %v1423_v5 = vld [vmem:[%s2555_s1 + $0xa8] sm:$0xff] }
  0x1f   : > { %342 = vmatpush.msra.mxu2 %v158_v44  ;;  %525 = vmatpush.msrb.mxu3 %v1466_v61  ;;  %v153_v6 = vld [vmem:[%s2555_s1 + $0x8] sm:$0xff]  ;;  %v1541_v8 = vld [vmem:[%s2555_s1 + $0x318] sm:$0xff]  ;;  %v1422_v12 = vld [vmem:[%s2555_s1 + $0xa0] sm:$0xff]  ;;  %v207_v14 = vsel %vm204_vm1, %v205_v3, %v206_v4 }
  0x20   : > { %484 = vmatpush.msrb.mxu1 %v1462_v45  ;;  %273 = vmatpush.msra.mxu0 %v1427_v46  ;;  %v1457_v9 = vld [vmem:[%s2555_s1 + $0x178] sm:$0xff]  ;;  %v185_v10 = vld [vmem:[%s1789_s16 + $0x68] sm:$0xfe]  ;;  %v152_v13 = vld [vmem:[%s2555_s1] sm:$0xff] }
  0x21   : > { %1443 = vmatmul.msk.f32.gmra.mxu1 %vm254_vm0, %v216_v47  ;;  %343 = vmatpush.msra.mxu2 %v157_v49  ;;  %v187_v11 = vld [vmem:[%s1789_s16 + $0x78] sm:$0x1]  ;;  %v144_v15 = vld [vmem:[%s1789_s16] sm:$0xff]  ;;  %v1942_v16 = vld [vmem:[%s1789_s16 + $0x68] sm:$0xff]  ;;  %v226_v18 = vrot.slane %v185_v10, 1 }
  0x22   : > { %485 = vmatpush.msrb.mxu1 %v1461_v50  ;;  %274 = vmatpush.msra.mxu0 %v1426_v52  ;;  %v1456_v17 = vld [vmem:[%s2555_s1 + $0x170] sm:$0xff]  ;;  %v227_v19 = vrot.slane %v187_v11, 1  ;;  %v176_v20 = vld [vmem:[%s1789_s16 + $0x20] sm:$0xfe]  ;;  %v1501_v22 = vld [vmem:[%s2555_s1 + $0x278] sm:$0xff] }
  0x23   : > { %344 = vmatpush.msra.mxu2 %v156_v53  ;;  %777 = vmatpush.msra.mxu3 %v1541_v8  ;;  %v178_v21 = vld [vmem:[%s1789_s16 + $0x30] sm:$0x1]  ;;  %v392_v23 = vld [vmem:[%s1789_s16 + $0x8] sm:$0xfc]  ;;  %v394_v24 = vld [vmem:[%s1789_s16 + $0x18] sm:$0x3] }
  0x24   : > { %486 = vmatpush.msrb.mxu1 %v1460_v55  ;;  %275 = vmatpush.msra.mxu0 %v1425_v56  ;;  %v1497_v25 = vld [vmem:[%s2555_s1 + $0x258] sm:$0xff]  ;;  %v1540_v26 = vld [vmem:[%s2555_s1 + $0x310] sm:$0xff]  ;;  %v1455_v27 = vld [vmem:[%s2555_s1 + $0x168] sm:$0xff]  ;;  %v211_v28 = vrot.slane %v176_v20, 1  ;;  %v212_v29 = vrot.slane %v178_v21, 1  ;;  %v228_v31 = vsel %vm204_vm1, %v226_v18, %v227_v19  ;;  %v427_v32 = vrot.slane %v392_v23, 2 }
  0x25   : > { %1448 = vmatmul.msk.f32.gmra.mxu3 %vm254_vm0, %v1887_v54  ;;  %345 = vmatpush.msra.mxu2 %v155_v62  ;;  %v1500_v30 = vld [vmem:[%s2555_s1 + $0x270] sm:$0xff]  ;;  %v428_v33 = vrot.slane %v394_v24, 2  ;;  %v1454_v35 = vld [vmem:[%s2555_s1 + $0x160] sm:$0xff]  ;;  %v1499_v37 = vld [vmem:[%s2555_s1 + $0x268] sm:$0xff] }
  0x26   : > { %487 = vmatpush.msrb.mxu1 %v1459_v63  ;;  %276 = vmatpush.msra.mxu0 %v1424_v0  ;;  %v1496_v34 = vld [vmem:[%s2555_s1 + $0x250] sm:$0xff]  ;;  %v1453_v38 = vld [vmem:[%s2555_s1 + $0x158] sm:$0xff]  ;;  %v1982_v39 = vld [vmem:[%s1789_s16 + $0x20] sm:$0xff]  ;;  %v213_v41 = vsel %vm204_vm1, %v211_v28, %v212_v29 }
  0x27   : > { %346 = vmatpush.msra.mxu2 %v154_v1  ;;  %778 = vmatpush.msra.mxu3 %v1540_v26  ;;  %v1495_v40 = vld [vmem:[%s2555_s1 + $0x248] sm:$0xff]  ;;  %v1452_v42 = vld [vmem:[%s2555_s1 + $0x150] sm:$0xff]  ;;  %v391_v43 = vld [vmem:[%s1789_s16] sm:$0xfc]  ;;  %v429_v45 = vsel %vm423_vm2, %v427_v32, %v428_v33 }
  0x28   : > { %488 = vmatpush.msrb.mxu1 %v1458_v2  ;;  %277 = vmatpush.msra.mxu0 %v1423_v5  ;;  %v393_v44 = vld [vmem:[%s1789_s16 + $0x10] sm:$0x3]  ;;  %v180_v46 = vld [vmem:[%s1789_s16 + $0x40] sm:$0xfe]  ;;  %v1539_v48 = vld [vmem:[%s2555_s1 + $0x308] sm:$0xff]  ;;  %v424_v52 = vrot.slane %v391_v43, 2 }
  0x29   : > { %1444 = vmatmul.msk.f32.gmra.mxu1 %vm254_vm0, %v222_v7  ;;  %347 = vmatpush.msra.mxu2 %v153_v6  ;;  %v182_v47 = vld [vmem:[%s1789_s16 + $0x50] sm:$0x1]  ;;  %v1494_v49 = vld [vmem:[%s2555_s1 + $0x240] sm:$0xff]  ;;  %v396_v50 = vld [vmem:[%s1789_s16 + $0x28] sm:$0xfc]  ;;  %v425_v53 = vrot.slane %v393_v44, 2 }
  0x2a   : > { %489 = vmatpush.msrb.mxu1 %v1457_v9  ;;  %278 = vmatpush.msra.mxu0 %v1422_v12  ;;  %v398_v51 = vld [vmem:[%s1789_s16 + $0x38] sm:$0x3]  ;;  %v1451_v55 = vld [vmem:[%s2555_s1 + $0x148] sm:$0xff]  ;;  %v217_v57 = vrot.slane %v180_v46, 1  ;;  %v218_v58 = vrot.slane %v182_v47, 1  ;;  %v1498_v59 = vld [vmem:[%s2555_s1 + $0x260] sm:$0xff] }
  0x2b   : > { %348 = vmatpush.msra.mxu2 %v152_v13  ;;  %279 = vmatmul.f32.vlgmr.msra.gmra.mxu0 %v207_v14  ;;  %v1493_v56 = vld [vmem:[%s2555_s1 + $0x238] sm:$0xff]  ;;  %v433_v60 = vrot.slane %v396_v50, 2  ;;  %v434_v61 = vrot.slane %v398_v51, 2  ;;  %v1450_v62 = vld [vmem:[%s2555_s1 + $0x140] sm:$0xff]  ;;  %v1492_v63 = vld [vmem:[%s2555_s1 + $0x230] sm:$0xff]  ;;  %v426_v1 = vsel %vm423_vm2, %v424_v52, %v425_v53 }
  0x2c   : > { %349 = vmatmul.f32.vlgmr.msra.gmra.mxu2 %v144_v15  ;;  %490 = vmatpush.msrb.mxu1 %v1456_v17  ;;  %v1538_v0 = vld [vmem:[%s2555_s1 + $0x300] sm:$0xff]  ;;  %v1537_v2 = vld [vmem:[%s2555_s1 + $0x2f8] sm:$0xff]  ;;  %v219_v4 = vsel %vm204_vm1, %v217_v57, %v218_v58  ;;  %v1536_v5 = vld [vmem:[%s2555_s1 + $0x2f0] sm:$0xff] }
  0x2d   : > { %1449 = vmatmul.msk.f32.gmra.mxu3 %vm254_vm0, %v1942_v16  ;;  %626 = vmatpush.msrb.mxu2 %v1501_v22  ;;  %v2030_v3 = vld [vmem:[%s1789_s16 + $0x40] sm:$0xff]  ;;  %v397_v7 = vld [vmem:[%s1789_s16 + $0x30] sm:$0x3]  ;;  %v435_v8 = vsel %vm423_vm2, %v433_v60, %v434_v61  ;;  %v1581_v11 = vld [vmem:[%s2555_s1 + $0x3b8] sm:$0xff] }
  0x2e   : > { %585 = vmatpush.msrb.mxu0 %v1497_v25  ;;  %491 = vmatpush.msrb.mxu1 %v1455_v27  ;;  %v395_v6 = vld [vmem:[%s1789_s16 + $0x20] sm:$0xfc]  ;;  %v186_v10 = vld [vmem:[%s1789_s16 + $0x70] sm:$0x1]  ;;  %v1491_v12 = vld [vmem:[%s2555_s1 + $0x228] sm:$0xff]  ;;  %v431_v17 = vrot.slane %v397_v7, 2 }
  0x2f   : > { %627 = vmatpush.msrb.mxu2 %v1500_v30  ;;  %779 = vmatpush.msra.mxu3 %v1539_v48  ;;  %v184_v9 = vld [vmem:[%s1789_s16 + $0x60] sm:$0xfe]  ;;  %v400_v13 = vld [vmem:[%s1789_s16 + $0x48] sm:$0xfc]  ;;  %v402_v14 = vld [vmem:[%s1789_s16 + $0x58] sm:$0x3] }
  0x30   : > { %586 = vmatpush.msrb.mxu0 %v1496_v34  ;;  %492 = vmatpush.msrb.mxu1 %v1454_v35  ;;  %v430_v15 = vrot.slane %v395_v6, 2  ;;  %v1613_v18 = vld [vmem:[%s2555_s1 + $0x458] sm:$0xff]  ;;  %v1535_v19 = vld [vmem:[%s2555_s1 + $0x2e8] sm:$0xff]  ;;  %v1490_v20 = vld [vmem:[%s2555_s1 + $0x220] sm:$0xff]  ;;  %v223_v21 = vrot.slane %v184_v9, 1  ;;  %v224_v22 = vrot.slane %v186_v10, 1 }
  0x31   : > { %1445 = vmatmul.msk.f32.gmra.mxu1 %vm254_vm0, %v228_v31  ;;  %628 = vmatpush.msrb.mxu2 %v1499_v37  ;;  %v439_v23 = vrot.slane %v400_v13, 2  ;;  %v440_v24 = vrot.slane %v402_v14, 2  ;;  %v1580_v25 = vld [vmem:[%s2555_s1 + $0x3b0] sm:$0xff]  ;;  %v1534_v26 = vld [vmem:[%s2555_s1 + $0x2e0] sm:$0xff]  ;;  %v1489_v27 = vld [vmem:[%s2555_s1 + $0x218] sm:$0xff] }
  0x32   : > { %587 = vmatpush.msrb.mxu0 %v1495_v40  ;;  %493 = vmatpush.msrb.mxu1 %v1453_v38  ;;  %v432_v28 = vsel %vm423_vm2, %v430_v15, %v431_v17  ;;  %v1612_v29 = vld [vmem:[%s2555_s1 + $0x450] sm:$0xff]  ;;  %v1533_v30 = vld [vmem:[%s2555_s1 + $0x2d8] sm:$0xff]  ;;  %v225_v31 = vsel %vm204_vm1, %v223_v21, %v224_v22  ;;  %v399_v32 = vld [vmem:[%s1789_s16 + $0x40] sm:$0xfc] }
  0x33   : > { %282 = vmatmul.f32.gmra.mxu0 %v213_v41  ;;  %629 = vmatpush.msrb.mxu2 %v1498_v59  ;;  %v401_v33 = vld [vmem:[%s1789_s16 + $0x50] sm:$0x3]  ;;  %v2080_v34 = vld [vmem:[%s1789_s16 + $0x60] sm:$0xff]  ;;  %v441_v35 = vsel %vm423_vm2, %v439_v23, %v440_v24  ;;  %v404_v40 = vld [vmem:[%s1789_s16 + $0x68] sm:$0xfc] }
  0x34   : > { %352 = vmatmul.f32.gmra.mxu2 %v1982_v39  ;;  %494 = vmatpush.msrb.mxu1 %v1452_v42  ;;  %v1532_v37 = vld [vmem:[%s2555_s1 + $0x2d0] sm:$0xff]  ;;  %v406_v41 = vld [vmem:[%s1789_s16 + $0x78] sm:$0x3]  ;;  %v436_v42 = vrot.slane %v399_v32, 2  ;;  %v437_v43 = vrot.slane %v401_v33, 2  ;;  %v1579_v44 = vld [vmem:[%s2555_s1 + $0x3a8] sm:$0xff] }
  0x35   : > { %1470 = vmatmul.msk.f32.vlgmr.msrb.gmra.mxu3 %vm254_vm0, %v429_v45  ;;  %588 = vmatpush.msrb.mxu0 %v1494_v49  ;;  %v1488_v38 = vld [vmem:[%s2555_s1 + $0x210] sm:$0xff]  ;;  %v1531_v45 = vld [vmem:[%s2555_s1 + $0x2c8] sm:$0xff]  ;;  %v445_v47 = vrot.slane %v404_v40, 2  ;;  %v446_v48 = vrot.slane %v406_v41, 2  ;;  %v1530_v50 = vld [vmem:[%s2555_s1 + $0x2c0] sm:$0xff] }
  0x36   : > { %495 = vmatpush.msrb.mxu1 %v1451_v55  ;;  %780 = vmatpush.msra.mxu3 %v1538_v0  ;;  %v1487_v46 = vld [vmem:[%s2555_s1 + $0x208] sm:$0xff]  ;;  %v1486_v51 = vld [vmem:[%s2555_s1 + $0x200] sm:$0xff]  ;;  %v438_v52 = vsel %vm423_vm2, %v436_v42, %v437_v43  ;;  %v1529_v53 = vld [vmem:[%s2555_s1 + $0x2b8] sm:$0xff] }
  0x37   : > { %589 = vmatpush.msrb.mxu0 %v1493_v56  ;;  %928 = vmatpush.msra.mxu2 %v1581_v11  ;;  %v1611_v49 = vld [vmem:[%s2555_s1 + $0x448] sm:$0xff]  ;;  %v1485_v55 = vld [vmem:[%s2555_s1 + $0x1f8] sm:$0xff]  ;;  %v403_v56 = vld [vmem:[%s1789_s16 + $0x60] sm:$0xfc]  ;;  %v447_v58 = vsel %vm423_vm2, %v445_v47, %v446_v48 }
  0x38   : > { %496 = vmatpush.msrb.mxu1 %v1450_v62  ;;  %1032 = vmatpush.msrb.mxu3 %v1613_v18  ;;  %v405_v57 = vld [vmem:[%s1789_s16 + $0x70] sm:$0x3]  ;;  %v1507_v61 = vld [vmem:[%s1789_s16 + $0x28] sm:$0xfe]  ;;  %v1509_v62 = vld [vmem:[%s1789_s16 + $0x38] sm:$0x1] }
  0x39   : > { %590 = vmatpush.msrb.mxu0 %v1492_v63  ;;  %497 = vmatmul.f32.vlgmr.msrb.gmra.mxu1 %v426_v1  ;;  %v1528_v59 = vld [vmem:[%s2555_s1 + $0x2b0] sm:$0xff]  ;;  %v442_v63 = vrot.slane %v403_v56, 2  ;;  %v443_v0 = vrot.slane %v405_v57, 2  ;;  %v1578_v1 = vld [vmem:[%s2555_s1 + $0x3a0] sm:$0xff]  ;;  %v683_v6 = vrot.slane %v1509_v62, 1  ;;  %v1525_v10 = vld [vmem:[%s2555_s1 + $0x298] sm:$0xff] }
  0x3a   : > { %736 = vmatpush.msra.mxu1 %v1537_v2  ;;  %929 = vmatpush.msra.mxu2 %v1580_v25  ;;  %v1484_v60 = vld [vmem:[%s2555_s1 + $0x1f0] sm:$0xff]  ;;  %v1527_v2 = vld [vmem:[%s2555_s1 + $0x2a8] sm:$0xff]  ;;  %v1610_v7 = vld [vmem:[%s2555_s1 + $0x440] sm:$0xff] }
  0x3b   : > { %285 = vmatmul.f32.gmra.mxu0 %v219_v4  ;;  %1033 = vmatpush.msrb.mxu3 %v1612_v29  ;;  %v1483_v4 = vld [vmem:[%s2555_s1 + $0x1e8] sm:$0xff]  ;;  %v444_v9 = vsel %vm423_vm2, %v442_v63, %v443_v0  ;;  %v1577_v11 = vld [vmem:[%s2555_s1 + $0x398] sm:$0xff]  ;;  %v1508_v13 = vld [vmem:[%s1789_s16 + $0x30] sm:$0x1] }
  0x3c   : > { %355 = vmatmul.f32.gmra.mxu2 %v2030_v3  ;;  %737 = vmatpush.msra.mxu1 %v1536_v5  ;;  %v682_v5 = vrot.slane %v1507_v61, 1  ;;  %v1524_v14 = vld [vmem:[%s2555_s1 + $0x290] sm:$0xff]  ;;  %v1511_v18 = vld [vmem:[%s1789_s16 + $0x48] sm:$0xfe]  ;;  %v680_v21 = vrot.slane %v1508_v13, 1  ;;  %v1653_v22 = vld [vmem:[%s2555_s1 + $0x4f8] sm:$0xff] }
  0x3d   : > { %1471 = vmatmul.msk.f32.gmra.mxu3 %vm254_vm0, %v435_v8  ;;  %591 = vmatpush.msrb.mxu0 %v1491_v12  ;;  %v1482_v8 = vld [vmem:[%s2555_s1 + $0x1e0] sm:$0xff]  ;;  %v1576_v17 = vld [vmem:[%s2555_s1 + $0x390] sm:$0xff]  ;;  %v1575_v23 = vld [vmem:[%s2555_s1 + $0x388] sm:$0xff]  ;;  %v688_v24 = vrot.slane %v1511_v18, 1 }
  0x3e   : > { %738 = vmatpush.msra.mxu1 %v1535_v19  ;;  %930 = vmatpush.msra.mxu2 %v1579_v44  ;;  %v1506_v12 = vld [vmem:[%s1789_s16 + $0x20] sm:$0xfe]  ;;  %v684_v15 = vsel %vm204_vm1, %v682_v5, %v683_v6  ;;  %v1513_v19 = vld [vmem:[%s1789_s16 + $0x58] sm:$0x1]  ;;  %v1512_v33 = vld [vmem:[%s1789_s16 + $0x50] sm:$0x1] }
  0x3f   : > { %592 = vmatpush.msrb.mxu0 %v1490_v20  ;;  %1034 = vmatpush.msrb.mxu3 %v1611_v49  ;;  %v679_v20 = vrot.slane %v1506_v12, 1  ;;  %v689_v25 = vrot.slane %v1513_v19, 1  ;;  %v1510_v32 = vld [vmem:[%s1789_s16 + $0x40] sm:$0xfe]  ;;  %v1515_v40 = vld [vmem:[%s1789_s16 + $0x68] sm:$0xfe] }
  0x40   : > { %739 = vmatpush.msra.mxu1 %v1534_v26  ;;  %931 = vmatpush.msra.mxu2 %v1578_v1  ;;  %v1693_v26 = vld [vmem:[%s2555_s1 + $0x598] sm:$0xff]  ;;  %v685_v42 = vrot.slane %v1510_v32, 1  ;;  %v686_v43 = vrot.slane %v1512_v33, 1  ;;  %v1652_v44 = vld [vmem:[%s2555_s1 + $0x4f0] sm:$0xff]  ;;  %v694_v47 = vrot.slane %v1515_v40, 1  ;;  %v2238_v56 = vld [vmem:[%s1789_s16 + $0x88] sm:$0xff] }
  0x41   : > { %593 = vmatpush.msrb.mxu0 %v1489_v27  ;;  %500 = vmatmul.f32.gmra.mxu1 %v432_v28  ;;  %v1522_v27 = vld [vmem:[%s2555_s1 + $0x280] sm:$0xff]  ;;  %v681_v29 = vsel %vm204_vm1, %v679_v20, %v680_v21  ;;  %v1517_v41 = vld [vmem:[%s1789_s16 + $0x78] sm:$0x1]  ;;  %v1692_v49 = vld [vmem:[%s2555_s1 + $0x590] sm:$0xff] }
  0x42   : > { %740 = vmatpush.msra.mxu1 %v1533_v30  ;;  %1035 = vmatpush.msrb.mxu3 %v1610_v7  ;;  %v1574_v28 = vld [vmem:[%s2555_s1 + $0x380] sm:$0xff]  ;;  %v1609_v30 = vld [vmem:[%s2555_s1 + $0x438] sm:$0xff]  ;;  %v695_v48 = vrot.slane %v1517_v41, 1  ;;  %v1568_v61 = vld [vmem:[%s2555_s1 + $0x350] sm:$0xff] }
  0x43   : > { %288 = vmatmul.f32.gmra.mxu0 %v225_v31  ;;  %v1573_v31 = vld [vmem:[%s2555_s1 + $0x378] sm:$0xff]  ;;  %v1514_v57 = vld [vmem:[%s1789_s16 + $0x60] sm:$0xfe]  ;;  %v1519_v62 = vld [vmem:[%s1789_s16 + $0x88] sm:$0xfe] }
  0x44   : > { %358 = vmatmul.f32.gmra.mxu2 %v2080_v34  ;;  %741 = vmatpush.msra.mxu1 %v1532_v37  ;;  %v1608_v37 = vld [vmem:[%s2555_s1 + $0x430] sm:$0xff]  ;;  %v1521_v63 = vld [vmem:[%s1789_s16 + $0x98] sm:$0x1]  ;;  %v1547_v0 = vld [vmem:[%s1789_s16 + $0x28] sm:$0xfc] }
  0x45   : > { %1472 = vmatmul.msk.f32.gmra.mxu3 %vm254_vm0, %v441_v35  ;;  %594 = vmatpush.msrb.mxu0 %v1488_v38  ;;  %v690_v35 = vsel %vm204_vm1, %v688_v24, %v689_v25  ;;  %v1572_v38 = vld [vmem:[%s2555_s1 + $0x370] sm:$0xff]  ;;  %v1549_v1 = vld [vmem:[%s1789_s16 + $0x38] sm:$0x3]  ;;  %v1651_v5 = vld [vmem:[%s2555_s1 + $0x4e8] sm:$0xff] }
  0x46   : > { %742 = vmatpush.msra.mxu1 %v1531_v45  ;;  %v1607_v45 = vld [vmem:[%s2555_s1 + $0x428] sm:$0xff]  ;;  %v1602_v12 = vld [vmem:[%s2555_s1 + $0x400] sm:$0xff]  ;;  %v1565_v18 = vld [vmem:[%s2555_s1 + $0x338] sm:$0xff] }
  0x47   : > { %595 = vmatpush.msrb.mxu0 %v1487_v46  ;;  %v1571_v46 = vld [vmem:[%s2555_s1 + $0x368] sm:$0xff]  ;;  %v1566_v13 = vld [vmem:[%s2555_s1 + $0x340] sm:$0xff]  ;;  %v1520_v20 = vld [vmem:[%s1789_s16 + $0x90] sm:$0x1] }
  0x48   : > { %743 = vmatpush.msra.mxu1 %v1530_v50  ;;  %v1606_v50 = vld [vmem:[%s2555_s1 + $0x420] sm:$0xff]  ;;  %v1603_v6 = vld [vmem:[%s2555_s1 + $0x408] sm:$0xff]  ;;  %v1600_v24 = vld [vmem:[%s2555_s1 + $0x3f0] sm:$0xff] }
  0x49   : > { %596 = vmatpush.msrb.mxu0 %v1486_v51  ;;  %503 = vmatmul.f32.gmra.mxu1 %v438_v52  ;;  %v1570_v51 = vld [vmem:[%s2555_s1 + $0x360] sm:$0xff]  ;;  %v687_v52 = vsel %vm204_vm1, %v685_v42, %v686_v43  ;;  %v1567_v7 = vld [vmem:[%s2555_s1 + $0x348] sm:$0xff]  ;;  %v1564_v25 = vld [vmem:[%s2555_s1 + $0x330] sm:$0xff] }
  0x4a   : > { %744 = vmatpush.msra.mxu1 %v1529_v53  ;;  %v1605_v53 = vld [vmem:[%s2555_s1 + $0x418] sm:$0xff]  ;;  %v1518_v19 = vld [vmem:[%s1789_s16 + $0x80] sm:$0xfe]  ;;  %v1599_v33 = vld [vmem:[%s2555_s1 + $0x3e8] sm:$0xff] }
  0x4b   : > { %597 = vmatpush.msrb.mxu0 %v1485_v55  ;;  %v1569_v55 = vld [vmem:[%s2555_s1 + $0x358] sm:$0xff]  ;;  %v1546_v21 = vld [vmem:[%s1789_s16 + $0x20] sm:$0xfc] }
  0x4c   : > { %1502 = vmatmul.msk.f32.vlgmr.msrb.gmra.mxu2 %vm254_vm0, %v1842_v36  ;;  %745 = vmatpush.msra.mxu1 %v1528_v59  ;;  %v1526_v36 = vld [vmem:[%s2555_s1 + $0x2a0] sm:$0xff]  ;;  %v696_v59 = vsel %vm204_vm1, %v694_v47, %v695_v48  ;;  %v1552_v48 = vld [vmem:[%s1789_s16 + $0x50] sm:$0x3] }
  0x4d   : > { %1473 = vmatmul.msk.f32.gmra.mxu3 %vm254_vm0, %v447_v58  ;;  %598 = vmatpush.msrb.mxu0 %v1484_v60  ;;  %v1516_v58 = vld [vmem:[%s1789_s16 + $0x70] sm:$0x1]  ;;  %v1650_v32 = vld [vmem:[%s2555_s1 + $0x4e0] sm:$0xff] }
  0x4e   : > { %746 = vmatpush.msra.mxu1 %v1527_v2  ;;  %1183 = vmatpush.msrb.mxu2 %v1653_v22  ;;  %v1604_v60 = vld [vmem:[%s2555_s1 + $0x410] sm:$0xff]  ;;  %v691_v2 = vrot.slane %v1514_v57, 1  ;;  %v1690_v40 = vld [vmem:[%s2555_s1 + $0x580] sm:$0xff]  ;;  %v837_v57 = vrot.slane %v1552_v48, 2 }
  0x4f   : > { %599 = vmatpush.msrb.mxu0 %v1483_v4  ;;  %v692_v4 = vrot.slane %v1516_v58, 1  ;;  %v1548_v22 = vld [vmem:[%s1789_s16 + $0x30] sm:$0x3]  ;;  %v1598_v41 = vld [vmem:[%s2555_s1 + $0x3e0] sm:$0xff]  ;;  %v1595_v58 = vld [vmem:[%s2555_s1 + $0x3c8] sm:$0xff] }
  0x50   : > { %747 = vmatpush.msra.mxu1 %v1526_v36  ;;  %1184 = vmatpush.msrb.mxu2 %v1652_v44  ;;  %v700_v36 = vrot.slane %v1519_v62, 1  ;;  %v1562_v42 = vld [vmem:[%s2555_s1 + $0x320] sm:$0xff] }
  0x51   : > { %600 = vmatpush.msrb.mxu0 %v1482_v8  ;;  %506 = vmatmul.f32.gmra.mxu1 %v444_v9  ;;  %v701_v8 = vrot.slane %v1521_v63, 1  ;;  %v833_v9 = vrot.slane %v1547_v0, 2  ;;  %v1550_v47 = vld [vmem:[%s1789_s16 + $0x40] sm:$0xfc]  ;;  %v1689_v0 = vld [vmem:[%s2555_s1 + $0x578] sm:$0xff] }
  0x52   : > { %601 = vmatmul.f32.vlgmr.msrb.gmra.mxu0 %v1982_v39  ;;  %748 = vmatpush.msra.mxu1 %v1525_v10  ;;  %v1523_v39 = vld [vmem:[%s2555_s1 + $0x288] sm:$0xff]  ;;  %v834_v10 = vrot.slane %v1549_v1, 2  ;;  %v1594_v62 = vld [vmem:[%s2555_s1 + $0x3c0] sm:$0xff]  ;;  %v1645_v1 = vld [vmem:[%s2555_s1 + $0x4b8] sm:$0xff] }
  0x53   : > { %887 = vmatpush.msra.mxu0 %v1577_v11  ;;  %v1691_v11 = vld [vmem:[%s2555_s1 + $0x588] sm:$0xff]  ;;  %1185 = vmatpush.msrb.mxu2 %v1651_v5 }
  0x54   : > { %1503 = vmatmul.msk.f32.gmra.mxu2 %vm254_vm0, %v1887_v54  ;;  %749 = vmatpush.msra.mxu1 %v1524_v14  ;;  %v2276_v14 = vld [vmem:[%s1789_s16 + $0x80] sm:$0xff] }
  0x55   : > { %1542 = vmatmul.msk.f32.vlgmr.msra.gmra.mxu3 %vm254_vm0, %v684_v15  ;;  %888 = vmatpush.msra.mxu0 %v1576_v17  ;;  %v693_v15 = vsel %vm204_vm1, %v691_v2, %v692_v4  ;;  %v1601_v17 = vld [vmem:[%s2555_s1 + $0x3f8] sm:$0xff]  ;;  %v1554_v2 = vld [vmem:[%s1789_s16 + $0x60] sm:$0xfc]  ;;  %v1556_v4 = vld [vmem:[%s1789_s16 + $0x70] sm:$0x3] }
  0x56   : > { %1334 = vmatpush.msra.mxu3 %v1693_v26  ;;  %750 = vmatpush.msra.mxu1 %v1523_v39  ;;  %v702_v39 = vsel %vm204_vm1, %v700_v36, %v701_v8  ;;  %v1551_v26 = vld [vmem:[%s1789_s16 + $0x48] sm:$0xfc]  ;;  %v1561_v8 = vld [vmem:[%s1789_s16 + $0x98] sm:$0x3] }
  0x57   : > { %889 = vmatpush.msra.mxu0 %v1575_v23  ;;  %v835_v23 = vsel %vm423_vm2, %v833_v9, %v834_v10  ;;  %1186 = vmatpush.msrb.mxu2 %v1650_v32  ;;  %v1559_v36 = vld [vmem:[%s1789_s16 + $0x88] sm:$0xfc]  ;;  %v842_v9 = vrot.slane %v1554_v2, 2  ;;  %v843_v10 = vrot.slane %v1556_v4, 2  ;;  %v1676_v2 = vld [vmem:[%s2555_s1 + $0x510] sm:$0xff] }
  0x58   : > { %751 = vmatpush.msra.mxu1 %v1522_v27  ;;  %1335 = vmatpush.msra.mxu3 %v1692_v49  ;;  %v1553_v27 = vld [vmem:[%s1789_s16 + $0x58] sm:$0x3] }
  0x59   : > { %890 = vmatpush.msra.mxu0 %v1574_v28  ;;  %752 = vmatmul.f32.vlgmr.msra.gmra.mxu1 %v681_v29  ;;  %v697_v28 = vrot.slane %v1518_v19, 1  ;;  %v698_v29 = vrot.slane %v1520_v20, 1  ;;  %v1641_v19 = vld [vmem:[%s2555_s1 + $0x498] sm:$0xff]  ;;  %v1558_v20 = vld [vmem:[%s1789_s16 + $0x80] sm:$0xfc] }
  0x5a   : > { %604 = vmatmul.f32.gmra.mxu0 %v2030_v3  ;;  %991 = vmatpush.msrb.mxu1 %v1609_v30  ;;  %v830_v30 = vrot.slane %v1546_v21, 2  ;;  %v1560_v21 = vld [vmem:[%s1789_s16 + $0x90] sm:$0x3] }
  0x5b   : > { %891 = vmatpush.msra.mxu0 %v1573_v31  ;;  %1336 = vmatpush.msra.mxu3 %v1691_v11  ;;  %v831_v31 = vrot.slane %v1548_v22, 2  ;;  %v699_v43 = vsel %vm204_vm1, %v697_v28, %v698_v29  ;;  %v1643_v11 = vld [vmem:[%s2555_s1 + $0x4a8] sm:$0xff] }
  0x5c   : > { %1504 = vmatmul.msk.f32.gmra.mxu2 %vm254_vm0, %v1942_v16  ;;  %992 = vmatpush.msrb.mxu1 %v1608_v37  ;;  %v839_v37 = vrot.slane %v1551_v26, 2  ;;  %v848_v26 = vrot.slane %v1558_v20, 2  ;;  %v1639_v28 = vld [vmem:[%s2555_s1 + $0x488] sm:$0xff] }
  0x5d   : > { %1543 = vmatmul.msk.f32.gmra.mxu3 %vm254_vm0, %v690_v35  ;;  %892 = vmatpush.msra.mxu0 %v1572_v38  ;;  %v1563_v35 = vld [vmem:[%s2555_s1 + $0x328] sm:$0xff]  ;;  %v840_v38 = vrot.slane %v1553_v27, 2  ;;  %v832_v44 = vsel %vm423_vm2, %v830_v30, %v831_v31  ;;  %v849_v27 = vrot.slane %v1560_v21, 2  ;;  %v1682_v31 = vld [vmem:[%s2555_s1 + $0x540] sm:$0xff] }
  0x5e   : > { %993 = vmatpush.msrb.mxu1 %v1607_v45  ;;  %1337 = vmatpush.msra.mxu3 %v1690_v40  ;;  %v1597_v45 = vld [vmem:[%s2555_s1 + $0x3d8] sm:$0xff]  ;;  %v1620_v40 = vld [vmem:[%s1789_s16 + $0x50] sm:$0x1] }
  0x5f   : > { %893 = vmatpush.msra.mxu0 %v1571_v46  ;;  %v1649_v46 = vld [vmem:[%s2555_s1 + $0x4d8] sm:$0xff]  ;;  %v841_v49 = vsel %vm423_vm2, %v839_v37, %v840_v38  ;;  %v850_v32 = vsel %vm423_vm2, %v848_v26, %v849_v27  ;;  %v1593_v37 = vld [vmem:[%s1789_s16 + $0xa8] sm:$0xff]  ;;  %v1618_v38 = vld [vmem:[%s1789_s16 + $0x40] sm:$0xfe] }
  0x60   : > { %994 = vmatpush.msrb.mxu1 %v1606_v50  ;;  %v1596_v50 = vld [vmem:[%s2555_s1 + $0x3d0] sm:$0xff]  ;;  %v1085_v48 = vrot.slane %v1618_v38, 1  ;;  %v1631_v27 = vld [vmem:[%s1789_s16 + $0xa8] sm:$0xfe] }
  0x61   : > { %894 = vmatpush.msra.mxu0 %v1570_v51  ;;  %755 = vmatmul.f32.gmra.mxu1 %v687_v52  ;;  %v1648_v51 = vld [vmem:[%s2555_s1 + $0x4d0] sm:$0xff]  ;;  %v1555_v52 = vld [vmem:[%s1789_s16 + $0x68] sm:$0xfc] }
  0x62   : > { %607 = vmatmul.f32.gmra.mxu0 %v2080_v34  ;;  %995 = vmatpush.msrb.mxu1 %v1605_v53  ;;  %v1557_v53 = vld [vmem:[%s1789_s16 + $0x78] sm:$0x3] }
  0x63   : > { %895 = vmatpush.msra.mxu0 %v1569_v55  ;;  %v836_v55 = vrot.slane %v1550_v47, 2  ;;  %v1661_v47 = vld [vmem:[%s1789_s16 + $0x58] sm:$0x3] }
  0x64   : > { %1505 = vmatmul.msk.f32.gmra.mxu2 %vm254_vm0, %v2238_v56  ;;  %996 = vmatpush.msrb.mxu1 %v1604_v60  ;;  %v845_v60 = vrot.slane %v1555_v52, 2 }
  0x65   : > { %1544 = vmatmul.msk.f32.gmra.mxu3 %vm254_vm0, %v696_v59  ;;  %896 = vmatpush.msra.mxu0 %v1568_v61  ;;  %v1647_v59 = vld [vmem:[%s2555_s1 + $0x4c8] sm:$0xff]  ;;  %v846_v61 = vrot.slane %v1557_v53, 2  ;;  %v838_v63 = vsel %vm423_vm2, %v836_v55, %v837_v57  ;;  %v1240_v55 = vrot.slane %v1661_v47, 2  ;;  %v1678_v57 = vld [vmem:[%s2555_s1 + $0x520] sm:$0xff]  ;;  %v1668_v47 = vld [vmem:[%s1789_s16 + $0x90] sm:$0x3] }
  0x66   : > { %997 = vmatpush.msrb.mxu1 %v1603_v6  ;;  %v1688_v6 = vld [vmem:[%s2555_s1 + $0x570] sm:$0xff] }
  0x67   : > { %897 = vmatpush.msra.mxu0 %v1567_v7  ;;  %v847_v5 = vsel %vm423_vm2, %v845_v60, %v846_v61  ;;  %v1644_v7 = vld [vmem:[%s2555_s1 + $0x4b0] sm:$0xff]  ;;  %v1677_v61 = vld [vmem:[%s2555_s1 + $0x518] sm:$0xff] }
  0x68   : > { %998 = vmatpush.msrb.mxu1 %v1602_v12  ;;  %v851_v12 = vrot.slane %v1559_v36, 2  ;;  %v1665_v36 = vld [vmem:[%s1789_s16 + $0x78] sm:$0x3] }
  0x69   : > { %898 = vmatpush.msra.mxu0 %v1566_v13  ;;  %758 = vmatmul.f32.gmra.mxu1 %v693_v15  ;;  %v852_v13 = vrot.slane %v1561_v8, 2  ;;  %v1686_v15 = vld [vmem:[%s2555_s1 + $0x560] sm:$0xff] }
  0x6a   : > { %610 = vmatmul.f32.gmra.mxu0 %v2276_v14  ;;  %999 = vmatpush.msrb.mxu1 %v1601_v17  ;;  %v844_v17 = vsel %vm423_vm2, %v842_v9, %v843_v10 }
  0x6b   : > { %899 = vmatpush.msra.mxu0 %v1565_v18  ;;  %v1685_v18 = vld [vmem:[%s2555_s1 + $0x558] sm:$0xff]  ;;  %v853_v22 = vsel %vm423_vm2, %v851_v12, %v852_v13 }
  0x6c   : > { %1582 = vmatmul.msk.f32.vlgmr.msra.gmra.mxu2 %vm254_vm0, %v835_v23  ;;  %1000 = vmatpush.msrb.mxu1 %v1600_v24  ;;  %v1640_v23 = vld [vmem:[%s2555_s1 + $0x490] sm:$0xff]  ;;  %v1619_v24 = vld [vmem:[%s1789_s16 + $0x48] sm:$0xfe] }
  0x6d   : > { %1545 = vmatmul.msk.f32.gmra.mxu3 %vm254_vm0, %v702_v39  ;;  %900 = vmatpush.msra.mxu0 %v1564_v25  ;;  %v1684_v39 = vld [vmem:[%s2555_s1 + $0x550] sm:$0xff]  ;;  %v1621_v25 = vld [vmem:[%s1789_s16 + $0x58] sm:$0x1]  ;;  %v1088_v29 = vrot.slane %v1619_v24, 1 }
  0x6e   : > { %1001 = vmatpush.msrb.mxu1 %v1599_v33  ;;  %v1089_v30 = vrot.slane %v1621_v25, 1  ;;  %v1681_v33 = vld [vmem:[%s2555_s1 + $0x538] sm:$0xff]  ;;  %v1664_v24 = vld [vmem:[%s1789_s16 + $0x70] sm:$0x3] }
  0x6f   : > { %901 = vmatpush.msra.mxu0 %v1563_v35  ;;  %v1637_v35 = vld [vmem:[%s2555_s1 + $0x478] sm:$0xff] }
  0x70   : > { %1002 = vmatpush.msrb.mxu1 %v1598_v41  ;;  %v1090_v41 = vsel %vm204_vm1, %v1088_v29, %v1089_v30  ;;  %v1669_v29 = vld [vmem:[%s1789_s16 + $0x98] sm:$0x3] }
  0x71   : > { %902 = vmatpush.msra.mxu0 %v1562_v42  ;;  %761 = vmatmul.f32.gmra.mxu1 %v699_v43  ;;  %v1680_v42 = vld [vmem:[%s2555_s1 + $0x530] sm:$0xff] }
  0x72   : > { %903 = vmatmul.f32.vlgmr.msra.gmra.mxu0 %v832_v44  ;;  %1003 = vmatpush.msrb.mxu1 %v1597_v45  ;;  %v1636_v43 = vld [vmem:[%s2555_s1 + $0x470] sm:$0xff]  ;;  %v1623_v44 = vld [vmem:[%s1789_s16 + $0x68] sm:$0xfe]  ;;  %v1625_v45 = vld [vmem:[%s1789_s16 + $0x78] sm:$0x1] }
  0x73   : > { %1142 = vmatpush.msrb.mxu0 %v1649_v46  ;;  %v1659_v46 = vld [vmem:[%s1789_s16 + $0x48] sm:$0xfc]  ;;  %v1095_v52 = vrot.slane %v1625_v45, 1  ;;  %v1632_v45 = vld [vmem:[%s1789_s16 + $0xb0] sm:$0x1] }
  0x74   : > { %1583 = vmatmul.msk.f32.gmra.mxu2 %vm254_vm0, %v841_v49  ;;  %1004 = vmatpush.msrb.mxu1 %v1596_v50  ;;  %v1086_v49 = vrot.slane %v1620_v40, 1  ;;  %v1679_v50 = vld [vmem:[%s2555_s1 + $0x528] sm:$0xff]  ;;  %v1239_v53 = vrot.slane %v1659_v46, 2  ;;  %v1252_v40 = vrot.slane %v1669_v29, 2  ;;  %v1666_v46 = vld [vmem:[%s1789_s16 + $0x80] sm:$0xfc] }
  0x75   : > { %1614 = vmatmul.msk.f32.vlgmr.msrb.gmra.mxu3 %vm254_vm0, %v1887_v54  ;;  %1143 = vmatpush.msrb.mxu0 %v1648_v51  ;;  %v1646_v54 = vld [vmem:[%s2555_s1 + $0x4c0] sm:$0xff]  ;;  %v1094_v51 = vrot.slane %v1623_v44, 1 }
  0x76   : > { %1005 = vmatpush.msrb.mxu1 %v1595_v58  ;;  %v1634_v58 = vld [vmem:[%s2555_s1 + $0x460] sm:$0xff]  ;;  %v1087_v60 = vsel %vm204_vm1, %v1085_v48, %v1086_v49  ;;  %v1241_v4 = vsel %vm423_vm2, %v1239_v53, %v1240_v55  ;;  %v1248_v53 = vrot.slane %v1666_v46, 2  ;;  %v1249_v55 = vrot.slane %v1668_v47, 2 }
  0x77   : > { %1144 = vmatpush.msrb.mxu0 %v1647_v59  ;;  %v1592_v59 = vld [vmem:[%s1789_s16 + $0xa0] sm:$0xff] }
  0x78   : > { %1006 = vmatpush.msrb.mxu1 %v1594_v62  ;;  %v1622_v62 = vld [vmem:[%s1789_s16 + $0x60] sm:$0xfe] }
  0x79   : > { %1145 = vmatpush.msrb.mxu0 %v1646_v54  ;;  %1007 = vmatmul.f32.vlgmr.msrb.gmra.mxu1 %v2030_v3  ;;  %v1687_v3 = vld [vmem:[%s2555_s1 + $0x568] sm:$0xff]  ;;  %v1624_v54 = vld [vmem:[%s1789_s16 + $0x70] sm:$0x1]  ;;  %v1091_v8 = vrot.slane %v1622_v62, 1  ;;  %v1630_v44 = vld [vmem:[%s1789_s16 + $0xa0] sm:$0xfe]  ;;  %v1250_v62 = vsel %vm423_vm2, %v1248_v53, %v1249_v55 }
  0x7a   : > { %906 = vmatmul.f32.gmra.mxu0 %v838_v63  ;;  %1293 = vmatpush.msra.mxu1 %v1689_v0  ;;  %v1658_v63 = vld [vmem:[%s1789_s16 + $0x40] sm:$0xfc]  ;;  %v1660_v0 = vld [vmem:[%s1789_s16 + $0x50] sm:$0x3]  ;;  %v1092_v9 = vrot.slane %v1624_v54, 1 }
  0x7b   : > { %1146 = vmatpush.msrb.mxu0 %v1645_v1  ;;  %v1096_v1 = vsel %vm204_vm1, %v1094_v51, %v1095_v52  ;;  %v1236_v10 = vrot.slane %v1658_v63, 2  ;;  %v1103_v51 = vrot.slane %v1630_v44, 1  ;;  %v1104_v52 = vrot.slane %v1632_v45, 1  ;;  %v1670_v63 = vld [vmem:[%s1789_s16 + $0xa0] sm:$0xfc] }
  0x7c   : > { %1584 = vmatmul.msk.f32.gmra.mxu2 %vm254_vm0, %v847_v5  ;;  %1294 = vmatpush.msra.mxu1 %v1688_v6  ;;  %v1627_v5 = vld [vmem:[%s1789_s16 + $0x88] sm:$0xfe]  ;;  %v1629_v6 = vld [vmem:[%s1789_s16 + $0x98] sm:$0x1]  ;;  %v1093_v20 = vsel %vm204_vm1, %v1091_v8, %v1092_v9 }
  0x7d   : > { %1615 = vmatmul.msk.f32.gmra.mxu3 %vm254_vm0, %v1942_v16  ;;  %1147 = vmatpush.msrb.mxu0 %v1644_v7  ;;  %v1642_v16 = vld [vmem:[%s2555_s1 + $0x4a0] sm:$0xff]  ;;  %v1663_v7 = vld [vmem:[%s1789_s16 + $0x68] sm:$0xfc]  ;;  %v1100_v13 = vrot.slane %v1627_v5, 1 }
  0x7e   : > { %1295 = vmatpush.msra.mxu1 %v1687_v3  ;;  %v1237_v3 = vrot.slane %v1660_v0, 2  ;;  %v1672_v0 = vld [vmem:[%s1789_s16 + $0xb0] sm:$0x3] }
  0x7f   : > { %1148 = vmatpush.msrb.mxu0 %v1643_v11  ;;  %v1675_v11 = vld [vmem:[%s2555_s1 + $0x508] sm:$0xff]  ;;  %v1255_v5 = vrot.slane %v1672_v0, 2 }
  0x80   : > { %1296 = vmatpush.msra.mxu1 %v1686_v15  ;;  %v1101_v15 = vrot.slane %v1629_v6, 1  ;;  %v1238_v21 = vsel %vm423_vm2, %v1236_v10, %v1237_v3 }
  0x81   : > { %1149 = vmatpush.msrb.mxu0 %v1642_v16  ;;  %1010 = vmatmul.f32.gmra.mxu1 %v2080_v34  ;;  %v1683_v34 = vld [vmem:[%s2555_s1 + $0x548] sm:$0xff]  ;;  %v1245_v16 = vrot.slane %v1663_v7, 2 }
  0x82   : > { %909 = vmatmul.f32.gmra.mxu0 %v844_v17  ;;  %1297 = vmatpush.msra.mxu1 %v1685_v18  ;;  %v1246_v17 = vrot.slane %v1665_v36, 2  ;;  %v1674_v18 = vld [vmem:[%s2555_s1 + $0x500] sm:$0xff]  ;;  %v1102_v25 = vsel %vm204_vm1, %v1100_v13, %v1101_v15 }
  0x83   : > { %1150 = vmatpush.msrb.mxu0 %v1641_v19 }
  0x84   : > { %1585 = vmatmul.msk.f32.gmra.mxu2 %vm254_vm0, %v853_v22  ;;  %1298 = vmatpush.msra.mxu1 %v1684_v39  ;;  %v1626_v22 = vld [vmem:[%s1789_s16 + $0x80] sm:$0xfe]  ;;  %v1628_v39 = vld [vmem:[%s1789_s16 + $0x90] sm:$0x1]  ;;  %v1247_v26 = vsel %vm423_vm2, %v1245_v16, %v1246_v17 }
  0x85   : > { %1616 = vmatmul.msk.f32.gmra.mxu3 %vm254_vm0, %v2238_v56  ;;  %1151 = vmatpush.msrb.mxu0 %v1640_v23  ;;  %v1638_v56 = vld [vmem:[%s2555_s1 + $0x480] sm:$0xff]  ;;  %v1097_v30 = vrot.slane %v1626_v22, 1 }
  0x86   : > { %1299 = vmatpush.msra.mxu1 %v1683_v34  ;;  %v1662_v23 = vld [vmem:[%s1789_s16 + $0x60] sm:$0xfc]  ;;  %v1633_v34 = vld [vmem:[%s1789_s16 + $0xb8] sm:$0x1] }
  0x87   : > { %1152 = vmatpush.msrb.mxu0 %v1639_v28  ;;  %v1667_v28 = vld [vmem:[%s1789_s16 + $0x88] sm:$0xfc] }
  0x88   : > { %1300 = vmatpush.msra.mxu1 %v1682_v31  ;;  %v1098_v31 = vrot.slane %v1628_v39, 1  ;;  %v1251_v38 = vrot.slane %v1667_v28, 2 }
  0x89   : > { %1153 = vmatpush.msrb.mxu0 %v1638_v56  ;;  %1013 = vmatmul.f32.gmra.mxu1 %v2276_v14  ;;  %v1635_v14 = vld [vmem:[%s2555_s1 + $0x468] sm:$0xff]  ;;  %v1242_v56 = vrot.slane %v1662_v23, 2 }
  0x8a   : > { %912 = vmatmul.f32.gmra.mxu0 %v850_v32  ;;  %1301 = vmatpush.msra.mxu1 %v1681_v33  ;;  %v1243_v32 = vrot.slane %v1664_v24, 2  ;;  %v1253_v49 = vsel %vm423_vm2, %v1251_v38, %v1252_v40 }
  0x8b   : > { %1154 = vmatpush.msrb.mxu0 %v1637_v35  ;;  %v1106_v35 = vrot.slane %v1631_v27, 1 }
  0x8c   : > { %1654 = vmatmul.msk.f32.vlgmr.msrb.gmra.mxu2 %vm254_vm0, %v1090_v41  ;;  %1302 = vmatpush.msra.mxu1 %v1680_v42  ;;  %v1099_v42 = vsel %vm204_vm1, %v1097_v30, %v1098_v31 }
  0x8d   : > { %1617 = vmatmul.msk.f32.gmra.mxu3 %vm254_vm0, %v1593_v37  ;;  %1155 = vmatpush.msrb.mxu0 %v1636_v43  ;;  %v1107_v37 = vrot.slane %v1633_v34, 1  ;;  %v1244_v43 = vsel %vm423_vm2, %v1242_v56, %v1243_v32 }
  0x8e   : > { %1303 = vmatpush.msra.mxu1 %v1679_v50  ;;  %v1671_v50 = vld [vmem:[%s1789_s16 + $0xa8] sm:$0xfc] }
  0x8f   : > { %1156 = vmatpush.msrb.mxu0 %v1635_v14  ;;  %v1108_v48 = vsel %vm204_vm1, %v1106_v35, %v1107_v37  ;;  %v1673_v14 = vld [vmem:[%s1789_s16 + $0xb8] sm:$0x3]  ;;  %s1700_s16 = sshll.u32 %s2558_s10, 5 }
  0x90   : > { %1304 = vmatpush.msra.mxu1 %v1678_v57  ;;  %s2539_s26 = scalar_lea.vmem %s2556_s2, %s1700_s16 }
  0x91   : > { %1157 = vmatpush.msrb.mxu0 %v1634_v58  ;;  %1016 = vmatmul.f32.gmra.mxu1 %v1592_v59  ;;  %v1257_v58 = vrot.slane %v1671_v50, 2  ;;  %v1258_v59 = vrot.slane %v1673_v14, 2 }
  0x92   : > { %1158 = vmatmul.f32.vlgmr.msrb.gmra.mxu0 %v1087_v60  ;;  %1305 = vmatpush.msra.mxu1 %v1677_v61  ;;  %v1105_v61 = vsel %vm204_vm1, %v1103_v51, %v1104_v52 }
  0x94   : > { %1655 = vmatmul.msk.f32.gmra.mxu2 %vm254_vm0, %v1096_v1  ;;  %1306 = vmatpush.msra.mxu1 %v1676_v2  ;;  %v1259_v2 = vsel %vm423_vm2, %v1257_v58, %v1258_v59 }
  0x95   : > { %1694 = vmatmul.msk.f32.vlgmr.msra.gmra.mxu3 %vm254_vm0, %v1241_v4  ;;  %v2481_v12 = vpop.f32.mrf.mxu1  ;;  %v1254_v4 = vrot.slane %v1670_v63, 2 }
  0x96   : > { %1307 = vmatpush.msra.mxu1 %v1675_v11 }
  0x97   : > { %v1256_v8 = vsel %vm423_vm2, %v1254_v4, %v1255_v5 }
  0x98   : > { %v2486_v19 = vpop.f32.mrf.mxu3  ;;  %1308 = vmatpush.msra.mxu1 %v1674_v18 }
  0x99   : > { %1309 = vmatmul.f32.vlgmr.msra.gmra.mxu1 %v1238_v21 }
  0x9a   : > { %1161 = vmatmul.f32.gmra.mxu0 %v1093_v20 }
  0x9c   : > { %1656 = vmatmul.msk.f32.gmra.mxu2 %vm254_vm0, %v1102_v25 }
  0x9d   : > { %1695 = vmatmul.msk.f32.gmra.mxu3 %vm254_vm0, %v1247_v26 }
  0x9e   : > { %v312_v33 = vpop.f32.mrf.mxu1 }
  0xa0   : > { %v382_v41 = vpop.f32.mrf.mxu3 }
  0xa1   : > { %1312 = vmatmul.f32.gmra.mxu1 %v1244_v43 }
  0xa2   : > { %1164 = vmatmul.f32.gmra.mxu0 %v1099_v42 }
  0xa4   : > { %1657 = vmatmul.msk.f32.gmra.mxu2 %vm254_vm0, %v1108_v48 }
  0xa5   : > { %1696 = vmatmul.msk.f32.gmra.mxu3 %vm254_vm0, %v1253_v49 }
  0xa6   : > { %v315_v57 = vpop.f32.mrf.mxu1 }
  0xa8   : > { %v385_v60 = vpop.f32.mrf.mxu3  ;;  %v280_v54 = vpop.f32.mrf.mxu0 }
  0xa9   : > { %v310_v1 = vadd.f32 %v2481_v12, %v280_v54  ;;  %1315 = vmatmul.f32.gmra.mxu1 %v1250_v62 }
  0xaa   : > { %1167 = vmatmul.f32.gmra.mxu0 %v1105_v61 }
  0xad   : > { %1697 = vmatmul.msk.f32.gmra.mxu3 %vm254_vm0, %v1259_v2 }
  0xae   : > { %v318_v6 = vpop.f32.mrf.mxu1 }
  0xaf   : > { %v350_v7 = vpop.f32.mrf.mxu2 }
  0xb0   : > { %v388_v36 = vpop.f32.mrf.mxu3  ;;  %v351_v9 = vadd.f32 %v350_v7, %v310_v1  ;;  %v283_v10 = vpop.f32.mrf.mxu0 }
  0xb1   : > { %v313_v3 = vadd.f32 %v312_v33, %v283_v10  ;;  %1318 = vmatmul.f32.gmra.mxu1 %v1256_v8 }
  0xb2   : > { %v380_v11 = vadd.f32 %v2486_v19, %v351_v9 }
  0xb6   : > { %v498_v13 = vpop.f32.mrf.mxu1 }
  0xb7   : > { %v353_v12 = vpop.f32.mrf.mxu2 }
  0xb8   : > { %v354_v15 = vadd.f32 %v353_v12, %v313_v3  ;;  %v527_v16 = vpop.f32.mrf.mxu3  ;;  %v286_v17 = vpop.f32.mrf.mxu0 }
  0xb9   : > { %v528_v18 = vadd.f32 %v527_v16, %v498_v13  ;;  %v316_v20 = vadd.f32 %v315_v57, %v286_v17 }
  0xba   : > { %v383_v21 = vadd.f32 %v382_v41, %v354_v15 }
  0xbb   : > { %v539_v22 = vadd.f32 %v528_v18, %v380_v11 }
  0xbe   : > { %v501_v23 = vpop.f32.mrf.mxu1 }
  0xbf   : > { %v356_v39 = vpop.f32.mrf.mxu2 }
  0xc0   : > { %v357_v24 = vadd.f32 %v356_v39, %v316_v20  ;;  %v530_v25 = vpop.f32.mrf.mxu3  ;;  %v289_v26 = vpop.f32.mrf.mxu0 }
  0xc1   : > { %v531_v27 = vadd.f32 %v530_v25, %v501_v23  ;;  %v319_v34 = vadd.f32 %v318_v6, %v289_v26 }
  0xc2   : > { %v386_v28 = vadd.f32 %v385_v60, %v357_v24 }
  0xc3   : > { %v540_v29 = vadd.f32 %v531_v27, %v383_v21 }
  0xc6   : > { %v504_v30 = vpop.f32.mrf.mxu1 }
  0xc7   : > { %v359_v19 = vpop.f32.mrf.mxu2 }
  0xc8   : > { %v360_v31 = vadd.f32 %v359_v19, %v319_v34  ;;  %v533_v56 = vpop.f32.mrf.mxu3 }
  0xc9   : > { %v534_v32 = vadd.f32 %v533_v56, %v504_v30 }
  0xca   : > { %v389_v33 = vadd.f32 %v388_v36, %v360_v31 }
  0xcb   : > { %v2523_v35 = vadd.f32 %v534_v32, %v386_v28 }
  0xce   : > { %v507_v37 = vpop.f32.mrf.mxu1 }
  0xcf   : > { %v602_v38 = vpop.f32.mrf.mxu0  ;;  %v631_v41 = vpop.f32.mrf.mxu2 }
  0xd0   : > { %v536_v40 = vpop.f32.mrf.mxu3  ;;  %v632_v8 = vadd.f32 %v631_v41, %v602_v38 }
  0xd1   : > { %v537_v42 = vadd.f32 %v536_v40, %v507_v37 }
  0xd2   : > { %v643_v13 = vadd.f32 %v632_v8, %v539_v22 }
  0xd3   : > { %v2525_v43 = vadd.f32 %v537_v42, %v389_v33 }
  0xd6   : > { %v753_v45 = vpop.f32.mrf.mxu1 }
  0xd7   : > { %v605_v44 = vpop.f32.mrf.mxu0  ;;  %v634_v46 = vpop.f32.mrf.mxu2 }
  0xd8   : > { %v782_v47 = vpop.f32.mrf.mxu3  ;;  %v635_v18 = vadd.f32 %v634_v46, %v605_v44 }
  0xd9   : > { %v783_v9 = vadd.f32 %v782_v47, %v753_v45 }
  0xda   : > { %v644_v34 = vadd.f32 %v635_v18, %v540_v29 }
  0xdb   : > { %v794_v16 = vadd.f32 %v783_v9, %v643_v13 }
  0xde   : > { %v756_v49 = vpop.f32.mrf.mxu1 }
  0xdf   : > { %v608_v48 = vpop.f32.mrf.mxu0  ;;  %v637_v50 = vpop.f32.mrf.mxu2 }
  0xe0   : > { %v785_v14 = vpop.f32.mrf.mxu3  ;;  %v638_v32 = vadd.f32 %v637_v50, %v608_v48 }
  0xe1   : > { %v786_v39 = vadd.f32 %v785_v14, %v756_v49 }
  0xe2   : > { %v645_v45 = vadd.f32 %v638_v32, %v2523_v35 }
  0xe3   : > { %v795_v22 = vadd.f32 %v786_v39, %v644_v34 }
  0xe6   : > { %v759_v52 = vpop.f32.mrf.mxu1 }
  0xe7   : > { %v2527_v51 = vpop.f32.mrf.mxu0  ;;  %v2529_v53 = vpop.f32.mrf.mxu2 }
  0xe8   : > { %v788_v55 = vpop.f32.mrf.mxu3  ;;  %v641_v48 = vadd.f32 %v2529_v53, %v2527_v51 }
  0xe9   : > { %v789_v38 = vadd.f32 %v788_v55, %v759_v52 }
  0xea   : > { %v646_v35 = vadd.f32 %v641_v48, %v2525_v43 }
  0xeb   : > { %v796_v14 = vadd.f32 %v789_v38, %v645_v45 }
  0xee   : > { %v2531_v57 = vpop.f32.mrf.mxu1 }
  0xef   : > { %v904_v58 = vpop.f32.mrf.mxu0  ;;  %v933_v60 = vpop.f32.mrf.mxu2 }
  0xf0   : > { %v2533_v59 = vpop.f32.mrf.mxu3  ;;  %v934_v15 = vadd.f32 %v933_v60, %v904_v58 }
  0xf1   : > { %v792_v52 = vadd.f32 %v2533_v59, %v2531_v57 }
  0xf2   : > { %v945_v20 = vadd.f32 %v934_v15, %v794_v16 }
  0xf6   : > { %v1008_v62 = vpop.f32.mrf.mxu1 }
  0xf7   : > { %v907_v61 = vpop.f32.mrf.mxu0  ;;  %v936_v54 = vpop.f32.mrf.mxu2 }
  0xf8   : > { %v1037_v63 = vpop.f32.mrf.mxu3  ;;  %v937_v28 = vadd.f32 %v936_v54, %v907_v61 }
  0xf9   : > { %v1038_v17 = vadd.f32 %v1037_v63, %v1008_v62 }
  0xfa   : > { %v946_v33 = vadd.f32 %v937_v28, %v795_v22 }
  0xfb   : > { %v1049_v23 = vadd.f32 %v1038_v17, %v945_v20 }
  0xfe   : > { %v1011_v1 = vpop.f32.mrf.mxu1 }
  0xff   : > { %v910_v0 = vpop.f32.mrf.mxu0  ;;  %v939_v2 = vpop.f32.mrf.mxu2 }
 0x100   : > { %v1040_v4 = vpop.f32.mrf.mxu3  ;;  %v940_v46 = vadd.f32 %v939_v2, %v910_v0 }
 0x101   : > { %v1041_v31 = vadd.f32 %v1040_v4, %v1011_v1 }
 0x102   : > { %v947_v50 = vadd.f32 %v940_v46, %v796_v14 }
 0x103   : > { %v1050_v40 = vadd.f32 %v1041_v31, %v946_v33 }
 0x106   : > { %v1014_v6 = vpop.f32.mrf.mxu1 }
 0x107   : > { %v913_v5 = vpop.f32.mrf.mxu0  ;;  %v942_v7 = vpop.f32.mrf.mxu2 }
 0x108   : > { %v1043_v36 = vpop.f32.mrf.mxu3  ;;  %v943_v63 = vadd.f32 %v942_v7, %v913_v5 }
 0x109   : > { %v1044_v58 = vadd.f32 %v1043_v36, %v1014_v6  ;;  %v797_v6 = vadd.f32 %v792_v52, %v646_v35 }
 0x10b   : > { %v1051_v55 = vadd.f32 %v1044_v58, %v947_v50  ;;  %v948_v36 = vadd.f32 %v943_v63, %v797_v6 }
 0x10e   : > { %v1017_v10 = vpop.f32.mrf.mxu1 }
 0x10f   : > { %v1159_v3 = vpop.f32.mrf.mxu0  ;;  %v1188_v12 = vpop.f32.mrf.mxu2 }
 0x110   : > { %v1046_v11 = vpop.f32.mrf.mxu3  ;;  %v1189_v21 = vadd.f32 %v1188_v12, %v1159_v3 }
 0x111   : > { %v1047_v51 = vadd.f32 %v1046_v11, %v1017_v10 }
 0x112   : > { %v1200_v19 = vadd.f32 %v1189_v21, %v1049_v23 }
 0x113   : > { %v1052_v9 = vadd.f32 %v1047_v51, %v948_v36 }
 0x116   : > { %v1310_v25 = vpop.f32.mrf.mxu1 }
 0x117   : > { %v1162_v24 = vpop.f32.mrf.mxu0  ;;  %v1191_v26 = vpop.f32.mrf.mxu2 }
 0x118   : > { %v1339_v27 = vpop.f32.mrf.mxu3  ;;  %v1192_v37 = vadd.f32 %v1191_v26, %v1162_v24 }
 0x119   : > { %v1340_v30 = vadd.f32 %v1339_v27, %v1310_v25 }
 0x11a   : > { %v1201_v47 = vadd.f32 %v1192_v37, %v1050_v40 }
 0x11b   : > { %v1351_v56 = vadd.f32 %v1340_v30, %v1200_v19 }
 0x11d   : > { %1355 = vst [vmem:[%s2539_s26] sm:$0xff] %v1351_v56 }
 0x11e   : > { %v1313_v41 = vpop.f32.mrf.mxu1 }
 0x11f   : > { %v1165_v29 = vpop.f32.mrf.mxu0  ;;  %v1194_v42 = vpop.f32.mrf.mxu2 }
 0x120   : > { %v1342_v44 = vpop.f32.mrf.mxu3  ;;  %v1195_v61 = vadd.f32 %v1194_v42, %v1165_v29 }
 0x121   : > { %v1343_v49 = vadd.f32 %v1342_v44, %v1313_v41 }
 0x122   : > { %v1202_v0 = vadd.f32 %v1195_v61, %v1051_v55 }
 0x123   : > { %v1352_v60 = vadd.f32 %v1343_v49, %v1201_v47 }
 0x125   : > { %1356 = vst [vmem:[%s2539_s26 + $0x8] sm:$0xff] %v1352_v60 }
 0x126   : > { %v1316_v62 = vpop.f32.mrf.mxu1 }
 0x127   : > { %v1168_v2 = vpop.f32.mrf.mxu0  ;;  %v1197_v4 = vpop.f32.mrf.mxu2 }
 0x128   : > { %v1345_v54 = vpop.f32.mrf.mxu3  ;;  %v1198_v8 = vadd.f32 %v1197_v4, %v1168_v2 }
 0x129   : > { %v1346_v1 = vadd.f32 %v1345_v54, %v1316_v62 }
 0x12a   : > { %v1203_v59 = vadd.f32 %v1198_v8, %v1052_v9 }
 0x12b   : > { %v1353_v53 = vadd.f32 %v1346_v1, %v1202_v0 }
 0x12d   : > { %1357 = vst [vmem:[%s2539_s26 + $0x10] sm:$0xff] %v1353_v53 }
 0x12e   : > { %v1319_v3 = vpop.f32.mrf.mxu1 }
 0x130   : > { %v1348_v57 = vpop.f32.mrf.mxu3 }
 0x131   : > { %v1349_v12 = vadd.f32 %v1348_v57, %v1319_v3 }
 0x133   : > { %v1354_v13 = vadd.f32 %v1349_v12, %v1203_v59 }
 0x135   : > { %1358 = vst [vmem:[%s2539_s26 + $0x18] sm:$0xff] %v1354_v13 }
 0x136 PF: > { %s12_s9 = sadd.s32 1, %s1716_s9  }
 0x137   : > { %p9_p4 = scmp.ge.s32.totalorder %s12_s9, 4  }
 0x139   :  { %11 = sbr.rel (!%p9_p4) target bundleno = 1 (0x1), region = 68 }

// kernel: mutifuse_forward.9
= control target key start
LH: loop header
LB: loop body
LE: loop exit
PB: predicated region body
PF: predicated region fallthrough
CT: control target
= control target key end

     0   :  { %s1019_s13 = smov 0   ;;  %s1021_s14 = smov 0   ;;  %s1106_s0 = inlined_call_operand.vmem [shape: f32[2,8,256], index: 0, kind: input, shape index: {}]   ;;  %s1107_s1 = inlined_call_operand.vmem [shape: f32[2,8,256], index: 1, kind: input, shape index: {}]   ;;  %s1108_s2 = inlined_call_operand.vmem [shape: f32[2,16,256], index: 2, kind: input, shape index: {}]   ;;  %s1109_s3 = inlined_call_operand.vmem [shape: f32[2,16,1], index: 3, kind: input, shape index: {}]   ;;  %s1110_s4 = inlined_call_operand.vmem [shape: f32[2,1,256], index: 4, kind: input, shape index: {}]   ;;  %s1111_s5 = inlined_call_operand.vmem [shape: f32[8,1], index: 5, kind: input, shape index: {}]   ;;  %s1112_s6 = inlined_call_operand.vmem [shape: f32[8,1], index: 6, kind: input, shape index: {}]   ;;  %s1113_s7 = inlined_call_operand.vmem [shape: f32[8,8], index: 7, kind: input, shape index: {}]   ;;  %s1114_s8 = inlined_call_operand.vmem [shape: f32[8,8], index: 8, kind: input, shape index: {}]   ;;  %s1115_s9 = inlined_call_operand.vmem [shape: f32[8,1], index: 9, kind: input, shape index: {}]   ;;  %s1116_s10 = inlined_call_operand.vmem [shape: f32[2,8,256], index: 10, kind: output, shape index: {}]  }
   0x1   :  { %s1023_s15 = smov 0  }
   0x2 LB: > { %s32_s16 = sadd.s32 1, %s957_s14  ;;  %p878_p0 = scmp.ge.s32.totalorder %s961_s15, 1  ;;  %s961_s15 = sphi %s1023_s15, %s20_s15   ;;  %s957_s14 = sphi %s1021_s14, %s1122_s14   ;;  %s953_s13 = sphi %s1019_s13, %s1121_s13  }
   0x3   : > { %p34_p1 = scmp.ge.s32.totalorder %s32_s16, 2  ;;  %p393_p2 = scmp.lt.s32.totalorder %s961_s15, 3 }
   0x5   : > { %s1124_s16 = smov (%p34_p1, %s32_s16), 0  ;;  %p394_p3 = pnand %p878_p0, %p393_p2 }
   0x6   : > { %p471_p4 = scmp.lt.s32.totalorder (!%p394_p3), %s953_s13, 1 }
   0x7   : > { %397 = sbr.rel (%p394_p3) target bundleno = 282 (0x11a), region = 60 }
   0xc   : > { %v528_v0 = vld [vmem:[%s1111_s5] sm:$0xff]  ;;  %v963_v1 = vmov 0   ;;  %s1126_s13 = smov (!%p471_p4, %s953_s13), 1  ;;  %vm625_vm0 = vcmask 64512  }
   0xd   : > { %928 = vset.pattern.permute.xlu0 %v963_v1  ;;  %929 = vset.pattern.permute.xlu1 %v963_v1  ;;  %v529_v2 = vld [vmem:[%s1112_s6] sm:$0xff]  ;;  %s1046_s21 = sshll.u32 %s1126_s13, 4  ;;  %s887_s17 = sshll.u32 %s1126_s13, 1 }
   0xe   : > { %534 = vperm.xlu1 %929, %v528_v0   ;;  %930 = vset.pattern.permute.xlu2 %v963_v1  ;;  %s504_s24 = scalar_lea.vmem %s1109_s3, %s1046_s21  ;;  %v539_v4 = vmul.f32 2.0, %v529_v2  ;;  %s478_s27 = scalar_lea.vmem %s1106_s0, %s1046_s21  ;;  %v712_v10 = vld [vmem:[%s1115_s9] sm:$0xff] }
   0xf   : > { %v585_v3 = vld [vmem:[%s504_s24] sm:$0xff]  ;;  %v586_v5 = vld [vmem:[%s504_s24 + $0x8] sm:$0xff]  ;;  %s488_s30 = scalar_lea.vmem %s1107_s1, %s1046_s21  ;;  %715 = vperm.xlu2 %930, %v712_v10   ;;  %s512_s20 = scalar_lea.vmem %s1110_s4, %s887_s17 }
  0x10   : > { %594 = vperm.xlu0 %928, %v585_v3   ;;  %v524_v6 = vld [vmem:[%s478_s27] sm:$0xff]  ;;  %v525_v7 = vld [vmem:[%s478_s27 + $0x8] sm:$0xff]  ;;  %s900_s22 = sshll.u32 %s1126_s13, 5  ;;  %s522_s11 = scalar_lea.vmem %s1116_s10, %s1046_s21 }
  0x11   : > { %v526_v8 = vld [vmem:[%s488_s30] sm:$0xff]  ;;  %v527_v9 = vld [vmem:[%s488_s30 + $0x8] sm:$0xff]  ;;  %s498_s25 = scalar_lea.vmem %s1108_s2, %s900_s22 }
  0x12   : > { %v530_v11 = vadd.f32 %v526_v8, %v524_v6  ;;  %v531_v12 = vadd.f32 %v527_v9, %v525_v7  ;;  %v587_v13 = vld [vmem:[%s512_s20] sm:$0x3]  ;;  %v589_v20 = vld [vmem:[%s498_s25 + $0x8] sm:$0xff]  ;;  %v590_v31 = vld [vmem:[%s498_s25 + $0x10] sm:$0xff] }
  0x13   : > { %v607_v14 = vperm.slane %v587_v13, 0  ;;  %v608_v15 = vperm.slane %v587_v13, 1  ;;  %v588_v19 = vld [vmem:[%s498_s25] sm:$0xff]  ;;  %v591_v32 = vld [vmem:[%s498_s25 + $0x18] sm:$0xff] }
  0x14   : > { %v623_v27 = vld [vmem:[%s1113_s7] sm:$0xff] }
  0x15   : > { %v624_v39 = vld [vmem:[%s1114_s8] sm:$0xff] }
  0x16   : > { %542 = vperm.xlu1 %929, %v539_v4  }
  0x18   : > { %601 = vperm.xlu0 %928, %v586_v5  }
  0x80   : > { %v535_v40 = vpop.permute.xlu1 %534 }
  0x81   : > { %v537_v41 = vmul.f32 %v535_v40, %v530_v11  ;;  %v538_v42 = vmul.f32 %v535_v40, %v531_v12 }
  0x82   : > { %v595_v16 = vpop.permute.xlu0 %594 }
  0x83   : > { %v597_v17 = vmul.f32 %v595_v16, %v524_v6  ;;  %v598_v18 = vmul.f32 %v595_v16, %v525_v7 }
  0x85   : > { %v611_v21 = vmul.f32 %v607_v14, %v597_v17  ;;  %v612_v22 = vmul.f32 %v608_v15, %v598_v18 }
  0x87   : > { %v613_v23 = vmul.f32 %v611_v21, %v588_v19  ;;  %v614_v24 = vmul.f32 %v612_v22, %v589_v20 }
  0x88   : > { %v543_v43 = vpop.permute.xlu1 %542 }
  0x89   : > { %v615_v25 = vmul.f32 %v613_v23, %v524_v6  ;;  %v616_v26 = vmul.f32 %v614_v24, %v525_v7  ;;  %v545_v44 = vadd.f32 %v543_v43, %v537_v41  ;;  %v546_v45 = vadd.f32 %v543_v43, %v538_v42  ;;  %v716_v6 = vpop.permute.xlu2 %715 }
  0x8a   : > { %v602_v28 = vpop.permute.xlu0 %601 }
  0x8b   : > { %v604_v29 = vmul.f32 %v602_v28, %v526_v8  ;;  %v605_v30 = vmul.f32 %v602_v28, %v527_v9  ;;  %687 = vmatpush.msra.mxu2 %v615_v25  ;;  %707 = vmatpush.msra.mxu3 %v616_v26  ;;  %v890_v46 = vmul.f32 -1.442695, %v545_v44  ;;  %v891_v47 = vmul.f32 -1.442695, %v546_v45 }
  0x8c   : > { %894 = vmatmul.msk.f32.vlgmr.msra.gmra.mxu2 %vm625_vm0, %v623_v27  ;;  %895 = vmatmul.msk.f32.vlgmr.msra.gmra.mxu3 %vm625_vm0, %v623_v27 }
  0x8d   : > { %v617_v33 = vmul.f32 %v607_v14, %v604_v29  ;;  %v618_v34 = vmul.f32 %v608_v15, %v605_v30  ;;  %931 = vpow2.f32 %v890_v46 }
  0x8e   : > { %933 = vpow2.f32 %v891_v47 }
  0x8f   : > { %v619_v35 = vmul.f32 %v617_v33, %v590_v31  ;;  %v620_v36 = vmul.f32 %v618_v34, %v591_v32 }
  0x91   : > { %v621_v37 = vmul.f32 %v619_v35, %v526_v8  ;;  %v622_v38 = vmul.f32 %v620_v36, %v527_v9 }
  0x93   : > { %644 = vmatpush.msra.mxu0 %v621_v37  ;;  %664 = vmatpush.msra.mxu1 %v622_v38  ;;  %v932_v48 = vpop.eup %931 }
  0x94   : > { %892 = vmatmul.msk.f32.vlgmr.msra.gmra.mxu0 %vm625_vm0, %v624_v39  ;;  %893 = vmatmul.msk.f32.vlgmr.msra.gmra.mxu1 %vm625_vm0, %v624_v39  ;;  %v934_v49 = vpop.eup %933  ;;  %v553_v50 = vadd.f32 1.0, %v932_v48 }
  0x95   : > { %v554_v51 = vadd.f32 1.0, %v934_v49 }
  0x96   : > { %935 = vrcp.f32 %v553_v50  ;;  %vm560_vm1 = vweird.f32 %v553_v50  ;;  %v564_v61 = vand.u32 2147483647, %v553_v50  ;;  %v566_v62 = vand.u32 2147483648, %v553_v50 }
  0x97   : > { %937 = vrcp.f32 %v554_v51  ;;  %vm575_vm3 = vweird.f32 %v554_v51  ;;  %v581_v63 = vand.u32 2147483648, %v554_v51  ;;  %v579_v2 = vand.u32 2147483647, %v554_v51 }
  0x98   : > { %vm565_vm7 = vcmp.eq.f32.partialorder %v564_v61, 8.507059e+37  ;;  %v567_v10 = vor.u32 1.1754944e-38, %v566_v62 }
  0x99   : > { %v582_v11 = vor.u32 1.1754944e-38, %v581_v63  ;;  %vm580_vm8 = vcmp.eq.f32.partialorder %v579_v2, 8.507059e+37 }
  0x9c   : > { %v936_v52 = vpop.eup %935 }
  0x9d   : > { %v938_v53 = vpop.eup %937  ;;  %v556_v54 = vmul.f32 %v936_v52, %v553_v50  ;;  %vm561_vm2 = vweird.f32 %v936_v52 }
  0x9e   : > { %v571_v55 = vmul.f32 %v938_v53, %v554_v51  ;;  %vm576_vm4 = vweird.f32 %v938_v53  ;;  %vm1081_vm5 = vmor %vm560_vm1, %vm561_vm2 }
  0x9f   : > { %v557_v56 = vsub.f32 1.0, %v556_v54  ;;  %vm1085_vm6 = vmor %vm575_vm3, %vm576_vm4 }
  0xa0   : > { %v572_v57 = vsub.f32 1.0, %v571_v55 }
  0xa1   : > { %v558_v58 = vmul.f32 %v936_v52, %v557_v56 }
  0xa2   : > { %v573_v59 = vmul.f32 %v938_v53, %v572_v57 }
  0xa3   : > { %v559_v60 = vadd.f32 %v936_v52, %v558_v58 }
  0xa4   : > { %v574_v1 = vadd.f32 %v938_v53, %v573_v59 }
  0xa5   : > { %v563_v9 = vsel %vm1081_vm5, %v936_v52, %v559_v60 }
  0xa6   : > { %v578_v14 = vsel %vm1085_vm6, %v938_v53, %v574_v1  ;;  %v568_v17 = vsel %vm565_vm7, %v567_v10, %v563_v9 }
  0xa7   : > { %v583_v18 = vsel %vm580_vm8, %v582_v11, %v578_v14 }
 0x10f   : > { %v689_v3 = vpop.f32.mrf.mxu2  ;;  %v709_v4 = vpop.f32.mrf.mxu3 }
 0x111   : > { %v646_v7 = vpop.f32.mrf.mxu0  ;;  %v666_v8 = vpop.f32.mrf.mxu1 }
 0x112   : > { %v690_v12 = vadd.f32 %v689_v3, %v646_v7  ;;  %v710_v13 = vadd.f32 %v709_v4, %v666_v8 }
 0x114   : > { %v718_v15 = vadd.f32 %v716_v6, %v690_v12  ;;  %v719_v16 = vadd.f32 %v716_v6, %v710_v13 }
 0x116   : > { %v720_v19 = vmul.f32 %v718_v15, %v568_v17  ;;  %v721_v20 = vmul.f32 %v719_v16, %v583_v18 }
 0x118   : > { %722 = vst [vmem:[%s522_s11] sm:$0xff] %v720_v19 }
 0x119   : > { %723 = vst [vmem:[%s522_s11 + $0x8] sm:$0xff] %v721_v20 }
 0x11a PF: > { %s20_s15 = sadd.s32 1, %s961_s15   ;;  %s1121_s13 = smov %s957_s14 }
 0x11b   : > { %p17_p5 = scmp.ge.s32.totalorder %s20_s15, 4   ;;  %s1122_s14 = smov %s1124_s16 }
 0x11d   :  { %19 = sbr.rel (!%p17_p5) target bundleno = 2 (0x2), region = 102 }

</bundles_post_ra>
